<compile_context>
chip_gen: v7x
topology: tpu7x:2x2x1
jax: 0.10.0
libtpu: 0.0.40
codegen_flags: <defaults>
</compile_context>

<pallas_src>
import functools

import jax
import jax.numpy as jnp
from jax.experimental import pallas as pl
from jax.experimental.pallas import tpu as pltpu

LANE = 128  # lane-dense channel padding (unmasked vst on the output store)


def _round_up(x, m):
    return ((x + m - 1) // m) * m


def _pick_row_tile(hout, wout, m_target=1024):
    """Largest divisor of hout whose (rows * wout) output tile stays <= m_target."""
    max_rows = max(1, m_target // max(wout, 1))
    th = 1
    for cand in range(1, hout + 1):
        if hout % cand == 0 and cand <= max_rows:
            th = cand
    return th


# ---------------------------------------------------------------------------
# Kernels: implicit-GEMM conv (+ folded BN, + fused shortcut / residual / ReLU)
# ---------------------------------------------------------------------------

def _accum_taps(x_ref, w_ref, row0, taps, th, wout):
    """sum_t  window_t(x) @ w[t]  with an f32 value accumulator (no scratch RMW)."""
    cin = x_ref.shape[-1]
    m = th * wout
    acc = None
    for t, (dy, dx) in enumerate(taps):
        # rows [row0+dy, row0+dy+th), cols [dx, dx+wout), all channels
        win = x_ref[pl.ds(row0 + dy, th), dx:dx + wout, :]
        part = jnp.dot(win.reshape(m, cin), w_ref[t],
                       preferred_element_type=jnp.float32)
        acc = part if acc is None else acc + part
    return acc


def _conv_bn_act_kernel(x_ref, w_ref, scale_ref, shift_ref, o_ref, *,
                        taps, th, wout, relu):
    """out = act((conv(x) ) * scale + shift)   -- used for conv1."""
    row0 = pl.program_id(1) * th
    cout = o_ref.shape[-1]
    y = _accum_taps(x_ref, w_ref, row0, taps, th, wout)
    y = y * scale_ref[...] + shift_ref[...]
    if relu:
        y = jnp.maximum(y, 0.0)
    o_ref[...] = y.reshape(th, wout, cout).astype(o_ref.dtype)


def _conv_bn_add_relu_kernel(x_ref, w_ref, scale_ref, shift_ref, res_ref, o_ref,
                             *, taps, th, wout):
    """out = ReLU(conv(x)*scale + shift + residual)   -- conv2, identity shortcut."""
    row0 = pl.program_id(1) * th
    cout = o_ref.shape[-1]
    m = th * wout
    y = _accum_taps(x_ref, w_ref, row0, taps, th, wout)
    y = y * scale_ref[...] + shift_ref[...]
    y = y + res_ref[...].reshape(m, cout).astype(jnp.float32)
    o_ref[...] = jnp.maximum(y, 0.0).reshape(th, wout, cout).astype(o_ref.dtype)


def _conv_bn_proj_relu_kernel(x_ref, w_ref, scale_ref, shift_ref,
                              xsc_ref, w3_ref, scale3_ref, shift3_ref, o_ref,
                              *, taps, th, wout):
    """out = ReLU(conv(x)*s2 + b2 + (x_sc @ w3)*s3 + b3) -- conv2 + fused conv3."""
    row0 = pl.program_id(1) * th
    cout = o_ref.shape[-1]
    csc = xsc_ref.shape[-1]
    m = th * wout
    y = _accum_taps(x_ref, w_ref, row0, taps, th, wout)
    y = y * scale_ref[...] + shift_ref[...]
    sc = jnp.dot(xsc_ref[...].reshape(m, csc), w3_ref[...],
                 preferred_element_type=jnp.float32)
    sc = sc * scale3_ref[...] + shift3_ref[...]
    o_ref[...] = jnp.maximum(y + sc, 0.0).reshape(th, wout, cout).astype(o_ref.dtype)


# ---------------------------------------------------------------------------
# pallas_call wrapper (one call per fused conv layer)
# ---------------------------------------------------------------------------

def _conv_pallas(x_img, w_taps, scale, shift, *, taps, hout, wout,
                 relu=True, residual=None, proj=None, out_dtype=jnp.float32):
    """Implicit-GEMM multi-tap stride-1 conv + folded BN (+ fused shortcut).

    x_img:   (N, Hp, Wp, Cin_p)  bf16 padded (and possibly space-to-depth'd) image
    w_taps:  (T, Cin_p, Cout_p)  bf16
    scale/shift: (1, Cout_p)     f32 folded BatchNorm affine
    residual: (N, hout, wout, Cout_p) bf16 (identity shortcut) or None
    proj:     (x_sc, w3, scale3, shift3) for the fused 1x1 projection, or None
    """
    N, Hp, Wp, cin_p = x_img.shape
    T, _, cout_p = w_taps.shape
    assert len(taps) == T

    th = _pick_row_tile(hout, wout)
    grid = (N, hout // th)

    in_specs = [
        # Full padded image per batch element; resident across all row blocks.
        pl.BlockSpec((None, Hp, Wp, cin_p), lambda n, r: (n, 0, 0, 0)),
        # Full weight tensor, resident for the whole grid.
        pl.BlockSpec((T, cin_p, cout_p), lambda n, r: (0, 0, 0)),
        pl.BlockSpec((1, cout_p), lambda n, r: (0, 0)),
        pl.BlockSpec((1, cout_p), lambda n, r: (0, 0)),
    ]
    operands = [x_img, w_taps, scale, shift]

    if residual is not None:
        in_specs.append(
            pl.BlockSpec((None, th, wout, cout_p), lambda n, r: (n, r, 0, 0)))
        operands.append(residual)
        kernel = functools.partial(_conv_bn_add_relu_kernel,
                                   taps=taps, th=th, wout=wout)
    elif proj is not None:
        x_sc, w3, scale3, shift3 = proj
        csc_p = x_sc.shape[-1]
        in_specs += [
            pl.BlockSpec((None, th, wout, csc_p), lambda n, r: (n, r, 0, 0)),
            pl.BlockSpec((csc_p, cout_p), lambda n, r: (0, 0)),
            pl.BlockSpec((1, cout_p), lambda n, r: (0, 0)),
            pl.BlockSpec((1, cout_p), lambda n, r: (0, 0)),
        ]
        operands += [x_sc, w3, scale3, shift3]
        kernel = functools.partial(_conv_bn_proj_relu_kernel,
                                   taps=taps, th=th, wout=wout)
    else:
        kernel = functools.partial(_conv_bn_act_kernel,
                                   taps=taps, th=th, wout=wout, relu=relu)

    return pl.pallas_call(
        kernel,
        out_shape=jax.ShapeDtypeStruct((N, hout, wout, cout_p), out_dtype),
        grid=grid,
        in_specs=in_specs,
        out_specs=pl.BlockSpec((None, th, wout, cout_p), lambda n, r: (n, r, 0, 0)),
        compiler_params=pltpu.CompilerParams(
            dimension_semantics=("parallel", "parallel"),
            vmem_limit_bytes=32 * 1024 * 1024,   # safe on v5e/v6e and v7x (64 MiB)
        ),
    )(*operands)


# ---------------------------------------------------------------------------
# Wrapper-side parameter / input preparation (pure XLA, single-pass relayouts)
# ---------------------------------------------------------------------------

def _fold_bn(layer, eps, cout_p):
    scale = layer["g"] / jnp.sqrt(layer["v"] + eps)
    shift = layer["b"] - layer["m"] * scale
    pad = cout_p - scale.shape[0]
    scale = jnp.pad(scale, (0, pad)).reshape(1, cout_p).astype(jnp.float32)
    shift = jnp.pad(shift, (0, pad)).reshape(1, cout_p).astype(jnp.float32)
    return scale, shift


def _prep_w3x3(w, cin_p, cout_p):
    """(Cout, Cin, 3, 3) torch layout -> (9, Cin_p, Cout_p) bf16, tap = dy*3+dx."""
    cout, cin = w.shape[0], w.shape[1]
    wt = jnp.transpose(w, (2, 3, 1, 0)).reshape(9, cin, cout)
    wt = jnp.pad(wt, ((0, 0), (0, cin_p - cin), (0, cout_p - cout)))
    return wt.astype(jnp.bfloat16)


def _prep_w3x3_s2d(w, s, cin_blk_p, cout_p):
    """Rearranged weights for the stride-s 3x3 conv expressed as a stride-1
    conv over the space-to-depth (block s) input."""
    cout, cin = w.shape[0], w.shape[1]
    kq = -(-3 // s)                                       # taps per axis
    wt = jnp.transpose(w, (2, 3, 1, 0))                   # (3,3,Cin,Cout)
    wt = jnp.pad(wt, ((0, kq * s - 3), (0, kq * s - 3), (0, 0), (0, 0)))
    wt = wt.reshape(kq, s, kq, s, cin, cout)              # (ay,p,ax,q,Cin,Cout)
    wt = jnp.transpose(wt, (0, 2, 1, 3, 4, 5)).reshape(kq * kq, s * s * cin, cout)
    wt = jnp.pad(wt, ((0, 0), (0, cin_blk_p - s * s * cin), (0, cout_p - cout)))
    return wt.astype(jnp.bfloat16)


def _space_to_depth(x, s):
    """NHWC -> (N, ceil(H/s), ceil(W/s), s*s*C) with channel order (p, q, c)."""
    N, H, W, C = x.shape
    Hq, Wq = -(-H // s), -(-W // s)
    x = jnp.pad(x, ((0, 0), (0, Hq * s - H), (0, Wq * s - W), (0, 0)))
    x = x.reshape(N, Hq, s, Wq, s, C)
    x = jnp.transpose(x, (0, 1, 3, 2, 4, 5)).reshape(N, Hq, Wq, s * s * C)
    return x


# ---------------------------------------------------------------------------
# Block forward (matches nets/nn.py::Block.forward in eval mode)
# ---------------------------------------------------------------------------

def block_forward(x_nchw, params, *, s, eps=1e-3):
    N, in_ch, H, W = x_nchw.shape
    w1 = params["conv1"]["w"]
    w2 = params["conv2"]["w"]
    out_ch = w1.shape[0]
    add = (s != 1) or (in_ch != out_ch)

    hout = (H - 1) // s + 1
    wout = (W - 1) // s + 1
    cout_p = _round_up(out_ch, LANE)

    x_nhwc = jnp.transpose(x_nchw, (0, 2, 3, 1)).astype(jnp.bfloat16)

    # ---- conv1: 3x3 stride s + BN + ReLU (implicit GEMM, bf16 output) ----
    scale1, shift1 = _fold_bn(params["conv1"], eps, cout_p)
    xp = jnp.pad(x_nhwc, ((0, 0), (1, 1), (1, 1), (0, 0)))     # spatial halo
    if s == 1:
        cin_p = _round_up(in_ch, LANE)
        x1 = jnp.pad(xp, ((0, 0), (0, 0), (0, 0), (0, cin_p - in_ch)))
        w1t = _prep_w3x3(w1, cin_p, cout_p)
        taps1 = [(dy, dx) for dy in range(3) for dx in range(3)]
    else:
        # stride-s conv == stride-1 conv over the space-to-depth image
        xs = _space_to_depth(xp, s)
        cin_blk = xs.shape[-1]
        cin_p = _round_up(cin_blk, LANE)
        x1 = jnp.pad(xs, ((0, 0), (0, 0), (0, 0), (0, cin_p - cin_blk)))
        w1t = _prep_w3x3_s2d(w1, s, cin_p, cout_p)
        kq = -(-3 // s)
        taps1 = [(dy, dx) for dy in range(kq) for dx in range(kq)]

    y1 = _conv_pallas(x1, w1t, scale1, shift1, taps=taps1, hout=hout, wout=wout,
                      relu=True, out_dtype=jnp.bfloat16)

    # ---- conv2: 3x3 stride 1 + BN, fused shortcut + residual add + ReLU ----
    scale2, shift2 = _fold_bn(params["conv2"], eps, cout_p)
    y1p = jnp.pad(y1, ((0, 0), (1, 1), (1, 1), (0, 0)))
    w2t = _prep_w3x3(w2, cout_p, cout_p)
    taps2 = [(dy, dx) for dy in range(3) for dx in range(3)]

    if add:
        # 1x1 stride-s projection shortcut fused into the conv2 epilogue.
        w3 = params["conv3"]["w"]
        csc_p = _round_up(in_ch, LANE)
        x_sc = x_nhwc[:, ::s, ::s, :]                     # exactly the 1x1/s taps
        x_sc = jnp.pad(x_sc, ((0, 0), (0, 0), (0, 0), (0, csc_p - in_ch)))
        w3t = jnp.pad(jnp.transpose(w3.reshape(out_ch, in_ch), (1, 0)),
                      ((0, csc_p - in_ch), (0, cout_p - out_ch))).astype(jnp.bfloat16)
        scale3, shift3 = _fold_bn(params["conv3"], eps, cout_p)
        out = _conv_pallas(y1p, w2t, scale2, shift2, taps=taps2, hout=hout,
                           wout=wout, proj=(x_sc, w3t, scale3, shift3),
                           out_dtype=jnp.float32)
    else:
        res = jnp.pad(x_nhwc, ((0, 0), (0, 0), (0, 0), (0, cout_p - in_ch)))
        out = _conv_pallas(y1p, w2t, scale2, shift2, taps=taps2, hout=hout,
                           wout=wout, residual=res, out_dtype=jnp.float32)

    out = out[:, :, :, :out_ch]
    return jnp.transpose(out, (0, 3, 1, 2))


# ---------------------------------------------------------------------------
# Pure-JAX reference (f32)
# ---------------------------------------------------------------------------

def _conv_bn_ref(x, layer, *, s, p, eps):
    y = jax.lax.conv_general_dilated(
        x, layer["w"], window_strides=(s, s), padding=[(p, p), (p, p)],
        dimension_numbers=("NCHW", "OIHW", "NCHW"))
    scale = (layer["g"] / jnp.sqrt(layer["v"] + eps)).reshape(1, -1, 1, 1)
    shift = (layer["b"] - layer["m"] * layer["g"]
             / jnp.sqrt(layer["v"] + eps)).reshape(1, -1, 1, 1)
    return y * scale + shift


def _block_ref(x, params, *, s, eps=1e-3):
    in_ch = x.shape[1]
    out_ch = params["conv1"]["w"].shape[0]
    add = (s != 1) or (in_ch != out_ch)
    y = jax.nn.relu(_conv_bn_ref(x, params["conv1"], s=s, p=1, eps=eps))
    y = _conv_bn_ref(y, params["conv2"], s=1, p=1, eps=eps)
    if add:
        x = _conv_bn_ref(x, params["conv3"], s=s, p=0, eps=eps)
    return jax.nn.relu(x + y)


# ---------------------------------------------------------------------------
# Demo / correctness check
# ---------------------------------------------------------------------------

if __name__ == "__main__":
    EPS = 1e-3   # BatchNorm2d(out_ch, 0.001, 0.03) -> eps = 0.001

    def init_layer(key, cout, cin, k):
        kw, kg, kb, km, kv = jax.random.split(key, 5)
        return {
            "w": 0.1 * jax.random.normal(kw, (cout, cin, k, k), jnp.float32),
            "g": 1.0 + 0.1 * jax.random.normal(kg, (cout,), jnp.float32),
            "b": 0.1 * jax.random.normal(kb, (cout,), jnp.float32),
            "m": 0.1 * jax.random.normal(km, (cout,), jnp.float32),
            "v": jax.random.uniform(kv, (cout,), jnp.float32, 0.5, 1.5),
        }

    def init_block(key, in_ch, out_ch, s):
        k1, k2, k3 = jax.random.split(key, 3)
        params = {"conv1": init_layer(k1, out_ch, in_ch, 3),
                  "conv2": init_layer(k2, out_ch, out_ch, 3)}
        if s != 1 or in_ch != out_ch:
            params["conv3"] = init_layer(k3, out_ch, in_ch, 1)
        return params

    N, H, W = 2, 16, 16
    cases = [
        (4, 8, 1),   # projection shortcut (1x1 conv3), stride 1
        (8, 8, 1),   # identity shortcut
        (4, 8, 2),   # strided block (conv1 / conv3 stride 2)
    ]

    key = jax.random.PRNGKey(0)
    for (in_ch, out_ch, s) in cases:
        key, kp, kx = jax.random.split(key, 3)
        params = init_block(kp, in_ch, out_ch, s)
        x = jax.random.normal(kx, (N, in_ch, H, W), jnp.float32)

        fwd = jax.jit(functools.partial(block_forward, s=s, eps=EPS))
        out = jax.block_until_ready(fwd(x, params))

        ref = _block_ref(x, params, s=s, eps=EPS)
        H_out = (H + 2 - 3) // s + 1
        assert out.shape == (N, out_ch, H_out, H_out), out.shape
        max_err = float(jnp.max(jnp.abs(out - ref)))
        assert jnp.allclose(out, ref, atol=5e-2, rtol=5e-2), max_err

    print("KERNEL_OK")
</pallas_src>

<mosaic_0001>
module attributes {stable_mosaic.version = 11 : i64} {
  func.func @_conv_bn_act_kernel(%arg0: i32, %arg1: i32, %arg2: memref<1x18x18x128xbf16, #tpu.memory_space<vmem>>, %arg3: memref<9x128x128xbf16, #tpu.memory_space<vmem>>, %arg4: memref<1x128xf32, #tpu.memory_space<vmem>>, %arg5: memref<1x128xf32, #tpu.memory_space<vmem>>, %arg6: memref<1x16x16x128xbf16, #tpu.memory_space<vmem>>) attributes {dimension_semantics = [#tpu.dimension_semantics<parallel>, #tpu.dimension_semantics<parallel>], iteration_bounds = array<i64: 2, 1>, scalar_prefetch = 0 : i64, scratch_operands = 0 : i64, tpu.core_type = #tpu.core_type<tc>, window_params = [{transform_indices = @transform_0, window_bounds = array<i64: 1, 18, 18, 128>}, {pipeline_mode = #tpu.pipeline_mode<synchronous>, transform_indices = @transform_1, window_bounds = array<i64: 9, 128, 128>}, {pipeline_mode = #tpu.pipeline_mode<synchronous>, transform_indices = @transform_2, window_bounds = array<i64: 1, 128>}, {pipeline_mode = #tpu.pipeline_mode<synchronous>, transform_indices = @transform_3, window_bounds = array<i64: 1, 128>}, {transform_indices = @transform_4, window_bounds = array<i64: 1, 16, 16, 128>}]} {
    %c16_i32 = arith.constant 16 : i32
    %0 = arith.muli %arg1, %c16_i32 : i32
    %c0_i32 = arith.constant 0 : i32
    %1 = arith.addi %0, %c0_i32 : i32
    %c0 = arith.constant 0 : index
    %2 = arith.index_cast %1 : i32 to index
    %c0_0 = arith.constant 0 : index
    %c0_1 = arith.constant 0 : index
    %3 = vector.load %arg2[%c0, %2, %c0_0, %c0_1] : memref<1x18x18x128xbf16, #tpu.memory_space<vmem>>, vector<1x16x16x128xbf16>
    %4 = vector.shape_cast %3 : vector<1x16x16x128xbf16> to vector<16x16x128xbf16>
    %5 = vector.shape_cast %4 : vector<16x16x128xbf16> to vector<256x128xbf16>
    %c0_2 = arith.constant 0 : index
    %c0_3 = arith.constant 0 : index
    %c0_4 = arith.constant 0 : index
    %6 = vector.load %arg3[%c0_2, %c0_3, %c0_4] : memref<9x128x128xbf16, #tpu.memory_space<vmem>>, vector<1x128x128xbf16>
    %7 = vector.shape_cast %6 : vector<1x128x128xbf16> to vector<128x128xbf16>
    %cst = arith.constant dense<0.000000e+00> : vector<256x128xf32>
    %8 = tpu.matmul %5, %7, %cst {dimension_numbers = #tpu.dot_dimension_numbers<[1], [0], [0], [1], [0, 0, 1, 1], [], []>} : vector<256x128xbf16>, vector<128x128xbf16>, vector<256x128xf32> -> vector<256x128xf32>
    %c0_i32_5 = arith.constant 0 : i32
    %9 = arith.addi %0, %c0_i32_5 : i32
    %c0_6 = arith.constant 0 : index
    %10 = arith.index_cast %9 : i32 to index
    %c1 = arith.constant 1 : index
    %c0_7 = arith.constant 0 : index
    %11 = vector.load %arg2[%c0_6, %10, %c1, %c0_7] : memref<1x18x18x128xbf16, #tpu.memory_space<vmem>>, vector<1x16x16x128xbf16>
    %12 = vector.shape_cast %11 : vector<1x16x16x128xbf16> to vector<16x16x128xbf16>
    %13 = vector.shape_cast %12 : vector<16x16x128xbf16> to vector<256x128xbf16>
    %c1_8 = arith.constant 1 : index
    %c0_9 = arith.constant 0 : index
    %c0_10 = arith.constant 0 : index
    %14 = vector.load %arg3[%c1_8, %c0_9, %c0_10] : memref<9x128x128xbf16, #tpu.memory_space<vmem>>, vector<1x128x128xbf16>
    %15 = vector.shape_cast %14 : vector<1x128x128xbf16> to vector<128x128xbf16>
    %cst_11 = arith.constant dense<0.000000e+00> : vector<256x128xf32>
    %16 = tpu.matmul %13, %15, %cst_11 {dimension_numbers = #tpu.dot_dimension_numbers<[1], [0], [0], [1], [0, 0, 1, 1], [], []>} : vector<256x128xbf16>, vector<128x128xbf16>, vector<256x128xf32> -> vector<256x128xf32>
    %17 = arith.addf %8, %16 : vector<256x128xf32>
    %c0_i32_12 = arith.constant 0 : i32
    %18 = arith.addi %0, %c0_i32_12 : i32
    %c0_13 = arith.constant 0 : index
    %19 = arith.index_cast %18 : i32 to index
    %c2 = arith.constant 2 : index
    %c0_14 = arith.constant 0 : index
    %20 = vector.load %arg2[%c0_13, %19, %c2, %c0_14] : memref<1x18x18x128xbf16, #tpu.memory_space<vmem>>, vector<1x16x16x128xbf16>
    %21 = vector.shape_cast %20 : vector<1x16x16x128xbf16> to vector<16x16x128xbf16>
    %22 = vector.shape_cast %21 : vector<16x16x128xbf16> to vector<256x128xbf16>
    %c2_15 = arith.constant 2 : index
    %c0_16 = arith.constant 0 : index
    %c0_17 = arith.constant 0 : index
    %23 = vector.load %arg3[%c2_15, %c0_16, %c0_17] : memref<9x128x128xbf16, #tpu.memory_space<vmem>>, vector<1x128x128xbf16>
    %24 = vector.shape_cast %23 : vector<1x128x128xbf16> to vector<128x128xbf16>
    %cst_18 = arith.constant dense<0.000000e+00> : vector<256x128xf32>
    %25 = tpu.matmul %22, %24, %cst_18 {dimension_numbers = #tpu.dot_dimension_numbers<[1], [0], [0], [1], [0, 0, 1, 1], [], []>} : vector<256x128xbf16>, vector<128x128xbf16>, vector<256x128xf32> -> vector<256x128xf32>
    %26 = arith.addf %17, %25 : vector<256x128xf32>
    %c1_i32 = arith.constant 1 : i32
    %27 = arith.addi %0, %c1_i32 : i32
    %c0_19 = arith.constant 0 : index
    %28 = arith.index_cast %27 : i32 to index
    %c0_20 = arith.constant 0 : index
    %c0_21 = arith.constant 0 : index
    %29 = vector.load %arg2[%c0_19, %28, %c0_20, %c0_21] : memref<1x18x18x128xbf16, #tpu.memory_space<vmem>>, vector<1x16x16x128xbf16>
    %30 = vector.shape_cast %29 : vector<1x16x16x128xbf16> to vector<16x16x128xbf16>
    %31 = vector.shape_cast %30 : vector<16x16x128xbf16> to vector<256x128xbf16>
    %c3 = arith.constant 3 : index
    %c0_22 = arith.constant 0 : index
    %c0_23 = arith.constant 0 : index
    %32 = vector.load %arg3[%c3, %c0_22, %c0_23] : memref<9x128x128xbf16, #tpu.memory_space<vmem>>, vector<1x128x128xbf16>
    %33 = vector.shape_cast %32 : vector<1x128x128xbf16> to vector<128x128xbf16>
    %cst_24 = arith.constant dense<0.000000e+00> : vector<256x128xf32>
    %34 = tpu.matmul %31, %33, %cst_24 {dimension_numbers = #tpu.dot_dimension_numbers<[1], [0], [0], [1], [0, 0, 1, 1], [], []>} : vector<256x128xbf16>, vector<128x128xbf16>, vector<256x128xf32> -> vector<256x128xf32>
    %35 = arith.addf %26, %34 : vector<256x128xf32>
    %c1_i32_25 = arith.constant 1 : i32
    %36 = arith.addi %0, %c1_i32_25 : i32
    %c0_26 = arith.constant 0 : index
    %37 = arith.index_cast %36 : i32 to index
    %c1_27 = arith.constant 1 : index
    %c0_28 = arith.constant 0 : index
    %38 = vector.load %arg2[%c0_26, %37, %c1_27, %c0_28] : memref<1x18x18x128xbf16, #tpu.memory_space<vmem>>, vector<1x16x16x128xbf16>
    %39 = vector.shape_cast %38 : vector<1x16x16x128xbf16> to vector<16x16x128xbf16>
    %40 = vector.shape_cast %39 : vector<16x16x128xbf16> to vector<256x128xbf16>
    %c4 = arith.constant 4 : index
    %c0_29 = arith.constant 0 : index
    %c0_30 = arith.constant 0 : index
    %41 = vector.load %arg3[%c4, %c0_29, %c0_30] : memref<9x128x128xbf16, #tpu.memory_space<vmem>>, vector<1x128x128xbf16>
    %42 = vector.shape_cast %41 : vector<1x128x128xbf16> to vector<128x128xbf16>
    %cst_31 = arith.constant dense<0.000000e+00> : vector<256x128xf32>
    %43 = tpu.matmul %40, %42, %cst_31 {dimension_numbers = #tpu.dot_dimension_numbers<[1], [0], [0], [1], [0, 0, 1, 1], [], []>} : vector<256x128xbf16>, vector<128x128xbf16>, vector<256x128xf32> -> vector<256x128xf32>
    %44 = arith.addf %35, %43 : vector<256x128xf32>
    %c1_i32_32 = arith.constant 1 : i32
    %45 = arith.addi %0, %c1_i32_32 : i32
    %c0_33 = arith.constant 0 : index
    %46 = arith.index_cast %45 : i32 to index
    %c2_34 = arith.constant 2 : index
    %c0_35 = arith.constant 0 : index
    %47 = vector.load %arg2[%c0_33, %46, %c2_34, %c0_35] : memref<1x18x18x128xbf16, #tpu.memory_space<vmem>>, vector<1x16x16x128xbf16>
    %48 = vector.shape_cast %47 : vector<1x16x16x128xbf16> to vector<16x16x128xbf16>
    %49 = vector.shape_cast %48 : vector<16x16x128xbf16> to vector<256x128xbf16>
    %c5 = arith.constant 5 : index
    %c0_36 = arith.constant 0 : index
    %c0_37 = arith.constant 0 : index
    %50 = vector.load %arg3[%c5, %c0_36, %c0_37] : memref<9x128x128xbf16, #tpu.memory_space<vmem>>, vector<1x128x128xbf16>
    %51 = vector.shape_cast %50 : vector<1x128x128xbf16> to vector<128x128xbf16>
    %cst_38 = arith.constant dense<0.000000e+00> : vector<256x128xf32>
    %52 = tpu.matmul %49, %51, %cst_38 {dimension_numbers = #tpu.dot_dimension_numbers<[1], [0], [0], [1], [0, 0, 1, 1], [], []>} : vector<256x128xbf16>, vector<128x128xbf16>, vector<256x128xf32> -> vector<256x128xf32>
    %53 = arith.addf %44, %52 : vector<256x128xf32>
    %c2_i32 = arith.constant 2 : i32
    %54 = arith.addi %0, %c2_i32 : i32
    %c0_39 = arith.constant 0 : index
    %55 = arith.index_cast %54 : i32 to index
    %c0_40 = arith.constant 0 : index
    %c0_41 = arith.constant 0 : index
    %56 = vector.load %arg2[%c0_39, %55, %c0_40, %c0_41] : memref<1x18x18x128xbf16, #tpu.memory_space<vmem>>, vector<1x16x16x128xbf16>
    %57 = vector.shape_cast %56 : vector<1x16x16x128xbf16> to vector<16x16x128xbf16>
    %58 = vector.shape_cast %57 : vector<16x16x128xbf16> to vector<256x128xbf16>
    %c6 = arith.constant 6 : index
    %c0_42 = arith.constant 0 : index
    %c0_43 = arith.constant 0 : index
    %59 = vector.load %arg3[%c6, %c0_42, %c0_43] : memref<9x128x128xbf16, #tpu.memory_space<vmem>>, vector<1x128x128xbf16>
    %60 = vector.shape_cast %59 : vector<1x128x128xbf16> to vector<128x128xbf16>
    %cst_44 = arith.constant dense<0.000000e+00> : vector<256x128xf32>
    %61 = tpu.matmul %58, %60, %cst_44 {dimension_numbers = #tpu.dot_dimension_numbers<[1], [0], [0], [1], [0, 0, 1, 1], [], []>} : vector<256x128xbf16>, vector<128x128xbf16>, vector<256x128xf32> -> vector<256x128xf32>
    %62 = arith.addf %53, %61 : vector<256x128xf32>
    %c2_i32_45 = arith.constant 2 : i32
    %63 = arith.addi %0, %c2_i32_45 : i32
    %c0_46 = arith.constant 0 : index
    %64 = arith.index_cast %63 : i32 to index
    %c1_47 = arith.constant 1 : index
    %c0_48 = arith.constant 0 : index
    %65 = vector.load %arg2[%c0_46, %64, %c1_47, %c0_48] : memref<1x18x18x128xbf16, #tpu.memory_space<vmem>>, vector<1x16x16x128xbf16>
    %66 = vector.shape_cast %65 : vector<1x16x16x128xbf16> to vector<16x16x128xbf16>
    %67 = vector.shape_cast %66 : vector<16x16x128xbf16> to vector<256x128xbf16>
    %c7 = arith.constant 7 : index
    %c0_49 = arith.constant 0 : index
    %c0_50 = arith.constant 0 : index
    %68 = vector.load %arg3[%c7, %c0_49, %c0_50] : memref<9x128x128xbf16, #tpu.memory_space<vmem>>, vector<1x128x128xbf16>
    %69 = vector.shape_cast %68 : vector<1x128x128xbf16> to vector<128x128xbf16>
    %cst_51 = arith.constant dense<0.000000e+00> : vector<256x128xf32>
    %70 = tpu.matmul %67, %69, %cst_51 {dimension_numbers = #tpu.dot_dimension_numbers<[1], [0], [0], [1], [0, 0, 1, 1], [], []>} : vector<256x128xbf16>, vector<128x128xbf16>, vector<256x128xf32> -> vector<256x128xf32>
    %71 = arith.addf %62, %70 : vector<256x128xf32>
    %c2_i32_52 = arith.constant 2 : i32
    %72 = arith.addi %0, %c2_i32_52 : i32
    %c0_53 = arith.constant 0 : index
    %73 = arith.index_cast %72 : i32 to index
    %c2_54 = arith.constant 2 : index
    %c0_55 = arith.constant 0 : index
    %74 = vector.load %arg2[%c0_53, %73, %c2_54, %c0_55] : memref<1x18x18x128xbf16, #tpu.memory_space<vmem>>, vector<1x16x16x128xbf16>
    %75 = vector.shape_cast %74 : vector<1x16x16x128xbf16> to vector<16x16x128xbf16>
    %76 = vector.shape_cast %75 : vector<16x16x128xbf16> to vector<256x128xbf16>
    %c8 = arith.constant 8 : index
    %c0_56 = arith.constant 0 : index
    %c0_57 = arith.constant 0 : index
    %77 = vector.load %arg3[%c8, %c0_56, %c0_57] : memref<9x128x128xbf16, #tpu.memory_space<vmem>>, vector<1x128x128xbf16>
    %78 = vector.shape_cast %77 : vector<1x128x128xbf16> to vector<128x128xbf16>
    %cst_58 = arith.constant dense<0.000000e+00> : vector<256x128xf32>
    %79 = tpu.matmul %76, %78, %cst_58 {dimension_numbers = #tpu.dot_dimension_numbers<[1], [0], [0], [1], [0, 0, 1, 1], [], []>} : vector<256x128xbf16>, vector<128x128xbf16>, vector<256x128xf32> -> vector<256x128xf32>
    %80 = arith.addf %71, %79 : vector<256x128xf32>
    %c0_59 = arith.constant 0 : index
    %c0_60 = arith.constant 0 : index
    %81 = vector.load %arg4[%c0_59, %c0_60] : memref<1x128xf32, #tpu.memory_space<vmem>>, vector<1x128xf32>
    %82 = vector.broadcast %81 : vector<1x128xf32> to vector<256x128xf32>
    %83 = arith.mulf %80, %82 : vector<256x128xf32>
    %c0_61 = arith.constant 0 : index
    %c0_62 = arith.constant 0 : index
    %84 = vector.load %arg5[%c0_61, %c0_62] : memref<1x128xf32, #tpu.memory_space<vmem>>, vector<1x128xf32>
    %85 = vector.broadcast %84 : vector<1x128xf32> to vector<256x128xf32>
    %86 = arith.addf %83, %85 : vector<256x128xf32>
    %cst_63 = arith.constant 0.000000e+00 : f32
    %87 = vector.broadcast %cst_63 : f32 to vector<256x128xf32>
    %88 = arith.maximumf %86, %87 : vector<256x128xf32>
    %89 = vector.shape_cast %88 : vector<256x128xf32> to vector<16x16x128xf32>
    %90 = arith.truncf %89 : vector<16x16x128xf32> to vector<16x16x128xbf16>
    %c0_64 = arith.constant 0 : index
    %c0_65 = arith.constant 0 : index
    %c0_66 = arith.constant 0 : index
    %c0_67 = arith.constant 0 : index
    %91 = vector.load %arg6[%c0_64, %c0_65, %c0_66, %c0_67] : memref<1x16x16x128xbf16, #tpu.memory_space<vmem>>, vector<1x16x16x128xbf16>
    %92 = vector.shape_cast %91 : vector<1x16x16x128xbf16> to vector<16x16x128xbf16>
    %93 = vector.shape_cast %90 : vector<16x16x128xbf16> to vector<1x16x16x128xbf16>
    tpu.vector_store %arg6[%c0_64, %c0_65, %c0_66, %c0_67], %93 {strides = array<i32>} : memref<1x16x16x128xbf16, #tpu.memory_space<vmem>>, vector<1x16x16x128xbf16>,
    return
  }
  func.func @transform_0(%arg0: i32, %arg1: i32) -> (i32, i32, i32, i32) {
    %c0_i32 = arith.constant 0 : i32
    %c0_i32_0 = arith.constant 0 : i32
    %c0_i32_1 = arith.constant 0 : i32
    %c0_i32_2 = arith.constant 0 : i32
    return %arg0, %c0_i32, %c0_i32_0, %c0_i32_1 : i32, i32, i32, i32
  }
  func.func @transform_1(%arg0: i32, %arg1: i32) -> (i32, i32, i32) {
    %c0_i32 = arith.constant 0 : i32
    %c0_i32_0 = arith.constant 0 : i32
    %c0_i32_1 = arith.constant 0 : i32
    %c0_i32_2 = arith.constant 0 : i32
    return %c0_i32, %c0_i32_0, %c0_i32_1 : i32, i32, i32
  }
  func.func @transform_2(%arg0: i32, %arg1: i32) -> (i32, i32) {
    %c0_i32 = arith.constant 0 : i32
    %c0_i32_0 = arith.constant 0 : i32
    %c0_i32_1 = arith.constant 0 : i32
    return %c0_i32, %c0_i32_0 : i32, i32
  }
  func.func @transform_3(%arg0: i32, %arg1: i32) -> (i32, i32) {
    %c0_i32 = arith.constant 0 : i32
    %c0_i32_0 = arith.constant 0 : i32
    %c0_i32_1 = arith.constant 0 : i32
    return %c0_i32, %c0_i32_0 : i32, i32
  }
  func.func @transform_4(%arg0: i32, %arg1: i32) -> (i32, i32, i32, i32) {
    %c0_i32 = arith.constant 0 : i32
    %c0_i32_0 = arith.constant 0 : i32
    %c0_i32_1 = arith.constant 0 : i32
    return %arg0, %arg1, %c0_i32, %c0_i32_0 : i32, i32, i32, i32
  }
}

module attributes {stable_mosaic.version = 11 : i64} {
  func.func @_conv_bn_proj_relu_kernel(%arg0: i32, %arg1: i32, %arg2: memref<1x18x18x128xbf16, #tpu.memory_space<vmem>>, %arg3: memref<9x128x128xbf16, #tpu.memory_space<vmem>>, %arg4: memref<1x128xf32, #tpu.memory_space<vmem>>, %arg5: memref<1x128xf32, #tpu.memory_space<vmem>>, %arg6: memref<1x16x16x128xbf16, #tpu.memory_space<vmem>>, %arg7: memref<128x128xbf16, #tpu.memory_space<vmem>>, %arg8: memref<1x128xf32, #tpu.memory_space<vmem>>, %arg9: memref<1x128xf32, #tpu.memory_space<vmem>>, %arg10: memref<1x16x16x128xf32, #tpu.memory_space<vmem>>) attributes {dimension_semantics = [#tpu.dimension_semantics<parallel>, #tpu.dimension_semantics<parallel>], iteration_bounds = array<i64: 2, 1>, scalar_prefetch = 0 : i64, scratch_operands = 0 : i64, tpu.core_type = #tpu.core_type<tc>, window_params = [{transform_indices = @transform_0, window_bounds = array<i64: 1, 18, 18, 128>}, {pipeline_mode = #tpu.pipeline_mode<synchronous>, transform_indices = @transform_1, window_bounds = array<i64: 9, 128, 128>}, {pipeline_mode = #tpu.pipeline_mode<synchronous>, transform_indices = @transform_2, window_bounds = array<i64: 1, 128>}, {pipeline_mode = #tpu.pipeline_mode<synchronous>, transform_indices = @transform_3, window_bounds = array<i64: 1, 128>}, {transform_indices = @transform_4, window_bounds = array<i64: 1, 16, 16, 128>}, {pipeline_mode = #tpu.pipeline_mode<synchronous>, transform_indices = @transform_5, window_bounds = array<i64: 128, 128>}, {pipeline_mode = #tpu.pipeline_mode<synchronous>, transform_indices = @transform_6, window_bounds = array<i64: 1, 128>}, {pipeline_mode = #tpu.pipeline_mode<synchronous>, transform_indices = @transform_7, window_bounds = array<i64: 1, 128>}, {transform_indices = @transform_8, window_bounds = array<i64: 1, 16, 16, 128>}]} {
    %c16_i32 = arith.constant 16 : i32
    %0 = arith.muli %arg1, %c16_i32 : i32
    %c0_i32 = arith.constant 0 : i32
    %1 = arith.addi %0, %c0_i32 : i32
    %c0 = arith.constant 0 : index
    %2 = arith.index_cast %1 : i32 to index
    %c0_0 = arith.constant 0 : index
    %c0_1 = arith.constant 0 : index
    %3 = vector.load %arg2[%c0, %2, %c0_0, %c0_1] : memref<1x18x18x128xbf16, #tpu.memory_space<vmem>>, vector<1x16x16x128xbf16>
    %4 = vector.shape_cast %3 : vector<1x16x16x128xbf16> to vector<16x16x128xbf16>
    %5 = vector.shape_cast %4 : vector<16x16x128xbf16> to vector<256x128xbf16>
    %c0_2 = arith.constant 0 : index
    %c0_3 = arith.constant 0 : index
    %c0_4 = arith.constant 0 : index
    %6 = vector.load %arg3[%c0_2, %c0_3, %c0_4] : memref<9x128x128xbf16, #tpu.memory_space<vmem>>, vector<1x128x128xbf16>
    %7 = vector.shape_cast %6 : vector<1x128x128xbf16> to vector<128x128xbf16>
    %cst = arith.constant dense<0.000000e+00> : vector<256x128xf32>
    %8 = tpu.matmul %5, %7, %cst {dimension_numbers = #tpu.dot_dimension_numbers<[1], [0], [0], [1], [0, 0, 1, 1], [], []>} : vector<256x128xbf16>, vector<128x128xbf16>, vector<256x128xf32> -> vector<256x128xf32>
    %c0_i32_5 = arith.constant 0 : i32
    %9 = arith.addi %0, %c0_i32_5 : i32
    %c0_6 = arith.constant 0 : index
    %10 = arith.index_cast %9 : i32 to index
    %c1 = arith.constant 1 : index
    %c0_7 = arith.constant 0 : index
    %11 = vector.load %arg2[%c0_6, %10, %c1, %c0_7] : memref<1x18x18x128xbf16, #tpu.memory_space<vmem>>, vector<1x16x16x128xbf16>
    %12 = vector.shape_cast %11 : vector<1x16x16x128xbf16> to vector<16x16x128xbf16>
    %13 = vector.shape_cast %12 : vector<16x16x128xbf16> to vector<256x128xbf16>
    %c1_8 = arith.constant 1 : index
    %c0_9 = arith.constant 0 : index
    %c0_10 = arith.constant 0 : index
    %14 = vector.load %arg3[%c1_8, %c0_9, %c0_10] : memref<9x128x128xbf16, #tpu.memory_space<vmem>>, vector<1x128x128xbf16>
    %15 = vector.shape_cast %14 : vector<1x128x128xbf16> to vector<128x128xbf16>
    %cst_11 = arith.constant dense<0.000000e+00> : vector<256x128xf32>
    %16 = tpu.matmul %13, %15, %cst_11 {dimension_numbers = #tpu.dot_dimension_numbers<[1], [0], [0], [1], [0, 0, 1, 1], [], []>} : vector<256x128xbf16>, vector<128x128xbf16>, vector<256x128xf32> -> vector<256x128xf32>
    %17 = arith.addf %8, %16 : vector<256x128xf32>
    %c0_i32_12 = arith.constant 0 : i32
    %18 = arith.addi %0, %c0_i32_12 : i32
    %c0_13 = arith.constant 0 : index
    %19 = arith.index_cast %18 : i32 to index
    %c2 = arith.constant 2 : index
    %c0_14 = arith.constant 0 : index
    %20 = vector.load %arg2[%c0_13, %19, %c2, %c0_14] : memref<1x18x18x128xbf16, #tpu.memory_space<vmem>>, vector<1x16x16x128xbf16>
    %21 = vector.shape_cast %20 : vector<1x16x16x128xbf16> to vector<16x16x128xbf16>
    %22 = vector.shape_cast %21 : vector<16x16x128xbf16> to vector<256x128xbf16>
    %c2_15 = arith.constant 2 : index
    %c0_16 = arith.constant 0 : index
    %c0_17 = arith.constant 0 : index
    %23 = vector.load %arg3[%c2_15, %c0_16, %c0_17] : memref<9x128x128xbf16, #tpu.memory_space<vmem>>, vector<1x128x128xbf16>
    %24 = vector.shape_cast %23 : vector<1x128x128xbf16> to vector<128x128xbf16>
    %cst_18 = arith.constant dense<0.000000e+00> : vector<256x128xf32>
    %25 = tpu.matmul %22, %24, %cst_18 {dimension_numbers = #tpu.dot_dimension_numbers<[1], [0], [0], [1], [0, 0, 1, 1], [], []>} : vector<256x128xbf16>, vector<128x128xbf16>, vector<256x128xf32> -> vector<256x128xf32>
    %26 = arith.addf %17, %25 : vector<256x128xf32>
    %c1_i32 = arith.constant 1 : i32
    %27 = arith.addi %0, %c1_i32 : i32
    %c0_19 = arith.constant 0 : index
    %28 = arith.index_cast %27 : i32 to index
    %c0_20 = arith.constant 0 : index
    %c0_21 = arith.constant 0 : index
    %29 = vector.load %arg2[%c0_19, %28, %c0_20, %c0_21] : memref<1x18x18x128xbf16, #tpu.memory_space<vmem>>, vector<1x16x16x128xbf16>
    %30 = vector.shape_cast %29 : vector<1x16x16x128xbf16> to vector<16x16x128xbf16>
    %31 = vector.shape_cast %30 : vector<16x16x128xbf16> to vector<256x128xbf16>
    %c3 = arith.constant 3 : index
    %c0_22 = arith.constant 0 : index
    %c0_23 = arith.constant 0 : index
    %32 = vector.load %arg3[%c3, %c0_22, %c0_23] : memref<9x128x128xbf16, #tpu.memory_space<vmem>>, vector<1x128x128xbf16>
    %33 = vector.shape_cast %32 : vector<1x128x128xbf16> to vector<128x128xbf16>
    %cst_24 = arith.constant dense<0.000000e+00> : vector<256x128xf32>
    %34 = tpu.matmul %31, %33, %cst_24 {dimension_numbers = #tpu.dot_dimension_numbers<[1], [0], [0], [1], [0, 0, 1, 1], [], []>} : vector<256x128xbf16>, vector<128x128xbf16>, vector<256x128xf32> -> vector<256x128xf32>
    %35 = arith.addf %26, %34 : vector<256x128xf32>
    %c1_i32_25 = arith.constant 1 : i32
    %36 = arith.addi %0, %c1_i32_25 : i32
    %c0_26 = arith.constant 0 : index
    %37 = arith.index_cast %36 : i32 to index
    %c1_27 = arith.constant 1 : index
    %c0_28 = arith.constant 0 : index
    %38 = vector.load %arg2[%c0_26, %37, %c1_27, %c0_28] : memref<1x18x18x128xbf16, #tpu.memory_space<vmem>>, vector<1x16x16x128xbf16>
    %39 = vector.shape_cast %38 : vector<1x16x16x128xbf16> to vector<16x16x128xbf16>
    %40 = vector.shape_cast %39 : vector<16x16x128xbf16> to vector<256x128xbf16>
    %c4 = arith.constant 4 : index
    %c0_29 = arith.constant 0 : index
    %c0_30 = arith.constant 0 : index
    %41 = vector.load %arg3[%c4, %c0_29, %c0_30] : memref<9x128x128xbf16, #tpu.memory_space<vmem>>, vector<1x128x128xbf16>
    %42 = vector.shape_cast %41 : vector<1x128x128xbf16> to vector<128x128xbf16>
    %cst_31 = arith.constant dense<0.000000e+00> : vector<256x128xf32>
    %43 = tpu.matmul %40, %42, %cst_31 {dimension_numbers = #tpu.dot_dimension_numbers<[1], [0], [0], [1], [0, 0, 1, 1], [], []>} : vector<256x128xbf16>, vector<128x128xbf16>, vector<256x128xf32> -> vector<256x128xf32>
    %44 = arith.addf %35, %43 : vector<256x128xf32>
    %c1_i32_32 = arith.constant 1 : i32
    %45 = arith.addi %0, %c1_i32_32 : i32
    %c0_33 = arith.constant 0 : index
    %46 = arith.index_cast %45 : i32 to index
    %c2_34 = arith.constant 2 : index
    %c0_35 = arith.constant 0 : index
    %47 = vector.load %arg2[%c0_33, %46, %c2_34, %c0_35] : memref<1x18x18x128xbf16, #tpu.memory_space<vmem>>, vector<1x16x16x128xbf16>
    %48 = vector.shape_cast %47 : vector<1x16x16x128xbf16> to vector<16x16x128xbf16>
    %49 = vector.shape_cast %48 : vector<16x16x128xbf16> to vector<256x128xbf16>
    %c5 = arith.constant 5 : index
    %c0_36 = arith.constant 0 : index
    %c0_37 = arith.constant 0 : index
    %50 = vector.load %arg3[%c5, %c0_36, %c0_37] : memref<9x128x128xbf16, #tpu.memory_space<vmem>>, vector<1x128x128xbf16>
    %51 = vector.shape_cast %50 : vector<1x128x128xbf16> to vector<128x128xbf16>
    %cst_38 = arith.constant dense<0.000000e+00> : vector<256x128xf32>
    %52 = tpu.matmul %49, %51, %cst_38 {dimension_numbers = #tpu.dot_dimension_numbers<[1], [0], [0], [1], [0, 0, 1, 1], [], []>} : vector<256x128xbf16>, vector<128x128xbf16>, vector<256x128xf32> -> vector<256x128xf32>
    %53 = arith.addf %44, %52 : vector<256x128xf32>
    %c2_i32 = arith.constant 2 : i32
    %54 = arith.addi %0, %c2_i32 : i32
    %c0_39 = arith.constant 0 : index
    %55 = arith.index_cast %54 : i32 to index
    %c0_40 = arith.constant 0 : index
    %c0_41 = arith.constant 0 : index
    %56 = vector.load %arg2[%c0_39, %55, %c0_40, %c0_41] : memref<1x18x18x128xbf16, #tpu.memory_space<vmem>>, vector<1x16x16x128xbf16>
    %57 = vector.shape_cast %56 : vector<1x16x16x128xbf16> to vector<16x16x128xbf16>
    %58 = vector.shape_cast %57 : vector<16x16x128xbf16> to vector<256x128xbf16>
    %c6 = arith.constant 6 : index
    %c0_42 = arith.constant 0 : index
    %c0_43 = arith.constant 0 : index
    %59 = vector.load %arg3[%c6, %c0_42, %c0_43] : memref<9x128x128xbf16, #tpu.memory_space<vmem>>, vector<1x128x128xbf16>
    %60 = vector.shape_cast %59 : vector<1x128x128xbf16> to vector<128x128xbf16>
    %cst_44 = arith.constant dense<0.000000e+00> : vector<256x128xf32>
    %61 = tpu.matmul %58, %60, %cst_44 {dimension_numbers = #tpu.dot_dimension_numbers<[1], [0], [0], [1], [0, 0, 1, 1], [], []>} : vector<256x128xbf16>, vector<128x128xbf16>, vector<256x128xf32> -> vector<256x128xf32>
    %62 = arith.addf %53, %61 : vector<256x128xf32>
    %c2_i32_45 = arith.constant 2 : i32
    %63 = arith.addi %0, %c2_i32_45 : i32
    %c0_46 = arith.constant 0 : index
    %64 = arith.index_cast %63 : i32 to index
    %c1_47 = arith.constant 1 : index
    %c0_48 = arith.constant 0 : index
    %65 = vector.load %arg2[%c0_46, %64, %c1_47, %c0_48] : memref<1x18x18x128xbf16, #tpu.memory_space<vmem>>, vector<1x16x16x128xbf16>
    %66 = vector.shape_cast %65 : vector<1x16x16x128xbf16> to vector<16x16x128xbf16>
    %67 = vector.shape_cast %66 : vector<16x16x128xbf16> to vector<256x128xbf16>
    %c7 = arith.constant 7 : index
    %c0_49 = arith.constant 0 : index
    %c0_50 = arith.constant 0 : index
    %68 = vector.load %arg3[%c7, %c0_49, %c0_50] : memref<9x128x128xbf16, #tpu.memory_space<vmem>>, vector<1x128x128xbf16>
    %69 = vector.shape_cast %68 : vector<1x128x128xbf16> to vector<128x128xbf16>
    %cst_51 = arith.constant dense<0.000000e+00> : vector<256x128xf32>
    %70 = tpu.matmul %67, %69, %cst_51 {dimension_numbers = #tpu.dot_dimension_numbers<[1], [0], [0], [1], [0, 0, 1, 1], [], []>} : vector<256x128xbf16>, vector<128x128xbf16>, vector<256x128xf32> -> vector<256x128xf32>
    %71 = arith.addf %62, %70 : vector<256x128xf32>
    %c2_i32_52 = arith.constant 2 : i32
    %72 = arith.addi %0, %c2_i32_52 : i32
    %c0_53 = arith.constant 0 : index
    %73 = arith.index_cast %72 : i32 to index
    %c2_54 = arith.constant 2 : index
    %c0_55 = arith.constant 0 : index
    %74 = vector.load %arg2[%c0_53, %73, %c2_54, %c0_55] : memref<1x18x18x128xbf16, #tpu.memory_space<vmem>>, vector<1x16x16x128xbf16>
    %75 = vector.shape_cast %74 : vector<1x16x16x128xbf16> to vector<16x16x128xbf16>
    %76 = vector.shape_cast %75 : vector<16x16x128xbf16> to vector<256x128xbf16>
    %c8 = arith.constant 8 : index
    %c0_56 = arith.constant 0 : index
    %c0_57 = arith.constant 0 : index
    %77 = vector.load %arg3[%c8, %c0_56, %c0_57] : memref<9x128x128xbf16, #tpu.memory_space<vmem>>, vector<1x128x128xbf16>
    %78 = vector.shape_cast %77 : vector<1x128x128xbf16> to vector<128x128xbf16>
    %cst_58 = arith.constant dense<0.000000e+00> : vector<256x128xf32>
    %79 = tpu.matmul %76, %78, %cst_58 {dimension_numbers = #tpu.dot_dimension_numbers<[1], [0], [0], [1], [0, 0, 1, 1], [], []>} : vector<256x128xbf16>, vector<128x128xbf16>, vector<256x128xf32> -> vector<256x128xf32>
    %80 = arith.addf %71, %79 : vector<256x128xf32>
    %c0_59 = arith.constant 0 : index
    %c0_60 = arith.constant 0 : index
    %81 = vector.load %arg4[%c0_59, %c0_60] : memref<1x128xf32, #tpu.memory_space<vmem>>, vector<1x128xf32>
    %82 = vector.broadcast %81 : vector<1x128xf32> to vector<256x128xf32>
    %83 = arith.mulf %80, %82 : vector<256x128xf32>
    %c0_61 = arith.constant 0 : index
    %c0_62 = arith.constant 0 : index
    %84 = vector.load %arg5[%c0_61, %c0_62] : memref<1x128xf32, #tpu.memory_space<vmem>>, vector<1x128xf32>
    %85 = vector.broadcast %84 : vector<1x128xf32> to vector<256x128xf32>
    %86 = arith.addf %83, %85 : vector<256x128xf32>
    %c0_63 = arith.constant 0 : index
    %c0_64 = arith.constant 0 : index
    %c0_65 = arith.constant 0 : index
    %c0_66 = arith.constant 0 : index
    %87 = vector.load %arg6[%c0_63, %c0_64, %c0_65, %c0_66] : memref<1x16x16x128xbf16, #tpu.memory_space<vmem>>, vector<1x16x16x128xbf16>
    %88 = vector.shape_cast %87 : vector<1x16x16x128xbf16> to vector<16x16x128xbf16>
    %89 = vector.shape_cast %88 : vector<16x16x128xbf16> to vector<256x128xbf16>
    %c0_67 = arith.constant 0 : index
    %c0_68 = arith.constant 0 : index
    %90 = vector.load %arg7[%c0_67, %c0_68] : memref<128x128xbf16, #tpu.memory_space<vmem>>, vector<128x128xbf16>
    %cst_69 = arith.constant dense<0.000000e+00> : vector<256x128xf32>
    %91 = tpu.matmul %89, %90, %cst_69 {dimension_numbers = #tpu.dot_dimension_numbers<[1], [0], [0], [1], [0, 0, 1, 1], [], []>} : vector<256x128xbf16>, vector<128x128xbf16>, vector<256x128xf32> -> vector<256x128xf32>
    %c0_70 = arith.constant 0 : index
    %c0_71 = arith.constant 0 : index
    %92 = vector.load %arg8[%c0_70, %c0_71] : memref<1x128xf32, #tpu.memory_space<vmem>>, vector<1x128xf32>
    %93 = vector.broadcast %92 : vector<1x128xf32> to vector<256x128xf32>
    %94 = arith.mulf %91, %93 : vector<256x128xf32>
    %c0_72 = arith.constant 0 : index
    %c0_73 = arith.constant 0 : index
    %95 = vector.load %arg9[%c0_72, %c0_73] : memref<1x128xf32, #tpu.memory_space<vmem>>, vector<1x128xf32>
    %96 = vector.broadcast %95 : vector<1x128xf32> to vector<256x128xf32>
    %97 = arith.addf %94, %96 : vector<256x128xf32>
    %98 = arith.addf %86, %97 : vector<256x128xf32>
    %cst_74 = arith.constant 0.000000e+00 : f32
    %99 = vector.broadcast %cst_74 : f32 to vector<256x128xf32>
    %100 = arith.maximumf %98, %99 : vector<256x128xf32>
    %101 = vector.shape_cast %100 : vector<256x128xf32> to vector<16x16x128xf32>
    %c0_75 = arith.constant 0 : index
    %c0_76 = arith.constant 0 : index
    %c0_77 = arith.constant 0 : index
    %c0_78 = arith.constant 0 : index
    %102 = vector.load %arg10[%c0_75, %c0_76, %c0_77, %c0_78] : memref<1x16x16x128xf32, #tpu.memory_space<vmem>>, vector<1x16x16x128xf32>
    %103 = vector.shape_cast %102 : vector<1x16x16x128xf32> to vector<16x16x128xf32>
    %104 = vector.shape_cast %101 : vector<16x16x128xf32> to vector<1x16x16x128xf32>
    tpu.vector_store %arg10[%c0_75, %c0_76, %c0_77, %c0_78], %104 {strides = array<i32>} : memref<1x16x16x128xf32, #tpu.memory_space<vmem>>, vector<1x16x16x128xf32>,
    return
  }
  func.func @transform_0(%arg0: i32, %arg1: i32) -> (i32, i32, i32, i32) {
    %c0_i32 = arith.constant 0 : i32
    %c0_i32_0 = arith.constant 0 : i32
    %c0_i32_1 = arith.constant 0 : i32
    %c0_i32_2 = arith.constant 0 : i32
    return %arg0, %c0_i32, %c0_i32_0, %c0_i32_1 : i32, i32, i32, i32
  }
  func.func @transform_1(%arg0: i32, %arg1: i32) -> (i32, i32, i32) {
    %c0_i32 = arith.constant 0 : i32
    %c0_i32_0 = arith.constant 0 : i32
    %c0_i32_1 = arith.constant 0 : i32
    %c0_i32_2 = arith.constant 0 : i32
    return %c0_i32, %c0_i32_0, %c0_i32_1 : i32, i32, i32
  }
  func.func @transform_2(%arg0: i32, %arg1: i32) -> (i32, i32) {
    %c0_i32 = arith.constant 0 : i32
    %c0_i32_0 = arith.constant 0 : i32
    %c0_i32_1 = arith.constant 0 : i32
    return %c0_i32, %c0_i32_0 : i32, i32
  }
  func.func @transform_3(%arg0: i32, %arg1: i32) -> (i32, i32) {
    %c0_i32 = arith.constant 0 : i32
    %c0_i32_0 = arith.constant 0 : i32
    %c0_i32_1 = arith.constant 0 : i32
    return %c0_i32, %c0_i32_0 : i32, i32
  }
  func.func @transform_4(%arg0: i32, %arg1: i32) -> (i32, i32, i32, i32) {
    %c0_i32 = arith.constant 0 : i32
    %c0_i32_0 = arith.constant 0 : i32
    %c0_i32_1 = arith.constant 0 : i32
    return %arg0, %arg1, %c0_i32, %c0_i32_0 : i32, i32, i32, i32
  }
  func.func @transform_5(%arg0: i32, %arg1: i32) -> (i32, i32) {
    %c0_i32 = arith.constant 0 : i32
    %c0_i32_0 = arith.constant 0 : i32
    %c0_i32_1 = arith.constant 0 : i32
    return %c0_i32, %c0_i32_0 : i32, i32
  }
  func.func @transform_6(%arg0: i32, %arg1: i32) -> (i32, i32) {
    %c0_i32 = arith.constant 0 : i32
    %c0_i32_0 = arith.constant 0 : i32
    %c0_i32_1 = arith.constant 0 : i32
    return %c0_i32, %c0_i32_0 : i32, i32
  }
  func.func @transform_7(%arg0: i32, %arg1: i32) -> (i32, i32) {
    %c0_i32 = arith.constant 0 : i32
    %c0_i32_0 = arith.constant 0 : i32
    %c0_i32_1 = arith.constant 0 : i32
    return %c0_i32, %c0_i32_0 : i32, i32
  }
  func.func @transform_8(%arg0: i32, %arg1: i32) -> (i32, i32, i32, i32) {
    %c0_i32 = arith.constant 0 : i32
    %c0_i32_0 = arith.constant 0 : i32
    %c0_i32_1 = arith.constant 0 : i32
    return %arg0, %arg1, %c0_i32, %c0_i32_0 : i32, i32, i32, i32
  }
}

</mosaic_0001>

<bundles_post_ra>
// kernel: block_forward.2
= control target key start
LH: loop header
LB: loop body
LE: loop exit
PB: predicated region body
PF: predicated region fallthrough
CT: control target
= control target key end

     0   :  { %s7350_s15 = smov 0   ;;  %s7352_s16 = smov 0   ;;  %s9252_s0 = inlined_call_operand.vmem [shape: bf16[2,18,18,128], index: 0, kind: input, shape index: {}]   ;;  %s9253_s1 = inlined_call_operand.vmem [shape: bf16[9,128,128], index: 1, kind: input, shape index: {}]   ;;  %s9254_s2 = inlined_call_operand.vmem [shape: f32[1,128], index: 2, kind: input, shape index: {}]   ;;  %s9255_s3 = inlined_call_operand.vmem [shape: f32[1,128], index: 3, kind: input, shape index: {}]   ;;  %s9256_s4 = inlined_call_operand.vmem [shape: bf16[2,16,16,128], index: 4, kind: output, shape index: {}]  }
   0x1   :  { %s7354_s17 = smov 0  }
   0x2 LB: > { %s26_s18 = sadd.s32 1, %s7319_s16  ;;  %p5414_p0 = scmp.ge.s32.totalorder %s7323_s17, 1  ;;  %s7323_s17 = sphi %s7354_s17, %s14_s17   ;;  %s7319_s16 = sphi %s7352_s16, %s9324_s16   ;;  %s7315_s15 = sphi %s7350_s15, %s9323_s15  }
   0x3   : > { %p28_p1 = scmp.ge.s32.totalorder %s26_s18, 2  ;;  %p176_p2 = scmp.lt.s32.totalorder %s7323_s17, 3 }
   0x5   : > { %s9326_s18 = smov (%p28_p1, %s26_s18), 0  ;;  %p177_p3 = pnand %p5414_p0, %p176_p2 }
   0x7   : > { %180 = sbr.rel (%p177_p3) target bundleno = 592 (0x250), region = 36 }
   0xe   : > { %v7111_v0 = vld [vmem:[%s9253_s1 + $0x40] sm:$0xff]   ;;  %p207_p4 = scmp.lt.s32.totalorder %s7315_s15, 1  ;;  %v7113_v2 = vld [vmem:[%s9253_s1 + $0x48] sm:$0xff]   ;;  %v7115_v4 = vld [vmem:[%s9253_s1 + $0x50] sm:$0xff]   ;;  %vm292_vm0 = vsmask.f32 3328 }
   0xf   : > { %v7112_v1 = vld [vmem:[%s9253_s1 + $0x100] sm:$0xff]   ;;  %6382 = vmatprep.subr.bf16.mxu1 %v7111_v0  ;;  %v7114_v3 = vld [vmem:[%s9253_s1 + $0x108] sm:$0xff]   ;;  %v7116_v5 = vld [vmem:[%s9253_s1 + $0x110] sm:$0xff]   ;;  %vm293_vm1 = vsmask.f32 7440  ;;  %vm1322_vm3 = vcmask 1042432  }
  0x10   : > { %6574 = vmatprep.subr.bf16.mxu0 %v7112_v1  ;;  %6383 = vmatpush3.bf16.msra.mxu1 %v7111_v0  ;;  %s9328_s15 = smov (!%p207_p4, %s7315_s15), 1  ;;  %v7117_v6 = vld [vmem:[%s9253_s1 + $0x58] sm:$0xff]   ;;  %v7119_v8 = vld [vmem:[%s9253_s1 + $0x60] sm:$0xff]   ;;  %v7121_v10 = vld [vmem:[%s9253_s1 + $0x68] sm:$0xff]   ;;  %vm1323_vm4 = vcmask 1046532  }
  0x11   : > { %6575 = vmatpush3.bf16.msra.mxu0 %v7112_v1  ;;  %6384 = vmatprep.subr.bf16.mxu1 %v7113_v2  ;;  %v7118_v7 = vld [vmem:[%s9253_s1 + $0x118] sm:$0xff]   ;;  %s7086_s9 = smul.u32 216, %s9328_s15  ;;  %v7120_v9 = vld [vmem:[%s9253_s1 + $0x120] sm:$0xff]   ;;  %v7122_v11 = vld [vmem:[%s9253_s1 + $0x128] sm:$0xff]   ;;  %s6038_s12 = sshll.u32 %s9328_s15, 7 }
  0x12   : > { %6576 = vmatprep.subr.bf16.mxu0 %v7114_v3  ;;  %v7123_v25 = vld [vmem:[%s9253_s1 + $0x70] sm:$0xff]   ;;  %v7125_v36 = vld [vmem:[%s9253_s1 + $0x78] sm:$0xff]   ;;  %vm7436_vm2 = vmor %vm292_vm0, %vm293_vm1  ;;  %s9164_s19 = scalar_lea.vmem %s9256_s4, %s6038_s12 }
  0x13   : > { %s7404_s20 = scalar_lea.vmem %s9252_s0, %s7086_s9  ;;  %v7124_v30 = vld [vmem:[%s9253_s1 + $0x130] sm:$0xff]   ;;  %v7126_v51 = vld [vmem:[%s9253_s1 + $0x138] sm:$0xff]   ;;  %vm7682_vm5 = vmor %vm1322_vm3, %vm1323_vm4 }
  0x14   : > { %6385 = vmatpush3.bf16.msra.mxu1 %v7113_v2  ;;  %v228_v12 = vld [vmem:[%s7404_s20] sm:$0xf]  ;;  %v229_v13 = vld [vmem:[%s7404_s20 + $0x4] sm:$0xf]  ;;  %v276_v14 = vld [vmem:[%s7404_s20 + $0x8] sm:$0x1] }
  0x15   : > { %6577 = vmatpush3.bf16.msra.mxu0 %v7114_v3  ;;  %6386 = vmatprep.subr.bf16.mxu1 %v7115_v4  ;;  %v296_v15 = vshrl.u32 %v228_v12, 16  ;;  %v299_v16 = vshll.u32 %v228_v12, 16  ;;  %v305_v17 = vshll.u32 %v229_v13, 16  ;;  %v309_v18 = vshrl.u32 %v229_v13, 16  ;;  %v5610_v20 = vld [vmem:[%s7404_s20 + $0xc] sm:$0xf] }
  0x16   : > { %6578 = vmatprep.subr.bf16.mxu0 %v7116_v5  ;;  %v315_v19 = vshll.u32 %v276_v14, 16  ;;  %v7417_v23 = vld [vmem:[%s7404_s20 + $0x10] sm:$0xf]  ;;  %v7420_v24 = vld [vmem:[%s7404_s20 + $0x14] sm:$0x1]  ;;  %v2198_v29 = vshrl.u32 %v5610_v20, 16 }
  0x17   : > { %v298_v21 = vrot.slane %v296_v15, 4  ;;  %v301_v22 = vrot.slane %v299_v16, 5  ;;  %v307_v26 = vrot.slane %v305_v17, 5  ;;  %v311_v27 = vrot.slane %v309_v18, 4  ;;  %v230_v35 = vld [vmem:[%s7404_s20 + $0xc] sm:$0xf] }
  0x18   : > { %6387 = vmatpush3.bf16.msra.mxu1 %v7115_v4  ;;  %v317_v28 = vrot.slane %v315_v19, 5  ;;  %v2201_v32 = vshll.u32 %v5610_v20, 16  ;;  %v2207_v33 = vshll.u32 %v7417_v23, 16  ;;  %v2211_v34 = vshrl.u32 %v7417_v23, 16  ;;  %v231_v42 = vld [vmem:[%s7404_s20 + $0x10] sm:$0xf] }
  0x19   : > { %6579 = vmatpush3.bf16.msra.mxu0 %v7116_v5  ;;  %6388 = vmatprep.subr.bf16.mxu1 %v7117_v6  ;;  %v302_v31 = vor.u32 %v301_v22, %v298_v21  ;;  %v312_v38 = vor.u32 %v311_v27, %v307_v26  ;;  %v2200_v39 = vrot.slane %v2198_v29, 4  ;;  %v2217_v40 = vshll.u32 %v7420_v24, 16  ;;  %v277_v55 = vld [vmem:[%s7404_s20 + $0x14] sm:$0x1]  ;;  %v5613_v57 = vld [vmem:[%s7404_s20 + $0x18] sm:$0xf] }
  0x1a   : > { %6580 = vmatprep.subr.bf16.mxu0 %v7118_v7  ;;  %v2972_v41 = vrot.slane %v7420_v24, 5  ;;  %v2203_v44 = vrot.slane %v2201_v32, 5  ;;  %v2209_v45 = vrot.slane %v2207_v33, 5  ;;  %v2213_v46 = vrot.slane %v2211_v34, 4  ;;  %v7453_v62 = vld [vmem:[%s7404_s20 + $0x1c] sm:$0xf] }
  0x1b   : > { %v303_v43 = vrot.slane %v302_v31, 4  ;;  %v313_v47 = vrot.slane %v312_v38, 4  ;;  %v2219_v48 = vrot.slane %v2217_v40, 5  ;;  %v320_v49 = vshrl.u32 %v230_v35, 16  ;;  %v7127_v3 = vld [vmem:[%s9253_s1] sm:$0xff]  }
  0x1c   : > { %6389 = vmatpush3.bf16.msra.mxu1 %v7117_v6  ;;  %v323_v50 = vshll.u32 %v230_v35, 16  ;;  %v2204_v53 = vor.u32 %v2203_v44, %v2200_v39  ;;  %v2214_v54 = vor.u32 %v2213_v46, %v2209_v45  ;;  %v329_v56 = vshll.u32 %v231_v42, 16  ;;  %v7461_v4 = vld [vmem:[%s9253_s1 + $0x140] sm:$0xff]   ;;  %v232_v21 = vld [vmem:[%s7404_s20 + $0x18] sm:$0xf]  ;;  %v7130_v46 = vld [vmem:[%s9253_s1 + $0x8] sm:$0xff]  }
  0x1d   : > { %6581 = vmatpush3.bf16.msra.mxu0 %v7118_v7  ;;  %6390 = vmatprep.subr.bf16.mxu1 %v7119_v8  ;;  %v308_v52 = vsel %vm7436_vm2, %v303_v43, %v307_v26  ;;  %v318_v58 = vsel %vm7436_vm2, %v313_v47, %v317_v28  ;;  %v322_v59 = vrot.slane %v320_v49, 4  ;;  %v333_v61 = vshrl.u32 %v231_v42, 16  ;;  %v233_v28 = vld [vmem:[%s7404_s20 + $0x1c] sm:$0xf]  ;;  %v278_v33 = vld [vmem:[%s7404_s20 + $0x20] sm:$0x1] }
  0x1e   : > { %6582 = vmatprep.subr.bf16.mxu0 %v7120_v9  ;;  %v325_v60 = vrot.slane %v323_v50, 5  ;;  %v5434_v63 = vcombine.low %v308_v52, %v318_v58  ;;  %v2205_v0 = vrot.slane %v2204_v53, 4  ;;  %v2215_v1 = vrot.slane %v2214_v54, 4  ;;  %v5616_v39 = vld [vmem:[%s7404_s20 + $0x24] sm:$0xf] }
  0x1f   : > { %v331_v2 = vrot.slane %v329_v56, 5  ;;  %v335_v6 = vrot.slane %v333_v61, 4  ;;  %v339_v7 = vshll.u32 %v277_v55, 16  ;;  %v2225_v12 = vshll.u32 %v5613_v57, 16  ;;  %v234_v52 = vld [vmem:[%s7404_s20 + $0x24] sm:$0xf] }
  0x20   : > { %6391 = vmatpush3.bf16.msra.mxu1 %v7119_v8  ;;  %v326_v5 = vor.u32 %v325_v60, %v322_v59  ;;  %v7464_v8 = vld [vmem:[%s7404_s20 + $0x20] sm:$0x1]  ;;  %6398 = vmatprep.mubr.bf16.mxu1 %v5434_v63  ;;  %v2231_v19 = vshll.u32 %v7453_v62, 16  ;;  %v2235_v20 = vshrl.u32 %v7453_v62, 16  ;;  %v2976_v27 = vrot.slane %v7453_v62, 5  ;;  %v7129_v63 = vld [vmem:[%s9253_s1 + $0x148] sm:$0xff]  }
  0x21   : > { %6583 = vmatpush3.bf16.msra.mxu0 %v7120_v9  ;;  %6392 = vmatprep.subr.bf16.mxu1 %v7121_v10  ;;  %v2210_v9 = vsel %vm7436_vm2, %v2205_v0, %v2209_v45  ;;  %v336_v15 = vor.u32 %v335_v6, %v331_v2  ;;  %v341_v16 = vrot.slane %v339_v7, 5  ;;  %v2227_v18 = vrot.slane %v2225_v12, 5  ;;  %v7489_v45 = vld [vmem:[%s7404_s20 + $0x28] sm:$0xf] }
  0x22   : > { %6584 = vmatprep.subr.bf16.mxu0 %v7122_v11  ;;  %v327_v14 = vrot.slane %v326_v5, 4  ;;  %v2241_v26 = vshll.u32 %v7464_v8, 16  ;;  %v2237_v31 = vrot.slane %v2235_v20, 4  ;;  %v2979_v32 = vrot.slane %v7464_v8, 5  ;;  %v235_v5 = vld [vmem:[%s7404_s20 + $0x28] sm:$0xf] }
  0x23   : > { %v344_v38 = vshrl.u32 %v232_v21, 16  ;;  %v347_v44 = vshll.u32 %v232_v21, 16  ;;  %v357_v49 = vshrl.u32 %v233_v28, 16  ;;  %v363_v50 = vshll.u32 %v278_v33, 16  ;;  %v7520_v33 = vld [vmem:[%s7404_s20 + $0x34] sm:$0xf] }
  0x24   : > { %6393 = vmatpush3.bf16.msra.mxu1 %v7121_v10  ;;  %v2220_v10 = vsel %vm7436_vm2, %v2215_v1, %v2219_v48  ;;  %v332_v22 = vsel %vm7436_vm2, %v327_v14, %v331_v2  ;;  %v2243_v35 = vrot.slane %v2241_v26, 5  ;;  %v353_v48 = vshll.u32 %v233_v28, 16 }
  0x25   : > { %6585 = vmatpush3.bf16.msra.mxu0 %v7122_v11  ;;  %6394 = vmatprep.subr.bf16.mxu1 %v7123_v25  ;;  %v2222_v11 = vshrl.u32 %v5613_v57, 16  ;;  %v5674_v13 = vcombine.low %v2210_v9, %v2220_v10  ;;  %v346_v47 = vrot.slane %v344_v38, 4  ;;  %v349_v55 = vrot.slane %v347_v44, 5 }
  0x26   : > { %6586 = vmatprep.subr.bf16.mxu0 %v7124_v30  ;;  %v2246_v56 = vshrl.u32 %v5616_v39, 16  ;;  %v355_v57 = vrot.slane %v353_v48, 5  ;;  %v359_v58 = vrot.slane %v357_v49, 4  ;;  %v365_v59 = vrot.slane %v363_v50, 5  ;;  %v7132_v48 = vld [vmem:[%s9253_s1 + $0x158] sm:$0xff]  }
  0x27   : > { %v2224_v17 = vrot.slane %v2222_v11, 4  ;;  %6590 = vmatprep.mubr.bf16.mxu0 %v5674_v13  ;;  %v2249_v60 = vshll.u32 %v5616_v39, 16  ;;  %v350_v0 = vor.u32 %v349_v55, %v346_v47  ;;  %v2255_v2 = vshll.u32 %v7489_v45, 16  ;;  %v279_v11 = vld [vmem:[%s7404_s20 + $0x2c] sm:$0x1] }
  0x28   : > { %6395 = vmatpush3.bf16.msra.mxu1 %v7123_v25  ;;  %v337_v25 = vrot.slane %v336_v15, 4  ;;  %v2248_v1 = vrot.slane %v2246_v56, 4  ;;  %v360_v7 = vor.u32 %v359_v58, %v355_v57  ;;  %v2259_v10 = vshrl.u32 %v7489_v45, 16 }
  0x29   : > { %6587 = vmatpush3.bf16.msra.mxu0 %v7124_v30  ;;  %6396 = vmatprep.subr.bf16.mxu1 %v7125_v36  ;;  %v2228_v29 = vor.u32 %v2227_v18, %v2224_v17  ;;  %v2233_v30 = vrot.slane %v2231_v19, 5  ;;  %v2251_v9 = vrot.slane %v2249_v60, 5  ;;  %v351_v12 = vrot.slane %v350_v0, 4  ;;  %v7139_v60 = vld [vmem:[%s9253_s1 + $0x20] sm:$0xff]  }
  0x2a   : > { %6588 = vmatprep.subr.bf16.mxu0 %v7126_v51  ;;  %v342_v34 = vsel %vm7436_vm2, %v337_v25, %v341_v16  ;;  %v2257_v13 = vrot.slane %v2255_v2, 5  ;;  %v368_v15 = vshrl.u32 %v234_v52, 16  ;;  %v5619_v16 = vld [vmem:[%s7404_s20 + $0x30] sm:$0xf]  ;;  %v361_v17 = vrot.slane %v360_v7, 4 }
  0x2b   : > { %v5435_v40 = vcombine.low %v332_v22, %v342_v34  ;;  %v2229_v42 = vrot.slane %v2228_v29, 4  ;;  %v2238_v43 = vor.u32 %v2237_v31, %v2233_v30  ;;  %v2252_v18 = vor.u32 %v2251_v9, %v2248_v1  ;;  %v7136_v34 = vld [vmem:[%s9253_s1 + $0x18] sm:$0xff]  }
  0x2c   : > { %6397 = vmatpush3.bf16.msra.mxu1 %v7125_v36  ;;  %v7485_v36 = vrot.slane %v2976_v27, 4  ;;  %v2261_v19 = vrot.slane %v2259_v10, 4  ;;  %v371_v20 = vshll.u32 %v234_v52, 16  ;;  %v356_v21 = vsel %vm7436_vm2, %v351_v12, %v355_v57  ;;  %v280_v2 = vld [vmem:[%s7404_s20 + $0x38] sm:$0x1] }
  0x2d   : > { %6589 = vmatpush3.bf16.msra.mxu0 %v7126_v51  ;;  %6430 = vmatprep.subr.bf16.mxu1 %v7127_v3  ;;  %v7495_v51 = vld [vmem:[%s7404_s20 + $0x2c] sm:$0x1]  ;;  %v2234_v53 = vsel %vm7436_vm2, %v2229_v42, %v2233_v30  ;;  %v2239_v54 = vrot.slane %v2238_v43, 4  ;;  %v370_v25 = vrot.slane %v368_v15, 4  ;;  %v377_v26 = vshll.u32 %v235_v5, 16 }
  0x2e   : > { %6622 = vmatprep.subr.bf16.mxu0 %v7461_v4  ;;  %v2265_v14 = vshll.u32 %v7495_v51, 16  ;;  %v366_v28 = vsel %vm7436_vm2, %v361_v17, %v365_v59  ;;  %v2253_v29 = vrot.slane %v2252_v18, 4  ;;  %v2262_v30 = vor.u32 %v2261_v19, %v2257_v13  ;;  %v237_v59 = vld [vmem:[%s7404_s20 + $0x34] sm:$0xf]  ;;  %v5622_v9 = vld [vmem:[%s7404_s20 + $0x3c] sm:$0xf] }
  0x2f   : > { %6399 = vmatmul.mubr.bf16.vlgmr.msra.gmra.mrb[0].mxu1 %v5435_v40  ;;  %v2244_v61 = vsel %vm7436_vm2, %v2239_v54, %v2243_v35  ;;  %v373_v31 = vrot.slane %v371_v20, 5  ;;  %v5436_v35 = vcombine.low %v356_v21, %v366_v28  ;;  %v379_v38 = vrot.slane %v377_v26, 5  ;;  %v236_v54 = vld [vmem:[%s7404_s20 + $0x30] sm:$0xf]  ;;  %v7554_v19 = vld [vmem:[%s7404_s20 + $0x40] sm:$0xf] }
  0x30   : > { %6431 = vmatpush3.bf16.msra.mxu1 %v7127_v3  ;;  %v7133_v3 = vld [vmem:[%s9253_s1 + $0x10] sm:$0xff]   ;;  %v5675_v6 = vcombine.low %v2234_v53, %v2244_v61  ;;  %v2267_v22 = vrot.slane %v2265_v14, 5  ;;  %v381_v39 = vshrl.u32 %v235_v5, 16  ;;  %v387_v40 = vshll.u32 %v279_v11, 16  ;;  %v7141_v14 = vld [vmem:[%s9253_s1 + $0x28] sm:$0xff]   ;;  %v7134_v20 = vld [vmem:[%s9253_s1 + $0x160] sm:$0xff]  }
  0x31   : > { %6432 = vmatprep.subr.bf16.mxu1 %v7130_v46  ;;  %v2258_v42 = vsel %vm7436_vm2, %v2253_v29, %v2257_v13  ;;  %v2263_v43 = vrot.slane %v2262_v30, 4  ;;  %v374_v44 = vor.u32 %v373_v31, %v370_v25  ;;  %v2270_v47 = vshrl.u32 %v5619_v16, 16  ;;  %6402 = vmatprep.mubr.bf16.mxu1 %v5436_v35  ;;  %v7562_v28 = vld [vmem:[%s7404_s20 + $0x44] sm:$0x1]  ;;  %v7143_v35 = vld [vmem:[%s9253_s1 + $0x30] sm:$0xff]  }
  0x32   : > { %6591 = vmatmul.mubr.bf16.vlgmr.msra.gmra.mrb[0].mxu0 %v5675_v6  ;;  %v383_v49 = vrot.slane %v381_v39, 4  ;;  %v389_v50 = vrot.slane %v387_v40, 5  ;;  %v2273_v52 = vshll.u32 %v5619_v16, 16  ;;  %v2279_v53 = vshll.u32 %v7520_v33, 16 }
  0x33   : > { %6623 = vmatpush3.bf16.msra.mxu0 %v7461_v4  ;;  %v7131_v4 = vld [vmem:[%s9253_s1 + $0x150] sm:$0xff]   ;;  %v2268_v55 = vsel %vm7436_vm2, %v2263_v43, %v2267_v22  ;;  %v375_v56 = vrot.slane %v374_v44, 4  ;;  %v2272_v57 = vrot.slane %v2270_v47, 4  ;;  %v2283_v58 = vshrl.u32 %v7520_v33, 16 }
  0x34   : > { %6433 = vmatpush3.bf16.msra.mxu1 %v7130_v46  ;;  %6624 = vmatprep.subr.bf16.mxu0 %v7129_v63  ;;  %v7531_v46 = vld [vmem:[%s7404_s20 + $0x38] sm:$0x1]  ;;  %v5676_v61 = vcombine.low %v2258_v42, %v2268_v55  ;;  %v2275_v0 = vrot.slane %v2273_v52, 5  ;;  %v2281_v1 = vrot.slane %v2279_v53, 5  ;;  %v392_v7 = vshrl.u32 %v236_v54, 16 }
  0x35   : > { %6434 = vmatprep.subr.bf16.mxu1 %v7133_v3  ;;  %v380_v5 = vsel %vm7436_vm2, %v375_v56, %v379_v38  ;;  %v2289_v6 = vshll.u32 %v7531_v46, 16  ;;  %v395_v12 = vshll.u32 %v236_v54, 16  ;;  %v401_v13 = vshll.u32 %v237_v59, 16  ;;  %v239_v55 = vld [vmem:[%s7404_s20 + $0x40] sm:$0xf] }
  0x36   : > { %6594 = vmatprep.mubr.bf16.mxu0 %v5676_v61  ;;  %v2276_v11 = vor.u32 %v2275_v0, %v2272_v57  ;;  %v394_v17 = vrot.slane %v392_v7, 4  ;;  %v405_v18 = vshrl.u32 %v237_v59, 16  ;;  %v2294_v40 = vshrl.u32 %v5622_v9, 16 }
  0x37   : > { %6625 = vmatpush3.bf16.msra.mxu0 %v7129_v63  ;;  %v384_v63 = vor.u32 %v383_v49, %v379_v38  ;;  %v2291_v16 = vrot.slane %v2289_v6, 5  ;;  %v397_v25 = vrot.slane %v395_v12, 5  ;;  %v403_v26 = vrot.slane %v401_v13, 5 }
  0x38   : > { %6435 = vmatpush3.bf16.msra.mxu1 %v7133_v3  ;;  %6626 = vmatprep.subr.bf16.mxu0 %v7131_v4  ;;  %v2285_v3 = vrot.slane %v2283_v58, 4  ;;  %v2277_v22 = vrot.slane %v2276_v11, 4  ;;  %v407_v31 = vrot.slane %v405_v18, 4  ;;  %v2297_v42 = vshll.u32 %v5622_v9, 16  ;;  %v5625_v9 = vld [vmem:[%s7404_s20 + $0x48] sm:$0xf] }
  0x39   : > { %6436 = vmatprep.subr.bf16.mxu1 %v7136_v34  ;;  %v385_v10 = vrot.slane %v384_v63, 4  ;;  %v398_v39 = vor.u32 %v397_v25, %v394_v17  ;;  %v2303_v49 = vshll.u32 %v7554_v19, 16  ;;  %v2296_v53 = vrot.slane %v2294_v40, 4  ;;  %v281_v63 = vld [vmem:[%s7404_s20 + $0x44] sm:$0x1] }
  0x3a   : > { %v2286_v15 = vor.u32 %v2285_v3, %v2281_v1  ;;  %v2282_v38 = vsel %vm7436_vm2, %v2277_v22, %v2281_v1  ;;  %v408_v44 = vor.u32 %v407_v31, %v403_v26  ;;  %v2299_v54 = vrot.slane %v2297_v42, 5  ;;  %v7595_v22 = vld [vmem:[%s7404_s20 + $0x50] sm:$0x1]  ;;  %v7138_v31 = vld [vmem:[%s9253_s1 + $0x178] sm:$0xff]  }
  0x3b   : > { %6627 = vmatpush3.bf16.msra.mxu0 %v7131_v4  ;;  %v390_v21 = vsel %vm7436_vm2, %v385_v10, %v389_v50  ;;  %v411_v4 = vshll.u32 %v280_v2, 16  ;;  %v399_v52 = vrot.slane %v398_v39, 4  ;;  %v2305_v57 = vrot.slane %v2303_v49, 5  ;;  %v7145_v2 = vld [vmem:[%s9253_s1 + $0x38] sm:$0xff]  }
  0x3c   : > { %6437 = vmatpush3.bf16.msra.mxu1 %v7136_v34  ;;  %6628 = vmatprep.subr.bf16.mxu0 %v7132_v48  ;;  %v5437_v29 = vcombine.low %v380_v5, %v390_v21  ;;  %v2287_v30 = vrot.slane %v2286_v15, 4  ;;  %v238_v34 = vld [vmem:[%s7404_s20 + $0x3c] sm:$0xf]  ;;  %v409_v56 = vrot.slane %v408_v44, 4  ;;  %v2307_v58 = vshrl.u32 %v7554_v19, 16  ;;  %v7137_v15 = vld [vmem:[%s9253_s1 + $0x170] sm:$0xff]  }
  0x3d   : > { %6438 = vmatprep.subr.bf16.mxu1 %v7139_v60  ;;  %v413_v47 = vrot.slane %v411_v4, 5  ;;  %v2313_v59 = vshll.u32 %v7562_v28, 16  ;;  %v2300_v61 = vor.u32 %v2299_v54, %v2296_v53  ;;  %v416_v0 = vshrl.u32 %v238_v34, 16  ;;  %v7606_v4 = vld [vmem:[%s9253_s1 + $0x80] sm:$0xff]   ;;  %v241_v53 = vld [vmem:[%s7404_s20 + $0x4c] sm:$0xf] }
  0x3e   : > { %6403 = vmatmul.mubr.bf16.gmra.mrb[4].mxu1 %v5437_v29  ;;  %v2292_v43 = vsel %vm7436_vm2, %v2287_v30, %v2291_v16  ;;  %v419_v1 = vshll.u32 %v238_v34, 16  ;;  %v2309_v3 = vrot.slane %v2307_v58, 4  ;;  %v425_v7 = vshll.u32 %v239_v55, 16  ;;  %v240_v30 = vld [vmem:[%s7404_s20 + $0x48] sm:$0xf] }
  0x3f   : > { %6629 = vmatpush3.bf16.msra.mxu0 %v7132_v48  ;;  %v5677_v50 = vcombine.low %v2282_v38, %v2292_v43  ;;  %v7135_v48 = vld [vmem:[%s9253_s1 + $0x168] sm:$0xff]   ;;  %v414_v5 = vsel %vm7436_vm2, %v409_v56, %v413_v47  ;;  %v2315_v6 = vrot.slane %v2313_v59, 5  ;;  %v2301_v11 = vrot.slane %v2300_v61, 4  ;;  %v282_v54 = vld [vmem:[%s7404_s20 + $0x50] sm:$0x1] }
  0x40   : > { %6439 = vmatpush3.bf16.msra.mxu1 %v7139_v60  ;;  %6630 = vmatprep.subr.bf16.mxu0 %v7134_v20  ;;  %v404_v60 = vsel %vm7436_vm2, %v399_v52, %v403_v26  ;;  %v418_v12 = vrot.slane %v416_v0, 4  ;;  %v421_v13 = vrot.slane %v419_v1, 5  ;;  %v2310_v16 = vor.u32 %v2309_v3, %v2305_v57  ;;  %v5628_v58 = vld [vmem:[%s7404_s20 + $0x54] sm:$0xf]  ;;  %v7620_v0 = vld [vmem:[%s7404_s20 + $0x58] sm:$0xf] }
  0x41   : > { %6440 = vmatprep.subr.bf16.mxu1 %v7141_v14  ;;  %6595 = vmatmul.mubr.bf16.gmra.mrb[4].mxu0 %v5677_v50  ;;  %v5438_v10 = vcombine.low %v404_v60, %v414_v5  ;;  %v427_v17 = vrot.slane %v425_v7, 5  ;;  %v429_v18 = vshrl.u32 %v239_v55, 16  ;;  %v435_v21 = vshll.u32 %v281_v63, 16 }
  0x42   : > { %v422_v25 = vor.u32 %v421_v13, %v418_v12  ;;  %v2318_v26 = vshrl.u32 %v5625_v9, 16  ;;  %v2321_v29 = vshll.u32 %v5625_v9, 16  ;;  %v2311_v34 = vrot.slane %v2310_v16, 4 }
  0x43   : > { %6631 = vmatpush3.bf16.msra.mxu0 %v7134_v20  ;;  %6406 = vmatprep.mubr.bf16.mxu1 %v5438_v10  ;;  %v2306_v20 = vsel %vm7436_vm2, %v2301_v11, %v2305_v57  ;;  %v437_v38 = vrot.slane %v435_v21, 5  ;;  %v2337_v52 = vshll.u32 %v7595_v22, 16  ;;  %v440_v61 = vshrl.u32 %v240_v30, 16 }
  0x44   : > { %6441 = vmatpush3.bf16.msra.mxu1 %v7141_v14  ;;  %v7589_v14 = vld [vmem:[%s7404_s20 + $0x4c] sm:$0xf]  ;;  %6632 = vmatprep.subr.bf16.mxu0 %v7135_v48  ;;  %v423_v40 = vrot.slane %v422_v25, 4  ;;  %v2320_v42 = vrot.slane %v2318_v26, 4  ;;  %v2323_v43 = vrot.slane %v2321_v29, 5  ;;  %v2316_v47 = vsel %vm7436_vm2, %v2311_v34, %v2315_v6  ;;  %v7625_v6 = vld [vmem:[%s9253_s1 + $0x180] sm:$0xff]  }
  0x45   : > { %6442 = vmatprep.subr.bf16.mxu1 %v7143_v35  ;;  %v2327_v39 = vshll.u32 %v7589_v14, 16  ;;  %v2331_v44 = vshrl.u32 %v7589_v14, 16  ;;  %v5678_v55 = vcombine.low %v2306_v20, %v2316_v47  ;;  %v2339_v60 = vrot.slane %v2337_v52, 5  ;;  %v7632_v20 = vld [vmem:[%s7404_s20 + $0x5c] sm:$0x1] }
  0x46   : > { %v2324_v56 = vor.u32 %v2323_v43, %v2320_v42  ;;  %v443_v63 = vshll.u32 %v240_v30, 16  ;;  %v453_v3 = vshrl.u32 %v241_v53, 16  ;;  %v442_v9 = vrot.slane %v440_v61, 4  ;;  %v243_v43 = vld [vmem:[%s7404_s20 + $0x58] sm:$0xf] }
  0x47   : > { %6633 = vmatpush3.bf16.msra.mxu0 %v7135_v48  ;;  %v2329_v50 = vrot.slane %v2327_v39, 5  ;;  %v428_v48 = vsel %vm7436_vm2, %v423_v40, %v427_v17  ;;  %v2333_v57 = vrot.slane %v2331_v44, 4  ;;  %6598 = vmatprep.mubr.bf16.mxu0 %v5678_v55  ;;  %v459_v11 = vshll.u32 %v282_v54, 16  ;;  %v5631_v52 = vld [vmem:[%s7404_s20 + $0x60] sm:$0xf] }
  0x48   : > { %6443 = vmatpush3.bf16.msra.mxu1 %v7143_v35  ;;  %v431_v35 = vrot.slane %v429_v18, 4  ;;  %6634 = vmatprep.subr.bf16.mxu0 %v7137_v15  ;;  %v2325_v1 = vrot.slane %v2324_v56, 4  ;;  %v445_v10 = vrot.slane %v443_v63, 5  ;;  %v455_v18 = vrot.slane %v453_v3, 4 }
  0x49   : > { %6444 = vmatprep.subr.bf16.mxu1 %v7145_v2  ;;  %v2334_v5 = vor.u32 %v2333_v57, %v2329_v50  ;;  %v461_v21 = vrot.slane %v459_v11, 5  ;;  %v2342_v25 = vshrl.u32 %v5628_v58, 16  ;;  %v2345_v29 = vshll.u32 %v5628_v58, 16 }
  0x4a   : > { %v432_v49 = vor.u32 %v431_v35, %v427_v17  ;;  %v2330_v13 = vsel %vm7436_vm2, %v2325_v1, %v2329_v50  ;;  %v446_v17 = vor.u32 %v445_v10, %v442_v9  ;;  %v2351_v30 = vshll.u32 %v7620_v0, 16  ;;  %v242_v35 = vld [vmem:[%s7404_s20 + $0x54] sm:$0xf]  ;;  %v283_v50 = vld [vmem:[%s7404_s20 + $0x5c] sm:$0x1] }
  0x4b   : > { %6635 = vmatpush3.bf16.msra.mxu0 %v7137_v15  ;;  %v2335_v15 = vrot.slane %v2334_v5, 4  ;;  %v2355_v34 = vshrl.u32 %v7620_v0, 16  ;;  %v2344_v42 = vrot.slane %v2342_v25, 4  ;;  %v464_v55 = vshrl.u32 %v242_v35, 16  ;;  %v7660_v25 = vld [vmem:[%s7404_s20 + $0x60] sm:$0xf] }
  0x4c   : > { %6445 = vmatpush3.bf16.msra.mxu1 %v7145_v2  ;;  %v433_v59 = vrot.slane %v432_v49, 4  ;;  %v449_v2 = vshll.u32 %v241_v53, 16  ;;  %6636 = vmatprep.subr.bf16.mxu0 %v7138_v31  ;;  %v447_v39 = vrot.slane %v446_v17, 4  ;;  %v2353_v44 = vrot.slane %v2351_v30, 5  ;;  %v7656_v17 = vld [vmem:[%s7404_s20 + $0x68] sm:$0x1] }
  0x4d   : > { %6478 = vmatprep.subr.bf16.mxu1 %v7606_v4  ;;  %v2340_v26 = vsel %vm7436_vm2, %v2335_v15, %v2339_v60  ;;  %v2357_v47 = vrot.slane %v2355_v34, 4  ;;  %v2361_v49 = vshll.u32 %v7632_v20, 16  ;;  %v7647_v60 = vld [vmem:[%s7404_s20 + $0x64] sm:$0xf]  ;;  %v466_v63 = vrot.slane %v464_v55, 4 }
  0x4e   : > { %v438_v7 = vsel %vm7436_vm2, %v433_v59, %v437_v38  ;;  %v451_v16 = vrot.slane %v449_v2, 5  ;;  %v5679_v38 = vcombine.low %v2330_v13, %v2340_v26  ;;  %v473_v59 = vshll.u32 %v243_v43, 16 }
  0x4f   : > { %v5439_v12 = vcombine.low %v428_v48, %v438_v7  ;;  %6637 = vmatpush3.bf16.msra.mxu0 %v7138_v31  ;;  %v2347_v31 = vrot.slane %v2345_v29, 5  ;;  %v467_v48 = vshll.u32 %v242_v35, 16  ;;  %v2358_v57 = vor.u32 %v2357_v47, %v2353_v44  ;;  %v7663_v35 = vld [vmem:[%s7404_s20 + $0x64] sm:$0xf] }
  0x50   : > { %6670 = vmatprep.subr.bf16.mxu0 %v7625_v6  ;;  %v456_v40 = vor.u32 %v455_v18, %v451_v16  ;;  %6599 = vmatmul.mubr.bf16.gmra.mrb[8].mxu0 %v5679_v38  ;;  %v452_v53 = vsel %vm7436_vm2, %v447_v39, %v451_v16  ;;  %v2363_v58 = vrot.slane %v2361_v49, 5  ;;  %v477_v5 = vshrl.u32 %v243_v43, 16  ;;  %v284_v43 = vld [vmem:[%s7404_s20 + $0x68] sm:$0x1] }
  0x51   : > { %6407 = vmatmul.mubr.bf16.gmra.mrb[8].mxu1 %v5439_v12  ;;  %v2348_v56 = vor.u32 %v2347_v31, %v2344_v42  ;;  %v469_v1 = vrot.slane %v467_v48, 5  ;;  %v2359_v7 = vrot.slane %v2358_v57, 4  ;;  %v475_v9 = vrot.slane %v473_v59, 5 }
  0x52   : > { %v457_v54 = vrot.slane %v456_v40, 4  ;;  %v479_v11 = vrot.slane %v477_v5, 4  ;;  %v483_v12 = vshll.u32 %v283_v50, 16  ;;  %v2366_v13 = vshrl.u32 %v5631_v52, 16  ;;  %v5698_v50 = vld [vmem:[%s7404_s20 + $0xc] sm:$0xe] }
  0x53   : > { %v2349_v3 = vrot.slane %v2348_v56, 4  ;;  %v470_v10 = vor.u32 %v469_v1, %v466_v63  ;;  %v2364_v16 = vsel %vm7436_vm2, %v2359_v7, %v2363_v58  ;;  %v2369_v18 = vshll.u32 %v5631_v52, 16  ;;  %v7678_v5 = vld [vmem:[%s7404_s20 + $0x6c] sm:$0xf] }
  0x54   : > { %v462_v61 = vsel %vm7436_vm2, %v457_v54, %v461_v21  ;;  %v2375_v21 = vshll.u32 %v7647_v60, 16  ;;  %v480_v30 = vor.u32 %v479_v11, %v475_v9  ;;  %v485_v34 = vrot.slane %v483_v12, 5 }
  0x55   : > { %v5440_v2 = vcombine.low %v452_v53, %v462_v61  ;;  %v2354_v15 = vsel %vm7436_vm2, %v2349_v3, %v2353_v44  ;;  %v471_v29 = vrot.slane %v470_v10, 4  ;;  %v2368_v38 = vrot.slane %v2366_v13, 4 }
  0x56   : > { %v5680_v26 = vcombine.low %v2354_v15, %v2364_v16  ;;  %v2371_v39 = vrot.slane %v2369_v18, 5  ;;  %v2377_v40 = vrot.slane %v2375_v21, 5  ;;  %v2379_v42 = vshrl.u32 %v7647_v60, 16  ;;  %v7690_v21 = vld [vmem:[%s7404_s20 + $0x70] sm:$0xf] }
  0x57   : > { %6410 = vmatprep.mubr.bf16.mxu1 %v5440_v2  ;;  %v476_v31 = vsel %vm7436_vm2, %v471_v29, %v475_v9  ;;  %v481_v44 = vrot.slane %v480_v30, 4  ;;  %v2385_v47 = vshll.u32 %v7656_v17, 16  ;;  %v488_v49 = vshrl.u32 %v7660_v25, 16  ;;  %v7229_v9 = vld [vmem:[%s7404_s20 + $0xb4] sm:$0xff]  }
  0x58   : > { %6602 = vmatprep.mubr.bf16.mxu0 %v5680_v26  ;;  %v2372_v52 = vor.u32 %v2371_v39, %v2368_v38  ;;  %v2381_v53 = vrot.slane %v2379_v42, 4  ;;  %v491_v54 = vshll.u32 %v7660_v25, 16  ;;  %v497_v55 = vshll.u32 %v7663_v35, 16 }
  0x59   : > { %v486_v48 = vsel %vm7436_vm2, %v481_v44, %v485_v34  ;;  %v2387_v56 = vrot.slane %v2385_v47, 5  ;;  %v490_v57 = vrot.slane %v488_v49, 4  ;;  %v501_v58 = vshrl.u32 %v7663_v35, 16  ;;  %v7701_v47 = vld [vmem:[%s7404_s20 + $0x78] sm:$0xf] }
  0x5a   : > { %v5441_v59 = vcombine.low %v476_v31, %v486_v48  ;;  %v2373_v61 = vrot.slane %v2372_v52, 4  ;;  %v2382_v63 = vor.u32 %v2381_v53, %v2377_v40  ;;  %v493_v1 = vrot.slane %v491_v54, 5  ;;  %v7712_v54 = vld [vmem:[%s7404_s20 + $0x7c] sm:$0xf] }
  0x5b   : > { %v499_v2 = vrot.slane %v497_v55, 5  ;;  %v503_v3 = vrot.slane %v501_v58, 4  ;;  %v507_v7 = vshll.u32 %v284_v43, 16  ;;  %v5714_v10 = vrot.slane %v5698_v50, 9  ;;  %v286_v58 = vld [vmem:[%s7404_s20 + $0x80] sm:$0x1] }
  0x5c   : > { %6411 = vmatmul.mubr.bf16.gmra.mrb[12].mxu1 %v5441_v59  ;;  %v2378_v11 = vsel %vm7436_vm2, %v2373_v61, %v2377_v40  ;;  %v2383_v12 = vrot.slane %v2382_v63, 4  ;;  %v494_v13 = vor.u32 %v493_v1, %v490_v57  ;;  %v2969_v15 = vrot.slane %v7417_v23, 5  ;;  %v285_v40 = vld [vmem:[%s7404_s20 + $0x74] sm:$0x1]  ;;  %v5699_v23 = vld [vmem:[%s7404_s20 + $0x18] sm:$0xe] }
  0x5d   : > { %v504_v16 = vor.u32 %v503_v3, %v499_v2  ;;  %v509_v18 = vrot.slane %v507_v7, 5  ;;  %v512_v26 = vshrl.u32 %v7678_v5, 16  ;;  %v515_v29 = vshll.u32 %v7678_v5, 16 }
  0x5e   : > { %v2388_v30 = vsel %vm7436_vm2, %v2383_v12, %v2387_v56  ;;  %v495_v34 = vrot.slane %v494_v13, 4  ;;  %v2970_v38 = vsel %vm7682_vm5, %v5714_v10, %v2969_v15  ;;  %v2971_v39 = vrot.slane %v2969_v15, 4  ;;  %v5700_v13 = vld [vmem:[%s7404_s20 + $0x24] sm:$0xe] }
  0x5f   : > { %v5681_v42 = vcombine.low %v2378_v11, %v2388_v30  ;;  %v505_v43 = vrot.slane %v504_v16, 4  ;;  %v514_v31 = vrot.slane %v512_v26, 4  ;;  %v517_v44 = vrot.slane %v515_v29, 5  ;;  %v7734_v16 = vld [vmem:[%s7404_s20 + $0x84] sm:$0xf]  ;;  %v7142_v29 = vld [vmem:[%s9253_s1 + $0x188] sm:$0xff]  }
  0x60   : > { %v500_v49 = vsel %vm7436_vm2, %v495_v34, %v499_v2  ;;  %v2973_v50 = vsel %vm7682_vm5, %v2971_v39, %v2972_v41  ;;  %v521_v52 = vshll.u32 %v7690_v21, 16  ;;  %v525_v53 = vshrl.u32 %v7690_v21, 16 }
  0x61   : > { %6603 = vmatmul.mubr.bf16.gmra.mrb[12].mxu0 %v5681_v42  ;;  %v510_v55 = vsel %vm7436_vm2, %v505_v43, %v509_v18  ;;  %v5746_v48 = vcombine.low %v2970_v38, %v2973_v50  ;;  %v518_v56 = vor.u32 %v517_v44, %v514_v31  ;;  %v531_v57 = vshll.u32 %v285_v40, 16  ;;  %v7742_v40 = vld [vmem:[%s7404_s20 + $0x88] sm:$0xf]  ;;  %v287_v31 = vld [vmem:[%s7404_s20 + $0x8c] sm:$0x1] }
  0x62   : > { %v5442_v59 = vcombine.low %v500_v49, %v510_v55  ;;  %v523_v24 = vrot.slane %v521_v52, 5  ;;  %v527_v61 = vrot.slane %v525_v53, 4  ;;  %v5715_v63 = vrot.slane %v5699_v23, 9 }
  0x63   : > { %6638 = vmatprep.mubr.bf16.mxu0 %v5746_v48  ;;  %v519_v41 = vrot.slane %v518_v56, 4  ;;  %v533_v1 = vrot.slane %v531_v57, 5  ;;  %v2980_v2 = vsel %vm7682_vm5, %v7485_v36, %v2979_v32  ;;  %v536_v3 = vshrl.u32 %v7701_v47, 16 }
  0x64   : > { %6414 = vmatprep.mubr.bf16.mxu1 %v5442_v59  ;;  %v528_v7 = vor.u32 %v527_v61, %v523_v24  ;;  %v2977_v10 = vsel %vm7682_vm5, %v5715_v63, %v2976_v27  ;;  %v539_v11 = vshll.u32 %v7701_v47, 16  ;;  %v545_v12 = vshll.u32 %v7712_v54, 16 }
  0x65   : > { %v524_v8 = vsel %vm7436_vm2, %v519_v41, %v523_v24  ;;  %v5747_v15 = vcombine.low %v2977_v10, %v2980_v2  ;;  %v538_v32 = vrot.slane %v536_v3, 4  ;;  %v549_v36 = vshrl.u32 %v7712_v54, 16  ;;  %v7763_v2 = vld [vmem:[%s7404_s20 + $0x90] sm:$0xf]  ;;  %v7766_v3 = vld [vmem:[%s7404_s20 + $0x94] sm:$0xf] }
  0x66   : > { %v529_v62 = vrot.slane %v528_v7, 4  ;;  %v541_v18 = vrot.slane %v539_v11, 5  ;;  %v547_v26 = vrot.slane %v545_v12, 5  ;;  %v555_v27 = vshll.u32 %v286_v58, 16 }
  0x67   : > { %v551_v30 = vrot.slane %v549_v36, 4  ;;  %v5716_v34 = vrot.slane %v5700_v13, 9  ;;  %v2983_v38 = vrot.slane %v7489_v45, 5  ;;  %v2986_v39 = vrot.slane %v7495_v51, 5  ;;  %v5701_v45 = vld [vmem:[%s7404_s20 + $0x30] sm:$0xe] }
  0x68   : > { %v534_v23 = vsel %vm7436_vm2, %v529_v62, %v533_v1  ;;  %v542_v42 = vor.u32 %v541_v18, %v538_v32  ;;  %v557_v43 = vrot.slane %v555_v27, 5  ;;  %v560_v44 = vshrl.u32 %v7734_v16, 16  ;;  %v288_v62 = vld [vmem:[%s7404_s20 + $0x98] sm:$0x1] }
  0x69   : > { %v5443_v49 = vcombine.low %v524_v8, %v534_v23  ;;  %6639 = vmatmul.mubr.bf16.vlgmr.msra.gmra.mrb[0].mxu0 %v5747_v15  ;;  %v552_v50 = vor.u32 %v551_v30, %v547_v26  ;;  %v2984_v52 = vsel %vm7682_vm5, %v5716_v34, %v2983_v38  ;;  %v2985_v53 = vrot.slane %v2983_v38, 4  ;;  %v7146_v30 = vld [vmem:[%s9253_s1 + $0x198] sm:$0xff]  }
  0x6a   : > { %6671 = vmatpush3.bf16.msra.mxu0 %v7625_v6  ;;  %v543_v51 = vrot.slane %v542_v42, 4  ;;  %v562_v55 = vrot.slane %v560_v44, 4  ;;  %v563_v48 = vshll.u32 %v7734_v16, 16  ;;  %v569_v56 = vshll.u32 %v7742_v40, 16  ;;  %v7144_v6 = vld [vmem:[%s9253_s1 + $0x190] sm:$0xff]  }
  0x6b   : > { %6415 = vmatmul.mubr.bf16.gmra.mrb[16].mxu1 %v5443_v49  ;;  %v553_v57 = vrot.slane %v552_v50, 4  ;;  %v2987_v58 = vsel %vm7682_vm5, %v2985_v53, %v2986_v39  ;;  %v573_v59 = vshrl.u32 %v7742_v40, 16  ;;  %v579_v24 = vshll.u32 %v287_v31, 16  ;;  %6672 = vmatprep.subr.bf16.mxu0 %v7142_v29  ;;  %v5702_v38 = vld [vmem:[%s7404_s20 + $0x3c] sm:$0xe] }
  0x6c   : > { %v548_v61 = vsel %vm7436_vm2, %v543_v51, %v547_v26  ;;  %v5748_v63 = vcombine.low %v2984_v52, %v2987_v58  ;;  %v565_v41 = vrot.slane %v563_v48, 5  ;;  %v571_v1 = vrot.slane %v569_v56, 5  ;;  %v7784_v31 = vld [vmem:[%s7404_s20 + $0x9c] sm:$0xf]  ;;  %v7793_v48 = vld [vmem:[%s7404_s20 + $0xa0] sm:$0xf] }
  0x6d   : > { %v558_v7 = vsel %vm7436_vm2, %v553_v57, %v557_v43  ;;  %v575_v10 = vrot.slane %v573_v59, 4  ;;  %v581_v11 = vrot.slane %v579_v24, 5  ;;  %v5717_v12 = vrot.slane %v5701_v45, 9  ;;  %v7150_v56 = vld [vmem:[%s9253_s1 + $0x1a0] sm:$0xff]  }
  0x6e   : > { %v5444_v13 = vcombine.low %v548_v61, %v558_v7  ;;  %6642 = vmatprep.mubr.bf16.mxu0 %v5748_v63  ;;  %v566_v8 = vor.u32 %v565_v41, %v562_v55  ;;  %v2990_v15 = vrot.slane %v7520_v33, 5  ;;  %v2993_v32 = vrot.slane %v7531_v46, 5  ;;  %6673 = vmatpush3.bf16.msra.mxu0 %v7142_v29  ;;  %v289_v61 = vld [vmem:[%s7404_s20 + $0xa4] sm:$0x1] }
  0x6f   : > { %v576_v36 = vor.u32 %v575_v10, %v571_v1  ;;  %v584_v18 = vshrl.u32 %v7763_v2, 16  ;;  %v587_v26 = vshll.u32 %v7763_v2, 16  ;;  %v593_v27 = vshll.u32 %v7766_v3, 16  ;;  %6674 = vmatprep.subr.bf16.mxu0 %v7144_v6 }
  0x70   : > { %6418 = vmatprep.mubr.bf16.mxu1 %v5444_v13  ;;  %v567_v34 = vrot.slane %v566_v8, 4  ;;  %v2991_v33 = vsel %vm7682_vm5, %v5717_v12, %v2990_v15  ;;  %v2992_v46 = vrot.slane %v2990_v15, 4  ;;  %v597_v29 = vshrl.u32 %v7766_v3, 16  ;;  %v5703_v15 = vld [vmem:[%s7404_s20 + $0x48] sm:$0xe] }
  0x71   : > { %v577_v39 = vrot.slane %v576_v36, 4  ;;  %v586_v23 = vrot.slane %v584_v18, 4  ;;  %v589_v42 = vrot.slane %v587_v26, 5  ;;  %v595_v43 = vrot.slane %v593_v27, 5  ;;  %v7818_v27 = vld [vmem:[%s7404_s20 + $0xa8] sm:$0xf] }
  0x72   : > { %v572_v44 = vsel %vm7436_vm2, %v567_v34, %v571_v1  ;;  %v2994_v49 = vsel %vm7682_vm5, %v2992_v46, %v2993_v32  ;;  %v599_v50 = vrot.slane %v597_v29, 4  ;;  %v603_v52 = vshll.u32 %v288_v62, 16  ;;  %6675 = vmatpush3.bf16.msra.mxu0 %v7144_v6  ;;  %v7154_v32 = vld [vmem:[%s9253_s1 + $0x1a8] sm:$0xff]  }
  0x73   : > { %v582_v53 = vsel %vm7436_vm2, %v577_v39, %v581_v11  ;;  %v5749_v45 = vcombine.low %v2991_v33, %v2994_v49  ;;  %v590_v51 = vor.u32 %v589_v42, %v586_v23  ;;  %v5718_v55 = vrot.slane %v5702_v38, 9  ;;  %6676 = vmatprep.subr.bf16.mxu0 %v7146_v30  ;;  %v7821_v29 = vld [vmem:[%s7404_s20 + $0xac] sm:$0xf] }
  0x74   : > { %v5445_v57 = vcombine.low %v572_v44, %v582_v53  ;;  %v600_v58 = vor.u32 %v599_v50, %v595_v43  ;;  %v605_v59 = vrot.slane %v603_v52, 5  ;;  %v2997_v24 = vrot.slane %v7554_v19, 5  ;;  %v5704_v53 = vld [vmem:[%s7404_s20 + $0x54] sm:$0xe] }
  0x75   : > { %6643 = vmatmul.mubr.bf16.gmra.mrb[4].mxu0 %v5749_v45  ;;  %v591_v6 = vrot.slane %v590_v51, 4  ;;  %v3000_v63 = vrot.slane %v7562_v28, 5  ;;  %v608_v41 = vshrl.u32 %v7784_v31, 16  ;;  %v611_v1 = vshll.u32 %v7784_v31, 16  ;;  %v7158_v45 = vld [vmem:[%s9253_s1 + $0x1b0] sm:$0xff]  }
  0x76   : > { %6419 = vmatmul.mubr.bf16.gmra.mrb[20].mxu1 %v5445_v57  ;;  %v601_v7 = vrot.slane %v600_v58, 4  ;;  %v2998_v10 = vsel %vm7682_vm5, %v5718_v55, %v2997_v24  ;;  %v2999_v11 = vrot.slane %v2997_v24, 4  ;;  %v617_v12 = vshll.u32 %v7793_v48, 16  ;;  %6677 = vmatpush3.bf16.msra.mxu0 %v7146_v30 }
  0x77   : > { %v596_v19 = vsel %vm7436_vm2, %v591_v6, %v595_v43  ;;  %v610_v13 = vrot.slane %v608_v41, 4  ;;  %v613_v28 = vrot.slane %v611_v1, 5  ;;  %v621_v8 = vshrl.u32 %v7793_v48, 16  ;;  %6678 = vmatprep.subr.bf16.mxu0 %v7150_v56  ;;  %v290_v43 = vld [vmem:[%s7404_s20 + $0xb0] sm:$0x1] }
  0x78   : > { %v606_v36 = vsel %vm7436_vm2, %v601_v7, %v605_v59  ;;  %v3001_v62 = vsel %vm7682_vm5, %v2999_v11, %v3000_v63  ;;  %v619_v18 = vrot.slane %v617_v12, 5  ;;  %v627_v26 = vshll.u32 %v289_v61, 16  ;;  %v7841_v41 = vld [vmem:[%s7404_s20 + $0xb4] sm:$0xf]  ;;  %v7846_v12 = vld [vmem:[%s7404_s20 + $0xb8] sm:$0xf] }
  0x79   : > { %v5446_v30 = vcombine.low %v596_v19, %v606_v36  ;;  %v5750_v34 = vcombine.low %v2998_v10, %v3001_v62  ;;  %v614_v33 = vor.u32 %v613_v28, %v610_v13  ;;  %v623_v46 = vrot.slane %v621_v8, 4  ;;  %v291_v19 = vld [vmem:[%s7404_s20 + $0xbc] sm:$0x1] }
  0x7a   : > { %v629_v38 = vrot.slane %v627_v26, 5  ;;  %v5719_v39 = vrot.slane %v5703_v15, 9  ;;  %v3004_v23 = vrot.slane %v7589_v14, 5  ;;  %v3007_v42 = vrot.slane %v7595_v22, 5  ;;  %6679 = vmatpush3.bf16.msra.mxu0 %v7150_v56  ;;  %v7162_v13 = vld [vmem:[%s9253_s1 + $0x1b8] sm:$0xff]  }
  0x7b   : > { %6422 = vmatprep.mubr.bf16.mxu1 %v5446_v30  ;;  %6646 = vmatprep.mubr.bf16.mxu0 %v5750_v34  ;;  %v615_v44 = vrot.slane %v614_v33, 4  ;;  %v624_v49 = vor.u32 %v623_v46, %v619_v18  ;;  %v632_v50 = vshrl.u32 %v7818_v27, 16  ;;  %v635_v52 = vshll.u32 %v7818_v27, 16  ;;  %v5705_v30 = vld [vmem:[%s7404_s20 + $0x60] sm:$0xe] }
  0x7c   : > { %v3005_v14 = vsel %vm7682_vm5, %v5719_v39, %v3004_v23  ;;  %v3006_v22 = vrot.slane %v3004_v23, 4  ;;  %v641_v51 = vshll.u32 %v7821_v29, 16  ;;  %v645_v55 = vshrl.u32 %v7821_v29, 16  ;;  %6680 = vmatprep.subr.bf16.mxu0 %v7154_v32  ;;  %v5635_v39 = vld [vmem:[%s7404_s20 + $0x70] sm:$0xf] }
  0x7d   : > { %v620_v56 = vsel %vm7436_vm2, %v615_v44, %v619_v18  ;;  %v625_v57 = vrot.slane %v624_v49, 4  ;;  %v634_v58 = vrot.slane %v632_v50, 4  ;;  %v637_v59 = vrot.slane %v635_v52, 5  ;;  %v7868_v44 = vld [vmem:[%s9253_s1 + $0x1c0] sm:$0xff]  }
  0x7e   : > { %v3008_v24 = vsel %vm7682_vm5, %v3006_v22, %v3007_v42  ;;  %v643_v61 = vrot.slane %v641_v51, 5  ;;  %v647_v6 = vrot.slane %v645_v55, 4  ;;  %v651_v63 = vshll.u32 %v290_v43, 16  ;;  %6681 = vmatpush3.bf16.msra.mxu0 %v7154_v32  ;;  %v5706_v43 = vld [vmem:[%s7404_s20 + $0x6c] sm:$0xe] }
  0x7f   : > { %v630_v1 = vsel %vm7436_vm2, %v625_v57, %v629_v38  ;;  %v5751_v7 = vcombine.low %v3005_v14, %v3008_v24  ;;  %v638_v10 = vor.u32 %v637_v59, %v634_v58  ;;  %v5720_v11 = vrot.slane %v5704_v53, 9  ;;  %6682 = vmatprep.subr.bf16.mxu0 %v7158_v45  ;;  %v5636_v55 = vld [vmem:[%s7404_s20 + $0x74] sm:$0x1]  ;;  %v5707_v24 = vld [vmem:[%s7404_s20 + $0x78] sm:$0xe] }
  0x80   : > { %v5447_v28 = vcombine.low %v620_v56, %v630_v1  ;;  %v648_v8 = vor.u32 %v647_v6, %v643_v61  ;;  %v653_v15 = vrot.slane %v651_v63, 5  ;;  %v3011_v32 = vrot.slane %v7620_v0, 5 }
  0x81   : > { %6647 = vmatmul.mubr.bf16.gmra.mrb[8].mxu0 %v5751_v7  ;;  %v639_v36 = vrot.slane %v638_v10, 4  ;;  %v3014_v62 = vrot.slane %v7632_v20, 5  ;;  %v656_v18 = vshrl.u32 %v7841_v41, 16  ;;  %v659_v26 = vshll.u32 %v7841_v41, 16 }
  0x82   : > { %6423 = vmatmul.mubr.bf16.gmra.mrb[24].mxu1 %v5447_v28  ;;  %v649_v34 = vrot.slane %v648_v8, 4  ;;  %v3012_v33 = vsel %vm7682_vm5, %v5720_v11, %v3011_v32  ;;  %v3013_v46 = vrot.slane %v3011_v32, 4  ;;  %v665_v38 = vshll.u32 %v7846_v12, 16  ;;  %6683 = vmatpush3.bf16.msra.mxu0 %v7158_v45  ;;  %v7881_v11 = vld [vmem:[%s7404_s20 + $0x7c] sm:$0xf] }
  0x83   : > { %v644_v0 = vsel %vm7436_vm2, %v639_v36, %v643_v61  ;;  %v658_v20 = vrot.slane %v656_v18, 4  ;;  %v661_v23 = vrot.slane %v659_v26, 5  ;;  %v669_v42 = vshrl.u32 %v7846_v12, 16  ;;  %6684 = vmatprep.subr.bf16.mxu0 %v7162_v13  ;;  %v7231_v36 = vld [vmem:[%s7404_s20] sm:$0xf] }
  0x84   : > { %v654_v49 = vsel %vm7436_vm2, %v649_v34, %v653_v15  ;;  %v3015_v50 = vsel %vm7682_vm5, %v3013_v46, %v3014_v62  ;;  %v667_v52 = vrot.slane %v665_v38, 5  ;;  %v675_v53 = vshll.u32 %v291_v19, 16  ;;  %v5641_v15 = vld [vmem:[%s7404_s20 + $0x88] sm:$0xf]  ;;  %v7896_v62 = vld [vmem:[%s7404_s20 + $0x4] sm:$0xf] }
  0x85   : > { %v5448_v45 = vcombine.low %v644_v0, %v654_v49  ;;  %v5752_v14 = vcombine.low %v3012_v33, %v3015_v50  ;;  %v662_v22 = vor.u32 %v661_v23, %v658_v20  ;;  %v671_v51 = vrot.slane %v669_v42, 4  ;;  %v5642_v26 = vld [vmem:[%s7404_s20 + $0x8c] sm:$0x1]  ;;  %v5645_v23 = vld [vmem:[%s7404_s20 + $0x98] sm:$0x1] }
  0x86   : > { %v677_v56 = vrot.slane %v675_v53, 5  ;;  %v5721_v57 = vrot.slane %v5705_v30, 9  ;;  %v3018_v58 = vrot.slane %v7647_v60, 5  ;;  %v3021_v59 = vrot.slane %v7656_v17, 5  ;;  %6685 = vmatpush3.bf16.msra.mxu0 %v7162_v13  ;;  %v7884_v17 = vld [vmem:[%s7404_s20 + $0x80] sm:$0x1] }
  0x87   : > { %6426 = vmatprep.mubr.bf16.mxu1 %v5448_v45  ;;  %6650 = vmatprep.mubr.bf16.mxu0 %v5752_v14  ;;  %v663_v61 = vrot.slane %v662_v22, 4  ;;  %v672_v6 = vor.u32 %v671_v51, %v667_v52  ;;  %v5722_v63 = vrot.slane %v5706_v43, 9  ;;  %v3025_v1 = vrot.slane %v5635_v39, 5  ;;  %v5708_v30 = vld [vmem:[%s7404_s20 + $0x84] sm:$0xe] }
  0x88   : > { %v3019_v7 = vsel %vm7682_vm5, %v5721_v57, %v3018_v58  ;;  %v3020_v10 = vrot.slane %v3018_v58, 4  ;;  %v3028_v60 = vrot.slane %v5636_v55, 5  ;;  %6718 = vmatprep.subr.bf16.mxu0 %v7868_v44  ;;  %v5458_v18 = vcombine.low %v7231_v36, %v7896_v62  ;;  %v5644_v39 = vld [vmem:[%s7404_s20 + $0x94] sm:$0xf]  ;;  %v5709_v42 = vld [vmem:[%s7404_s20 + $0x90] sm:$0xe] }
  0x89   : > { %v668_v19 = vsel %vm7436_vm2, %v663_v61, %v667_v52  ;;  %v673_v13 = vrot.slane %v672_v6, 4  ;;  %v3026_v28 = vsel %vm7682_vm5, %v5722_v63, %v3025_v1  ;;  %v3027_v8 = vrot.slane %v3025_v1, 4  ;;  %v5710_v50 = vld [vmem:[%s7404_s20 + $0x9c] sm:$0xe]  ;;  %v5647_v14 = vld [vmem:[%s7404_s20 + $0xa0] sm:$0xf] }
  0x8a   : > { %v3022_v32 = vsel %vm7682_vm5, %v3020_v10, %v3021_v59  ;;  %v5723_v38 = vrot.slane %v5707_v24, 9  ;;  %v3032_v43 = vrot.slane %v7881_v11, 5  ;;  %v3035_v49 = vrot.slane %v7884_v17, 5  ;;  %v5648_v22 = vld [vmem:[%s7404_s20 + $0xa4] sm:$0x1] }
  0x8b   : > { %v678_v34 = vsel %vm7436_vm2, %v673_v13, %v677_v56  ;;  %v5753_v33 = vcombine.low %v3019_v7, %v3022_v32  ;;  %v3029_v46 = vsel %vm7682_vm5, %v3027_v8, %v3028_v60  ;;  %v5724_v52 = vrot.slane %v5708_v30, 9  ;;  %v5650_v59 = vld [vmem:[%s7404_s20 + $0xac] sm:$0xf]  ;;  %v7920_v61 = vld [vmem:[%s7404_s20 + $0x10] sm:$0xf] }
  0x8c   : > { %v5449_v0 = vcombine.low %v668_v19, %v678_v34  ;;  %v5754_v20 = vcombine.low %v3026_v28, %v3029_v46  ;;  %v3039_v53 = vrot.slane %v5641_v15, 5  ;;  %v3042_v45 = vrot.slane %v5642_v26, 5  ;;  %v7233_v24 = vld [vmem:[%s7404_s20 + $0xc] sm:$0xf]  ;;  %v7235_v8 = vld [vmem:[%s7404_s20 + $0x18] sm:$0xf] }
  0x8d   : > { %6651 = vmatmul.mubr.bf16.gmra.mrb[12].mxu0 %v5753_v33  ;;  %v3033_v51 = vsel %vm7682_vm5, %v5723_v38, %v3032_v43  ;;  %v3034_v55 = vrot.slane %v3032_v43, 4  ;;  %v3046_v58 = vrot.slane %v5644_v39, 5  ;;  %v5459_v6 = vcombine.low %v7233_v24, %v7920_v61  ;;  %v7153_v19 = vld [vmem:[%s9253_s1 + $0x88] sm:$0xff]   ;;  %v7932_v15 = vld [vmem:[%s7404_s20 + $0x1c] sm:$0xf] }
  0x8e   : > { %6427 = vmatmul.mubr.bf16.gmra.mrb[28].mxu1 %v5449_v0  ;;  %6654 = vmatprep.mubr.bf16.mxu0 %v5754_v20  ;;  %v3040_v56 = vsel %vm7682_vm5, %v5724_v52, %v3039_v53  ;;  %v3041_v57 = vrot.slane %v3039_v53, 4  ;;  %v5725_v1 = vrot.slane %v5709_v42, 9  ;;  %v3049_v7 = vrot.slane %v5645_v23, 5  ;;  %v5651_v30 = vld [vmem:[%s7404_s20 + $0xb0] sm:$0x1] }
  0x8f   : > { %6446 = vmatprep.mubr.bf16.mxu1 %v5458_v18  ;;  %v3036_v63 = vsel %vm7682_vm5, %v3034_v55, %v3035_v49  ;;  %v3048_v13 = vrot.slane %v3046_v58, 4  ;;  %v5726_v28 = vrot.slane %v5710_v50, 9  ;;  %v5460_v32 = vcombine.low %v7235_v8, %v7932_v15  ;;  %v5711_v34 = vld [vmem:[%s7404_s20 + $0xa8] sm:$0xe]  ;;  %v5653_v33 = vld [vmem:[%s7404_s20 + $0xb8] sm:$0xf] }
  0x90   : > { %v5755_v10 = vcombine.low %v3033_v51, %v3036_v63  ;;  %v3043_v60 = vsel %vm7682_vm5, %v3041_v57, %v3042_v45  ;;  %v3053_v18 = vrot.slane %v5647_v14, 5  ;;  %v3056_v26 = vrot.slane %v5648_v22, 5  ;;  %v5654_v20 = vld [vmem:[%s7404_s20 + $0xbc] sm:$0x1]  ;;  %v5712_v23 = vld [vmem:[%s7404_s20 + $0xb4] sm:$0xe] }
  0x91   : > { %v5756_v36 = vcombine.low %v3040_v56, %v3043_v60  ;;  %v3060_v38 = vrot.slane %v5650_v59, 5  ;;  %v3047_v39 = vsel %vm7682_vm5, %v5725_v1, %v3046_v58  ;;  %v3050_v0 = vsel %vm7682_vm5, %v3048_v13, %v3049_v7  ;;  %v7157_v50 = vld [vmem:[%s9253_s1 + $0x90] sm:$0xff]   ;;  %v5656_v53 = vld [vmem:[%s7404_s20 + $0xc4] sm:$0xf]  ;;  %v7955_v51 = vld [vmem:[%s7404_s20 + $0x28] sm:$0xf] }
  0x92   : > { %v3055_v46 = vrot.slane %v3053_v18, 4  ;;  %v3054_v42 = vsel %vm7682_vm5, %v5726_v28, %v3053_v18  ;;  %v3067_v49 = vrot.slane %v5653_v33, 5  ;;  %v5727_v52 = vrot.slane %v5711_v34, 9  ;;  %v7237_v22 = vld [vmem:[%s7404_s20 + $0x24] sm:$0xf]  ;;  %v7161_v1 = vld [vmem:[%s9253_s1 + $0x98] sm:$0xff]  }
  0x93   : > { %v5757_v45 = vcombine.low %v3047_v39, %v3050_v0  ;;  %v3062_v14 = vrot.slane %v3060_v38, 4  ;;  %v5461_v55 = vcombine.low %v7237_v22, %v7955_v51  ;;  %v7239_v57 = vld [vmem:[%s7404_s20 + $0x30] sm:$0xf]  ;;  %v7960_v58 = vld [vmem:[%s7404_s20 + $0x34] sm:$0xf]  ;;  %v5728_v24 = vrot.slane %v5712_v23, 9 }
  0x94   : > { %v3057_v43 = vsel %vm7682_vm5, %v3055_v46, %v3056_v26  ;;  %v5462_v59 = vcombine.low %v7239_v57, %v7960_v58  ;;  %v3070_v63 = vrot.slane %v5654_v20, 5  ;;  %v5713_v7 = vld [vmem:[%s7404_s20 + $0xc0] sm:$0xe]  ;;  %v3061_v60 = vsel %vm7682_vm5, %v5727_v52, %v3060_v38  ;;  %v5657_v8 = vld [vmem:[%s7404_s20 + $0xc8] sm:$0x1]  ;;  %v7164_v22 = vld [vmem:[%s7404_s20 + $0x18] sm:$0xff]  }
  0x95   : > { %6655 = vmatmul.mubr.bf16.gmra.mrb[16].mxu0 %v5755_v10  ;;  %v5758_v56 = vcombine.low %v3054_v42, %v3057_v43  ;;  %v3074_v10 = vrot.slane %v5656_v53, 5  ;;  %v3068_v13 = vsel %vm7682_vm5, %v5728_v24, %v3067_v49  ;;  %v5729_v18 = vrot.slane %v5713_v7, 9  ;;  %v7241_v26 = vld [vmem:[%s7404_s20 + $0x3c] sm:$0xf]  ;;  %v7243_v39 = vld [vmem:[%s7404_s20 + $0x48] sm:$0xf] }
  0x96   : > { %6447 = vmatmul.mubr.bf16.vlgmr.msra.gmra.mrb[0].mxu1 %v5459_v6  ;;  %6658 = vmatprep.mubr.bf16.mxu0 %v5756_v36  ;;  %v3069_v6 = vrot.slane %v3067_v49, 4  ;;  %v3077_v38 = vrot.slane %v5657_v8, 5  ;;  %v7986_v0 = vld [vmem:[%s7404_s20 + $0x4c] sm:$0xf]  ;;  %v7178_v49 = vld [vmem:[%s9253_s1 + $0xb0] sm:$0xff]   ;;  %v2427_v52 = vshrl.u32 %v7881_v11, 16 }
  0x97   : > { %6479 = vmatpush3.bf16.msra.mxu1 %v7606_v4  ;;  %6450 = vmatprep.mubr.bf16.mxu1 %v5460_v32  ;;  %v3063_v4 = vrot.slane %v5651_v30, 5  ;;  %v7166_v32 = vld [vmem:[%s9253_s1 + $0xa0] sm:$0xff]   ;;  %v3076_v46 = vrot.slane %v3074_v10, 4  ;;  %v5464_v20 = vcombine.low %v7243_v39, %v7986_v0  ;;  %v7172_v23 = vld [vmem:[%s9253_s1 + $0xa8] sm:$0xff]   ;;  %v3075_v42 = vsel %vm7682_vm5, %v5729_v18, %v3074_v10  ;;  %v7170_v18 = vld [vmem:[%s7404_s20 + $0x30] sm:$0xff]  }
  0x98   : > { %6480 = vmatprep.subr.bf16.mxu1 %v7153_v19  ;;  %v3071_v28 = vsel %vm7682_vm5, %v3069_v6, %v3070_v63  ;;  %v7981_v30 = vld [vmem:[%s7404_s20 + $0x40] sm:$0xf]  ;;  %v8014_v57 = vrot.slane %v2427_v52, 4  ;;  %v7167_v6 = vld [vmem:[%s7404_s20 + $0x24] sm:$0xff]   ;;  %v1334_v7 = vrot.slane %v7920_v61, 5  ;;  %v2433_v8 = vshll.u32 %v7884_v17, 16 }
  0x99   : > { %v5463_v34 = vcombine.low %v7241_v26, %v7981_v30  ;;  %v5760_v33 = vcombine.low %v3068_v13, %v3071_v28  ;;  %v3078_v43 = vsel %vm7682_vm5, %v3076_v46, %v3077_v38  ;;  %v1274_v63 = vld [vmem:[%s7404_s20] sm:$0xe]  ;;  %v1275_v10 = vld [vmem:[%s7404_s20 + $0xc] sm:$0xe]  ;;  %v1341_v13 = vrot.slane %v7932_v15, 5 }
  0x9a   : > { %v5761_v53 = vcombine.low %v3075_v42, %v3078_v43  ;;  %v1277_v61 = vld [vmem:[%s7404_s20 + $0x24] sm:$0xe]  ;;  %v5469_v15 = vcombine.low %v7734_v16, %v7742_v40  ;;  %v5470_v26 = vcombine.low %v7763_v2, %v7766_v3  ;;  %v5482_v17 = vrot.slane %v1274_v63, 9  ;;  %v7249_v38 = vld [vmem:[%s7404_s20 + $0x20] sm:$0x1]  ;;  %v7179_v2 = vld [vmem:[%s7404_s20 + $0x54] sm:$0xff]  }
  0x9b   : > { %6481 = vmatpush3.bf16.msra.mxu1 %v7153_v19  ;;  %v3064_v19 = vsel %vm7682_vm5, %v3062_v14, %v3063_v4  ;;  %v8003_v14 = vld [vmem:[%s7404_s20 + $0x58] sm:$0xf]  ;;  %v1343_v46 = vrot.slane %v1341_v13, 4  ;;  %v1344_v39 = vrot.slane %v7249_v38, 5  ;;  %v7250_v43 = vld [vmem:[%s7404_s20 + $0x2c] sm:$0x1] }
  0x9c   : > { %6482 = vmatprep.subr.bf16.mxu1 %v7157_v50  ;;  %v5759_v36 = vcombine.low %v3061_v60, %v3064_v19  ;;  %v8029_v60 = vld [vmem:[%s9253_s1 + $0xc0] sm:$0xff]   ;;  %v1276_v19 = vld [vmem:[%s7404_s20 + $0x18] sm:$0xe]  ;;  %v7253_v38 = vld [vmem:[%s7404_s20 + $0x50] sm:$0x1]  ;;  %v1376_v16 = vrot.slane %v8003_v14, 5 }
  0x9d   : > { %6659 = vmatmul.mubr.bf16.gmra.mrb[20].mxu0 %v5757_v45  ;;  %v7245_v45 = vld [vmem:[%s7404_s20 + $0x54] sm:$0xf]  ;;  %v8152_v40 = vld [vmem:[%s7404_s20 + $0x64] sm:$0xf] }
  0x9e   : > { %6451 = vmatmul.mubr.bf16.gmra.mrb[4].mxu1 %v5461_v55  ;;  %6662 = vmatprep.mubr.bf16.mxu0 %v5758_v56  ;;  %v5465_v4 = vcombine.low %v7245_v45, %v8003_v14  ;;  %v5466_v55 = vcombine.low %v7660_v25, %v7663_v35  ;;  %v7184_v56 = vld [vmem:[%s9253_s1 + $0xb8] sm:$0xff]   ;;  %v7248_v25 = vld [vmem:[%s7404_s20 + $0x14] sm:$0x1]  ;;  %v7182_v3 = vld [vmem:[%s7404_s20 + $0x60] sm:$0xff]  }
  0x9f   : > { %6454 = vmatprep.mubr.bf16.mxu1 %v5462_v59  ;;  %6483 = vmatpush3.bf16.msra.mxu1 %v7157_v50  ;;  %v2423_v50 = vshll.u32 %v7881_v11, 16  ;;  %v8017_v59 = vld [vmem:[%s7404_s20 + $0x8] sm:$0x1]  ;;  %v1337_v35 = vrot.slane %v7248_v25, 5 }
  0xa0   : > { %6484 = vmatprep.subr.bf16.mxu1 %v7161_v1  ;;  %v1330_v24 = vrot.slane %v8017_v59, 5 }
  0xa1   : > { %v8012_v11 = vrot.slane %v2423_v50, 5 }
  0xa3   : > { %6485 = vmatpush3.bf16.msra.mxu1 %v7161_v1  ;;  %v1327_v1 = vrot.slane %v7896_v62, 5  ;;  %v5467_v62 = vcombine.low %v7678_v5, %v7690_v21  ;;  %v5483_v21 = vrot.slane %v1275_v10, 9  ;;  %v5842_v10 = vld [vmem:[%s7404_s20 + $0x18] sm:$0xf] }
  0xa4   : > { %6486 = vmatprep.subr.bf16.mxu1 %v7166_v32 }
  0xa5   : > { %6663 = vmatmul.mubr.bf16.gmra.mrb[24].mxu0 %v5759_v36  ;;  %v5468_v36 = vcombine.low %v7701_v47, %v7712_v54  ;;  %v1329_v5 = vrot.slane %v1327_v1, 4  ;;  %v7174_v47 = vld [vmem:[%s9253_s1 + $0x1c8] sm:$0xff]   ;;  %v5484_v54 = vrot.slane %v1276_v19, 9  ;;  %v8072_v59 = vsel %vm7682_vm5, %v5482_v17, %v1327_v1  ;;  %v5843_v19 = vld [vmem:[%s7404_s20 + $0x1c] sm:$0xf] }
  0xa6   : > { %6455 = vmatmul.mubr.bf16.gmra.mrb[8].mxu1 %v5463_v34  ;;  %6666 = vmatprep.mubr.bf16.mxu0 %v5760_v33  ;;  %v1355_v34 = vrot.slane %v7960_v58, 5  ;;  %v1336_v33 = vrot.slane %v1334_v7, 4  ;;  %v5485_v58 = vrot.slane %v1277_v61, 9  ;;  %v1369_v1 = vrot.slane %v7986_v0, 5  ;;  %v7176_v0 = vld [vmem:[%s7404_s20 + $0x48] sm:$0xff]  }
  0xa7   : > { %6458 = vmatprep.mubr.bf16.mxu1 %v5464_v20  ;;  %6487 = vmatpush3.bf16.msra.mxu1 %v7166_v32  ;;  %v1348_v32 = vrot.slane %v7955_v51, 5  ;;  %v1278_v51 = vld [vmem:[%s7404_s20 + $0x30] sm:$0xe]  ;;  %v5471_v20 = vcombine.low %v7784_v31, %v7793_v48  ;;  %v8080_v25 = vsel %vm7682_vm5, %v1329_v5, %v1330_v24  ;;  %v8088_v63 = vsel %vm7682_vm5, %v5484_v54, %v1341_v13  ;;  %v1280_v13 = vld [vmem:[%s7404_s20 + $0x48] sm:$0xe] }
  0xa8   : > { %6488 = vmatprep.subr.bf16.mxu1 %v7172_v23  ;;  %v5486_v50 = vrot.slane %v1278_v51, 9  ;;  %v1357_v52 = vrot.slane %v1355_v34, 4  ;;  %v3840_v5 = vshrl.u32 %v5842_v10, 16  ;;  %v3853_v51 = vshrl.u32 %v5843_v19, 16  ;;  %v7185_v48 = vld [vmem:[%s7404_s20 + $0x6c] sm:$0xff]  }
  0xa9   : > { %v1350_v42 = vrot.slane %v1348_v32, 4  ;;  %v8100_v24 = vsel %vm7682_vm5, %v5485_v58, %v1348_v32  ;;  %v7252_v32 = vld [vmem:[%s7404_s20 + $0x44] sm:$0x1]  ;;  %v5488_v54 = vrot.slane %v1280_v13, 9  ;;  %v5846_v13 = vld [vmem:[%s7404_s20 + $0x28] sm:$0xf] }
  0xaa   : > { %v8110_v61 = vsel %vm7682_vm5, %v5486_v50, %v1355_v34  ;;  %v1365_v17 = vrot.slane %v7252_v32, 5  ;;  %v5844_v50 = vld [vmem:[%s7404_s20 + $0x20] sm:$0x1]  ;;  %v1282_v32 = vld [vmem:[%s7404_s20 + $0x60] sm:$0xe] }
  0xab   : > { %6489 = vmatpush3.bf16.msra.mxu1 %v7172_v23  ;;  %v5472_v23 = vcombine.low %v7818_v27, %v7821_v29 }
  0xac   : > { %6490 = vmatprep.subr.bf16.mxu1 %v7178_v49 }
  0xad   : > { %6667 = vmatmul.mubr.bf16.gmra.mrb[28].mxu0 %v5761_v53  ;;  %v7251_v53 = vld [vmem:[%s7404_s20 + $0x38] sm:$0x1] }
  0xae   : > { %6459 = vmatmul.mubr.bf16.gmra.mrb[12].mxu1 %v5465_v4  ;;  %6686 = vmatprep.mubr.bf16.mxu0 %v7164_v22  ;;  %v1358_v45 = vrot.slane %v7251_v53, 5  ;;  %v1279_v4 = vld [vmem:[%s7404_s20 + $0x3c] sm:$0xe]  ;;  %v1362_v22 = vrot.slane %v7981_v30, 5  ;;  %v8076_v30 = vsel %vm7682_vm5, %v5483_v21, %v1334_v7  ;;  %v3843_v21 = vshll.u32 %v5842_v10, 16  ;;  %v7190_v53 = vld [vmem:[%s9253_s1 + $0x1e0] sm:$0xff]  }
  0xaf   : > { %6462 = vmatprep.mubr.bf16.mxu1 %v5466_v55  ;;  %6491 = vmatpush3.bf16.msra.mxu1 %v7178_v49  ;;  %v1351_v49 = vrot.slane %v7250_v43, 5  ;;  %v8063_v55 = vrot.slane %v2433_v8, 5  ;;  %v7173_v7 = vld [vmem:[%s7404_s20 + $0x3c] sm:$0xff]   ;;  %v8096_v8 = vsel %vm7682_vm5, %v1343_v46, %v1344_v39  ;;  %v1371_v46 = vrot.slane %v1369_v1, 4  ;;  %v5848_v43 = vld [vmem:[%s7404_s20 + $0x30] sm:$0xf] }
  0xb0   : > { %6492 = vmatprep.subr.bf16.mxu1 %v7184_v56  ;;  %v1372_v39 = vrot.slane %v7253_v38, 5  ;;  %v3842_v10 = vrot.slane %v3840_v5, 4 }
  0xb1   : > { %9275 = vst [vmem:[#allocation2_spill] sm:$0xff] %v8063_v55 }
  0xb3   : > { %6493 = vmatpush3.bf16.msra.mxu1 %v7184_v56  ;;  %v7180_v56 = vld [vmem:[%s9253_s1 + $0x1d0] sm:$0xff]  }
  0xb4   : > { %6526 = vmatprep.subr.bf16.mxu1 %v8029_v60 }
  0xb5   : > { %6687 = vmatmul.mubr.bf16.vlgmr.msra.gmra.mrb[0].mxu0 %v7167_v6  ;;  %v8084_v6 = vsel %vm7682_vm5, %v1336_v33, %v1337_v35  ;;  %v8104_v35 = vsel %vm7682_vm5, %v1350_v42, %v1351_v49  ;;  %v3849_v33 = vshll.u32 %v5843_v19, 16  ;;  %v3845_v19 = vrot.slane %v3843_v21, 5  ;;  %v1283_v21 = vld [vmem:[%s7404_s20 + $0x6c] sm:$0xe] }
  0xb6   : > { %6463 = vmatmul.mubr.bf16.gmra.mrb[16].mxu1 %v5467_v62  ;;  %6719 = vmatpush3.bf16.msra.mxu0 %v7868_v44  ;;  %v5487_v62 = vrot.slane %v1279_v4, 9  ;;  %v5491_v58 = vrot.slane %v1283_v21, 9 }
  0xb7   : > { %6466 = vmatprep.mubr.bf16.mxu1 %v5468_v36  ;;  %6690 = vmatprep.mubr.bf16.mxu0 %v7170_v18  ;;  %v8114_v36 = vsel %vm7682_vm5, %v1357_v52, %v1358_v45  ;;  %v1364_v18 = vrot.slane %v1362_v22, 4  ;;  %v5845_v52 = vld [vmem:[%s7404_s20 + $0x24] sm:$0xf]  ;;  %v3877_v45 = vshrl.u32 %v5846_v13, 16 }
  0xb8   : > { %6720 = vmatprep.subr.bf16.mxu0 %v7174_v47  ;;  %v8131_v49 = vsel %vm7682_vm5, %v5487_v62, %v1362_v22  ;;  %v8148_v22 = vld [vmem:[%s7404_s20 + $0x54] sm:$0xe]  ;;  %v3855_v62 = vrot.slane %v3853_v51, 4  ;;  %v3864_v38 = vshrl.u32 %v5845_v52, 16  ;;  %v3867_v28 = vshll.u32 %v5845_v52, 16 }
  0xb9   : > { %v8145_v4 = vsel %vm7682_vm5, %v1364_v18, %v1365_v17  ;;  %v3859_v17 = vshll.u32 %v5844_v50, 16  ;;  %v5489_v5 = vrot.slane %v8148_v22, 9  ;;  %v7194_v50 = vld [vmem:[%s9253_s1 + $0x1e8] sm:$0xff]   ;;  %v1378_v52 = vrot.slane %v1376_v16, 4 }
  0xba   : > { %6721 = vmatpush3.bf16.msra.mxu0 %v7174_v47  ;;  %v7186_v47 = vld [vmem:[%s9253_s1 + $0x1d8] sm:$0xff]   ;;  %v3846_v22 = vor.u32 %v3845_v19, %v3842_v10  ;;  %v3866_v34 = vrot.slane %v3864_v38, 4  ;;  %v3869_v44 = vrot.slane %v3867_v28, 5  ;;  %v7258_v10 = vld [vmem:[%s7404_s20 + $0x74] sm:$0x1]  ;;  %v3879_v28 = vrot.slane %v3877_v45, 4 }
  0xbb   : > { %6722 = vmatprep.subr.bf16.mxu0 %v7180_v56  ;;  %v8186_v42 = vrot.slane %v3859_v17, 5  ;;  %v1393_v19 = vrot.slane %v7258_v10, 5  ;;  %v3888_v38 = vshrl.u32 %v5848_v43, 16  ;;  %v8211_v27 = vsel %vm7682_vm5, %v5489_v5, %v1376_v16 }
  0xbc   : > { %v3847_v21 = vrot.slane %v3846_v22, 4 }
  0xbd   : > { %6691 = vmatmul.mubr.bf16.gmra.mrb[4].mxu0 %v7173_v7  ;;  %v8158_v7 = vrot.slane %v3849_v33, 5  ;;  %v7256_v33 = vld [vmem:[%s7404_s20 + $0x70] sm:$0xf] }
  0xbe   : > { %6467 = vmatmul.mubr.bf16.gmra.mrb[20].mxu1 %v5469_v15  ;;  %6694 = vmatprep.mubr.bf16.mxu0 %v7176_v0  ;;  %v1383_v15 = vrot.slane %v8152_v40, 5  ;;  %v7255_v0 = vld [vmem:[%s7404_s20 + $0x5c] sm:$0x1]  ;;  %v1390_v51 = vrot.slane %v7256_v33, 5 }
  0xbf   : > { %6470 = vmatprep.mubr.bf16.mxu1 %v5470_v26  ;;  %6723 = vmatpush3.bf16.msra.mxu0 %v7180_v56  ;;  %v1379_v18 = vrot.slane %v7255_v0, 5  ;;  %v8167_v26 = vsel %vm7682_vm5, %v5488_v54, %v1369_v1  ;;  %v8171_v56 = vsel %vm7682_vm5, %v1371_v46, %v1372_v39  ;;  %v7257_v1 = vld [vmem:[%s7404_s20 + $0x68] sm:$0x1]  ;;  %v3873_v0 = vshll.u32 %v5846_v13, 16  ;;  %v7202_v40 = vld [vmem:[%s9253_s1 + $0x1f8] sm:$0xff]  }
  0xc0   : > { %6724 = vmatprep.subr.bf16.mxu0 %v7186_v47  ;;  %v1386_v54 = vrot.slane %v7257_v1, 5  ;;  %v5490_v46 = vrot.slane %v1282_v32, 9  ;;  %v1385_v39 = vrot.slane %v1383_v15, 4  ;;  %v3856_v33 = vor.u32 %v3855_v62, %v8158_v7  ;;  %v5849_v1 = vld [vmem:[%s7404_s20 + $0x34] sm:$0xf] }
  0xc1   : > { %v1392_v32 = vrot.slane %v1390_v51, 4  ;;  %v5847_v62 = vld [vmem:[%s7404_s20 + $0x2c] sm:$0x1]  ;;  %v8198_v17 = vrot.slane %v3873_v0, 5  ;;  %v3897_v13 = vshll.u32 %v5849_v1, 16  ;;  %v3901_v31 = vshrl.u32 %v5849_v1, 16 }
  0xc2   : > { %v3857_v10 = vrot.slane %v3856_v33, 4  ;;  %v8215_v29 = vsel %vm7682_vm5, %v1378_v52, %v1379_v18  ;;  %v8222_v45 = vsel %vm7682_vm5, %v5490_v46, %v1383_v15  ;;  %v8226_v14 = vsel %vm7682_vm5, %v1385_v39, %v1386_v54  ;;  %v1284_v18 = vld [vmem:[%s7404_s20 + $0x78] sm:$0xe] }
  0xc3   : > { %6725 = vmatpush3.bf16.msra.mxu0 %v7186_v47  ;;  %v8230_v16 = vsel %vm7682_vm5, %v5491_v58, %v1390_v51  ;;  %v8240_v15 = vsel %vm7682_vm5, %v1392_v32, %v1393_v19  ;;  %v3880_v5 = vor.u32 %v3879_v28, %v8198_v17  ;;  %v3890_v52 = vrot.slane %v3888_v38, 4  ;;  %v5851_v58 = vld [vmem:[%s7404_s20 + $0x3c] sm:$0xf]  ;;  %v5852_v51 = vld [vmem:[%s7404_s20 + $0x40] sm:$0xf] }
  0xc4   : > { %6726 = vmatprep.subr.bf16.mxu0 %v7190_v53  ;;  %v3852_v0 = vsel %vm7436_vm2, %v3847_v21, %v8158_v7  ;;  %v3862_v46 = vsel %vm7436_vm2, %v3857_v10, %v8186_v42  ;;  %v8251_v39 = vrot.slane %v3897_v13, 5  ;;  %v3903_v22 = vrot.slane %v3901_v31, 4  ;;  %v7260_v19 = vld [vmem:[%s7404_s20 + $0x80] sm:$0x1]  ;;  %v8410_v47 = vld [vmem:[%s7404_s20 + $0x68] sm:$0x1] }
  0xc5   : > { %6695 = vmatmul.mubr.bf16.gmra.mrb[8].mxu0 %v7179_v2  ;;  %v3891_v2 = vshll.u32 %v5848_v43, 16  ;;  %v3883_v43 = vshll.u32 %v5847_v62, 16  ;;  %v5492_v32 = vrot.slane %v1284_v18, 9  ;;  %v1285_v62 = vld [vmem:[%s7404_s20 + $0x84] sm:$0xe]  ;;  %v3912_v28 = vshrl.u32 %v5851_v58, 16 }
  0xc6   : > { %6471 = vmatmul.mubr.bf16.gmra.mrb[24].mxu1 %v5471_v20  ;;  %6698 = vmatprep.mubr.bf16.mxu0 %v7182_v3  ;;  %v7198_v20 = vld [vmem:[%s9253_s1 + $0x1f0] sm:$0xff]   ;;  %v7259_v3 = vld [vmem:[%s7404_s20 + $0x7c] sm:$0xf]  ;;  %v3915_v7 = vshll.u32 %v5851_v58, 16  ;;  %v3921_v38 = vshll.u32 %v5852_v51, 16  ;;  %v9276_v42 = vcombine.low %v7841_v41, %v7846_v12  ;;  %v8262_v13 = vrot.slane %v3880_v5, 4 }
  0xc7   : > { %6474 = vmatprep.mubr.bf16.mxu1 %v5472_v23  ;;  %6727 = vmatpush3.bf16.msra.mxu0 %v7190_v53  ;;  %v3870_v23 = vor.u32 %v3869_v44, %v3866_v34  ;;  %v7187_v53 = vld [vmem:[%s7404_s20 + $0x78] sm:$0xff]   ;;  %v1397_v44 = vrot.slane %v7259_v3, 5  ;;  %v3893_v54 = vrot.slane %v3891_v2, 5  ;;  %v8255_v1 = vrot.slane %v3883_v43, 5  ;;  %v8267_v21 = vld [vmem:[%s9253_s1 + $0x200] sm:$0xff]   ;;  %9284 = vst [vmem:[#allocation5_spill] sm:$0xff] %v8410_v47 }
  0xc8   : > { %6728 = vmatprep.subr.bf16.mxu0 %v7194_v50  ;;  %v5850_v34 = vld [vmem:[%s7404_s20 + $0x38] sm:$0x1]  ;;  %v3925_v2 = vshrl.u32 %v5852_v51, 16  ;;  %v7189_v43 = vld [vmem:[%s7404_s20 + $0x84] sm:$0xff]   ;;  %v3904_v12 = vor.u32 %v3903_v22, %v8251_v39  ;;  %v3917_v58 = vrot.slane %v3915_v7, 5  ;;  %v8289_v51 = vrot.slane %v3921_v38, 5 }
  0xc9   : > { %v8253_v33 = vrot.slane %v3870_v23, 4  ;;  %v1399_v10 = vrot.slane %v1397_v44, 4  ;;  %v3894_v31 = vor.u32 %v3893_v54, %v3890_v52  ;;  %v9277_v23 = vcombine.low %v8072_v59, %v8080_v25  ;;  %v7261_v18 = vld [vmem:[%s7404_s20 + $0x88] sm:$0xf]  ;;  %v5853_v5 = vld [vmem:[%s7404_s20 + $0x44] sm:$0x1] }
  0xca   : > { %v1404_v3 = vrot.slane %v7261_v18, 5  ;;  %v8280_v59 = vcombine.low %v3852_v0, %v3862_v46  ;;  %v5854_v52 = vld [vmem:[%s7404_s20 + $0x48] sm:$0xf]  ;;  %v3914_v54 = vrot.slane %v3912_v28, 4  ;;  %v3927_v22 = vrot.slane %v3925_v2, 4 }
  0xcb   : > { %6729 = vmatpush3.bf16.msra.mxu0 %v7194_v50  ;;  %v1400_v50 = vrot.slane %v7260_v19, 5  ;;  %v7191_v19 = vld [vmem:[%s7404_s20 + $0x90] sm:$0xff]   ;;  %v3876_v0 = vsel %vm7436_vm2, %v8253_v33, %v8198_v17  ;;  %v3895_v46 = vrot.slane %v3894_v31, 4  ;;  %v3886_v28 = vsel %vm7436_vm2, %v8262_v13, %v8255_v1  ;;  %v8311_v33 = vld [vmem:[%s7404_s20 + $0x58] sm:$0xf]  ;;  %v7192_v31 = vld [vmem:[%s9253_s1 + $0xc8] sm:$0xff]  }
  0xcc   : > { %6730 = vmatprep.subr.bf16.mxu0 %v7198_v20  ;;  %v3905_v38 = vrot.slane %v3904_v12, 4  ;;  %v1406_v2 = vrot.slane %v1404_v3, 4  ;;  %v5857_v17 = vld [vmem:[%s7404_s20 + $0x54] sm:$0xf]  ;;  %v3931_v1 = vshll.u32 %v5853_v5, 16  ;;  %v3936_v13 = vshrl.u32 %v5854_v52, 16 }
  0xcd   : > { %6699 = vmatmul.mubr.bf16.gmra.mrb[12].mxu0 %v7185_v48  ;;  %v3907_v48 = vshll.u32 %v5850_v34, 16  ;;  %v8307_v7 = vsel %vm7682_vm5, %v1399_v10, %v1400_v50  ;;  %v3939_v50 = vshll.u32 %v5854_v52, 16  ;;  %v3918_v10 = vor.u32 %v3917_v58, %v3914_v54  ;;  %v7193_v54 = vld [vmem:[%s7404_s20 + $0x9c] sm:$0xff]   ;;  %v7267_v41 = vld [vmem:[%s7404_s20 + $0xac] sm:$0xf] }
  0xce   : > { %6475 = vmatmul.mubr.bf16.gmra.mrb[28].mxu1 %v9276_v42  ;;  %6702 = vmatprep.mubr.bf16.mxu0 %v7187_v53  ;;  %v5493_v53 = vrot.slane %v1285_v62, 9  ;;  %v7262_v42 = vld [vmem:[%s7404_s20 + $0x8c] sm:$0x1]  ;;  %v3969_v5 = vshll.u32 %v8311_v33, 16  ;;  %v9279_v52 = vcombine.low %v8088_v63, %v8096_v8  ;;  %v8347_v63 = vld [vmem:[%s7404_s20 + $0x50] sm:$0x1] }
  0xcf   : > { %6494 = vmatprep.mubr.bf16.mxu1 %v9277_v23  ;;  %6731 = vmatpush3.bf16.msra.mxu0 %v7198_v20  ;;  %v8286_v20 = vsel %vm7682_vm5, %v5492_v32, %v1397_v44  ;;  %v3909_v62 = vrot.slane %v3907_v48, 5  ;;  %v1407_v23 = vrot.slane %v7262_v42, 5  ;;  %v1286_v44 = vld [vmem:[%s7404_s20 + $0x90] sm:$0xe]  ;;  %v8299_v32 = vld [vmem:[%s7404_s20 + $0x4c] sm:$0xf]  ;;  %v3928_v48 = vor.u32 %v3927_v22, %v8289_v51 }
  0xd0   : > { %6732 = vmatprep.subr.bf16.mxu0 %v7202_v40  ;;  %v3945_v12 = vshll.u32 %v8299_v32, 16  ;;  %v3949_v18 = vshrl.u32 %v8299_v32, 16  ;;  %v9278_v42 = vcombine.low %v8076_v30, %v8084_v6  ;;  %v7196_v30 = vld [vmem:[%s9253_s1 + $0xd0] sm:$0xff]   ;;  %v3900_v6 = vsel %vm7436_vm2, %v3895_v46, %v8251_v39  ;;  %v7195_v8 = vld [vmem:[%s7404_s20 + $0xa8] sm:$0xff]   ;;  %v8354_v39 = vld [vmem:[%s7404_s20 + $0x5c] sm:$0x1] }
  0xd1   : > { %v3910_v58 = vsel %vm7436_vm2, %v3905_v38, %v3909_v62  ;;  %v5494_v22 = vrot.slane %v1286_v44, 9  ;;  %v3941_v25 = vrot.slane %v3939_v50, 5  ;;  %9280 = vst [vmem:[#allocation3_spill] sm:$0xff] %v8354_v39  ;;  %v3919_v46 = vrot.slane %v3918_v10, 4 }
  0xd2   : > { %v3929_v62 = vrot.slane %v3928_v48, 4  ;;  %v8356_v38 = vrot.slane %v3945_v12, 5  ;;  %v8358_v34 = vrot.slane %v3969_v5, 5  ;;  %v8363_v50 = vcombine.low %v3876_v0, %v3886_v28  ;;  %v5860_v28 = vld [vmem:[%s7404_s20 + $0x60] sm:$0xf] }
  0xd3   : > { %6733 = vmatpush3.bf16.msra.mxu0 %v7202_v40  ;;  %v8319_v40 = vsel %vm7682_vm5, %v5493_v53, %v1404_v3  ;;  %v3960_v53 = vshrl.u32 %v5857_v17, 16  ;;  %v3963_v3 = vshll.u32 %v5857_v17, 16  ;;  %v7263_v17 = vld [vmem:[%s7404_s20 + $0x94] sm:$0xf]  ;;  %v8367_v48 = vcombine.low %v3900_v6, %v3910_v58 }
  0xd4   : > { %6766 = vmatprep.subr.bf16.mxu0 %v8267_v21  ;;  %v3955_v0 = vshll.u32 %v8347_v63, 16  ;;  %v3924_v6 = vsel %vm7436_vm2, %v3919_v46, %v8289_v51  ;;  %v9283_v46 = vcombine.low %v8110_v61, %v8114_v36 }
  0xd5   : > { %6703 = vmatmul.mubr.bf16.gmra.mrb[16].mxu0 %v7189_v43  ;;  %v3973_v43 = vshrl.u32 %v8311_v33, 16  ;;  %v3962_v44 = vrot.slane %v3960_v53, 4  ;;  %v7264_v53 = vld [vmem:[%s7404_s20 + $0x98] sm:$0x1] }
  0xd6   : > { %6495 = vmatmul.mubr.bf16.vlgmr.msra.gmra.mrb[0].mxu1 %v9278_v42  ;;  %6706 = vmatprep.mubr.bf16.mxu0 %v7191_v19  ;;  %v8350_v19 = vrot.slane %v3931_v1, 5  ;;  %v1411_v42 = vrot.slane %v7263_v17, 5  ;;  %v7265_v17 = vld [vmem:[%s7404_s20 + $0xa0] sm:$0xf]  ;;  %v3957_v36 = vrot.slane %v3955_v0, 5 }
  0xd7   : > { %6527 = vmatpush3.bf16.msra.mxu1 %v8029_v60  ;;  %6498 = vmatprep.mubr.bf16.mxu1 %v9279_v52  ;;  %v8344_v60 = vsel %vm7682_vm5, %v1406_v2, %v1407_v23  ;;  %v3938_v52 = vrot.slane %v3936_v13, 4  ;;  %v3951_v23 = vrot.slane %v3949_v18, 4  ;;  %v3965_v2 = vrot.slane %v3963_v3, 5  ;;  %v7200_v13 = vld [vmem:[%s9253_s1 + $0xd8] sm:$0xff]  }
  0xd8   : > { %6528 = vmatprep.subr.bf16.mxu1 %v7192_v31  ;;  %v3975_v1 = vrot.slane %v3973_v43, 4  ;;  %v1287_v18 = vld [vmem:[%s7404_s20 + $0x9c] sm:$0xe]  ;;  %v1414_v3 = vrot.slane %v7264_v53, 5  ;;  %v8380_v43 = vld [vmem:[%s7404_s20 + $0x64] sm:$0xf] }
  0xd9   : > { %v3942_v5 = vor.u32 %v3941_v25, %v3938_v52  ;;  %9281 = vst [vmem:[#allocation4_spill] sm:$0xff] %v8380_v43  ;;  %v3952_v58 = vor.u32 %v3951_v23, %v8356_v38  ;;  %v1418_v12 = vrot.slane %v7265_v17, 5  ;;  %v9282_v25 = vcombine.low %v8100_v24, %v8104_v35  ;;  %v7197_v23 = vld [vmem:[%s7404_s20 + $0xb4] sm:$0xff]   ;;  %v7203_v24 = vld [vmem:[%s9253_s1 + $0xe0] sm:$0xff]   ;;  %v5863_v17 = vld [vmem:[%s7404_s20 + $0x6c] sm:$0xf] }
  0xda   : > { %v1413_v52 = vrot.slane %v1411_v42, 4  ;;  %v3966_v53 = vor.u32 %v3965_v2, %v3962_v44  ;;  %v3976_v51 = vor.u32 %v3975_v1, %v8358_v34  ;;  %v3984_v35 = vshrl.u32 %v5860_v28, 16  ;;  %v7266_v2 = vld [vmem:[%s7404_s20 + $0xa4] sm:$0x1] }
  0xdb   : > { %6529 = vmatpush3.bf16.msra.mxu1 %v7192_v31  ;;  %v8374_v31 = vsel %vm7682_vm5, %v5494_v22, %v1411_v42  ;;  %v3979_v22 = vshll.u32 %v8354_v39, 16  ;;  %v3997_v42 = vshrl.u32 %v8380_v43, 16  ;;  %v3943_v61 = vrot.slane %v3942_v5, 4  ;;  %v8549_v39 = vld [vmem:[%s7404_s20 + $0x98] sm:$0x1] }
  0xdc   : > { %6530 = vmatprep.subr.bf16.mxu1 %v7196_v30  ;;  %v5495_v44 = vrot.slane %v1287_v18, 9  ;;  %v1421_v1 = vrot.slane %v7266_v2, 5  ;;  %v3967_v5 = vrot.slane %v3966_v53, 4  ;;  %v3977_v18 = vrot.slane %v3976_v51, 4  ;;  %9297 = vst [vmem:[#allocation14_spill] sm:$0xff] %v8549_v39 }
  0xdd   : > { %6707 = vmatmul.mubr.bf16.gmra.mrb[20].mxu0 %v7193_v54  ;;  %v3934_v54 = vsel %vm7436_vm2, %v3929_v62, %v8350_v19  ;;  %v3993_v19 = vshll.u32 %v8380_v43, 16  ;;  %v7199_v62 = vld [vmem:[%s7404_s20 + $0xc0] sm:$0xff]   ;;  %v3981_v10 = vrot.slane %v3979_v22, 5  ;;  %v8416_v43 = vsel %vm7682_vm5, %v1413_v52, %v1414_v3 }
  0xde   : > { %6499 = vmatmul.mubr.bf16.gmra.mrb[4].mxu1 %v9282_v25  ;;  %6710 = vmatprep.mubr.bf16.mxu0 %v7195_v8  ;;  %v3987_v8 = vshll.u32 %v5860_v28, 16  ;;  %v3953_v25 = vrot.slane %v3952_v58, 4  ;;  %v1425_v28 = vrot.slane %v7267_v41, 5  ;;  %v8412_v55 = vcombine.low %v3924_v6, %v3934_v54  ;;  %v7205_v41 = vld [vmem:[%s9253_s1 + $0xe8] sm:$0xff]  }
  0xdf   : > { %6502 = vmatprep.mubr.bf16.mxu1 %v9283_v46  ;;  %6531 = vmatpush3.bf16.msra.mxu1 %v7196_v30  ;;  %v1288_v30 = vld [vmem:[%s7404_s20 + $0xa8] sm:$0xe]  ;;  %v1420_v46 = vrot.slane %v1418_v12, 4  ;;  %v3986_v0 = vrot.slane %v3984_v35, 4  ;;  %v8418_v58 = vrot.slane %v3993_v19, 5  ;;  %v3999_v22 = vrot.slane %v3997_v42, 4 }
  0xe0   : > { %6532 = vmatprep.subr.bf16.mxu1 %v7200_v13  ;;  %v3989_v2 = vrot.slane %v3987_v8, 5  ;;  %v3948_v3 = vsel %vm7436_vm2, %v3943_v61, %v8356_v38  ;;  %v8428_v6 = vsel %vm7682_vm5, %v5495_v44, %v1418_v12  ;;  %v4008_v54 = vshrl.u32 %v5863_v17, 16  ;;  %v7268_v38 = vld [vmem:[%s7404_s20 + $0xb0] sm:$0x1]  ;;  %v1289_v19 = vld [vmem:[%s7404_s20 + $0xb4] sm:$0xe] }
  0xe1   : > { %v4011_v52 = vshll.u32 %v5863_v17, 16  ;;  %v3958_v53 = vsel %vm7436_vm2, %v3953_v25, %v3957_v36  ;;  %v8437_v51 = vsel %vm7682_vm5, %v1420_v46, %v1421_v1  ;;  %v5496_v35 = vrot.slane %v1288_v30, 9  ;;  %v8459_v30 = vld [vmem:[%s7404_s20 + $0x74] sm:$0x1]  ;;  %v7269_v25 = vld [vmem:[%s7404_s20 + $0xb8] sm:$0xf] }
  0xe2   : > { %v1428_v8 = vrot.slane %v7268_v38, 5  ;;  %v9286_v12 = vcombine.low %v8131_v49, %v8145_v4  ;;  %v3972_v42 = vsel %vm7436_vm2, %v3967_v5, %v8358_v34  ;;  %v3982_v61 = vsel %vm7436_vm2, %v3977_v18, %v3981_v10  ;;  %v7201_v4 = vld [vmem:[%s7404_s20 + $0xcc] sm:$0xff]   ;;  %9288 = vst [vmem:[#allocation7_spill] sm:$0xff] %v8459_v30  ;;  %v5869_v38 = vld [vmem:[%s7404_s20 + $0x84] sm:$0xf] }
  0xe3   : > { %6533 = vmatpush3.bf16.msra.mxu1 %v7200_v13  ;;  %v8431_v13 = vld [vmem:[%s7404_s20 + $0x70] sm:$0xf]  ;;  %v1427_v36 = vrot.slane %v1425_v28, 4  ;;  %v4003_v44 = vshll.u32 %v8410_v47, 16  ;;  %v9287_v49 = vcombine.low %v8167_v26, %v8171_v56  ;;  %v4000_v1 = vor.u32 %v3999_v22, %v8418_v58  ;;  %v8476_v22 = vld [vmem:[%s7404_s20 + $0x7c] sm:$0xf] }
  0xe4   : > { %6534 = vmatprep.subr.bf16.mxu1 %v7203_v24  ;;  %9285 = vst [vmem:[#allocation6_spill] sm:$0xff] %v8431_v13  ;;  %v4017_v34 = vshll.u32 %v8431_v13, 16  ;;  %v4021_v10 = vshrl.u32 %v8431_v13, 16  ;;  %v5497_v17 = vrot.slane %v1289_v19, 9  ;;  %v1432_v46 = vrot.slane %v7269_v25, 5  ;;  %9289 = vst [vmem:[#allocation8_spill] sm:$0xff] %v8476_v22 }
  0xe5   : > { %6711 = vmatmul.mubr.bf16.gmra.mrb[24].mxu0 %v7197_v23  ;;  %v7207_v23 = vld [vmem:[%s9253_s1 + $0xf0] sm:$0xff]   ;;  %v4010_v26 = vrot.slane %v4008_v54, 4  ;;  %v4013_v56 = vrot.slane %v4011_v52, 5  ;;  %v8467_v18 = vcombine.low %v3948_v3, %v3958_v53  ;;  %v8479_v19 = vcombine.low %v3972_v42, %v3982_v61  ;;  %v7270_v3 = vld [vmem:[%s7404_s20 + $0xbc] sm:$0x1] }
  0xe6   : > { %6503 = vmatmul.mubr.bf16.gmra.mrb[8].mxu1 %v9286_v12  ;;  %6714 = vmatprep.mubr.bf16.mxu0 %v7199_v62  ;;  %v3990_v62 = vor.u32 %v3989_v2, %v3986_v0  ;;  %v8473_v2 = vsel %vm7682_vm5, %v5496_v35, %v1425_v28  ;;  %v8483_v54 = vsel %vm7682_vm5, %v1427_v36, %v1428_v8  ;;  %v8485_v52 = vrot.slane %v4003_v44, 5  ;;  %v7209_v12 = vld [vmem:[%s9253_s1 + $0xf8] sm:$0xff]   ;;  %v8492_v28 = vld [vmem:[%s7404_s20 + $0x88] sm:$0xf] }
  0xe7   : > { %6506 = vmatprep.mubr.bf16.mxu1 %v9287_v49  ;;  %6535 = vmatpush3.bf16.msra.mxu1 %v7203_v24  ;;  %v5866_v24 = vld [vmem:[%s7404_s20 + $0x78] sm:$0xf]  ;;  %v1435_v53 = vrot.slane %v7270_v3, 5  ;;  %9290 = vst [vmem:[#allocation9_spill] sm:$0xff] %v8492_v28  ;;  %v8496_v42 = vrot.slane %v4000_v1, 4  ;;  %v8498_v61 = vrot.slane %v4017_v34, 5  ;;  %v8502_v36 = vsel %vm7682_vm5, %v5497_v17, %v1432_v46 }
  0xe8   : > { %6536 = vmatprep.subr.bf16.mxu1 %v7205_v41  ;;  %v8494_v35 = vrot.slane %v3990_v62, 4  ;;  %v4023_v8 = vrot.slane %v4021_v10, 4  ;;  %v1434_v44 = vrot.slane %v1432_v46, 4  ;;  %v4014_v49 = vor.u32 %v4013_v56, %v4010_v26  ;;  %v5872_v3 = vld [vmem:[%s7404_s20 + $0x90] sm:$0xf] }
  0xe9   : > { %v4027_v25 = vshll.u32 %v8459_v30, 16  ;;  %v4035_v0 = vshll.u32 %v5866_v24, 16  ;;  %v4041_v62 = vshll.u32 %v8476_v22, 16  ;;  %v4045_v1 = vshrl.u32 %v8476_v22, 16  ;;  %v8509_v34 = vld [vmem:[%s7404_s20 + $0x94] sm:$0xf] }
  0xea   : > { %9291 = vst [vmem:[#allocation10_spill] sm:$0xff] %v8509_v34  ;;  %v9292_v10 = vcombine.low %v8211_v27, %v8215_v29  ;;  %v4056_v17 = vshrl.u32 %v5869_v38, 16  ;;  %v4059_v46 = vshll.u32 %v5869_v38, 16  ;;  %v4069_v26 = vshrl.u32 %v8492_v28, 16  ;;  %v5875_v38 = vld [vmem:[%s7404_s20 + $0x9c] sm:$0xf] }
  0xeb   : > { %6537 = vmatpush3.bf16.msra.mxu1 %v7205_v41  ;;  %v4032_v41 = vshrl.u32 %v5866_v24, 16  ;;  %v9293_v56 = vcombine.low %v8222_v45, %v8226_v14  ;;  %v4024_v29 = vor.u32 %v4023_v8, %v8498_v61  ;;  %v4083_v24 = vshll.u32 %v5872_v3, 16  ;;  %v8531_v45 = vld [vmem:[%s7404_s20 + $0x80] sm:$0x1] }
  0xec   : > { %6538 = vmatprep.subr.bf16.mxu1 %v7207_v23  ;;  %v8528_v5 = vrot.slane %v4027_v25, 5  ;;  %9294 = vst [vmem:[#allocation11_spill] sm:$0xff] %v8531_v45  ;;  %v4089_v14 = vshll.u32 %v8509_v34, 16  ;;  %v4037_v27 = vrot.slane %v4035_v0, 5  ;;  %v4047_v8 = vrot.slane %v4045_v1, 4 }
  0xed   : > { %6715 = vmatmul.mubr.bf16.gmra.mrb[28].mxu0 %v7201_v4  ;;  %v4065_v4 = vshll.u32 %v8492_v28, 16  ;;  %v8535_v28 = vrot.slane %v4041_v62, 5  ;;  %v8541_v22 = vld [vmem:[%s7404_s20 + $0xa0] sm:$0xf]  ;;  %v4058_v25 = vrot.slane %v4056_v17, 4  ;;  %v4061_v30 = vrot.slane %v4059_v46, 5 }
  0xee   : > { %6507 = vmatmul.mubr.bf16.gmra.mrb[12].mxu1 %v9292_v10  ;;  %6734 = vmatprep.mubr.bf16.mxu0 %v8280_v59  ;;  %v4080_v59 = vshrl.u32 %v5872_v3, 16  ;;  %v8526_v10 = vrot.slane %v4014_v49, 4  ;;  %v8538_v3 = vld [vmem:[%s7404_s20 + $0x8c] sm:$0x1]  ;;  %9296 = vst [vmem:[#allocation13_spill] sm:$0xff] %v8541_v22  ;;  %v4071_v47 = vrot.slane %v4069_v26, 4  ;;  %v8558_v62 = vsel %vm7682_vm5, %v1434_v44, %v1435_v53 }
  0xef   : > { %6510 = vmatprep.mubr.bf16.mxu1 %v9293_v56  ;;  %6539 = vmatpush3.bf16.msra.mxu1 %v7207_v23  ;;  %v4093_v23 = vshrl.u32 %v8509_v34, 16  ;;  %v4034_v56 = vrot.slane %v4032_v41, 4  ;;  %9295 = vst [vmem:[#allocation12_spill] sm:$0xff] %v8538_v3  ;;  %v7206_v49 = vld [vmem:[%s9253_s1 + $0x208] sm:$0xff]   ;;  %v8546_v13 = vrot.slane %v4065_v4, 5  ;;  %v4085_v34 = vrot.slane %v4083_v24, 5 }
  0xf0   : > { %6540 = vmatprep.subr.bf16.mxu1 %v7209_v12  ;;  %v5878_v41 = vld [vmem:[%s7404_s20 + $0xa8] sm:$0xf]  ;;  %v4082_v1 = vrot.slane %v4080_v59, 4  ;;  %v8563_v17 = vld [vmem:[%s9253_s1 + $0x100] sm:$0xff]   ;;  %v8566_v46 = vrot.slane %v4089_v14, 5  ;;  %v4104_v26 = vshrl.u32 %v5875_v38, 16  ;;  %v9299_v24 = vcombine.low %v8230_v16, %v8240_v15 }
  0xf1   : > { %9298 = vst [vmem:[#allocation15_spill] sm:$0xff] %v8563_v17  ;;  %v4095_v4 = vrot.slane %v4093_v23, 4  ;;  %v4107_v0 = vshll.u32 %v5875_v38, 16  ;;  %v8569_v53 = vrot.slane %v4024_v29, 4  ;;  %v4113_v44 = vshll.u32 %v8541_v22, 16  ;;  %v7208_v16 = vld [vmem:[%s9253_s1 + $0x210] sm:$0xff]  }
  0xf2   : > { %v4117_v59 = vshrl.u32 %v8541_v22, 16  ;;  %v4038_v14 = vor.u32 %v4037_v27, %v4034_v56  ;;  %v4048_v38 = vor.u32 %v4047_v8, %v8535_v28  ;;  %v4062_v23 = vor.u32 %v4061_v30, %v4058_v25  ;;  %v8581_v29 = vld [vmem:[%s7404_s20 + $0xac] sm:$0xf]  ;;  %v8594_v25 = vld [vmem:[%s7404_s20 + $0xa4] sm:$0x1] }
  0xf3   : > { %6541 = vmatpush3.bf16.msra.mxu1 %v7209_v12  ;;  %v4051_v12 = vshll.u32 %v8531_v45, 16  ;;  %9300 = vst [vmem:[#allocation16_spill] sm:$0xff] %v8581_v29  ;;  %v4072_v15 = vor.u32 %v4071_v47, %v8546_v13  ;;  %v4128_v27 = vshrl.u32 %v5878_v41, 16  ;;  %v4131_v30 = vshll.u32 %v5878_v41, 16 }
  0xf4   : > { %6814 = vmatprep.subr.bf16.mxu1 %v8563_v17  ;;  %v9301_v17 = vcombine.low %v8286_v20, %v8307_v7  ;;  %v4086_v56 = vor.u32 %v4085_v34, %v4082_v1  ;;  %v4096_v8 = vor.u32 %v4095_v4, %v8566_v46  ;;  %v4106_v20 = vrot.slane %v4104_v26, 4 }
  0xf5   : > { %6735 = vmatmul.mubr.bf16.vlgmr.msra.gmra.mrb[0].mxu0 %v8363_v50  ;;  %v4075_v50 = vshll.u32 %v8538_v3, 16  ;;  %v4109_v7 = vrot.slane %v4107_v0, 5  ;;  %v4141_v22 = vshrl.u32 %v8581_v29, 16  ;;  %v4039_v47 = vrot.slane %v4038_v14, 4  ;;  %v7210_v0 = vld [vmem:[%s9253_s1 + $0x218] sm:$0xff]  }
  0xf6   : > { %6511 = vmatmul.mubr.bf16.gmra.mrb[16].mxu1 %v9299_v24  ;;  %6767 = vmatpush3.bf16.msra.mxu0 %v8267_v21  ;;  %v4099_v21 = vshll.u32 %v8549_v39, 16  ;;  %v4137_v24 = vshll.u32 %v8581_v29, 16  ;;  %v4049_v39 = vrot.slane %v4048_v38, 4  ;;  %v4053_v3 = vrot.slane %v4051_v12, 5 }
  0xf7   : > { %6514 = vmatprep.mubr.bf16.mxu1 %v9301_v17  ;;  %6738 = vmatprep.mubr.bf16.mxu0 %v8367_v48  ;;  %v8596_v17 = vrot.slane %v4113_v44, 5  ;;  %v4119_v48 = vrot.slane %v4117_v59, 4  ;;  %v4077_v41 = vrot.slane %v4075_v50, 5  ;;  %v4063_v34 = vrot.slane %v4062_v23, 4 }
  0xf8   : > { %6768 = vmatprep.subr.bf16.mxu0 %v7206_v49  ;;  %v4073_v1 = vrot.slane %v4072_v15, 4  ;;  %v4130_v4 = vrot.slane %v4128_v27, 4  ;;  %v4133_v45 = vrot.slane %v4131_v30, 5  ;;  %v4087_v26 = vrot.slane %v4086_v56, 4  ;;  %v8662_v27 = vld [vmem:[%s7404_s20 + $0xbc] sm:$0x1] }
  0xf9   : > { %v4101_v44 = vrot.slane %v4099_v21, 5  ;;  %v4110_v59 = vor.u32 %v4109_v7, %v4106_v20  ;;  %v4123_v29 = vshll.u32 %v8594_v25, 16  ;;  %v4120_v12 = vor.u32 %v4119_v48, %v8596_v17  ;;  %v8629_v21 = vld [vmem:[%s7404_s20 + $0xb0] sm:$0x1] }
  0xfa   : > { %6769 = vmatpush3.bf16.msra.mxu0 %v7206_v49  ;;  %v4097_v49 = vrot.slane %v4096_v8, 4  ;;  %v8606_v14 = vrot.slane %v4137_v24, 5  ;;  %v4143_v38 = vrot.slane %v4141_v22, 4  ;;  %v9302_v23 = vor.u32 %v8014_v57, %v8012_v11 }
  0xfb   : > { %6770 = vmatprep.subr.bf16.mxu0 %v7208_v16  ;;  %v9303_v15 = vcombine.low %v8319_v40, %v8344_v60  ;;  %v4030_v22 = vsel %vm7436_vm2, %v8569_v53, %v8528_v5  ;;  %v4044_v57 = vsel %vm7436_vm2, %v4039_v47, %v8535_v28  ;;  %v9304_v40 = vcombine.low %v8374_v31, %v8416_v43  ;;  %v7213_v31 = vld [vmem:[%s9253_s1 + $0x220] sm:$0xff]  }
  0xfc   : > { %v8611_v50 = vrot.slane %v9302_v23, 4  ;;  %v4054_v60 = vsel %vm7436_vm2, %v4049_v39, %v4053_v3  ;;  %v4134_v5 = vor.u32 %v4133_v45, %v4130_v4  ;;  %v4078_v28 = vsel %vm7436_vm2, %v4073_v1, %v4077_v41  ;;  %v5934_v41 = vld [vmem:[%s7404_s20 + $0x48] sm:$0xe] }
  0xfd   : > { %6739 = vmatmul.mubr.bf16.gmra.mrb[4].mxu0 %v8412_v55  ;;  %v4020_v55 = vsel %vm7436_vm2, %v8526_v10, %v8498_v61  ;;  %v5881_v61 = vld [vmem:[%s7404_s20 + $0xb4] sm:$0xf]  ;;  %v8641_v10 = vld [vmem:[%s7404_s20 + $0xb8] sm:$0xf]  ;;  %v4092_v39 = vsel %vm7436_vm2, %v4087_v26, %v8566_v46  ;;  %v8651_v43 = vrot.slane %v4110_v59, 4  ;;  %v8653_v3 = vrot.slane %v4123_v29, 5 }
  0xfe   : > { %6515 = vmatmul.mubr.bf16.gmra.mrb[20].mxu1 %v9303_v15  ;;  %6742 = vmatprep.mubr.bf16.mxu0 %v8467_v18  ;;  %v4068_v18 = vsel %vm7436_vm2, %v4063_v34, %v8546_v13  ;;  %v4102_v13 = vsel %vm7436_vm2, %v4097_v49, %v4101_v44  ;;  %v8657_v45 = vrot.slane %v4120_v12, 4  ;;  %v4144_v53 = vor.u32 %v4143_v38, %v8606_v14  ;;  %v5935_v26 = vld [vmem:[%s7404_s20 + $0x54] sm:$0xe] }
  0xff   : > { %6518 = vmatprep.mubr.bf16.mxu1 %v9304_v40  ;;  %6771 = vmatpush3.bf16.msra.mxu0 %v7208_v16  ;;  %v4147_v16 = vshll.u32 %v8629_v21, 16  ;;  %v9305_v46 = vsel %vm7436_vm2, %v8496_v42, %v8485_v52  ;;  %v9306_v29 = vsel %vm7436_vm2, %v8494_v35, %v8418_v58  ;;  %v4152_v56 = vshrl.u32 %v5881_v61, 16 }
 0x100   : > { %6772 = vmatprep.subr.bf16.mxu0 %v7210_v0  ;;  %v5912_v30 = vcombine.low %v9306_v29, %v9305_v46  ;;  %v4155_v8 = vshll.u32 %v5881_v61, 16  ;;  %v4161_v20 = vshll.u32 %v8641_v10, 16  ;;  %v5528_v7 = vcombine.low %v8473_v2, %v8483_v54  ;;  %v7216_v2 = vld [vmem:[%s9253_s1 + $0x228] sm:$0xff]   ;;  %v5884_v54 = vld [vmem:[%s7404_s20 + $0xc0] sm:$0xf]  ;;  %v9310_v29 = vld [vmem:[#allocation5_spill] sm:$0xff] }
 0x101   : > { %v5529_v48 = vcombine.low %v8502_v36, %v8558_v62  ;;  %v5913_v24 = vcombine.low %v4020_v55, %v4030_v22  ;;  %v8679_v52 = vrot.slane %v4134_v5, 4  ;;  %v5914_v42 = vcombine.low %v4044_v57, %v4054_v60 }
 0x102   : > { %v8681_v58 = vcombine.low %v4068_v18, %v4078_v28  ;;  %v8683_v35 = vcombine.low %v4092_v39, %v4102_v13  ;;  %v4116_v47 = vsel %vm7436_vm2, %v8651_v43, %v8596_v17  ;;  %v4126_v34 = vsel %vm7436_vm2, %v8657_v45, %v8653_v3  ;;  %v5937_v28 = vld [vmem:[%s7404_s20 + $0x6c] sm:$0xe] }
 0x103   : > { %6773 = vmatpush3.bf16.msra.mxu0 %v7210_v0  ;;  %v8699_v1 = vrot.slane %v4144_v53, 4  ;;  %v8701_v4 = vrot.slane %v4147_v16, 5  ;;  %v4165_v0 = vshrl.u32 %v8641_v10, 16  ;;  %v9307_v44 = vcombine.low %v8428_v6, %v8437_v51  ;;  %v7219_v6 = vld [vmem:[%s9253_s1 + $0x230] sm:$0xff]   ;;  %v8723_v51 = vld [vmem:[%s7404_s20 + $0xc4] sm:$0xf] }
 0x104   : > { %6774 = vmatprep.subr.bf16.mxu0 %v7213_v31  ;;  %v8708_v59 = vrot.slane %v4152_v56, 4  ;;  %v8712_v49 = vrot.slane %v4161_v20, 5  ;;  %v4171_v12 = vshll.u32 %v8662_v27, 16  ;;  %v4140_v38 = vsel %vm7436_vm2, %v8679_v52, %v8606_v14  ;;  %v5936_v14 = vld [vmem:[%s7404_s20 + $0x60] sm:$0xe]  ;;  %v9308_v39 = vld [vmem:[#allocation3_spill] sm:$0xff] }
 0x105   : > { %6743 = vmatmul.mubr.bf16.gmra.mrb[8].mxu0 %v8479_v19  ;;  %v8710_v19 = vrot.slane %v4155_v8, 5  ;;  %v4176_v23 = vshrl.u32 %v5884_v54, 16  ;;  %v5950_v15 = vrot.slane %v5934_v41, 9  ;;  %v4639_v55 = vrot.slane %v8299_v32, 5  ;;  %v7211_v13 = vld [vmem:[%s7404_s20 + $0xc] sm:$0xff]   ;;  %v7222_v56 = vld [vmem:[%s9253_s1 + $0x238] sm:$0xff]  }
 0x106   : > { %6519 = vmatmul.mubr.bf16.gmra.mrb[24].mxu1 %v9307_v44  ;;  %6746 = vmatprep.mubr.bf16.mxu0 %v5912_v30  ;;  %v4179_v22 = vshll.u32 %v5884_v54, 16  ;;  %v4642_v57 = vrot.slane %v8347_v63, 5  ;;  %v5951_v40 = vrot.slane %v5935_v26, 9  ;;  %v4646_v60 = vrot.slane %v8311_v33, 5  ;;  %v9309_v16 = vld [vmem:[#allocation4_spill] sm:$0xff]  ;;  %v9311_v52 = vld [vmem:[#allocation6_spill] sm:$0xff] }
 0x107   : > { %6522 = vmatprep.mubr.bf16.mxu1 %v5528_v7  ;;  %6775 = vmatpush3.bf16.msra.mxu0 %v7213_v31  ;;  %v4150_v18 = vsel %vm7436_vm2, %v8699_v1, %v8701_v4  ;;  %v8733_v5 = vrot.slane %v4165_v0, 4  ;;  %v8737_v61 = vsel %vm7682_vm5, %v5950_v15, %v4639_v55  ;;  %v4641_v32 = vrot.slane %v4639_v55, 4  ;;  %v9312_v4 = vld [vmem:[#allocation7_spill] sm:$0xff] }
 0x108   : > { %6776 = vmatprep.subr.bf16.mxu0 %v7216_v2  ;;  %v4185_v31 = vshll.u32 %v8723_v51, 16  ;;  %v8743_v63 = vsel %vm7682_vm5, %v5951_v40, %v4646_v60  ;;  %v4648_v33 = vrot.slane %v4646_v60, 4  ;;  %v4649_v3 = vrot.slane %v9308_v39, 5  ;;  %v8774_v26 = vld [vmem:[%s7404_s20 + $0xc8] sm:$0x1]  ;;  %v7212_v40 = vld [vmem:[%s7404_s20 + $0x18] sm:$0xff]  }
 0x109   : > { %v8749_v45 = vsel %vm7682_vm5, %v4641_v32, %v4642_v57  ;;  %v5952_v53 = vrot.slane %v5936_v14, 9  ;;  %v4653_v46 = vrot.slane %v9309_v16, 5  ;;  %v4656_v30 = vrot.slane %v9310_v29, 5  ;;  %v7214_v39 = vld [vmem:[%s7404_s20 + $0x24] sm:$0xff]  }
 0x10a   : > { %v5982_v8 = vcombine.low %v8737_v61, %v8749_v45  ;;  %v8760_v20 = vsel %vm7682_vm5, %v4648_v33, %v4649_v3  ;;  %v5953_v7 = vrot.slane %v5937_v28, 9  ;;  %v4663_v0 = vrot.slane %v9312_v4, 5  ;;  %v9314_v28 = vld [vmem:[#allocation11_spill] sm:$0xff]  ;;  %v5643_v61 = vld [vmem:[%s7404_s20 + $0x90] sm:$0xf] }
 0x10b   : > { %6777 = vmatpush3.bf16.msra.mxu0 %v7216_v2  ;;  %v4660_v2 = vrot.slane %v9311_v52, 5  ;;  %v5983_v54 = vcombine.low %v8743_v63, %v8760_v20  ;;  %v8767_v41 = vsel %vm7682_vm5, %v5952_v53, %v4653_v46  ;;  %v4655_v1 = vrot.slane %v4653_v46, 4  ;;  %v9315_v53 = vld [vmem:[#allocation2_spill] sm:$0xff]  ;;  %v7228_v45 = vld [vmem:[%s7404_s20 + $0xa8] sm:$0xff]  }
 0x10c   : > { %6778 = vmatprep.subr.bf16.mxu0 %v7219_v6  ;;  %v8776_v44 = vrot.slane %v4176_v23, 4  ;;  %v8789_v36 = vcombine.low %v4116_v47, %v4126_v34  ;;  %v4158_v62 = vor.u32 %v8710_v19, %v8708_v59  ;;  %v5938_v23 = vld [vmem:[%s7404_s20 + $0x78] sm:$0xe]  ;;  %v8801_v57 = vrot.slane %v4171_v12, 5  ;;  %v5887_v12 = vld [vmem:[%s7404_s20 + $0xcc] sm:$0xf] }
 0x10d   : > { %6747 = vmatmul.mubr.bf16.gmra.mrb[12].mxu0 %v5913_v24  ;;  %v8778_v24 = vrot.slane %v4179_v22, 5  ;;  %v8782_v15 = vsel %vm7682_vm5, %v5953_v7, %v4660_v2  ;;  %v4662_v55 = vrot.slane %v4660_v2, 4  ;;  %v8799_v22 = vcombine.low %v4140_v38, %v4150_v18  ;;  %v5637_v47 = vld [vmem:[%s7404_s20 + $0x78] sm:$0xf]  ;;  %v9313_v18 = vld [vmem:[#allocation8_spill] sm:$0xff] }
 0x10e   : > { %6523 = vmatmul.mubr.bf16.gmra.mrb[28].mxu1 %v5529_v48  ;;  %6750 = vmatprep.mubr.bf16.mxu0 %v5914_v42  ;;  %v4189_v48 = vshrl.u32 %v8723_v51, 16  ;;  %v8796_v42 = vsel %vm7682_vm5, %v4655_v1, %v4656_v30  ;;  %v4168_v34 = vor.u32 %v8733_v5, %v8712_v49  ;;  %v8812_v59 = vrot.slane %v4185_v31, 5  ;;  %v8826_v31 = vld [vmem:[%s7404_s20 + $0xd0] sm:$0xf]  ;;  %v9316_v1 = vld [vmem:[#allocation9_spill] sm:$0xff] }
 0x10f   : > { %6542 = vmatprep.mubr.bf16.mxu1 %v7211_v13  ;;  %6779 = vmatpush3.bf16.msra.mxu0 %v7219_v6  ;;  %v5984_v17 = vcombine.low %v8767_v41, %v8796_v42  ;;  %v8807_v43 = vsel %vm7682_vm5, %v4662_v55, %v4663_v0  ;;  %v4195_v19 = vshll.u32 %v8774_v26, 16  ;;  %v5939_v6 = vld [vmem:[%s7404_s20 + $0x84] sm:$0xe]  ;;  %v4182_v60 = vor.u32 %v8778_v24, %v8776_v44  ;;  %v9317_v24 = vld [vmem:[#allocation12_spill] sm:$0xff]  ;;  %v7292_v63 = vld [vmem:[%s7404_s20 + $0x8c] sm:$0x1] }
 0x110   : > { %6780 = vmatprep.subr.bf16.mxu0 %v7222_v56  ;;  %v5985_v38 = vcombine.low %v8782_v15, %v8807_v43  ;;  %v5954_v14 = vrot.slane %v5938_v23, 9  ;;  %v4667_v32 = vrot.slane %v9313_v18, 5  ;;  %v4670_v33 = vrot.slane %v9314_v28, 5 }
 0x111   : > { %v4191_v5 = vrot.slane %v4189_v48, 4  ;;  %v2414_v3 = vshrl.u32 %v5637_v47, 16  ;;  %v2417_v13 = vshll.u32 %v5637_v47, 16  ;;  %v2436_v16 = vsel %vm7436_vm2, %v8611_v50, %v9315_v53 }
 0x112   : > { %v4200_v46 = vshrl.u32 %v5887_v12, 16  ;;  %v8834_v29 = vsel %vm7682_vm5, %v5954_v14, %v4667_v32  ;;  %v4669_v30 = vrot.slane %v4667_v32, 4  ;;  %v5955_v7 = vrot.slane %v5939_v6, 9  ;;  %v7272_v6 = vld [vmem:[%s9253_s1 + $0x108] sm:$0xff]  }
 0x113   : > { %6781 = vmatpush3.bf16.msra.mxu0 %v7222_v56  ;;  %v4203_v52 = vshll.u32 %v5887_v12, 16  ;;  %v2416_v2 = vrot.slane %v2414_v3, 4  ;;  %v2419_v56 = vrot.slane %v2417_v13, 5  ;;  %v4674_v4 = vrot.slane %v9316_v1, 5  ;;  %v5940_v12 = vld [vmem:[%s7404_s20 + $0x90] sm:$0xe] }
 0x114   : > { %v4209_v50 = vshll.u32 %v8826_v31, 16  ;;  %v4213_v0 = vshrl.u32 %v8826_v31, 16  ;;  %v8843_v44 = vsel %vm7682_vm5, %v4669_v30, %v4670_v33  ;;  %v4677_v55 = vrot.slane %v9317_v24, 5  ;;  %v7215_v3 = vld [vmem:[%s7404_s20 + $0x30] sm:$0xff]  }
 0x115   : > { %6751 = vmatmul.mubr.bf16.gmra.mrb[16].mxu0 %v8681_v58  ;;  %v9318_v58 = vld [vmem:[#allocation15_spill] sm:$0xff]  ;;  %v4192_v48 = vor.u32 %v4191_v5, %v8812_v59  ;;  %v2420_v23 = vor.u32 %v2419_v56, %v2416_v2  ;;  %v4676_v47 = vrot.slane %v4674_v4, 4  ;;  %v4169_v14 = vrot.slane %v4168_v34, 4  ;;  %v8864_v13 = vld [vmem:[%s7404_s20 + $0xd4] sm:$0x1]  ;;  %v9319_v2 = vld [vmem:[#allocation10_spill] sm:$0xff] }
 0x116   : > { %6543 = vmatmul.mubr.bf16.vlgmr.msra.gmra.mrb[0].mxu1 %v7212_v40  ;;  %6754 = vmatprep.mubr.bf16.mxu0 %v8683_v35  ;;  %v5986_v35 = vcombine.low %v8834_v29, %v8843_v44  ;;  %v4159_v40 = vrot.slane %v4158_v62, 4  ;;  %v4197_v18 = vrot.slane %v4195_v19, 5  ;;  %v8856_v32 = vsel %vm7682_vm5, %v5955_v7, %v4674_v4  ;;  %v7217_v19 = vld [vmem:[%s7404_s20 + $0x3c] sm:$0xff]   ;;  %v7273_v1 = vld [vmem:[%s9253_s1 + $0x110] sm:$0xff]  }
 0x117   : > { %6822 = vmatpush3.bf16.msra.mxu1 %v9318_v58  ;;  %6546 = vmatprep.mubr.bf16.mxu1 %v7214_v39  ;;  %v4202_v28 = vrot.slane %v4200_v46, 4  ;;  %v4205_v33 = vrot.slane %v4203_v52, 5  ;;  %v2421_v39 = vrot.slane %v2420_v23, 4  ;;  %v8860_v5 = vsel %vm7682_vm5, %v4676_v47, %v4677_v55  ;;  %v7274_v47 = vld [vmem:[%s7404_s20 + $0x1c] sm:$0xf] }
 0x118   : > { %6815 = vmatprep.subr.bf16.mxu1 %v7272_v6  ;;  %v8866_v53 = vrot.slane %v4209_v50, 5  ;;  %v4215_v30 = vrot.slane %v4213_v0, 4  ;;  %v5987_v62 = vcombine.low %v8856_v32, %v8860_v5  ;;  %v5956_v34 = vrot.slane %v5940_v12, 9 }
 0x119   : > { %v4183_v7 = vrot.slane %v4182_v60, 4  ;;  %v4193_v46 = vrot.slane %v4192_v48, 4  ;;  %v2426_v52 = vsel %vm7436_vm2, %v2421_v39, %v8012_v11  ;;  %v4681_v56 = vrot.slane %v9319_v2, 5  ;;  %v9320_v11 = vld [vmem:[#allocation14_spill] sm:$0xff]  ;;  %v7218_v39 = vld [vmem:[%s7404_s20 + $0x48] sm:$0xff]  }
 0x11a   : > { %v4164_v4 = vsel %vm7436_vm2, %v4159_v40, %v8712_v49  ;;  %v4174_v60 = vsel %vm7436_vm2, %v4169_v14, %v8801_v57  ;;  %v8884_v50 = vcombine.low %v2426_v52, %v2436_v16  ;;  %v4684_v0 = vrot.slane %v9320_v11, 5  ;;  %v5930_v57 = vld [vmem:[%s7404_s20 + $0x18] sm:$0xe]  ;;  %v5941_v16 = vld [vmem:[%s7404_s20 + $0x9c] sm:$0xe] }
 0x11b   : > { %6823 = vmatpush3.bf16.msra.mxu1 %v7272_v6  ;;  %v4206_v24 = vor.u32 %v4205_v33, %v4202_v28  ;;  %v4219_v55 = vshll.u32 %v8864_v13, 16  ;;  %v8891_v58 = vsel %vm7682_vm5, %v5956_v34, %v4681_v56  ;;  %v4683_v48 = vrot.slane %v4681_v56, 4  ;;  %v7275_v40 = vld [vmem:[%s9253_s1 + $0x118] sm:$0xff]   ;;  %v7276_v2 = vld [vmem:[%s7404_s20 + $0x20] sm:$0x1] }
 0x11c   : > { %6816 = vmatprep.subr.bf16.mxu1 %v7273_v1  ;;  %v4216_v49 = vor.u32 %v4215_v30, %v8866_v53  ;;  %v4198_v23 = vsel %vm7436_vm2, %v4193_v46, %v4197_v18  ;;  %v4611_v12 = vrot.slane %v7274_v47, 5  ;;  %v5919_v6 = vcombine.low %v4164_v4, %v4174_v60  ;;  %v9321_v34 = vld [vmem:[#allocation13_spill] sm:$0xff]  ;;  %v5942_v11 = vld [vmem:[%s7404_s20 + $0xa8] sm:$0xe] }
 0x11d   : > { %6755 = vmatmul.mubr.bf16.gmra.mrb[20].mxu0 %v8789_v36  ;;  %v4188_v36 = vsel %vm7436_vm2, %v4183_v7, %v8812_v59  ;;  %v4207_v14 = vrot.slane %v4206_v24, 4  ;;  %v4221_v28 = vrot.slane %v4219_v55, 5  ;;  %v5946_v18 = vrot.slane %v5930_v57, 9  ;;  %v7220_v46 = vld [vmem:[%s7404_s20 + $0x54] sm:$0xff]   ;;  %v5931_v55 = vld [vmem:[%s7404_s20 + $0x24] sm:$0xe] }
 0x11e   : > { %6547 = vmatmul.mubr.bf16.gmra.mrb[4].mxu1 %v7215_v3  ;;  %6758 = vmatprep.mubr.bf16.mxu0 %v8799_v22  ;;  %v8905_v22 = vsel %vm7682_vm5, %v4683_v48, %v4684_v0  ;;  %v5957_v33 = vrot.slane %v5941_v16, 9  ;;  %v5920_v3 = vcombine.low %v4188_v36, %v4198_v23  ;;  %v4217_v30 = vrot.slane %v4216_v49, 4  ;;  %v7278_v48 = vld [vmem:[%s7404_s20 + $0x28] sm:$0xf]  ;;  %v7279_v36 = vld [vmem:[%s7404_s20 + $0x34] sm:$0xf] }
 0x11f   : > { %6550 = vmatprep.mubr.bf16.mxu1 %v7217_v19  ;;  %6824 = vmatpush3.bf16.msra.mxu1 %v7273_v1  ;;  %v5988_v59 = vcombine.low %v8891_v58, %v8905_v22  ;;  %v4688_v19 = vrot.slane %v9321_v34, 5  ;;  %v4691_v7 = vrot.slane %v8594_v25, 5  ;;  %v4613_v52 = vrot.slane %v4611_v12, 4  ;;  %v7277_v1 = vld [vmem:[%s9253_s1 + $0x120] sm:$0xff]  }
 0x120   : > { %6817 = vmatprep.subr.bf16.mxu1 %v7275_v40  ;;  %v4614_v56 = vrot.slane %v7276_v2, 5  ;;  %v4612_v25 = vsel %vm7682_vm5, %v5946_v18, %v4611_v12  ;;  %v4212_v0 = vsel %vm7436_vm2, %v4207_v14, %v8866_v53  ;;  %v4222_v24 = vsel %vm7436_vm2, %v4217_v30, %v4221_v28  ;;  %v5932_v12 = vld [vmem:[%s7404_s20 + $0x30] sm:$0xe]  ;;  %v7221_v30 = vld [vmem:[%s7404_s20 + $0x60] sm:$0xff]  }
 0x121   : > { %v8922_v4 = vsel %vm7682_vm5, %v5957_v33, %v4688_v19  ;;  %v4690_v60 = vrot.slane %v4688_v19, 4  ;;  %v4618_v49 = vrot.slane %v7278_v48, 5  ;;  %v4625_v23 = vrot.slane %v7279_v36, 5  ;;  %v7281_v33 = vld [vmem:[%s7404_s20 + $0x2c] sm:$0x1] }
 0x122   : > { %v4615_v16 = vsel %vm7682_vm5, %v4613_v52, %v4614_v56  ;;  %v5958_v47 = vrot.slane %v5942_v11, 9  ;;  %v5921_v28 = vcombine.low %v4212_v0, %v4222_v24  ;;  %v5947_v18 = vrot.slane %v5931_v55, 9  ;;  %v7223_v52 = vld [vmem:[%s7404_s20 + $0x6c] sm:$0xff]   ;;  %v5943_v11 = vld [vmem:[%s7404_s20 + $0xb4] sm:$0xe] }
 0x123   : > { %6825 = vmatpush3.bf16.msra.mxu1 %v7275_v40  ;;  %v8936_v57 = vsel %vm7682_vm5, %v4690_v60, %v4691_v7  ;;  %v9322_v40 = vld [vmem:[#allocation16_spill] sm:$0xff]  ;;  %v5978_v34 = vcombine.low %v4612_v25, %v4615_v16  ;;  %v4620_v19 = vrot.slane %v4618_v49, 4  ;;  %v5948_v2 = vrot.slane %v5932_v12, 9  ;;  %v5933_v0 = vld [vmem:[%s7404_s20 + $0x3c] sm:$0xe] }
 0x124   : > { %6818 = vmatprep.subr.bf16.mxu1 %v7277_v1  ;;  %v5989_v53 = vcombine.low %v8922_v4, %v8936_v57  ;;  %v4695_v14 = vrot.slane %v9322_v40, 5  ;;  %v4627_v56 = vrot.slane %v4625_v23, 4  ;;  %v7283_v24 = vld [vmem:[%s7404_s20 + $0x40] sm:$0xf]  ;;  %v4619_v48 = vsel %vm7682_vm5, %v5947_v18, %v4618_v49  ;;  %v7285_v18 = vld [vmem:[%s7404_s20 + $0x44] sm:$0x1] }
 0x125   : > { %6759 = vmatmul.mubr.bf16.gmra.mrb[24].mxu0 %v5919_v6  ;;  %v7280_v6 = vld [vmem:[%s9253_s1 + $0x128] sm:$0xff]   ;;  %v4632_v55 = vrot.slane %v7283_v24, 5  ;;  %v4702_v12 = vrot.slane %v8641_v10, 5  ;;  %v4626_v49 = vsel %vm7682_vm5, %v5948_v2, %v4625_v23  ;;  %v7286_v10 = vld [vmem:[%s9253_s1 + $0x138] sm:$0xff]   ;;  %v5944_v23 = vld [vmem:[%s7404_s20 + $0xc0] sm:$0xe] }
 0x126   : > { %6551 = vmatmul.mubr.bf16.gmra.mrb[8].mxu1 %v7218_v39  ;;  %6762 = vmatprep.mubr.bf16.mxu0 %v5920_v3  ;;  %v4621_v39 = vrot.slane %v7281_v33, 5  ;;  %v4698_v3 = vrot.slane %v8629_v21, 5  ;;  %v8953_v7 = vsel %vm7682_vm5, %v5958_v47, %v4695_v14  ;;  %v7284_v21 = vld [vmem:[%s9253_s1 + $0x130] sm:$0xff]   ;;  %v5959_v47 = vrot.slane %v5943_v11, 9 }
 0x127   : > { %6554 = vmatprep.mubr.bf16.mxu1 %v7220_v46  ;;  %6826 = vmatpush3.bf16.msra.mxu1 %v7277_v1  ;;  %v4697_v46 = vrot.slane %v4695_v14, 4  ;;  %v7282_v1 = vld [vmem:[%s7404_s20 + $0x38] sm:$0x1]  ;;  %v5949_v14 = vrot.slane %v5933_v0, 9  ;;  %v4635_v33 = vrot.slane %v7285_v18, 5  ;;  %v4709_v11 = vrot.slane %v8723_v51, 5 }
 0x128   : > { %6819 = vmatprep.subr.bf16.mxu1 %v7280_v6  ;;  %v4628_v60 = vrot.slane %v7282_v1, 5  ;;  %v4622_v36 = vsel %vm7682_vm5, %v4620_v19, %v4621_v39  ;;  %v4704_v39 = vrot.slane %v4702_v12, 4  ;;  %v5634_v19 = vld [vmem:[%s7404_s20 + $0x6c] sm:$0xf]  ;;  %v7226_v18 = vld [vmem:[%s7404_s20 + $0x90] sm:$0xff]   ;;  %v2457_v20 = vshll.u32 %v7292_v63, 16 }
 0x129   : > { %v8965_v25 = vsel %vm7682_vm5, %v4697_v46, %v4698_v3  ;;  %v5979_v3 = vcombine.low %v4619_v48, %v4622_v36  ;;  %v4633_v1 = vsel %vm7682_vm5, %v5949_v14, %v4632_v55  ;;  %v2390_v0 = vshrl.u32 %v5634_v19, 16  ;;  %v5945_v51 = vld [vmem:[%s7404_s20 + $0xcc] sm:$0xe] }
 0x12a   : > { %v5990_v16 = vcombine.low %v8953_v7, %v8965_v25  ;;  %v4629_v40 = vsel %vm7682_vm5, %v4627_v56, %v4628_v60  ;;  %v5960_v56 = vrot.slane %v5944_v23, 9  ;;  %v2393_v24 = vshll.u32 %v5634_v19, 16 }
 0x12b   : > { %6827 = vmatpush3.bf16.msra.mxu1 %v7280_v6  ;;  %v4705_v6 = vrot.slane %v8662_v27, 5  ;;  %v8985_v27 = vsel %vm7682_vm5, %v5959_v47, %v4702_v12  ;;  %v4712_v36 = vrot.slane %v8774_v26, 5  ;;  %v4711_v12 = vrot.slane %v4709_v11, 4 }
 0x12c   : > { %6820 = vmatprep.subr.bf16.mxu1 %v7284_v21  ;;  %v2395_v26 = vrot.slane %v2393_v24, 5  ;;  %v4719_v23 = vrot.slane %v8864_v13, 5 }
 0x12d   : > { %6763 = vmatmul.mubr.bf16.gmra.mrb[28].mxu0 %v5921_v28  ;;  %v4634_v28 = vrot.slane %v4632_v55, 4  ;;  %v8992_v46 = vsel %vm7682_vm5, %v4704_v39, %v4705_v6  ;;  %v9006_v55 = vsel %vm7682_vm5, %v5960_v56, %v4709_v11  ;;  %v4716_v39 = vrot.slane %v8826_v31, 5  ;;  %v7288_v56 = vld [vmem:[%s7404_s20 + $0x74] sm:$0x1] }
 0x12e   : > { %6555 = vmatmul.mubr.bf16.gmra.mrb[12].mxu1 %v7221_v30  ;;  %6782 = vmatprep.mubr.bf16.mxu0 %v5978_v34  ;;  %v7224_v30 = vld [vmem:[%s7404_s20 + $0x78] sm:$0xff]   ;;  %v5980_v34 = vcombine.low %v4626_v49, %v4629_v40  ;;  %v5991_v2 = vcombine.low %v8985_v27, %v8992_v46  ;;  %v9011_v49 = vsel %vm7682_vm5, %v4711_v12, %v4712_v36  ;;  %v2392_v40 = vrot.slane %v2390_v0, 4  ;;  %v7289_v0 = vld [vmem:[%s7404_s20 + $0x88] sm:$0xf] }
 0x12f   : > { %6558 = vmatprep.mubr.bf16.mxu1 %v7223_v52  ;;  %6828 = vmatpush3.bf16.msra.mxu1 %v7284_v21  ;;  %v7225_v52 = vld [vmem:[%s7404_s20 + $0x84] sm:$0xff]   ;;  %v4636_v60 = vsel %vm7682_vm5, %v4634_v28, %v4635_v33  ;;  %v7287_v21 = vld [vmem:[%s7404_s20 + $0x70] sm:$0xf]  ;;  %v5992_v28 = vcombine.low %v9006_v55, %v9011_v49  ;;  %v4718_v19 = vrot.slane %v4716_v39, 4  ;;  %v2447_v24 = vshll.u32 %v7289_v0, 16 }
 0x130   : > { %6821 = vmatprep.subr.bf16.mxu1 %v7286_v10  ;;  %v2399_v48 = vshll.u32 %v7287_v21, 16  ;;  %v2403_v47 = vshrl.u32 %v7287_v21, 16  ;;  %v5981_v6 = vcombine.low %v4633_v1, %v4636_v60  ;;  %v2409_v1 = vshll.u32 %v7288_v56, 16 }
 0x131   : > { %v9033_v11 = vsel %vm7682_vm5, %v4718_v19, %v4719_v23  ;;  %v2451_v21 = vshrl.u32 %v7289_v0, 16  ;;  %v7291_v19 = vld [vmem:[%s7404_s20 + $0xa0] sm:$0xf] }
 0x132   : > { %v9013_v14 = vrot.slane %v2399_v48, 5  ;;  %v2405_v33 = vrot.slane %v2403_v47, 4  ;;  %v2499_v56 = vshrl.u32 %v7291_v19, 16 }
 0x133   : > { %6829 = vmatpush3.bf16.msra.mxu1 %v7286_v10  ;;  %v5961_v10 = vrot.slane %v5945_v51, 9 }
 0x134   : > { %v2406_v31 = vor.u32 %v2405_v33, %v9013_v14  ;;  %v2465_v33 = vshll.u32 %v5643_v61, 16 }
 0x135   : > { %6783 = vmatmul.mubr.bf16.vlgmr.msra.gmra.mrb[0].mxu0 %v5979_v3  ;;  %v7227_v3 = vld [vmem:[%s7404_s20 + $0x9c] sm:$0xff]  }
 0x136   : > { %6559 = vmatmul.mubr.bf16.gmra.mrb[16].mxu1 %v7224_v30  ;;  %6786 = vmatprep.mubr.bf16.mxu0 %v5980_v34  ;;  %v5640_v30 = vld [vmem:[%s7404_s20 + $0x84] sm:$0xf]  ;;  %v9024_v34 = vsel %vm7682_vm5, %v5961_v10, %v4716_v39  ;;  %v2407_v47 = vrot.slane %v2406_v31, 4  ;;  %v7290_v10 = vld [vmem:[%s7404_s20 + $0x94] sm:$0xf]  ;;  %v2467_v0 = vrot.slane %v2465_v33, 5 }
 0x137   : > { %6562 = vmatprep.mubr.bf16.mxu1 %v7225_v52  ;;  %v2396_v52 = vor.u32 %v2395_v26, %v2392_v40  ;;  %v2438_v13 = vshrl.u32 %v5640_v30, 16  ;;  %v2441_v60 = vshll.u32 %v5640_v30, 16  ;;  %v5993_v48 = vcombine.low %v9024_v34, %v9033_v11 }
 0x138   : > { %v9042_v40 = vrot.slane %v2447_v24, 5  ;;  %v2453_v26 = vrot.slane %v2451_v21, 4  ;;  %v2471_v39 = vshll.u32 %v7290_v10, 16  ;;  %v2475_v23 = vshrl.u32 %v7290_v10, 16  ;;  %v7294_v10 = vld [vmem:[%s7404_s20 + $0xa4] sm:$0x1] }
 0x139   : > { %v2397_v36 = vrot.slane %v2396_v52, 4  ;;  %v2440_v12 = vrot.slane %v2438_v13, 4  ;;  %v2443_v51 = vrot.slane %v2441_v60, 5  ;;  %v2495_v52 = vshll.u32 %v7291_v19, 16  ;;  %v7295_v19 = vld [vmem:[%s7404_s20 + $0xac] sm:$0xf] }
 0x13a   : > { %v2454_v13 = vor.u32 %v2453_v26, %v9042_v40  ;;  %v9059_v41 = vrot.slane %v2471_v39, 5  ;;  %v2477_v42 = vrot.slane %v2475_v23, 4  ;;  %v2501_v21 = vrot.slane %v2499_v56, 4  ;;  %v5652_v23 = vld [vmem:[%s7404_s20 + $0xb4] sm:$0xf] }
 0x13b   : > { %v2505_v39 = vshll.u32 %v7294_v10, 16  ;;  %v2523_v15 = vshrl.u32 %v7295_v19, 16  ;;  %v2537_v63 = vshll.u32 %v5652_v23, 16 }
 0x13c   : > { %v2478_v26 = vor.u32 %v2477_v42, %v9059_v41 }
 0x13d   : > { %6787 = vmatmul.mubr.bf16.gmra.mrb[4].mxu0 %v5981_v6  ;;  %v5646_v6 = vld [vmem:[%s7404_s20 + $0x9c] sm:$0xf] }
 0x13e   : > { %6563 = vmatmul.mubr.bf16.gmra.mrb[20].mxu1 %v7226_v18  ;;  %6790 = vmatprep.mubr.bf16.mxu0 %v5982_v8  ;;  %v2411_v8 = vrot.slane %v2409_v1, 5  ;;  %v2462_v18 = vshrl.u32 %v5643_v61, 16  ;;  %v2489_v30 = vshll.u32 %v5646_v6, 16  ;;  %v2402_v1 = vsel %vm7436_vm2, %v2397_v36, %v9013_v14  ;;  %v7230_v61 = vld [vmem:[%s7404_s20 + $0xc0] sm:$0xff]  }
 0x13f   : > { %6566 = vmatprep.mubr.bf16.mxu1 %v7227_v3  ;;  %v2486_v3 = vshrl.u32 %v5646_v6, 16  ;;  %v9061_v14 = vrot.slane %v2495_v52, 5  ;;  %v2519_v52 = vshll.u32 %v7295_v19, 16 }
 0x140   : > { %v2412_v31 = vsel %vm7436_vm2, %v2407_v47, %v2411_v8  ;;  %v2464_v60 = vrot.slane %v2462_v18, 4  ;;  %v2491_v24 = vrot.slane %v2489_v30, 5  ;;  %v2459_v8 = vrot.slane %v2457_v20, 5  ;;  %v7296_v20 = vld [vmem:[%s7404_s20 + $0xb8] sm:$0xf] }
 0x141   : > { %v2455_v47 = vrot.slane %v2454_v13, 4  ;;  %v2502_v33 = vor.u32 %v2501_v21, %v9061_v14  ;;  %v2543_v29 = vshll.u32 %v7296_v20, 16  ;;  %v2547_v44 = vshrl.u32 %v7296_v20, 16 }
 0x143   : > { %v2503_v13 = vrot.slane %v2502_v33, 4 }
 0x145   : > { %6791 = vmatmul.mubr.bf16.gmra.mrb[8].mxu0 %v5983_v54  ;;  %v2444_v54 = vor.u32 %v2443_v51, %v2440_v12  ;;  %v2468_v12 = vor.u32 %v2467_v0, %v2464_v60  ;;  %v7293_v51 = vld [vmem:[%s7404_s20 + $0x98] sm:$0x1]  ;;  %v2507_v60 = vrot.slane %v2505_v39, 5 }
 0x146   : > { %6567 = vmatmul.mubr.bf16.gmra.mrb[24].mxu1 %v7228_v45  ;;  %6794 = vmatprep.mubr.bf16.mxu0 %v5984_v17  ;;  %v2488_v17 = vrot.slane %v2486_v3, 4  ;;  %v5682_v45 = vcombine.low %v2402_v1, %v2412_v31  ;;  %v2481_v6 = vshll.u32 %v7293_v51, 16  ;;  %v2534_v31 = vshrl.u32 %v5652_v23, 16 }
 0x147   : > { %6570 = vmatprep.mubr.bf16.mxu1 %v7229_v9  ;;  %v2445_v36 = vrot.slane %v2444_v54, 4  ;;  %v5649_v9 = vld [vmem:[%s7404_s20 + $0xa8] sm:$0xf]  ;;  %v2469_v56 = vrot.slane %v2468_v12, 4  ;;  %v2508_v32 = vsel %vm7436_vm2, %v2503_v13, %v2507_v60 }
 0x148   : > { %v2492_v18 = vor.u32 %v2491_v24, %v2488_v17  ;;  %v2510_v3 = vshrl.u32 %v5649_v9, 16  ;;  %v2513_v30 = vshll.u32 %v5649_v9, 16  ;;  %v2483_v1 = vrot.slane %v2481_v6, 5 }
 0x149   : > { %v2450_v43 = vsel %vm7436_vm2, %v2445_v36, %v9042_v40  ;;  %v2521_v17 = vrot.slane %v2519_v52, 5  ;;  %v2525_v24 = vrot.slane %v2523_v15, 4  ;;  %v2536_v21 = vrot.slane %v2534_v31, 4  ;;  %v5655_v36 = vld [vmem:[%s7404_s20 + $0xc0] sm:$0xf] }
 0x14a   : > { %v2493_v54 = vrot.slane %v2492_v18, 4  ;;  %v2512_v0 = vrot.slane %v2510_v3, 4  ;;  %v2515_v42 = vrot.slane %v2513_v30, 5  ;;  %v2558_v9 = vshrl.u32 %v5655_v36, 16  ;;  %v7298_v18 = vld [vmem:[%s7404_s20 + $0xc4] sm:$0xf] }
 0x14b   : > { %v2567_v33 = vshll.u32 %v7298_v18, 16 }
 0x14c   : > { %v2498_v51 = vsel %vm7436_vm2, %v2493_v54, %v9061_v14  ;;  %v2516_v5 = vor.u32 %v2515_v42, %v2512_v0  ;;  %v2571_v14 = vshrl.u32 %v7298_v18, 16  ;;  %v2560_v19 = vrot.slane %v2558_v9, 4 }
 0x14d   : > { %6795 = vmatmul.mubr.bf16.gmra.mrb[12].mxu0 %v5985_v38  ;;  %v2460_v38 = vsel %vm7436_vm2, %v2455_v47, %v2459_v8  ;;  %v2549_v8 = vrot.slane %v2547_v44, 4  ;;  %v2474_v47 = vsel %vm7436_vm2, %v2469_v56, %v9059_v41  ;;  %v7297_v41 = vld [vmem:[%s7404_s20 + $0xb0] sm:$0x1]  ;;  %v5686_v58 = vcombine.low %v2498_v51, %v2508_v32  ;;  %v7300_v44 = vld [vmem:[%s7404_s20 + $0xc8] sm:$0x1] }
 0x14e   : > { %6571 = vmatmul.mubr.bf16.gmra.mrb[28].mxu1 %v7230_v61  ;;  %6798 = vmatprep.mubr.bf16.mxu0 %v5986_v35  ;;  %v2479_v35 = vrot.slane %v2478_v26, 4  ;;  %v5684_v40 = vcombine.low %v2450_v43, %v2460_v38  ;;  %v2539_v61 = vrot.slane %v2537_v63, 5  ;;  %v2529_v6 = vshll.u32 %v7297_v41, 16 }
 0x14f   : > { %6606 = vmatprep.mubr.bf16.mxu1 %v5682_v45  ;;  %v2545_v45 = vrot.slane %v2543_v29, 5  ;;  %v2561_v26 = vshll.u32 %v5655_v36, 16  ;;  %v2517_v22 = vrot.slane %v2516_v5, 4  ;;  %v2569_v15 = vrot.slane %v2567_v33, 5 }
 0x150   : > { %v2484_v12 = vsel %vm7436_vm2, %v2479_v35, %v2483_v1  ;;  %v2540_v10 = vor.u32 %v2539_v61, %v2536_v21  ;;  %v2531_v30 = vrot.slane %v2529_v6, 5  ;;  %v2573_v43 = vrot.slane %v2571_v14, 4 }
 0x151   : > { %v2550_v39 = vor.u32 %v2549_v8, %v2545_v45  ;;  %v5685_v3 = vcombine.low %v2474_v47, %v2484_v12  ;;  %v2563_v52 = vrot.slane %v2561_v26, 5  ;;  %v2522_v31 = vsel %vm7436_vm2, %v2517_v22, %v2521_v17  ;;  %v9145_v8 = vld [vmem:[%s9254_s2] ss:$0 sm:$0xff] }
 0x152   : > { %v2541_v38 = vrot.slane %v2540_v10, 4  ;;  %v2574_v29 = vor.u32 %v2573_v43, %v2569_v15  ;;  %v2577_v35 = vshll.u32 %v7300_v44, 16  ;;  %v9150_v12 = vld [vmem:[%s9255_s3] ss:$0 sm:$0xff] }
 0x153   : > { %v2551_v56 = vrot.slane %v2550_v39, 4  ;;  %v2564_v20 = vor.u32 %v2563_v52, %v2560_v19 }
 0x154   : > { %v2546_v4 = vsel %vm7436_vm2, %v2541_v38, %v2545_v45  ;;  %v2579_v54 = vrot.slane %v2577_v35, 5 }
 0x155   : > { %6799 = vmatmul.mubr.bf16.gmra.mrb[16].mxu0 %v5987_v62  ;;  %v2526_v62 = vor.u32 %v2525_v24, %v2521_v17  ;;  %v2565_v25 = vrot.slane %v2564_v20, 4 }
 0x156   : > { %6607 = vmatmul.mubr.bf16.vlgmr.msra.gmra.mrb[16].mxu1 %v8884_v50  ;;  %6802 = vmatprep.mubr.bf16.mxu0 %v5988_v59  ;;  %v7299_v50 = vld [vmem:[%s7404_s20 + $0xbc] sm:$0x1] }
 0x157   : > { %6610 = vmatprep.mubr.bf16.mxu1 %v5684_v40  ;;  %v2553_v23 = vshll.u32 %v7299_v50, 16  ;;  %v2527_v59 = vrot.slane %v2526_v62, 4  ;;  %v2570_v13 = vsel %vm7436_vm2, %v2565_v25, %v2569_v15 }
 0x159   : > { %v2555_v1 = vrot.slane %v2553_v23, 5  ;;  %v2532_v63 = vsel %vm7436_vm2, %v2527_v59, %v2531_v30 }
 0x15b   : > { %v2556_v57 = vsel %vm7436_vm2, %v2551_v56, %v2555_v1 }
 0x15c   : > { %v5688_v7 = vcombine.low %v2546_v4, %v2556_v57 }
 0x15d   : > { %6803 = vmatmul.mubr.bf16.gmra.mrb[20].mxu0 %v5989_v53  ;;  %v5687_v53 = vcombine.low %v2522_v31, %v2532_v63 }
 0x15e   : > { %6611 = vmatmul.mubr.bf16.gmra.mrb[20].mxu1 %v5685_v3  ;;  %6806 = vmatprep.mubr.bf16.mxu0 %v5990_v16  ;;  %v2575_v16 = vrot.slane %v2574_v29, 4 }
 0x15f   : > { %6614 = vmatprep.mubr.bf16.mxu1 %v5686_v58 }
 0x160   : > { %v2580_v60 = vsel %vm7436_vm2, %v2575_v16, %v2579_v54 }
 0x161   : > { %v5689_v0 = vcombine.low %v2570_v13, %v2580_v60 }
 0x165   : > { %6807 = vmatmul.mubr.bf16.gmra.mrb[24].mxu0 %v5991_v2 }
 0x166   : > { %6615 = vmatmul.mubr.bf16.gmra.mrb[24].mxu1 %v5687_v53  ;;  %6810 = vmatprep.mubr.bf16.mxu0 %v5992_v28 }
 0x167   : > { %6618 = vmatprep.mubr.bf16.mxu1 %v5688_v7 }
 0x16d   : > { %6811 = vmatmul.mubr.bf16.gmra.mrb[28].mxu0 %v5993_v48 }
 0x16e   : > { %6619 = vmatmul.mubr.bf16.gmra.mrb[28].mxu1 %v5689_v0 }
 0x1e9   : > { %v6544_v27 = vpop.f32.mrb[0].mxu1 }
 0x1ea   : > { %v1990_v46 = vpop.f32.mrb[1].mxu1 }
 0x1eb   : > { %v6545_v2 = vpop.f32.mrb[2].mxu1 }
 0x1ec   : > { %v1993_v42 = vpop.f32.mrb[3].mxu1 }
 0x1f1   : > { %v6548_v17 = vpop.f32.mrb[4].mxu1 }
 0x1f2   : > { %v2006_v55 = vpop.f32.mrb[5].mxu1 }
 0x1f3   : > { %v6549_v49 = vpop.f32.mrb[6].mxu1 }
 0x1f4   : > { %v2009_v28 = vpop.f32.mrb[7].mxu1 }
 0x1f9   : > { %v6552_v24 = vpop.f32.mrb[8].mxu1 }
 0x1fa   : > { %v2022_v40 = vpop.f32.mrb[9].mxu1 }
 0x1fb   : > { %v6553_v21 = vpop.f32.mrb[10].mxu1 }
 0x1fc   : > { %v9132_v61 = vpop.f32.mrb[11].mxu1 }
 0x201   : > { %v9134_v37 = vpop.f32.mrb[12].mxu1 }
 0x202   : > { %v9136_v45 = vpop.f32.mrb[13].mxu1 }
 0x203   : > { %v9138_v34 = vpop.f32.mrb[14].mxu1 }
 0x204   : > { %v9140_v11 = vpop.f32.mrb[15].mxu1 }
 0x208   : > { %v6784_v48 = vpop.f32.mrb[0].mxu0 }
 0x209   : > { %v6830_v36 = vadd.f32 %v6784_v48, %v6544_v27  ;;  %v4884_v47 = vpop.f32.mrb[1].mxu0 }
 0x20a   : > { %v6831_v51 = vadd.f32 %v4884_v47, %v1990_v46  ;;  %v6785_v32 = vpop.f32.mrb[2].mxu0 }
 0x20b   : > { %v5052_v5 = vmul.f32 %v6830_v36, %v9145_v8  ;;  %v6832_v62 = vadd.f32 %v6785_v32, %v6545_v2  ;;  %v4887_v41 = vpop.f32.mrb[3].mxu0 }
 0x20c   : > { %v5050_v6 = vmul.f32 %v6831_v51, %v9145_v8  ;;  %v6833_v9 = vadd.f32 %v4887_v41, %v1993_v42 }
 0x20d   : > { %v5091_v26 = vadd.f32 %v9150_v12, %v5052_v5  ;;  %v5053_v18 = vmul.f32 %v6832_v62, %v9145_v8 }
 0x20e   : > { %v5089_v33 = vadd.f32 %v9150_v12, %v5050_v6  ;;  %v5051_v14 = vmul.f32 %v6833_v9, %v9145_v8 }
 0x20f   : > { %v5092_v10 = vadd.f32 %v9150_v12, %v5053_v18  ;;  %v5123_v23 = vmax.f32 %v5091_v26, 0.0 }
 0x210   : > { %v5090_v39 = vadd.f32 %v9150_v12, %v5051_v14  ;;  %v6788_v50 = vpop.f32.mrb[4].mxu0  ;;  %v5121_v59 = vmax.f32 %v5089_v33, 0.0 }
 0x211   : > { %v5124_v3 = vmax.f32 %v5092_v10, 0.0  ;;  %v6834_v58 = vadd.f32 %v6788_v50, %v6548_v17  ;;  %v4900_v22 = vpop.f32.mrb[5].mxu0 }
 0x212   : > { %v5122_v30 = vmax.f32 %v5090_v39, 0.0  ;;  %v6835_v19 = vadd.f32 %v4900_v22, %v2006_v55  ;;  %v6789_v52 = vpop.f32.mrb[6].mxu0 }
 0x213   : > { %v6079_v15 = vpack.c.bf16 %v5124_v3, %v5123_v23  ;;  %v5056_v43 = vmul.f32 %v6834_v58, %v9145_v8  ;;  %v6836_v38 = vadd.f32 %v6789_v52, %v6549_v49  ;;  %v4903_v56 = vpop.f32.mrb[7].mxu0 }
 0x214   : > { %v6074_v1 = vpack.c.bf16 %v5122_v30, %v5121_v59  ;;  %v5054_v31 = vmul.f32 %v6835_v19, %v9145_v8  ;;  %v6837_v63 = vadd.f32 %v4903_v56, %v2009_v28 }
 0x215   : > { %6151 = vst [vmem:[%s9164_s19 + $0x8] sm:$0xff] %v6079_v15   ;;  %v5095_v20 = vadd.f32 %v9150_v12, %v5056_v43  ;;  %v5057_v29 = vmul.f32 %v6836_v38, %v9145_v8 }
 0x216   : > { %6075 = vst [vmem:[%s9164_s19] sm:$0xff] %v6074_v1   ;;  %v5093_v44 = vadd.f32 %v9150_v12, %v5054_v31  ;;  %v5055_v35 = vmul.f32 %v6837_v63, %v9145_v8 }
 0x217   : > { %v5096_v4 = vadd.f32 %v9150_v12, %v5057_v29  ;;  %v5127_v7 = vmax.f32 %v5095_v20, 0.0 }
 0x218   : > { %v5094_v57 = vadd.f32 %v9150_v12, %v5055_v35  ;;  %v6792_v53 = vpop.f32.mrb[8].mxu0  ;;  %v5125_v13 = vmax.f32 %v5093_v44, 0.0 }
 0x219   : > { %v5128_v25 = vmax.f32 %v5096_v4, 0.0  ;;  %v6838_v16 = vadd.f32 %v6792_v53, %v6552_v24  ;;  %v4916_v54 = vpop.f32.mrb[9].mxu0 }
 0x21a   : > { %v5126_v60 = vmax.f32 %v5094_v57, 0.0  ;;  %v6839_v0 = vadd.f32 %v4916_v54, %v2022_v40  ;;  %v6793_v27 = vpop.f32.mrb[10].mxu0 }
 0x21b   : > { %v6089_v46 = vpack.c.bf16 %v5128_v25, %v5127_v7  ;;  %v5060_v2 = vmul.f32 %v6838_v16, %v9145_v8  ;;  %v6840_v42 = vadd.f32 %v6793_v27, %v6553_v21  ;;  %v4919_v17 = vpop.f32.mrb[11].mxu0 }
 0x21c   : > { %v6084_v55 = vpack.c.bf16 %v5126_v60, %v5125_v13  ;;  %v5058_v49 = vmul.f32 %v6839_v0, %v9145_v8  ;;  %v6841_v28 = vadd.f32 %v4919_v17, %v9132_v61 }
 0x21d   : > { %6153 = vst [vmem:[%s9164_s19 + $0x18] sm:$0xff] %v6089_v46   ;;  %v5099_v48 = vadd.f32 %v9150_v12, %v5060_v2  ;;  %v5061_v24 = vmul.f32 %v6840_v42, %v9145_v8 }
 0x21e   : > { %6152 = vst [vmem:[%s9164_s19 + $0x10] sm:$0xff] %v6084_v55   ;;  %v5097_v36 = vadd.f32 %v9150_v12, %v5058_v49  ;;  %v5059_v40 = vmul.f32 %v6841_v28, %v9145_v8 }
 0x21f   : > { %v5100_v47 = vadd.f32 %v9150_v12, %v5061_v24  ;;  %v5131_v32 = vmax.f32 %v5099_v48, 0.0 }
 0x220   : > { %v5098_v21 = vadd.f32 %v9150_v12, %v5059_v40  ;;  %v6796_v51 = vpop.f32.mrb[12].mxu0  ;;  %v5129_v41 = vmax.f32 %v5097_v36, 0.0 }
 0x221   : > { %v5132_v5 = vmax.f32 %v5100_v47, 0.0  ;;  %v6842_v61 = vadd.f32 %v6796_v51, %v9134_v37  ;;  %v4932_v62 = vpop.f32.mrb[13].mxu0 }
 0x222   : > { %v5130_v6 = vmax.f32 %v5098_v21, 0.0  ;;  %v6843_v9 = vadd.f32 %v4932_v62, %v9136_v45  ;;  %v6797_v26 = vpop.f32.mrb[14].mxu0 }
 0x223   : > { %v6099_v18 = vpack.c.bf16 %v5132_v5, %v5131_v32  ;;  %v5064_v33 = vmul.f32 %v6842_v61, %v9145_v8  ;;  %v6844_v14 = vadd.f32 %v6797_v26, %v9138_v34  ;;  %v4935_v10 = vpop.f32.mrb[15].mxu0 }
 0x224   : > { %v6094_v39 = vpack.c.bf16 %v5130_v6, %v5129_v41  ;;  %v5062_v50 = vmul.f32 %v6843_v9, %v9145_v8  ;;  %v6845_v23 = vadd.f32 %v4935_v10, %v9140_v11 }
 0x225   : > { %6155 = vst [vmem:[%s9164_s19 + $0x28] sm:$0xff] %v6099_v18   ;;  %v5103_v37 = vadd.f32 %v9150_v12, %v5064_v33  ;;  %v5065_v3 = vmul.f32 %v6844_v14, %v9145_v8 }
 0x226   : > { %6154 = vst [vmem:[%s9164_s19 + $0x20] sm:$0xff] %v6094_v39   ;;  %v5101_v45 = vadd.f32 %v9150_v12, %v5062_v50  ;;  %v5063_v58 = vmul.f32 %v6845_v23, %v9145_v8 }
 0x227   : > { %v5104_v22 = vadd.f32 %v9150_v12, %v5065_v3  ;;  %v5135_v30 = vmax.f32 %v5103_v37, 0.0 }
 0x228   : > { %v5102_v34 = vadd.f32 %v9150_v12, %v5063_v58  ;;  %v6800_v59 = vpop.f32.mrb[16].mxu0  ;;  %v5133_v15 = vmax.f32 %v5101_v45, 0.0 }
 0x229   : > { %v5136_v19 = vmax.f32 %v5104_v22, 0.0  ;;  %v6608_v52 = vpop.f32.mrb[16].mxu1  ;;  %v4948_v11 = vpop.f32.mrb[17].mxu0 }
 0x22a   : > { %v5134_v43 = vmax.f32 %v5102_v34, 0.0  ;;  %v6846_v38 = vadd.f32 %v6800_v59, %v6608_v52  ;;  %v2808_v56 = vpop.f32.mrb[17].mxu1  ;;  %v6801_v1 = vpop.f32.mrb[18].mxu0 }
 0x22b   : > { %v6109_v31 = vpack.c.bf16 %v5136_v19, %v5135_v30  ;;  %v6847_v63 = vadd.f32 %v4948_v11, %v2808_v56  ;;  %v6609_v20 = vpop.f32.mrb[18].mxu1  ;;  %v4951_v29 = vpop.f32.mrb[19].mxu0 }
 0x22c   : > { %v6104_v44 = vpack.c.bf16 %v5134_v43, %v5133_v15  ;;  %v5068_v35 = vmul.f32 %v6846_v38, %v9145_v8  ;;  %v6848_v4 = vadd.f32 %v6801_v1, %v6609_v20  ;;  %v2811_v57 = vpop.f32.mrb[19].mxu1 }
 0x22d   : > { %6157 = vst [vmem:[%s9164_s19 + $0x38] sm:$0xff] %v6109_v31   ;;  %v5066_v53 = vmul.f32 %v6847_v63, %v9145_v8  ;;  %v6849_v7 = vadd.f32 %v4951_v29, %v2811_v57 }
 0x22e   : > { %6156 = vst [vmem:[%s9164_s19 + $0x30] sm:$0xff] %v6104_v44   ;;  %v5107_v25 = vadd.f32 %v9150_v12, %v5068_v35  ;;  %v5069_v16 = vmul.f32 %v6848_v4, %v9145_v8 }
 0x22f   : > { %v5105_v54 = vadd.f32 %v9150_v12, %v5066_v53  ;;  %v5067_v13 = vmul.f32 %v6849_v7, %v9145_v8 }
 0x230   : > { %v5108_v60 = vadd.f32 %v9150_v12, %v5069_v16  ;;  %v6804_v0 = vpop.f32.mrb[20].mxu0  ;;  %v5139_v42 = vmax.f32 %v5107_v25, 0.0 }
 0x231   : > { %v5106_v27 = vadd.f32 %v9150_v12, %v5067_v13  ;;  %v6612_v46 = vpop.f32.mrb[20].mxu1  ;;  %v4964_v2 = vpop.f32.mrb[21].mxu0  ;;  %v5137_v48 = vmax.f32 %v5105_v54, 0.0 }
 0x232   : > { %v5140_v17 = vmax.f32 %v5108_v60, 0.0  ;;  %v6850_v55 = vadd.f32 %v6804_v0, %v6612_v46  ;;  %v2824_v49 = vpop.f32.mrb[21].mxu1  ;;  %v6805_v28 = vpop.f32.mrb[22].mxu0 }
 0x233   : > { %v5138_v24 = vmax.f32 %v5106_v27, 0.0  ;;  %v6851_v36 = vadd.f32 %v4964_v2, %v2824_v49  ;;  %v6613_v40 = vpop.f32.mrb[22].mxu1  ;;  %v4967_v47 = vpop.f32.mrb[23].mxu0 }
 0x234   : > { %v6119_v21 = vpack.c.bf16 %v5140_v17, %v5139_v42  ;;  %v5072_v51 = vmul.f32 %v6850_v55, %v9145_v8  ;;  %v6852_v32 = vadd.f32 %v6805_v28, %v6613_v40  ;;  %v2827_v5 = vpop.f32.mrb[23].mxu1 }
 0x235   : > { %v6114_v61 = vpack.c.bf16 %v5138_v24, %v5137_v48  ;;  %v5070_v62 = vmul.f32 %v6851_v36, %v9145_v8  ;;  %v6853_v41 = vadd.f32 %v4967_v47, %v2827_v5 }
 0x236   : > { %6159 = vst [vmem:[%s9164_s19 + $0x48] sm:$0xff] %v6119_v21   ;;  %v5111_v6 = vadd.f32 %v9150_v12, %v5072_v51  ;;  %v5073_v9 = vmul.f32 %v6852_v32, %v9145_v8 }
 0x237   : > { %6158 = vst [vmem:[%s9164_s19 + $0x40] sm:$0xff] %v6114_v61   ;;  %v5109_v26 = vadd.f32 %v9150_v12, %v5070_v62  ;;  %v5071_v18 = vmul.f32 %v6853_v41, %v9145_v8 }
 0x238   : > { %v5112_v33 = vadd.f32 %v9150_v12, %v5073_v9  ;;  %v6808_v14 = vpop.f32.mrb[24].mxu0  ;;  %v5143_v23 = vmax.f32 %v5111_v6, 0.0 }
 0x239   : > { %v5110_v10 = vadd.f32 %v9150_v12, %v5071_v18  ;;  %v6616_v39 = vpop.f32.mrb[24].mxu1  ;;  %v4980_v50 = vpop.f32.mrb[25].mxu0  ;;  %v5141_v22 = vmax.f32 %v5109_v26, 0.0 }
 0x23a   : > { %v5144_v37 = vmax.f32 %v5112_v33, 0.0  ;;  %v6854_v3 = vadd.f32 %v6808_v14, %v6616_v39  ;;  %v2840_v45 = vpop.f32.mrb[25].mxu1  ;;  %v6809_v58 = vpop.f32.mrb[26].mxu0 }
 0x23b   : > { %v5142_v34 = vmax.f32 %v5110_v10, 0.0  ;;  %v6855_v59 = vadd.f32 %v4980_v50, %v2840_v45  ;;  %v6617_v30 = vpop.f32.mrb[26].mxu1  ;;  %v4983_v19 = vpop.f32.mrb[27].mxu0 }
 0x23c   : > { %v6129_v52 = vpack.c.bf16 %v5144_v37, %v5143_v23  ;;  %v5076_v11 = vmul.f32 %v6854_v3, %v9145_v8  ;;  %v6856_v15 = vadd.f32 %v6809_v58, %v6617_v30  ;;  %v2843_v43 = vpop.f32.mrb[27].mxu1 }
 0x23d   : > { %v6124_v38 = vpack.c.bf16 %v5142_v34, %v5141_v22  ;;  %v5074_v56 = vmul.f32 %v6855_v59, %v9145_v8  ;;  %v6857_v1 = vadd.f32 %v4983_v19, %v2843_v43 }
 0x23e   : > { %6161 = vst [vmem:[%s9164_s19 + $0x58] sm:$0xff] %v6129_v52   ;;  %v5115_v31 = vadd.f32 %v9150_v12, %v5076_v11  ;;  %v5077_v63 = vmul.f32 %v6856_v15, %v9145_v8 }
 0x23f   : > { %6160 = vst [vmem:[%s9164_s19 + $0x50] sm:$0xff] %v6124_v38   ;;  %v5113_v20 = vadd.f32 %v9150_v12, %v5074_v56  ;;  %v5075_v29 = vmul.f32 %v6857_v1, %v9145_v8 }
 0x240   : > { %v5116_v44 = vadd.f32 %v9150_v12, %v5077_v63  ;;  %v6812_v35 = vpop.f32.mrb[28].mxu0  ;;  %v5147_v7 = vmax.f32 %v5115_v31, 0.0 }
 0x241   : > { %v5114_v4 = vadd.f32 %v9150_v12, %v5075_v29  ;;  %v6620_v57 = vpop.f32.mrb[28].mxu1  ;;  %v4996_v53 = vpop.f32.mrb[29].mxu0  ;;  %v5145_v60 = vmax.f32 %v5113_v20, 0.0 }
 0x242   : > { %v5148_v25 = vmax.f32 %v5116_v44, 0.0  ;;  %v6858_v16 = vadd.f32 %v6812_v35, %v6620_v57  ;;  %v2856_v54 = vpop.f32.mrb[29].mxu1  ;;  %v6813_v13 = vpop.f32.mrb[30].mxu0 }
 0x243   : > { %v5146_v0 = vmax.f32 %v5114_v4, 0.0  ;;  %v6859_v27 = vadd.f32 %v4996_v53, %v2856_v54  ;;  %v6621_v46 = vpop.f32.mrb[30].mxu1  ;;  %v4999_v2 = vpop.f32.mrb[31].mxu0 }
 0x244   : > { %v6139_v42 = vpack.c.bf16 %v5148_v25, %v5147_v7  ;;  %v5080_v17 = vmul.f32 %v6858_v16, %v9145_v8  ;;  %v6860_v55 = vadd.f32 %v6813_v13, %v6621_v46  ;;  %v2859_v49 = vpop.f32.mrb[31].mxu1 }
 0x245   : > { %v6134_v28 = vpack.c.bf16 %v5146_v0, %v5145_v60  ;;  %v5078_v48 = vmul.f32 %v6859_v27, %v9145_v8  ;;  %v6861_v24 = vadd.f32 %v4999_v2, %v2859_v49 }
 0x246   : > { %6163 = vst [vmem:[%s9164_s19 + $0x68] sm:$0xff] %v6139_v42   ;;  %v5119_v36 = vadd.f32 %v9150_v12, %v5080_v17  ;;  %v5081_v40 = vmul.f32 %v6860_v55, %v9145_v8 }
 0x247   : > { %6162 = vst [vmem:[%s9164_s19 + $0x60] sm:$0xff] %v6134_v28   ;;  %v5117_v47 = vadd.f32 %v9150_v12, %v5078_v48  ;;  %v5079_v21 = vmul.f32 %v6861_v24, %v9145_v8 }
 0x248   : > { %v5120_v51 = vadd.f32 %v9150_v12, %v5081_v40  ;;  %v5151_v5 = vmax.f32 %v5119_v36, 0.0 }
 0x249   : > { %v5118_v32 = vadd.f32 %v9150_v12, %v5079_v21  ;;  %v5149_v62 = vmax.f32 %v5117_v47, 0.0 }
 0x24a   : > { %v5152_v61 = vmax.f32 %v5120_v51, 0.0 }
 0x24b   : > { %v5150_v41 = vmax.f32 %v5118_v32, 0.0 }
 0x24c   : > { %v6149_v6 = vpack.c.bf16 %v5152_v61, %v5151_v5 }
 0x24d   : > { %v6144_v9 = vpack.c.bf16 %v5150_v41, %v5149_v62 }
 0x24e   : > { %6165 = vst [vmem:[%s9164_s19 + $0x78] sm:$0xff] %v6149_v6  }
 0x24f   : > { %6164 = vst [vmem:[%s9164_s19 + $0x70] sm:$0xff] %v6144_v9  }
 0x250 PF: > { %s14_s17 = sadd.s32 1, %s7323_s17   ;;  %s9323_s15 = smov %s7319_s16 }
 0x251   : > { %p11_p5 = scmp.ge.s32.totalorder %s14_s17, 4   ;;  %s9324_s16 = smov %s9326_s18 }
 0x253   :  { %13 = sbr.rel (!%p11_p5) target bundleno = 2 (0x2), region = 77 }

// kernel: block_forward.3
= control target key start
LH: loop header
LB: loop body
LE: loop exit
PB: predicated region body
PF: predicated region fallthrough
CT: control target
= control target key end

     0   :  { %s7821_s27 = smov 0   ;;  %s7823_s28 = smov 0   ;;  %s9946_s0 = inlined_call_operand.vmem [shape: bf16[2,18,18,128], index: 0, kind: input, shape index: {}]   ;;  %s9947_s1 = inlined_call_operand.vmem [shape: bf16[9,128,128], index: 1, kind: input, shape index: {}]   ;;  %s9948_s2 = inlined_call_operand.vmem [shape: f32[1,128], index: 2, kind: input, shape index: {}]   ;;  %s9949_s3 = inlined_call_operand.vmem [shape: f32[1,128], index: 3, kind: input, shape index: {}]   ;;  %s9950_s4 = inlined_call_operand.vmem [shape: bf16[2,16,16,128], index: 4, kind: input, shape index: {}]   ;;  %s9951_s5 = inlined_call_operand.vmem [shape: bf16[128,128], index: 5, kind: input, shape index: {}]   ;;  %s9952_s6 = inlined_call_operand.vmem [shape: f32[1,128], index: 6, kind: input, shape index: {}]   ;;  %s9953_s7 = inlined_call_operand.vmem [shape: f32[1,128], index: 7, kind: input, shape index: {}]   ;;  %s9954_s8 = inlined_call_operand.vmem [shape: f32[2,16,16,128], index: 8, kind: output, shape index: {}]  }
   0x1   :  { %s7825_s29 = smov 0  }
   0x2 LB: > { %s30_s30 = sadd.s32 1, %s7770_s28  ;;  %p5917_p0 = scmp.ge.s32.totalorder %s7774_s29, 1  ;;  %s7774_s29 = sphi %s7825_s29, %s18_s29   ;;  %s7770_s28 = sphi %s7823_s28, %s10044_s28   ;;  %s7766_s27 = sphi %s7821_s27, %s10043_s27  }
   0x3   : > { %p32_p1 = scmp.ge.s32.totalorder %s30_s30, 2  ;;  %p294_p2 = scmp.lt.s32.totalorder %s7774_s29, 3 }
   0x5   : > { %s10046_s30 = smov (%p32_p1, %s30_s30), 0  ;;  %p295_p3 = pnand %p5917_p0, %p294_p2 }
   0x7   : > { %298 = sbr.rel (%p295_p3) target bundleno = 647 (0x287), region = 52 }
   0xe   : > { %v7540_v0 = vld [vmem:[%s9947_s1 + $0x40] sm:$0xff]   ;;  %p343_p4 = scmp.lt.s32.totalorder %s7766_s27, 1  ;;  %v7542_v2 = vld [vmem:[%s9947_s1 + $0x48] sm:$0xff]   ;;  %v7544_v4 = vld [vmem:[%s9947_s1 + $0x50] sm:$0xff]   ;;  %vm439_vm0 = vsmask.f32 3328 }
   0xf   : > { %v7541_v1 = vld [vmem:[%s9947_s1 + $0x100] sm:$0xff]   ;;  %6779 = vmatprep.subr.bf16.mxu1 %v7540_v0  ;;  %v7543_v3 = vld [vmem:[%s9947_s1 + $0x108] sm:$0xff]   ;;  %v7545_v5 = vld [vmem:[%s9947_s1 + $0x110] sm:$0xff]   ;;  %vm440_vm1 = vsmask.f32 7440  ;;  %vm1469_vm3 = vcmask 1042432  }
  0x10   : > { %6971 = vmatprep.subr.bf16.mxu0 %v7541_v1  ;;  %6780 = vmatpush3.bf16.msra.mxu1 %v7540_v0  ;;  %s10048_s27 = smov (!%p343_p4, %s7766_s27), 1  ;;  %v7546_v6 = vld [vmem:[%s9947_s1 + $0x58] sm:$0xff]   ;;  %v7548_v8 = vld [vmem:[%s9947_s1 + $0x60] sm:$0xff]   ;;  %v7550_v10 = vld [vmem:[%s9947_s1 + $0x68] sm:$0xff]   ;;  %vm1470_vm4 = vcmask 1046532  }
  0x11   : > { %6972 = vmatpush3.bf16.msra.mxu0 %v7541_v1  ;;  %6781 = vmatprep.subr.bf16.mxu1 %v7542_v2  ;;  %v7547_v7 = vld [vmem:[%s9947_s1 + $0x118] sm:$0xff]   ;;  %s7515_s25 = smul.u32 216, %s10048_s27  ;;  %v7549_v9 = vld [vmem:[%s9947_s1 + $0x120] sm:$0xff]   ;;  %v7551_v11 = vld [vmem:[%s9947_s1 + $0x128] sm:$0xff]   ;;  %s6537_s11 = sshll.u32 %s10048_s27, 7 }
  0x12   : > { %6973 = vmatprep.subr.bf16.mxu0 %v7543_v3  ;;  %v7552_v25 = vld [vmem:[%s9947_s1 + $0x70] sm:$0xff]   ;;  %vm7900_vm2 = vmor %vm439_vm0, %vm440_vm1  ;;  %v7554_v42 = vld [vmem:[%s9947_s1 + $0x78] sm:$0xff]   ;;  %s9116_s15 = scalar_lea.vmem %s9950_s4, %s6537_s11  ;;  %s6538_s18 = sshll.u32 %s10048_s27, 8 }
  0x13   : > { %s7875_s14 = scalar_lea.vmem %s9946_s0, %s7515_s25  ;;  %v7553_v30 = vld [vmem:[%s9947_s1 + $0x130] sm:$0xff]   ;;  %v7555_v52 = vld [vmem:[%s9947_s1 + $0x138] sm:$0xff]   ;;  %vm8274_vm5 = vmor %vm1469_vm3, %vm1470_vm4  ;;  %s9763_s27 = scalar_lea.vmem %s9954_s8, %s6538_s18 }
  0x14   : > { %6782 = vmatpush3.bf16.msra.mxu1 %v7542_v2  ;;  %v375_v12 = vld [vmem:[%s7875_s14] sm:$0xf]  ;;  %v376_v13 = vld [vmem:[%s7875_s14 + $0x4] sm:$0xf]  ;;  %v423_v14 = vld [vmem:[%s7875_s14 + $0x8] sm:$0x1] }
  0x15   : > { %6974 = vmatpush3.bf16.msra.mxu0 %v7543_v3  ;;  %6783 = vmatprep.subr.bf16.mxu1 %v7544_v4  ;;  %v443_v15 = vshrl.u32 %v375_v12, 16  ;;  %v446_v16 = vshll.u32 %v375_v12, 16  ;;  %v452_v17 = vshll.u32 %v376_v13, 16  ;;  %v456_v18 = vshrl.u32 %v376_v13, 16  ;;  %v6115_v20 = vld [vmem:[%s7875_s14 + $0xc] sm:$0xf] }
  0x16   : > { %6975 = vmatprep.subr.bf16.mxu0 %v7545_v5  ;;  %v462_v19 = vshll.u32 %v423_v14, 16  ;;  %v6116_v23 = vld [vmem:[%s7875_s14 + $0x10] sm:$0xf]  ;;  %v7889_v24 = vld [vmem:[%s7875_s14 + $0x14] sm:$0x1]  ;;  %v2345_v29 = vshrl.u32 %v6115_v20, 16 }
  0x17   : > { %v445_v21 = vrot.slane %v443_v15, 4  ;;  %v448_v22 = vrot.slane %v446_v16, 5  ;;  %v454_v26 = vrot.slane %v452_v17, 5  ;;  %v458_v27 = vrot.slane %v456_v18, 4  ;;  %v377_v35 = vld [vmem:[%s7875_s14 + $0xc] sm:$0xf] }
  0x18   : > { %6784 = vmatpush3.bf16.msra.mxu1 %v7544_v4  ;;  %v464_v28 = vrot.slane %v462_v19, 5  ;;  %v2348_v32 = vshll.u32 %v6115_v20, 16  ;;  %v2354_v33 = vshll.u32 %v6116_v23, 16  ;;  %v2358_v34 = vshrl.u32 %v6116_v23, 16  ;;  %v378_v41 = vld [vmem:[%s7875_s14 + $0x10] sm:$0xf] }
  0x19   : > { %6976 = vmatpush3.bf16.msra.mxu0 %v7545_v5  ;;  %6785 = vmatprep.subr.bf16.mxu1 %v7546_v6  ;;  %v449_v31 = vor.u32 %v448_v22, %v445_v21  ;;  %v459_v37 = vor.u32 %v458_v27, %v454_v26  ;;  %v2347_v38 = vrot.slane %v2345_v29, 4  ;;  %v2364_v39 = vshll.u32 %v7889_v24, 16  ;;  %v424_v49 = vld [vmem:[%s7875_s14 + $0x14] sm:$0x1]  ;;  %v6118_v57 = vld [vmem:[%s7875_s14 + $0x18] sm:$0xf] }
  0x1a   : > { %6977 = vmatprep.subr.bf16.mxu0 %v7547_v7  ;;  %v3119_v40 = vrot.slane %v7889_v24, 5  ;;  %v2350_v44 = vrot.slane %v2348_v32, 5  ;;  %v2356_v45 = vrot.slane %v2354_v33, 5  ;;  %v2360_v46 = vrot.slane %v2358_v34, 4  ;;  %v7920_v5 = vld [vmem:[%s7875_s14 + $0x1c] sm:$0xf] }
  0x1b   : > { %v450_v43 = vrot.slane %v449_v31, 4  ;;  %v460_v47 = vrot.slane %v459_v37, 4  ;;  %v2366_v48 = vrot.slane %v2364_v39, 5  ;;  %v467_v50 = vshrl.u32 %v377_v35, 16  ;;  %v7557_v12 = vld [vmem:[%s9947_s1] sm:$0xff]  }
  0x1c   : > { %6786 = vmatpush3.bf16.msra.mxu1 %v7546_v6  ;;  %v470_v51 = vshll.u32 %v377_v35, 16  ;;  %v2351_v54 = vor.u32 %v2350_v44, %v2347_v38  ;;  %v2361_v55 = vor.u32 %v2360_v46, %v2356_v45  ;;  %v476_v56 = vshll.u32 %v378_v41, 16  ;;  %v379_v21 = vld [vmem:[%s7875_s14 + $0x18] sm:$0xf]  ;;  %v380_v27 = vld [vmem:[%s7875_s14 + $0x1c] sm:$0xf] }
  0x1d   : > { %6978 = vmatpush3.bf16.msra.mxu0 %v7547_v7  ;;  %6787 = vmatprep.subr.bf16.mxu1 %v7548_v8  ;;  %v455_v53 = vsel %vm7900_vm2, %v450_v43, %v454_v26  ;;  %v465_v58 = vsel %vm7900_vm2, %v460_v47, %v464_v28  ;;  %v469_v59 = vrot.slane %v467_v50, 4  ;;  %v480_v61 = vshrl.u32 %v378_v41, 16  ;;  %v425_v32 = vld [vmem:[%s7875_s14 + $0x20] sm:$0x1]  ;;  %v6121_v38 = vld [vmem:[%s7875_s14 + $0x24] sm:$0xf] }
  0x1e   : > { %6979 = vmatprep.subr.bf16.mxu0 %v7549_v9  ;;  %v472_v60 = vrot.slane %v470_v51, 5  ;;  %v5939_v62 = vcombine.low %v455_v53, %v465_v58  ;;  %v2352_v63 = vrot.slane %v2351_v54, 4  ;;  %v2362_v0 = vrot.slane %v2361_v55, 4  ;;  %v6122_v44 = vld [vmem:[%s7875_s14 + $0x28] sm:$0xf] }
  0x1f   : > { %v478_v1 = vrot.slane %v476_v56, 5  ;;  %v482_v3 = vrot.slane %v480_v61, 4  ;;  %v486_v4 = vshll.u32 %v424_v49, 16  ;;  %v2378_v19 = vshll.u32 %v7920_v5, 16  ;;  %v6123_v50 = vld [vmem:[%s7875_s14 + $0x2c] sm:$0x1] }
  0x20   : > { %6788 = vmatpush3.bf16.msra.mxu1 %v7548_v8  ;;  %v473_v2 = vor.u32 %v472_v60, %v469_v59  ;;  %6795 = vmatprep.mubr.bf16.mxu1 %v5939_v62  ;;  %v2357_v6 = vsel %vm7900_vm2, %v2352_v63, %v2356_v45  ;;  %v2367_v7 = vsel %vm7900_vm2, %v2362_v0, %v2366_v48  ;;  %v7927_v8 = vld [vmem:[%s7875_s14 + $0x20] sm:$0x1]  ;;  %v2382_v20 = vshrl.u32 %v7920_v5, 16  ;;  %v7559_v45 = vld [vmem:[%s9947_s1 + $0x8] sm:$0xff]   ;;  %v381_v55 = vld [vmem:[%s7875_s14 + $0x24] sm:$0xf] }
  0x21   : > { %6980 = vmatpush3.bf16.msra.mxu0 %v7549_v9  ;;  %6789 = vmatprep.subr.bf16.mxu1 %v7550_v10  ;;  %v2369_v9 = vshrl.u32 %v6118_v57, 16  ;;  %v6179_v13 = vcombine.low %v2357_v6, %v2367_v7  ;;  %v483_v15 = vor.u32 %v482_v3, %v478_v1  ;;  %v488_v16 = vrot.slane %v486_v4, 5  ;;  %v7561_v56 = vld [vmem:[%s9947_s1 + $0x10] sm:$0xff]   ;;  %v7558_v61 = vld [vmem:[%s9947_s1 + $0x148] sm:$0xff]  }
  0x22   : > { %6981 = vmatprep.subr.bf16.mxu0 %v7551_v11  ;;  %v474_v14 = vrot.slane %v473_v2, 4  ;;  %v3123_v26 = vrot.slane %v7920_v5, 5  ;;  %v2380_v29 = vrot.slane %v2378_v19, 5  ;;  %v3126_v31 = vrot.slane %v7927_v8, 5  ;;  %v382_v7 = vld [vmem:[%s7875_s14 + $0x28] sm:$0xf] }
  0x23   : > { %v2371_v17 = vrot.slane %v2369_v9, 4  ;;  %6987 = vmatprep.mubr.bf16.mxu0 %v6179_v13  ;;  %v484_v23 = vrot.slane %v483_v15, 4  ;;  %v491_v37 = vshrl.u32 %v379_v21, 16  ;;  %v494_v43 = vshll.u32 %v379_v21, 16  ;;  %v7688_v5 = vld [vmem:[%s7875_s14 + $0x2c] sm:$0x1] }
  0x24   : > { %6790 = vmatpush3.bf16.msra.mxu1 %v7550_v10  ;;  %v2372_v10 = vshll.u32 %v6118_v57, 16  ;;  %v479_v22 = vsel %vm7900_vm2, %v474_v14, %v478_v1  ;;  %v7952_v35 = vrot.slane %v3123_v26, 4  ;;  %v500_v47 = vshll.u32 %v380_v27, 16  ;;  %v7751_v36 = vld [vmem:[%s7875_s14 + $0x2c] sm:$0x1] }
  0x25   : > { %6982 = vmatpush3.bf16.msra.mxu0 %v7551_v11  ;;  %6791 = vmatprep.subr.bf16.mxu1 %v7552_v25  ;;  %v7932_v11 = vld [vmem:[%s9947_s1 + $0x140] sm:$0xff]   ;;  %v489_v33 = vsel %vm7900_vm2, %v484_v23, %v488_v16  ;;  %v493_v46 = vrot.slane %v491_v37, 4  ;;  %v504_v48 = vshrl.u32 %v380_v27, 16  ;;  %v510_v49 = vshll.u32 %v425_v32, 16  ;;  %v6124_v23 = vld [vmem:[%s7875_s14 + $0x30] sm:$0xf] }
  0x26   : > { %6983 = vmatprep.subr.bf16.mxu0 %v7553_v30  ;;  %v2374_v18 = vrot.slane %v2372_v10, 5  ;;  %v5940_v39 = vcombine.low %v479_v22, %v489_v33  ;;  %v496_v53 = vrot.slane %v494_v43, 5  ;;  %v2393_v54 = vshrl.u32 %v6121_v38, 16  ;;  %v7563_v32 = vld [vmem:[%s9947_s1 + $0x18] sm:$0xff]  }
  0x27   : > { %v502_v57 = vrot.slane %v500_v47, 5  ;;  %v506_v58 = vrot.slane %v504_v48, 4  ;;  %v512_v59 = vrot.slane %v510_v49, 5  ;;  %v2396_v60 = vshll.u32 %v6121_v38, 16  ;;  %v6126_v43 = vld [vmem:[%s7875_s14 + $0x38] sm:$0x1] }
  0x28   : > { %6792 = vmatpush3.bf16.msra.mxu1 %v7552_v25  ;;  %v2388_v25 = vshll.u32 %v7927_v8, 16  ;;  %v2375_v28 = vor.u32 %v2374_v18, %v2371_v17  ;;  %v497_v63 = vor.u32 %v496_v53, %v493_v46  ;;  %v2395_v0 = vrot.slane %v2393_v54, 4  ;;  %v426_v17 = vld [vmem:[%s7875_s14 + $0x2c] sm:$0x1] }
  0x29   : > { %6984 = vmatpush3.bf16.msra.mxu0 %v7553_v30  ;;  %6793 = vmatprep.subr.bf16.mxu1 %v7554_v42  ;;  %v2384_v30 = vrot.slane %v2382_v20, 4  ;;  %v2402_v1 = vshll.u32 %v6122_v44, 16  ;;  %v507_v3 = vor.u32 %v506_v58, %v502_v57  ;;  %v2398_v4 = vrot.slane %v2396_v60, 5 }
  0x2a   : > { %6985 = vmatprep.subr.bf16.mxu0 %v7555_v52  ;;  %v2390_v34 = vrot.slane %v2388_v25, 5  ;;  %v2376_v41 = vrot.slane %v2375_v28, 4  ;;  %v2406_v6 = vshrl.u32 %v6122_v44, 16  ;;  %v498_v9 = vrot.slane %v497_v63, 4 }
  0x2b   : > { %v2404_v10 = vrot.slane %v2402_v1, 5  ;;  %v515_v13 = vshrl.u32 %v381_v55, 16  ;;  %v508_v14 = vrot.slane %v507_v3, 4  ;;  %v2399_v15 = vor.u32 %v2398_v4, %v2395_v0 }
  0x2c   : > { %6794 = vmatpush3.bf16.msra.mxu1 %v7554_v42  ;;  %v2385_v42 = vor.u32 %v2384_v30, %v2380_v29  ;;  %v2381_v51 = vsel %vm7900_vm2, %v2376_v41, %v2380_v29  ;;  %v2408_v16 = vrot.slane %v2406_v6, 4  ;;  %v518_v18 = vshll.u32 %v381_v55, 16  ;;  %v6125_v30 = vld [vmem:[%s7875_s14 + $0x34] sm:$0xf] }
  0x2d   : > { %6986 = vmatpush3.bf16.msra.mxu0 %v7555_v52  ;;  %6827 = vmatprep.subr.bf16.mxu1 %v7557_v12  ;;  %v503_v19 = vsel %vm7900_vm2, %v498_v9, %v502_v57  ;;  %v517_v21 = vrot.slane %v515_v13, 4  ;;  %v524_v22 = vshll.u32 %v382_v7, 16  ;;  %v513_v25 = vsel %vm7900_vm2, %v508_v14, %v512_v59  ;;  %v384_v55 = vld [vmem:[%s7875_s14 + $0x34] sm:$0xf]  ;;  %v7567_v9 = vld [vmem:[%s9947_s1 + $0x28] sm:$0xff]  }
  0x2e   : > { %7019 = vmatprep.subr.bf16.mxu0 %v7932_v11  ;;  %v2386_v52 = vrot.slane %v2385_v42, 4  ;;  %v2400_v27 = vrot.slane %v2399_v15, 4  ;;  %v2409_v28 = vor.u32 %v2408_v16, %v2404_v10  ;;  %v520_v29 = vrot.slane %v518_v18, 5  ;;  %v7564_v15 = vld [vmem:[%s9947_s1 + $0x160] sm:$0xff]  }
  0x2f   : > { %6796 = vmatmul.mubr.bf16.vlgmr.msra.gmra.mrb[0].mxu1 %v5940_v39  ;;  %v5941_v33 = vcombine.low %v503_v19, %v513_v25  ;;  %v528_v37 = vshrl.u32 %v382_v7, 16  ;;  %v534_v38 = vshll.u32 %v426_v17, 16  ;;  %v2417_v44 = vshrl.u32 %v6124_v23, 16 }
  0x30   : > { %6828 = vmatpush3.bf16.msra.mxu1 %v7557_v12  ;;  %v2391_v62 = vsel %vm7900_vm2, %v2386_v52, %v2390_v34  ;;  %v2412_v12 = vshll.u32 %v6123_v50, 16  ;;  %v526_v34 = vrot.slane %v524_v22, 5  ;;  %v2405_v39 = vsel %vm7900_vm2, %v2400_v27, %v2404_v10  ;;  %v383_v50 = vld [vmem:[%s7875_s14 + $0x30] sm:$0xf] }
  0x31   : > { %6829 = vmatprep.subr.bf16.mxu1 %v7559_v45  ;;  %v6180_v2 = vcombine.low %v2381_v51, %v2391_v62  ;;  %v2410_v41 = vrot.slane %v2409_v28, 4  ;;  %v521_v42 = vor.u32 %v520_v29, %v517_v21  ;;  %6799 = vmatprep.mubr.bf16.mxu1 %v5941_v33  ;;  %v530_v46 = vrot.slane %v528_v37, 4  ;;  %v6129_v29 = vld [vmem:[%s7875_s14 + $0x44] sm:$0x1] }
  0x32   : > { %v2414_v20 = vrot.slane %v2412_v12, 5  ;;  %v536_v47 = vrot.slane %v534_v38, 5  ;;  %v2420_v48 = vshll.u32 %v6124_v23, 16  ;;  %v2426_v49 = vshll.u32 %v6125_v30, 16 }
  0x33   : > { %6988 = vmatmul.mubr.bf16.vlgmr.msra.gmra.mrb[0].mxu0 %v6180_v2  ;;  %v522_v52 = vrot.slane %v521_v42, 4  ;;  %v2419_v53 = vrot.slane %v2417_v44, 4  ;;  %v2430_v54 = vshrl.u32 %v6125_v30, 16  ;;  %v531_v58 = vor.u32 %v530_v46, %v526_v34  ;;  %v6127_v2 = vld [vmem:[%s7875_s14 + $0x3c] sm:$0xf]  ;;  %v7566_v46 = vld [vmem:[%s9947_s1 + $0x168] sm:$0xff]  }
  0x34   : > { %6830 = vmatpush3.bf16.msra.mxu1 %v7559_v45  ;;  %7020 = vmatpush3.bf16.msra.mxu0 %v7932_v11  ;;  %v7560_v11 = vld [vmem:[%s9947_s1 + $0x150] sm:$0xff]   ;;  %v7562_v45 = vld [vmem:[%s9947_s1 + $0x158] sm:$0xff]   ;;  %v2415_v51 = vsel %vm7900_vm2, %v2410_v41, %v2414_v20  ;;  %v2422_v59 = vrot.slane %v2420_v48, 5  ;;  %v2428_v60 = vrot.slane %v2426_v49, 5  ;;  %v2436_v0 = vshll.u32 %v6126_v43, 16 }
  0x35   : > { %6831 = vmatprep.subr.bf16.mxu1 %v7561_v56  ;;  %7021 = vmatprep.subr.bf16.mxu0 %v7558_v61  ;;  %v6181_v57 = vcombine.low %v2405_v39, %v2415_v51  ;;  %v527_v62 = vsel %vm7900_vm2, %v522_v52, %v526_v34  ;;  %v2432_v63 = vrot.slane %v2430_v54, 4  ;;  %v539_v1 = vshrl.u32 %v383_v50, 16  ;;  %v6128_v20 = vld [vmem:[%s7875_s14 + $0x40] sm:$0xf]  ;;  %v385_v39 = vld [vmem:[%s7875_s14 + $0x3c] sm:$0xf] }
  0x36   : > { %v532_v3 = vrot.slane %v531_v58, 4  ;;  %v2423_v4 = vor.u32 %v2422_v59, %v2419_v53  ;;  %v542_v6 = vshll.u32 %v383_v50, 16  ;;  %v548_v7 = vshll.u32 %v384_v55, 16  ;;  %v428_v51 = vld [vmem:[%s7875_s14 + $0x44] sm:$0x1] }
  0x37   : > { %6991 = vmatprep.mubr.bf16.mxu0 %v6181_v57  ;;  %v2433_v10 = vor.u32 %v2432_v63, %v2428_v60  ;;  %v2438_v12 = vrot.slane %v2436_v0, 5  ;;  %v541_v13 = vrot.slane %v539_v1, 4  ;;  %v552_v14 = vshrl.u32 %v384_v55, 16  ;;  %v7571_v57 = vld [vmem:[%s9947_s1 + $0x38] sm:$0xff]  }
  0x38   : > { %6832 = vmatpush3.bf16.msra.mxu1 %v7561_v56  ;;  %7022 = vmatpush3.bf16.msra.mxu0 %v7558_v61  ;;  %v7565_v56 = vld [vmem:[%s9947_s1 + $0x20] sm:$0xff]   ;;  %v427_v61 = vld [vmem:[%s7875_s14 + $0x38] sm:$0x1]  ;;  %v537_v16 = vsel %vm7900_vm2, %v532_v3, %v536_v47  ;;  %v2424_v17 = vrot.slane %v2423_v4, 4  ;;  %v544_v18 = vrot.slane %v542_v6, 5  ;;  %v550_v19 = vrot.slane %v548_v7, 5 }
  0x39   : > { %7023 = vmatprep.subr.bf16.mxu0 %v7560_v11  ;;  %6833 = vmatprep.subr.bf16.mxu1 %v7563_v32  ;;  %v5942_v21 = vcombine.low %v527_v62, %v537_v16  ;;  %v2434_v22 = vrot.slane %v2433_v10, 4  ;;  %v554_v23 = vrot.slane %v552_v14, 4  ;;  %v558_v25 = vshll.u32 %v427_v61, 16  ;;  %v6131_v62 = vld [vmem:[%s7875_s14 + $0x4c] sm:$0xf]  ;;  %v7568_v4 = vld [vmem:[%s9947_s1 + $0x170] sm:$0xff]  }
  0x3a   : > { %v2429_v27 = vsel %vm7900_vm2, %v2424_v17, %v2428_v60  ;;  %v545_v28 = vor.u32 %v544_v18, %v541_v13  ;;  %v2441_v30 = vshrl.u32 %v6127_v2, 16  ;;  %v2450_v38 = vshll.u32 %v6128_v20, 16  ;;  %v6132_v3 = vld [vmem:[%s7875_s14 + $0x50] sm:$0x1]  ;;  %v7570_v17 = vld [vmem:[%s9947_s1 + $0x178] sm:$0xff]  }
  0x3b   : > { %6800 = vmatmul.mubr.bf16.gmra.mrb[4].mxu1 %v5942_v21  ;;  %v2439_v33 = vsel %vm7900_vm2, %v2434_v22, %v2438_v12  ;;  %v555_v34 = vor.u32 %v554_v23, %v550_v19  ;;  %v560_v37 = vrot.slane %v558_v25, 5  ;;  %v2454_v49 = vshrl.u32 %v6128_v20, 16  ;;  %v7575_v12 = vld [vmem:[%s9947_s1 + $0x80] sm:$0xff]  }
  0x3c   : > { %6834 = vmatpush3.bf16.msra.mxu1 %v7563_v32  ;;  %7024 = vmatpush3.bf16.msra.mxu0 %v7560_v11  ;;  %v2444_v11 = vshll.u32 %v6127_v2, 16  ;;  %v7569_v32 = vld [vmem:[%s9947_s1 + $0x30] sm:$0xff]   ;;  %v6182_v41 = vcombine.low %v2429_v27, %v2439_v33  ;;  %v546_v42 = vrot.slane %v545_v28, 4  ;;  %v2443_v43 = vrot.slane %v2441_v30, 4  ;;  %v387_v28 = vld [vmem:[%s7875_s14 + $0x48] sm:$0xf] }
  0x3d   : > { %7025 = vmatprep.subr.bf16.mxu0 %v7562_v45  ;;  %6835 = vmatprep.subr.bf16.mxu1 %v7565_v56  ;;  %v556_v47 = vrot.slane %v555_v34, 4  ;;  %v2452_v48 = vrot.slane %v2450_v38, 5  ;;  %v2460_v50 = vshll.u32 %v6129_v29, 16  ;;  %v563_v54 = vshrl.u32 %v385_v39, 16  ;;  %v388_v33 = vld [vmem:[%s7875_s14 + $0x4c] sm:$0xf] }
  0x3e   : > { %v2446_v44 = vrot.slane %v2444_v11, 5  ;;  %6992 = vmatmul.mubr.bf16.gmra.mrb[4].mxu0 %v6182_v41  ;;  %v551_v52 = vsel %vm7900_vm2, %v546_v42, %v550_v19  ;;  %v566_v55 = vshll.u32 %v385_v39, 16  ;;  %v2456_v59 = vrot.slane %v2454_v49, 4  ;;  %v429_v41 = vld [vmem:[%s7875_s14 + $0x50] sm:$0x1] }
  0x3f   : > { %v561_v58 = vsel %vm7900_vm2, %v556_v47, %v560_v37  ;;  %v2462_v60 = vrot.slane %v2460_v50, 5  ;;  %v565_v1 = vrot.slane %v563_v54, 4  ;;  %v582_v10 = vshll.u32 %v428_v51, 16  ;;  %v6133_v50 = vld [vmem:[%s7875_s14 + $0x54] sm:$0xf]  ;;  %v7574_v51 = vld [vmem:[%s9947_s1 + $0x180] sm:$0xff]  }
  0x40   : > { %6836 = vmatpush3.bf16.msra.mxu1 %v7565_v56  ;;  %7026 = vmatpush3.bf16.msra.mxu0 %v7562_v45  ;;  %v386_v45 = vld [vmem:[%s7875_s14 + $0x40] sm:$0xf]  ;;  %v2447_v53 = vor.u32 %v2446_v44, %v2443_v43  ;;  %v6130_v56 = vld [vmem:[%s7875_s14 + $0x48] sm:$0xf]  ;;  %v5943_v63 = vcombine.low %v551_v52, %v561_v58  ;;  %v568_v2 = vrot.slane %v566_v55, 5  ;;  %v2457_v6 = vor.u32 %v2456_v59, %v2452_v48 }
  0x41   : > { %6837 = vmatprep.subr.bf16.mxu1 %v7567_v9  ;;  %7027 = vmatprep.subr.bf16.mxu0 %v7564_v15  ;;  %v572_v61 = vshll.u32 %v386_v45, 16  ;;  %v2468_v16 = vshll.u32 %v6130_v56, 16  ;;  %v584_v20 = vrot.slane %v582_v10, 5  ;;  %v2474_v21 = vshll.u32 %v6131_v62, 16 }
  0x42   : > { %v2448_v0 = vrot.slane %v2447_v53, 4  ;;  %6803 = vmatprep.mubr.bf16.mxu1 %v5943_v63  ;;  %v569_v14 = vor.u32 %v568_v2, %v565_v1  ;;  %v2458_v18 = vrot.slane %v2457_v6, 4  ;;  %v2478_v27 = vshrl.u32 %v6131_v62, 16  ;;  %v389_v2 = vld [vmem:[%s7875_s14 + $0x54] sm:$0xf] }
  0x43   : > { %v574_v7 = vrot.slane %v572_v61, 5  ;;  %v2470_v25 = vrot.slane %v2468_v16, 5  ;;  %v2476_v11 = vrot.slane %v2474_v21, 5  ;;  %v587_v44 = vshrl.u32 %v387_v28, 16  ;;  %v6135_v61 = vld [vmem:[%s7875_s14 + $0x5c] sm:$0x1] }
  0x44   : > { %6838 = vmatpush3.bf16.msra.mxu1 %v7567_v9  ;;  %7028 = vmatpush3.bf16.msra.mxu0 %v7564_v15  ;;  %v576_v9 = vshrl.u32 %v386_v45, 16  ;;  %v2453_v13 = vsel %vm7900_vm2, %v2448_v0, %v2452_v48  ;;  %v2465_v15 = vshrl.u32 %v6130_v56, 16  ;;  %v570_v22 = vrot.slane %v569_v14, 4  ;;  %v6134_v56 = vld [vmem:[%s7875_s14 + $0x58] sm:$0xf] }
  0x45   : > { %6839 = vmatprep.subr.bf16.mxu1 %v7569_v32  ;;  %7029 = vmatprep.subr.bf16.mxu0 %v7566_v46  ;;  %v2463_v29 = vsel %vm7900_vm2, %v2458_v18, %v2462_v60  ;;  %v2480_v39 = vrot.slane %v2478_v27, 4  ;;  %v590_v45 = vshll.u32 %v387_v28, 16  ;;  %v596_v48 = vshll.u32 %v388_v33, 16  ;;  %v430_v28 = vld [vmem:[%s7875_s14 + $0x5c] sm:$0x1] }
  0x46   : > { %v578_v19 = vrot.slane %v576_v9, 4  ;;  %v2467_v23 = vrot.slane %v2465_v15, 4  ;;  %v6183_v34 = vcombine.low %v2453_v13, %v2463_v29  ;;  %v575_v37 = vsel %vm7900_vm2, %v570_v22, %v574_v7  ;;  %v390_v9 = vld [vmem:[%s7875_s14 + $0x58] sm:$0xf] }
  0x47   : > { %v2481_v47 = vor.u32 %v2480_v39, %v2476_v11  ;;  %v600_v49 = vshrl.u32 %v388_v33, 16  ;;  %v589_v53 = vrot.slane %v587_v44, 4  ;;  %v592_v54 = vrot.slane %v590_v45, 5 }
  0x48   : > { %6840 = vmatpush3.bf16.msra.mxu1 %v7569_v32  ;;  %7030 = vmatpush3.bf16.msra.mxu0 %v7566_v46  ;;  %v579_v30 = vor.u32 %v578_v19, %v574_v7  ;;  %v2484_v32 = vshll.u32 %v6132_v3, 16  ;;  %v2471_v38 = vor.u32 %v2470_v25, %v2467_v23  ;;  %v606_v55 = vshll.u32 %v429_v41, 16 }
  0x49   : > { %6841 = vmatprep.subr.bf16.mxu1 %v7571_v57  ;;  %7031 = vmatprep.subr.bf16.mxu0 %v7568_v4  ;;  %v2482_v59 = vrot.slane %v2481_v47, 4  ;;  %v598_v60 = vrot.slane %v596_v48, 5  ;;  %v593_v62 = vor.u32 %v592_v54, %v589_v53  ;;  %v602_v63 = vrot.slane %v600_v49, 4  ;;  %v6138_v49 = vld [vmem:[%s7875_s14 + $0x68] sm:$0x1] }
  0x4a   : > { %v580_v42 = vrot.slane %v579_v30, 4  ;;  %v2486_v43 = vrot.slane %v2484_v32, 5  ;;  %6995 = vmatprep.mubr.bf16.mxu0 %v6183_v34  ;;  %v2472_v46 = vrot.slane %v2471_v38, 4  ;;  %v608_v0 = vrot.slane %v606_v55, 5  ;;  %v6136_v30 = vld [vmem:[%s7875_s14 + $0x60] sm:$0xf] }
  0x4b   : > { %v2489_v1 = vshrl.u32 %v6133_v50, 16  ;;  %v2498_v6 = vshll.u32 %v6134_v56, 16  ;;  %v2502_v7 = vshrl.u32 %v6134_v56, 16  ;;  %v603_v13 = vor.u32 %v602_v63, %v598_v60 }
  0x4c   : > { %6842 = vmatpush3.bf16.msra.mxu1 %v7571_v57  ;;  %7032 = vmatpush3.bf16.msra.mxu0 %v7568_v4  ;;  %v585_v52 = vsel %vm7900_vm2, %v580_v42, %v584_v20  ;;  %v2477_v58 = vsel %vm7900_vm2, %v2472_v46, %v2476_v11  ;;  %v2487_v3 = vsel %vm7900_vm2, %v2482_v59, %v2486_v43  ;;  %v2492_v4 = vshll.u32 %v6133_v50, 16 }
  0x4d   : > { %6875 = vmatprep.subr.bf16.mxu1 %v7575_v12  ;;  %7033 = vmatprep.subr.bf16.mxu0 %v7570_v17  ;;  %v5944_v57 = vcombine.low %v575_v37, %v585_v52  ;;  %v6184_v10 = vcombine.low %v2477_v58, %v2487_v3  ;;  %v594_v12 = vrot.slane %v593_v62, 4  ;;  %v2491_v14 = vrot.slane %v2489_v1, 4  ;;  %v6137_v37 = vld [vmem:[%s7875_s14 + $0x64] sm:$0xf]  ;;  %v391_v52 = vld [vmem:[%s7875_s14 + $0x60] sm:$0xf] }
  0x4e   : > { %v2494_v15 = vrot.slane %v2492_v4, 5  ;;  %v2500_v16 = vrot.slane %v2498_v6, 5  ;;  %v2504_v18 = vrot.slane %v2502_v7, 4  ;;  %v2508_v19 = vshll.u32 %v6135_v61, 16  ;;  %v431_v62 = vld [vmem:[%s7875_s14 + $0x68] sm:$0x1] }
  0x4f   : > { %6804 = vmatmul.mubr.bf16.gmra.mrb[8].mxu1 %v5944_v57  ;;  %6996 = vmatmul.mubr.bf16.gmra.mrb[8].mxu0 %v6184_v10  ;;  %v604_v20 = vrot.slane %v603_v13, 4  ;;  %v611_v21 = vshrl.u32 %v389_v2, 16  ;;  %v614_v22 = vshll.u32 %v389_v2, 16  ;;  %v620_v29 = vshll.u32 %v390_v9, 16  ;;  %v392_v57 = vld [vmem:[%s7875_s14 + $0x64] sm:$0xf] }
  0x50   : > { %7034 = vmatpush3.bf16.msra.mxu0 %v7570_v17  ;;  %v599_v17 = vsel %vm7900_vm2, %v594_v12, %v598_v60  ;;  %v2495_v23 = vor.u32 %v2494_v15, %v2491_v14  ;;  %v2505_v25 = vor.u32 %v2504_v18, %v2500_v16  ;;  %v2510_v27 = vrot.slane %v2508_v19, 5  ;;  %v6139_v3 = vld [vmem:[%s7875_s14 + $0x6c] sm:$0xf]  ;;  %v6140_v10 = vld [vmem:[%s7875_s14 + $0x70] sm:$0xf] }
  0x51   : > { %7067 = vmatprep.subr.bf16.mxu0 %v7574_v51  ;;  %v609_v11 = vsel %vm7900_vm2, %v604_v20, %v608_v0  ;;  %v613_v32 = vrot.slane %v611_v21, 4  ;;  %v616_v33 = vrot.slane %v614_v22, 5  ;;  %v624_v34 = vshrl.u32 %v390_v9, 16 }
  0x52   : > { %v5945_v38 = vcombine.low %v599_v17, %v609_v11  ;;  %v2496_v39 = vrot.slane %v2495_v23, 4  ;;  %v2506_v41 = vrot.slane %v2505_v25, 4  ;;  %v622_v42 = vrot.slane %v620_v29, 5  ;;  %v6141_v29 = vld [vmem:[%s7875_s14 + $0x74] sm:$0x1] }
  0x53   : > { %v617_v43 = vor.u32 %v616_v33, %v613_v32  ;;  %v626_v44 = vrot.slane %v624_v34, 4  ;;  %v630_v45 = vshll.u32 %v430_v28, 16  ;;  %v2513_v46 = vshrl.u32 %v6136_v30, 16 }
  0x54   : > { %6807 = vmatprep.mubr.bf16.mxu1 %v5945_v38  ;;  %v2501_v47 = vsel %vm7900_vm2, %v2496_v39, %v2500_v16  ;;  %v2511_v48 = vsel %vm7900_vm2, %v2506_v41, %v2510_v27  ;;  %v2516_v50 = vshll.u32 %v6136_v30, 16  ;;  %v2522_v51 = vshll.u32 %v6137_v37, 16 }
  0x55   : > { %v6185_v53 = vcombine.low %v2501_v47, %v2511_v48  ;;  %v618_v54 = vrot.slane %v617_v43, 4  ;;  %v627_v55 = vor.u32 %v626_v44, %v622_v42  ;;  %v632_v56 = vrot.slane %v630_v45, 5  ;;  %v394_v43 = vld [vmem:[%s7875_s14 + $0x70] sm:$0xf] }
  0x56   : > { %v2515_v58 = vrot.slane %v2513_v46, 4  ;;  %v2518_v59 = vrot.slane %v2516_v50, 5  ;;  %v2524_v60 = vrot.slane %v2522_v51, 5  ;;  %v2526_v61 = vshrl.u32 %v6137_v37, 16  ;;  %v393_v37 = vld [vmem:[%s7875_s14 + $0x6c] sm:$0xf] }
  0x57   : > { %6999 = vmatprep.mubr.bf16.mxu0 %v6185_v53  ;;  %v623_v63 = vsel %vm7900_vm2, %v618_v54, %v622_v42  ;;  %v628_v0 = vrot.slane %v627_v55, 4  ;;  %v2532_v1 = vshll.u32 %v6138_v49, 16  ;;  %v635_v2 = vshrl.u32 %v391_v52, 16  ;;  %v432_v51 = vld [vmem:[%s7875_s14 + $0x74] sm:$0x1] }
  0x58   : > { %v2519_v4 = vor.u32 %v2518_v59, %v2515_v58  ;;  %v2528_v6 = vrot.slane %v2526_v61, 4  ;;  %v638_v7 = vshll.u32 %v391_v52, 16  ;;  %v644_v9 = vshll.u32 %v392_v57, 16 }
  0x59   : > { %v633_v12 = vsel %vm7900_vm2, %v628_v0, %v632_v56  ;;  %v2534_v13 = vrot.slane %v2532_v1, 5  ;;  %v637_v14 = vrot.slane %v635_v2, 4  ;;  %v648_v15 = vshrl.u32 %v392_v57, 16  ;;  %v6142_v57 = vld [vmem:[%s7875_s14 + $0x78] sm:$0xf] }
  0x5a   : > { %v5946_v16 = vcombine.low %v623_v63, %v633_v12  ;;  %v2520_v18 = vrot.slane %v2519_v4, 4  ;;  %v2529_v19 = vor.u32 %v2528_v6, %v2524_v60  ;;  %v640_v17 = vrot.slane %v638_v7, 5  ;;  %v395_v4 = vld [vmem:[%s7875_s14 + $0x78] sm:$0xf]  ;;  %v396_v12 = vld [vmem:[%s7875_s14 + $0x7c] sm:$0xf] }
  0x5b   : > { %v646_v20 = vrot.slane %v644_v9, 5  ;;  %v650_v21 = vrot.slane %v648_v15, 4  ;;  %v654_v22 = vshll.u32 %v431_v62, 16  ;;  %v2537_v23 = vshrl.u32 %v6139_v3, 16  ;;  %v6143_v62 = vld [vmem:[%s7875_s14 + $0x7c] sm:$0xf] }
  0x5c   : > { %6808 = vmatmul.mubr.bf16.gmra.mrb[12].mxu1 %v5946_v16  ;;  %v2525_v25 = vsel %vm7900_vm2, %v2520_v18, %v2524_v60  ;;  %v2530_v27 = vrot.slane %v2529_v19, 4  ;;  %v641_v28 = vor.u32 %v640_v17, %v637_v14  ;;  %v2540_v30 = vshll.u32 %v6139_v3, 16  ;;  %v6144_v3 = vld [vmem:[%s7875_s14 + $0x80] sm:$0x1] }
  0x5d   : > { %v651_v11 = vor.u32 %v650_v21, %v646_v20  ;;  %v656_v32 = vrot.slane %v654_v22, 5  ;;  %v2539_v33 = vrot.slane %v2537_v23, 4  ;;  %v2546_v34 = vshll.u32 %v6140_v10, 16 }
  0x5e   : > { %v2535_v38 = vsel %vm7900_vm2, %v2530_v27, %v2534_v13  ;;  %v642_v39 = vrot.slane %v641_v28, 4  ;;  %v2542_v41 = vrot.slane %v2540_v30, 5  ;;  %v2550_v42 = vshrl.u32 %v6140_v10, 16 }
  0x5f   : > { %v6186_v44 = vcombine.low %v2525_v25, %v2535_v38  ;;  %v652_v45 = vrot.slane %v651_v11, 4  ;;  %v2548_v46 = vrot.slane %v2546_v34, 5  ;;  %v2556_v47 = vshll.u32 %v6141_v29, 16 }
  0x60   : > { %v647_v48 = vsel %vm7900_vm2, %v642_v39, %v646_v20  ;;  %v2543_v49 = vor.u32 %v2542_v41, %v2539_v33  ;;  %v2552_v50 = vrot.slane %v2550_v42, 4  ;;  %v659_v52 = vshrl.u32 %v393_v37, 16  ;;  %v433_v33 = vld [vmem:[%s7875_s14 + $0x80] sm:$0x1] }
  0x61   : > { %7000 = vmatmul.mubr.bf16.gmra.mrb[12].mxu0 %v6186_v44  ;;  %v657_v53 = vsel %vm7900_vm2, %v652_v45, %v656_v32  ;;  %v2558_v54 = vrot.slane %v2556_v47, 5  ;;  %v662_v55 = vshll.u32 %v393_v37, 16  ;;  %v668_v56 = vshll.u32 %v394_v43, 16 }
  0x62   : > { %v5947_v58 = vcombine.low %v647_v48, %v657_v53  ;;  %v2544_v59 = vrot.slane %v2543_v49, 4  ;;  %v2553_v60 = vor.u32 %v2552_v50, %v2548_v46  ;;  %v661_v61 = vrot.slane %v659_v52, 4  ;;  %v8117_v48 = vld [vmem:[%s7875_s14 + $0x88] sm:$0xf] }
  0x63   : > { %v664_v63 = vrot.slane %v662_v55, 5  ;;  %v670_v0 = vrot.slane %v668_v56, 5  ;;  %v672_v1 = vshrl.u32 %v394_v43, 16  ;;  %v678_v2 = vshll.u32 %v432_v51, 16  ;;  %v6145_v43 = vld [vmem:[%s7875_s14 + $0x84] sm:$0xf] }
  0x64   : > { %6811 = vmatprep.mubr.bf16.mxu1 %v5947_v58  ;;  %v2549_v6 = vsel %vm7900_vm2, %v2544_v59, %v2548_v46  ;;  %v2554_v7 = vrot.slane %v2553_v60, 4  ;;  %v2561_v9 = vshrl.u32 %v6142_v57, 16  ;;  %v2564_v10 = vshll.u32 %v6142_v57, 16  ;;  %v6147_v55 = vld [vmem:[%s7875_s14 + $0x8c] sm:$0x1] }
  0x65   : > { %v665_v13 = vor.u32 %v664_v63, %v661_v61  ;;  %v674_v14 = vrot.slane %v672_v1, 4  ;;  %v680_v15 = vrot.slane %v678_v2, 5  ;;  %v2570_v16 = vshll.u32 %v6143_v62, 16 }
  0x66   : > { %v2559_v18 = vsel %vm7900_vm2, %v2554_v7, %v2558_v54  ;;  %v2563_v19 = vrot.slane %v2561_v9, 4  ;;  %v2566_v17 = vrot.slane %v2564_v10, 5  ;;  %v2574_v20 = vshrl.u32 %v6143_v62, 16  ;;  %v397_v62 = vld [vmem:[%s7875_s14 + $0x84] sm:$0xf] }
  0x67   : > { %v6187_v21 = vcombine.low %v2549_v6, %v2559_v18  ;;  %v666_v22 = vrot.slane %v665_v13, 4  ;;  %v675_v23 = vor.u32 %v674_v14, %v670_v0  ;;  %v2572_v25 = vrot.slane %v2570_v16, 5  ;;  %v434_v10 = vld [vmem:[%s7875_s14 + $0x8c] sm:$0x1]  ;;  %v8133_v18 = vld [vmem:[%s7875_s14 + $0x94] sm:$0xf] }
  0x68   : > { %v2567_v27 = vor.u32 %v2566_v17, %v2563_v19  ;;  %v2576_v28 = vrot.slane %v2574_v20, 4  ;;  %v2580_v29 = vshll.u32 %v6144_v3, 16  ;;  %v683_v30 = vshrl.u32 %v395_v4, 16  ;;  %v398_v3 = vld [vmem:[%s7875_s14 + $0x88] sm:$0xf] }
  0x69   : > { %7003 = vmatprep.mubr.bf16.mxu0 %v6187_v21  ;;  %v671_v11 = vsel %vm7900_vm2, %v666_v22, %v670_v0  ;;  %v676_v32 = vrot.slane %v675_v23, 4  ;;  %v686_v34 = vshll.u32 %v395_v4, 16  ;;  %v692_v37 = vshll.u32 %v396_v12, 16 }
  0x6a   : > { %v2568_v38 = vrot.slane %v2567_v27, 4  ;;  %v2577_v39 = vor.u32 %v2576_v28, %v2572_v25  ;;  %v2582_v41 = vrot.slane %v2580_v29, 5  ;;  %v685_v42 = vrot.slane %v683_v30, 4 }
  0x6b   : > { %v681_v44 = vsel %vm7900_vm2, %v676_v32, %v680_v15  ;;  %v688_v45 = vrot.slane %v686_v34, 5  ;;  %v694_v46 = vrot.slane %v692_v37, 5  ;;  %v696_v47 = vshrl.u32 %v396_v12, 16  ;;  %v6148_v12 = vld [vmem:[%s7875_s14 + $0x90] sm:$0xf] }
  0x6c   : > { %v5948_v49 = vcombine.low %v671_v11, %v681_v44  ;;  %v2573_v50 = vsel %vm7900_vm2, %v2568_v38, %v2572_v25  ;;  %v2578_v51 = vrot.slane %v2577_v39, 4  ;;  %v702_v52 = vshll.u32 %v433_v33, 16  ;;  %v8138_v32 = vld [vmem:[%s7875_s14 + $0x98] sm:$0x1]  ;;  %v8141_v39 = vld [vmem:[%s7875_s14 + $0x90] sm:$0xf] }
  0x6d   : > { %v689_v53 = vor.u32 %v688_v45, %v685_v42  ;;  %v698_v54 = vrot.slane %v696_v47, 4  ;;  %v2585_v56 = vshrl.u32 %v6145_v43, 16  ;;  %v2588_v57 = vshll.u32 %v6145_v43, 16  ;;  %v8149_v45 = vld [vmem:[%s7875_s14 + $0x94] sm:$0xf] }
  0x6e   : > { %6812 = vmatmul.mubr.bf16.gmra.mrb[16].mxu1 %v5948_v49  ;;  %v2583_v58 = vsel %vm7900_vm2, %v2578_v51, %v2582_v41  ;;  %v704_v59 = vrot.slane %v702_v52, 5  ;;  %v2594_v60 = vshll.u32 %v8117_v48, 16  ;;  %v2598_v61 = vshrl.u32 %v8117_v48, 16 }
  0x6f   : > { %v6188_v63 = vcombine.low %v2573_v50, %v2583_v58  ;;  %v690_v0 = vrot.slane %v689_v53, 4  ;;  %v699_v1 = vor.u32 %v698_v54, %v694_v46  ;;  %v2587_v2 = vrot.slane %v2585_v56, 4 }
  0x70   : > { %v2590_v4 = vrot.slane %v2588_v57, 5  ;;  %v2596_v6 = vrot.slane %v2594_v60, 5  ;;  %v2600_v7 = vrot.slane %v2598_v61, 4  ;;  %v2604_v9 = vshll.u32 %v6147_v55, 16  ;;  %v435_v55 = vld [vmem:[%s7875_s14 + $0x98] sm:$0x1] }
  0x71   : > { %7004 = vmatmul.mubr.bf16.gmra.mrb[16].mxu0 %v6188_v63  ;;  %v695_v13 = vsel %vm7900_vm2, %v690_v0, %v694_v46  ;;  %v700_v14 = vrot.slane %v699_v1, 4  ;;  %v707_v15 = vshrl.u32 %v397_v62, 16  ;;  %v710_v16 = vshll.u32 %v397_v62, 16  ;;  %v6151_v60 = vld [vmem:[%s7875_s14 + $0x9c] sm:$0xf] }
  0x72   : > { %v2591_v19 = vor.u32 %v2590_v4, %v2587_v2  ;;  %v2601_v17 = vor.u32 %v2600_v7, %v2596_v6  ;;  %v2606_v20 = vrot.slane %v2604_v9, 5  ;;  %v716_v21 = vshll.u32 %v398_v3, 16  ;;  %v8161_v1 = vld [vmem:[%s7875_s14 + $0xa0] sm:$0xf] }
  0x73   : > { %v705_v22 = vsel %vm7900_vm2, %v700_v14, %v704_v59  ;;  %v709_v23 = vrot.slane %v707_v15, 4  ;;  %v712_v25 = vrot.slane %v710_v16, 5  ;;  %v720_v27 = vshrl.u32 %v398_v3, 16 }
  0x74   : > { %v5949_v28 = vcombine.low %v695_v13, %v705_v22  ;;  %v2592_v29 = vrot.slane %v2591_v19, 4  ;;  %v2602_v30 = vrot.slane %v2601_v17, 4  ;;  %v718_v11 = vrot.slane %v716_v21, 5  ;;  %v8167_v13 = vld [vmem:[%s7875_s14 + $0xa4] sm:$0x1] }
  0x75   : > { %v713_v33 = vor.u32 %v712_v25, %v709_v23  ;;  %v722_v34 = vrot.slane %v720_v27, 4  ;;  %v726_v37 = vshll.u32 %v434_v10, 16  ;;  %v2609_v38 = vshrl.u32 %v6148_v12, 16  ;;  %v8172_v23 = vld [vmem:[%s7875_s14 + $0x9c] sm:$0xf] }
  0x76   : > { %6815 = vmatprep.mubr.bf16.mxu1 %v5949_v28  ;;  %v2597_v41 = vsel %vm7900_vm2, %v2592_v29, %v2596_v6  ;;  %v2607_v42 = vsel %vm7900_vm2, %v2602_v30, %v2606_v20  ;;  %v2612_v43 = vshll.u32 %v6148_v12, 16  ;;  %v2618_v44 = vshll.u32 %v8133_v18, 16  ;;  %v8175_v25 = vld [vmem:[%s7875_s14 + $0xa0] sm:$0xf] }
  0x77   : > { %v6189_v46 = vcombine.low %v2597_v41, %v2607_v42  ;;  %v714_v47 = vrot.slane %v713_v33, 4  ;;  %v723_v49 = vor.u32 %v722_v34, %v718_v11  ;;  %v728_v50 = vrot.slane %v726_v37, 5 }
  0x78   : > { %v2611_v51 = vrot.slane %v2609_v38, 4  ;;  %v2614_v52 = vrot.slane %v2612_v43, 5  ;;  %v2620_v53 = vrot.slane %v2618_v44, 5  ;;  %v2622_v54 = vshrl.u32 %v8133_v18, 16  ;;  %v436_v38 = vld [vmem:[%s7875_s14 + $0xa4] sm:$0x1] }
  0x79   : > { %7007 = vmatprep.mubr.bf16.mxu0 %v6189_v46  ;;  %v719_v56 = vsel %vm7900_vm2, %v714_v47, %v718_v11  ;;  %v724_v57 = vrot.slane %v723_v49, 4  ;;  %v2628_v58 = vshll.u32 %v8138_v32, 16  ;;  %v731_v59 = vshrl.u32 %v8141_v39, 16 }
  0x7a   : > { %v2615_v61 = vor.u32 %v2614_v52, %v2611_v51  ;;  %v2624_v62 = vrot.slane %v2622_v54, 4  ;;  %v734_v63 = vshll.u32 %v8141_v39, 16  ;;  %v740_v0 = vshll.u32 %v8149_v45, 16  ;;  %v6154_v51 = vld [vmem:[%s7875_s14 + $0xa8] sm:$0xf] }
  0x7b   : > { %v729_v2 = vsel %vm7900_vm2, %v724_v57, %v728_v50  ;;  %v2630_v3 = vrot.slane %v2628_v58, 5  ;;  %v733_v4 = vrot.slane %v731_v59, 4  ;;  %v744_v6 = vshrl.u32 %v8149_v45, 16 }
  0x7c   : > { %v5950_v7 = vcombine.low %v719_v56, %v729_v2  ;;  %v2616_v9 = vrot.slane %v2615_v61, 4  ;;  %v2625_v10 = vor.u32 %v2624_v62, %v2620_v53  ;;  %v736_v12 = vrot.slane %v734_v63, 5  ;;  %v8192_v56 = vld [vmem:[%s7875_s14 + $0xac] sm:$0xf]  ;;  %v8196_v2 = vld [vmem:[%s7875_s14 + $0xb0] sm:$0x1] }
  0x7d   : > { %v742_v14 = vrot.slane %v740_v0, 5  ;;  %v746_v15 = vrot.slane %v744_v6, 4  ;;  %v750_v16 = vshll.u32 %v435_v55, 16  ;;  %v2633_v19 = vshrl.u32 %v6151_v60, 16 }
  0x7e   : > { %6816 = vmatmul.mubr.bf16.gmra.mrb[20].mxu1 %v5950_v7  ;;  %v2621_v17 = vsel %vm7900_vm2, %v2616_v9, %v2620_v53  ;;  %v2626_v20 = vrot.slane %v2625_v10, 4  ;;  %v737_v21 = vor.u32 %v736_v12, %v733_v4  ;;  %v2636_v22 = vshll.u32 %v6151_v60, 16 }
  0x7f   : > { %v747_v27 = vor.u32 %v746_v15, %v742_v14  ;;  %v752_v28 = vrot.slane %v750_v16, 5  ;;  %v2635_v29 = vrot.slane %v2633_v19, 4  ;;  %v2642_v30 = vshll.u32 %v8161_v1, 16  ;;  %v8202_v15 = vld [vmem:[%s7875_s14 + $0xa8] sm:$0xf] }
  0x80   : > { %v2631_v11 = vsel %vm7900_vm2, %v2626_v20, %v2630_v3  ;;  %v738_v33 = vrot.slane %v737_v21, 4  ;;  %v2638_v34 = vrot.slane %v2636_v22, 5  ;;  %v2646_v37 = vshrl.u32 %v8161_v1, 16  ;;  %v8208_v21 = vld [vmem:[%s7875_s14 + $0xac] sm:$0xf] }
  0x81   : > { %v6190_v41 = vcombine.low %v2621_v17, %v2631_v11  ;;  %v748_v42 = vrot.slane %v747_v27, 4  ;;  %v2644_v43 = vrot.slane %v2642_v30, 5  ;;  %v2652_v44 = vshll.u32 %v8167_v13, 16  ;;  %v437_v30 = vld [vmem:[%s7875_s14 + $0xb0] sm:$0x1] }
  0x82   : > { %v743_v46 = vsel %vm7900_vm2, %v738_v33, %v742_v14  ;;  %v2639_v47 = vor.u32 %v2638_v34, %v2635_v29  ;;  %v2648_v49 = vrot.slane %v2646_v37, 4  ;;  %v755_v50 = vshrl.u32 %v8172_v23, 16 }
  0x83   : > { %7008 = vmatmul.mubr.bf16.gmra.mrb[20].mxu0 %v6190_v41  ;;  %v753_v52 = vsel %vm7900_vm2, %v748_v42, %v752_v28  ;;  %v2654_v53 = vrot.slane %v2652_v44, 5  ;;  %v758_v54 = vshll.u32 %v8172_v23, 16  ;;  %v764_v55 = vshll.u32 %v8175_v25, 16 }
  0x84   : > { %v5951_v57 = vcombine.low %v743_v46, %v753_v52  ;;  %v2640_v58 = vrot.slane %v2639_v47, 4  ;;  %v2649_v59 = vor.u32 %v2648_v49, %v2644_v43  ;;  %v757_v60 = vrot.slane %v755_v50, 4 }
  0x85   : > { %v760_v61 = vrot.slane %v758_v54, 5  ;;  %v766_v62 = vrot.slane %v764_v55, 5  ;;  %v768_v63 = vshrl.u32 %v8175_v25, 16  ;;  %v774_v0 = vshll.u32 %v436_v38, 16  ;;  %v6157_v38 = vld [vmem:[%s7875_s14 + $0xb4] sm:$0xf] }
  0x86   : > { %6819 = vmatprep.mubr.bf16.mxu1 %v5951_v57  ;;  %v2645_v3 = vsel %vm7900_vm2, %v2640_v58, %v2644_v43  ;;  %v2650_v4 = vrot.slane %v2649_v59, 4  ;;  %v2657_v6 = vshrl.u32 %v6154_v51, 16  ;;  %v2660_v7 = vshll.u32 %v6154_v51, 16  ;;  %v8219_v51 = vld [vmem:[%s7875_s14 + $0xb8] sm:$0xf] }
  0x87   : > { %v761_v9 = vor.u32 %v760_v61, %v757_v60  ;;  %v770_v10 = vrot.slane %v768_v63, 4  ;;  %v776_v12 = vrot.slane %v774_v0, 5  ;;  %v2666_v14 = vshll.u32 %v8192_v56, 16  ;;  %v8225_v57 = vld [vmem:[%s7875_s14 + $0xbc] sm:$0x1] }
  0x88   : > { %v2655_v16 = vsel %vm7900_vm2, %v2650_v4, %v2654_v53  ;;  %v2659_v19 = vrot.slane %v2657_v6, 4  ;;  %v2662_v17 = vrot.slane %v2660_v7, 5  ;;  %v2670_v20 = vshrl.u32 %v8192_v56, 16 }
  0x89   : > { %v6191_v22 = vcombine.low %v2645_v3, %v2655_v16  ;;  %v762_v27 = vrot.slane %v761_v9, 4  ;;  %v771_v28 = vor.u32 %v770_v10, %v766_v62  ;;  %v2668_v29 = vrot.slane %v2666_v14, 5 }
  0x8a   : > { %v2663_v11 = vor.u32 %v2662_v17, %v2659_v19  ;;  %v2672_v33 = vrot.slane %v2670_v20, 4  ;;  %v2676_v34 = vshll.u32 %v8196_v2, 16  ;;  %v779_v37 = vshrl.u32 %v8202_v15, 16  ;;  %v8237_v17 = vld [vmem:[%s7875_s14 + $0xb8] sm:$0xf] }
  0x8b   : > { %7011 = vmatprep.mubr.bf16.mxu0 %v6191_v22  ;;  %v767_v41 = vsel %vm7900_vm2, %v762_v27, %v766_v62  ;;  %v772_v42 = vrot.slane %v771_v28, 4  ;;  %v782_v43 = vshll.u32 %v8202_v15, 16  ;;  %v788_v44 = vshll.u32 %v8208_v21, 16  ;;  %v8230_v62 = vld [vmem:[%s7875_s14 + $0xb4] sm:$0xf] }
  0x8c   : > { %v2664_v46 = vrot.slane %v2663_v11, 4  ;;  %v2673_v47 = vor.u32 %v2672_v33, %v2668_v29  ;;  %v2678_v49 = vrot.slane %v2676_v34, 5  ;;  %v781_v50 = vrot.slane %v779_v37, 4 }
  0x8d   : > { %v777_v52 = vsel %vm7900_vm2, %v772_v42, %v776_v12  ;;  %v784_v53 = vrot.slane %v782_v43, 5  ;;  %v790_v54 = vrot.slane %v788_v44, 5  ;;  %v792_v55 = vshrl.u32 %v8208_v21, 16 }
  0x8e   : > { %v5952_v58 = vcombine.low %v767_v41, %v777_v52  ;;  %v2669_v59 = vsel %vm7900_vm2, %v2664_v46, %v2668_v29  ;;  %v2674_v60 = vrot.slane %v2673_v47, 4  ;;  %v798_v61 = vshll.u32 %v437_v30, 16  ;;  %v438_v29 = vld [vmem:[%s7875_s14 + $0xbc] sm:$0x1]  ;;  %v6160_v30 = vld [vmem:[%s7875_s14 + $0xc0] sm:$0xf] }
  0x8f   : > { %v785_v63 = vor.u32 %v784_v53, %v781_v50  ;;  %v794_v0 = vrot.slane %v792_v55, 4  ;;  %v2681_v3 = vshrl.u32 %v6157_v38, 16  ;;  %v2684_v4 = vshll.u32 %v6157_v38, 16  ;;  %v8251_v50 = vld [vmem:[%s7875_s14 + $0xc4] sm:$0xf] }
  0x90   : > { %6820 = vmatmul.mubr.bf16.gmra.mrb[24].mxu1 %v5952_v58  ;;  %v2679_v6 = vsel %vm7900_vm2, %v2674_v60, %v2678_v49  ;;  %v800_v7 = vrot.slane %v798_v61, 5  ;;  %v2690_v9 = vshll.u32 %v8219_v51, 16  ;;  %v2694_v10 = vshrl.u32 %v8219_v51, 16  ;;  %v8254_v58 = vld [vmem:[%s7875_s14 + $0xc8] sm:$0x1] }
  0x91   : > { %v6192_v12 = vcombine.low %v2669_v59, %v2679_v6  ;;  %v786_v14 = vrot.slane %v785_v63, 4  ;;  %v795_v16 = vor.u32 %v794_v0, %v790_v54  ;;  %v2683_v19 = vrot.slane %v2681_v3, 4 }
  0x92   : > { %v2686_v20 = vrot.slane %v2684_v4, 5  ;;  %v2692_v22 = vrot.slane %v2690_v9, 5  ;;  %v2696_v27 = vrot.slane %v2694_v10, 4  ;;  %v2700_v28 = vshll.u32 %v8225_v57, 16 }
  0x93   : > { %7012 = vmatmul.mubr.bf16.gmra.mrb[24].mxu0 %v6192_v12  ;;  %v791_v11 = vsel %vm7900_vm2, %v786_v14, %v790_v54  ;;  %v796_v33 = vrot.slane %v795_v16, 4  ;;  %v803_v34 = vshrl.u32 %v8230_v62, 16  ;;  %v806_v37 = vshll.u32 %v8230_v62, 16  ;;  %v6203_v14 = vld [vmem:[%s7875_s14 + $0xc] sm:$0xe] }
  0x94   : > { %v2687_v38 = vor.u32 %v2686_v20, %v2683_v19  ;;  %v2697_v41 = vor.u32 %v2696_v27, %v2692_v22  ;;  %v2702_v42 = vrot.slane %v2700_v28, 5  ;;  %v812_v43 = vshll.u32 %v8237_v17, 16 }
  0x95   : > { %v801_v44 = vsel %vm7900_vm2, %v796_v33, %v800_v7  ;;  %v805_v46 = vrot.slane %v803_v34, 4  ;;  %v808_v47 = vrot.slane %v806_v37, 5  ;;  %v816_v49 = vshrl.u32 %v8237_v17, 16  ;;  %v7684_v37 = vld [vmem:[%s7875_s14] sm:$0xf] }
  0x96   : > { %v5953_v52 = vcombine.low %v791_v11, %v801_v44  ;;  %v2688_v53 = vrot.slane %v2687_v38, 4  ;;  %v2698_v54 = vrot.slane %v2697_v41, 4  ;;  %v814_v55 = vrot.slane %v812_v43, 5  ;;  %v8271_v38 = vld [vmem:[%s7875_s14 + $0x4] sm:$0xf] }
  0x97   : > { %v809_v59 = vor.u32 %v808_v47, %v805_v46  ;;  %v818_v60 = vrot.slane %v816_v49, 4  ;;  %v822_v61 = vshll.u32 %v438_v29, 16  ;;  %v2705_v63 = vshrl.u32 %v6160_v30, 16  ;;  %v7686_v44 = vld [vmem:[%s7875_s14 + $0x10] sm:$0xf] }
  0x98   : > { %6823 = vmatprep.mubr.bf16.mxu1 %v5953_v52  ;;  %v2693_v0 = vsel %vm7900_vm2, %v2688_v53, %v2692_v22  ;;  %v2703_v3 = vsel %vm7900_vm2, %v2698_v54, %v2702_v42  ;;  %v2708_v4 = vshll.u32 %v6160_v30, 16  ;;  %v2714_v6 = vshll.u32 %v8251_v50, 16  ;;  %v6204_v30 = vld [vmem:[%s7875_s14 + $0x18] sm:$0xe]  ;;  %v6205_v47 = vld [vmem:[%s7875_s14 + $0x24] sm:$0xe] }
  0x99   : > { %v6193_v7 = vcombine.low %v2693_v0, %v2703_v3  ;;  %v810_v9 = vrot.slane %v809_v59, 4  ;;  %v819_v10 = vor.u32 %v818_v60, %v814_v55  ;;  %v824_v12 = vrot.slane %v822_v61, 5 }
  0x9a   : > { %v2707_v16 = vrot.slane %v2705_v63, 4  ;;  %v2710_v19 = vrot.slane %v2708_v4, 5  ;;  %v2716_v20 = vrot.slane %v2714_v6, 5  ;;  %v2718_v27 = vshrl.u32 %v8251_v50, 16 }
  0x9b   : > { %7015 = vmatprep.mubr.bf16.mxu0 %v6193_v7  ;;  %v815_v22 = vsel %vm7900_vm2, %v810_v9, %v814_v55  ;;  %v820_v28 = vrot.slane %v819_v10, 4  ;;  %v2724_v29 = vshll.u32 %v8254_v58, 16  ;;  %v5963_v41 = vcombine.low %v7684_v37, %v8271_v38  ;;  %v6207_v37 = vld [vmem:[%s7875_s14 + $0x3c] sm:$0xe] }
  0x9c   : > { %v2711_v11 = vor.u32 %v2710_v19, %v2707_v16  ;;  %v2720_v33 = vrot.slane %v2718_v27, 4  ;;  %v6219_v43 = vrot.slane %v6203_v14, 9  ;;  %v3116_v46 = vrot.slane %v7686_v44, 5  ;;  %v7691_v16 = vld [vmem:[%s7875_s14 + $0x18] sm:$0xf] }
  0x9d   : > { %v825_v34 = vsel %vm7900_vm2, %v820_v28, %v824_v12  ;;  %v2726_v54 = vrot.slane %v2724_v29, 5  ;;  %v6220_v60 = vrot.slane %v6204_v30, 9  ;;  %v8287_v61 = vsel %vm8274_vm5, %v7952_v35, %v3126_v31  ;;  %v7687_v35 = vld [vmem:[%s7875_s14 + $0x28] sm:$0xf]  ;;  %v7689_v12 = vld [vmem:[%s7875_s14 + $0xc] sm:$0xf] }
  0x9e   : > { %v5954_v49 = vcombine.low %v815_v22, %v825_v34  ;;  %v2712_v52 = vrot.slane %v2711_v11, 4  ;;  %v2721_v53 = vor.u32 %v2720_v33, %v2716_v20  ;;  %v3117_v55 = vsel %vm8274_vm5, %v6219_v43, %v3116_v46  ;;  %v8311_v19 = vld [vmem:[%s7875_s14 + $0x1c] sm:$0xf]  ;;  %v6206_v27 = vld [vmem:[%s7875_s14 + $0x30] sm:$0xe]  ;;  %v7579_v29 = vld [vmem:[%s9947_s1 + $0x88] sm:$0xff]  }
  0x9f   : > { %v3118_v59 = vrot.slane %v3116_v46, 4  ;;  %v3124_v8 = vsel %vm8274_vm5, %v6220_v60, %v3123_v26  ;;  %v6221_v31 = vrot.slane %v6205_v47, 9  ;;  %v3130_v4 = vrot.slane %v7687_v35, 5  ;;  %v8306_v26 = vld [vmem:[%s7875_s14 + $0x10] sm:$0xf]  ;;  %v7696_v47 = vld [vmem:[%s9947_s1 + $0x80] sm:$0xff]  }
  0xa0   : > { %6824 = vmatmul.mubr.bf16.gmra.mrb[28].mxu1 %v5954_v49  ;;  %v2717_v63 = vsel %vm7900_vm2, %v2712_v52, %v2716_v20  ;;  %v2722_v0 = vrot.slane %v2721_v53, 4  ;;  %v6252_v24 = vcombine.low %v3124_v8, %v8287_v61  ;;  %v3133_v10 = vrot.slane %v7688_v5, 5  ;;  %v7693_v22 = vld [vmem:[%s7875_s14 + $0x34] sm:$0xf]  ;;  %v7694_v30 = vld [vmem:[%s7875_s14 + $0x40] sm:$0xf] }
  0xa1   : > { %6843 = vmatprep.mubr.bf16.mxu1 %v5963_v41  ;;  %v3120_v3 = vsel %vm8274_vm5, %v3118_v59, %v3119_v40  ;;  %v3132_v40 = vrot.slane %v3130_v4, 4  ;;  %v5964_v14 = vcombine.low %v7689_v12, %v8306_v26  ;;  %v5965_v20 = vcombine.low %v7691_v16, %v8311_v19  ;;  %v6208_v41 = vld [vmem:[%s7875_s14 + $0x48] sm:$0xe]  ;;  %v7695_v44 = vld [vmem:[%s7875_s14 + $0x38] sm:$0x1] }
  0xa2   : > { %v2727_v6 = vsel %vm7900_vm2, %v2722_v0, %v2726_v54  ;;  %v6251_v7 = vcombine.low %v3117_v55, %v3120_v3  ;;  %v3137_v28 = vrot.slane %v7693_v22, 5  ;;  %v3144_v11 = vrot.slane %v7694_v30, 5  ;;  %v7697_v52 = vld [vmem:[%s7875_s14 + $0x4c] sm:$0xf]  ;;  %v7698_v61 = vld [vmem:[%s7875_s14 + $0x44] sm:$0x1] }
  0xa3   : > { %v6194_v9 = vcombine.low %v2717_v63, %v2727_v6  ;;  %v3131_v33 = vsel %vm8274_vm5, %v6221_v31, %v3130_v4  ;;  %v3134_v34 = vsel %vm8274_vm5, %v3132_v40, %v3133_v10  ;;  %v6222_v43 = vrot.slane %v6206_v27, 9  ;;  %v7578_v55 = vld [vmem:[%s9947_s1 + $0x188] sm:$0xff]   ;;  %v7583_v0 = vld [vmem:[%s9947_s1 + $0x90] sm:$0xff]   ;;  %v7699_v3 = vld [vmem:[%s7875_s14 + $0x24] sm:$0xf] }
  0xa4   : > { %v3140_v46 = vrot.slane %v7695_v44, 5  ;;  %v3139_v49 = vrot.slane %v3137_v28, 4  ;;  %v3151_v53 = vrot.slane %v7697_v52, 5  ;;  %v6253_v54 = vcombine.low %v3131_v33, %v3134_v34  ;;  %v8340_v8 = vld [vmem:[%s7875_s14 + $0x28] sm:$0xf]  ;;  %v7587_v10 = vld [vmem:[%s9947_s1 + $0x98] sm:$0xff]  }
  0xa5   : > { %7016 = vmatmul.mubr.bf16.gmra.mrb[28].mxu0 %v6194_v9  ;;  %v6223_v59 = vrot.slane %v6207_v37, 9  ;;  %v3146_v60 = vrot.slane %v3144_v11, 4  ;;  %v3147_v63 = vrot.slane %v7698_v61, 5  ;;  %v5966_v31 = vcombine.low %v7699_v3, %v8340_v8  ;;  %v7701_v35 = vld [vmem:[%s7875_s14 + $0x30] sm:$0xf]  ;;  %v7705_v22 = vld [vmem:[%s9947_s1 + $0x180] sm:$0xff]  }
  0xa6   : > { %7035 = vmatprep.mubr.bf16.mxu0 %v6251_v7  ;;  %v8345_v4 = vld [vmem:[%s7875_s14 + $0x34] sm:$0xf]  ;;  %v6224_v7 = vrot.slane %v6208_v41, 9  ;;  %v7703_v9 = vld [vmem:[%s7875_s14 + $0x50] sm:$0x1]  ;;  %v3138_v12 = vsel %vm8274_vm5, %v6222_v43, %v3137_v28  ;;  %v3153_v16 = vrot.slane %v3151_v53, 4 }
  0xa7   : > { %v5967_v6 = vcombine.low %v7701_v35, %v8345_v4  ;;  %v3154_v40 = vrot.slane %v7703_v9, 5  ;;  %v6209_v5 = vld [vmem:[%s7875_s14 + $0x54] sm:$0xe]  ;;  %v3148_v28 = vsel %vm8274_vm5, %v3146_v60, %v3147_v63  ;;  %v8366_v30 = vld [vmem:[%s7875_s14 + $0x60] sm:$0xe]  ;;  %v3193_v35 = vrot.slane %v8133_v18, 5 }
  0xa8   : > { %6844 = vmatmul.mubr.bf16.vlgmr.msra.gmra.mrb[0].mxu1 %v5964_v14  ;;  %v3141_v14 = vsel %vm8274_vm5, %v3139_v49, %v3140_v46  ;;  %v7582_v33 = vld [vmem:[%s9947_s1 + $0x190] sm:$0xff]   ;;  %v6225_v34 = vrot.slane %v6209_v5, 9  ;;  %v7706_v41 = vld [vmem:[%s7875_s14 + $0x3c] sm:$0xf]  ;;  %v8379_v44 = vsel %vm8274_vm5, %v6224_v7, %v3151_v53  ;;  %v8382_v46 = vld [vmem:[%s7875_s14 + $0x6c] sm:$0xe] }
  0xa9   : > { %6876 = vmatpush3.bf16.msra.mxu1 %v7696_v47  ;;  %6847 = vmatprep.mubr.bf16.mxu1 %v5965_v20  ;;  %v7704_v20 = vld [vmem:[%s7875_s14 + $0x58] sm:$0xf]  ;;  %v6254_v37 = vcombine.low %v3138_v12, %v3141_v14  ;;  %v8386_v49 = vsel %vm8274_vm5, %v3153_v16, %v3154_v40  ;;  %v7591_v60 = vld [vmem:[%s9947_s1 + $0xa0] sm:$0xff]   ;;  %v6215_v61 = vld [vmem:[%s7875_s14 + $0x9c] sm:$0xe]  ;;  %v6226_v3 = vrot.slane %v8366_v30, 9 }
  0xaa   : > { %6877 = vmatprep.subr.bf16.mxu1 %v7579_v29  ;;  %v3158_v27 = vrot.slane %v7704_v20, 5  ;;  %v7586_v53 = vld [vmem:[%s9947_s1 + $0x198] sm:$0xff]   ;;  %v7710_v7 = vld [vmem:[%s7875_s14 + $0x48] sm:$0xf]  ;;  %v8405_v9 = vld [vmem:[%s7875_s14 + $0x4c] sm:$0xf]  ;;  %v6256_v20 = vcombine.low %v8379_v44, %v8386_v49 }
  0xab   : > { %v7709_v63 = vld [vmem:[%s7875_s14 + $0x5c] sm:$0x1]  ;;  %v5969_v40 = vcombine.low %v7710_v7, %v8405_v9  ;;  %v8417_v14 = vld [vmem:[%s7875_s14 + $0x70] sm:$0xf]  ;;  %v6217_v18 = vld [vmem:[%s7875_s14 + $0xb4] sm:$0xe] }
  0xac   : > { %v3160_v52 = vrot.slane %v3158_v27, 4  ;;  %v8410_v5 = vsel %vm8274_vm5, %v6225_v34, %v3158_v27  ;;  %v3172_v16 = vrot.slane %v8417_v14, 5  ;;  %v3196_v27 = vrot.slane %v8138_v32, 5 }
  0xad   : > { %7036 = vmatmul.mubr.bf16.vlgmr.msra.gmra.mrb[0].mxu0 %v6252_v24  ;;  %6878 = vmatpush3.bf16.msra.mxu1 %v7579_v29  ;;  %v3145_v24 = vsel %vm8274_vm5, %v6223_v59, %v3144_v11  ;;  %v6214_v29 = vld [vmem:[%s7875_s14 + $0x90] sm:$0xe]  ;;  %v8374_v11 = vld [vmem:[%s7875_s14 + $0x40] sm:$0xf]  ;;  %v6227_v34 = vrot.slane %v8382_v46, 9  ;;  %v6231_v44 = vrot.slane %v6215_v61, 9 }
  0xae   : > { %7068 = vmatpush3.bf16.msra.mxu0 %v7705_v22  ;;  %7039 = vmatprep.mubr.bf16.mxu0 %v6253_v54  ;;  %v5968_v43 = vcombine.low %v7706_v41, %v8374_v11  ;;  %v6255_v47 = vcombine.low %v3145_v24, %v3148_v28  ;;  %v8389_v54 = vld [vmem:[%s7875_s14 + $0x64] sm:$0xf]  ;;  %v3195_v24 = vrot.slane %v3193_v35, 4  ;;  %v7595_v28 = vld [vmem:[%s9947_s1 + $0xa8] sm:$0xff]   ;;  %v3200_v49 = vrot.slane %v8161_v1, 5 }
  0xaf   : > { %7069 = vmatprep.subr.bf16.mxu0 %v7578_v55  ;;  %6879 = vmatprep.subr.bf16.mxu1 %v7583_v0  ;;  %v3165_v59 = vrot.slane %v8389_v54, 5  ;;  %v7590_v41 = vld [vmem:[%s9947_s1 + $0x1a0] sm:$0xff]   ;;  %v6233_v7 = vrot.slane %v6217_v18, 9  ;;  %v3221_v18 = vrot.slane %v8251_v50, 5  ;;  %v7603_v54 = vld [vmem:[%s9947_s1 + $0xb8] sm:$0xff]   ;;  %v3173_v30 = vsel %vm8274_vm5, %v6227_v34, %v3172_v16 }
  0xb0   : > { %6848 = vmatmul.mubr.bf16.gmra.mrb[4].mxu1 %v5966_v31  ;;  %v6230_v31 = vrot.slane %v6214_v29, 9  ;;  %v8450_v1 = vsel %vm8274_vm5, %v6231_v44, %v3200_v49  ;;  %v3224_v44 = vrot.slane %v8254_v58, 5  ;;  %v6213_v46 = vld [vmem:[%s7875_s14 + $0x84] sm:$0xe] }
  0xb1   : > { %6851 = vmatprep.mubr.bf16.mxu1 %v5967_v6  ;;  %6880 = vmatpush3.bf16.msra.mxu1 %v7583_v0  ;;  %v3161_v0 = vrot.slane %v7709_v63, 5  ;;  %v6216_v6 = vld [vmem:[%s7875_s14 + $0xa8] sm:$0xe]  ;;  %v3167_v29 = vrot.slane %v3165_v59, 4 }
  0xb2   : > { %7070 = vmatpush3.bf16.msra.mxu0 %v7578_v55  ;;  %6881 = vmatprep.subr.bf16.mxu1 %v7587_v10  ;;  %v8413_v55 = vld [vmem:[%s7875_s14 + $0x68] sm:$0x1]  ;;  %v8425_v22 = vsel %vm8274_vm5, %v6230_v31, %v3193_v35  ;;  %v3203_v31 = vrot.slane %v8167_v13, 5  ;;  %v3207_v35 = vrot.slane %v8192_v56, 5  ;;  %v3210_v13 = vrot.slane %v8196_v2, 5 }
  0xb3   : > { %7071 = vmatprep.subr.bf16.mxu0 %v7582_v33  ;;  %v3168_v12 = vrot.slane %v8413_v55, 5  ;;  %v3162_v32 = vsel %vm8274_vm5, %v3160_v52, %v3161_v0  ;;  %v6218_v52 = vld [vmem:[%s7875_s14 + $0xc0] sm:$0xe]  ;;  %v3174_v0 = vrot.slane %v3172_v16, 4  ;;  %v3186_v55 = vrot.slane %v8117_v48, 5 }
  0xb5   : > { %7040 = vmatmul.mubr.bf16.gmra.mrb[4].mxu0 %v6254_v37  ;;  %6882 = vmatpush3.bf16.msra.mxu1 %v7587_v10  ;;  %v7714_v37 = vld [vmem:[%s7875_s14 + $0x74] sm:$0x1]  ;;  %v8443_v10 = vsel %vm8274_vm5, %v3195_v24, %v3196_v27  ;;  %v6257_v24 = vcombine.low %v8410_v5, %v3162_v32  ;;  %v8484_v32 = vld [vmem:[%s7875_s14 + $0x58] sm:$0xf] }
  0xb6   : > { %7043 = vmatprep.mubr.bf16.mxu0 %v6255_v47  ;;  %7072 = vmatpush3.bf16.msra.mxu0 %v7582_v33  ;;  %v3175_v63 = vrot.slane %v7714_v37, 5  ;;  %v6262_v61 = vcombine.low %v8425_v22, %v8443_v10  ;;  %v3202_v33 = vrot.slane %v3200_v49, 4  ;;  %v6232_v47 = vrot.slane %v6216_v6, 9  ;;  %v7715_v49 = vld [vmem:[%s7875_s14 + $0x54] sm:$0xf] }
  0xb7   : > { %7073 = vmatprep.subr.bf16.mxu0 %v7586_v53  ;;  %6883 = vmatprep.subr.bf16.mxu1 %v7591_v60  ;;  %v3214_v6 = vrot.slane %v8219_v51, 5  ;;  %v7594_v51 = vld [vmem:[%s9947_s1 + $0x1a8] sm:$0xff]   ;;  %v5970_v37 = vcombine.low %v7715_v49, %v8484_v32  ;;  %v8554_v49 = vld [vmem:[%s7875_s14 + $0x70] sm:$0xf]  ;;  %v7729_v22 = vld [vmem:[%s7875_s14 + $0x14] sm:$0x1] }
  0xb8   : > { %6852 = vmatmul.mubr.bf16.gmra.mrb[8].mxu1 %v5968_v43  ;;  %v8460_v27 = vsel %vm8274_vm5, %v3202_v33, %v3203_v31  ;;  %v3217_v43 = vrot.slane %v8225_v57, 5  ;;  %v8468_v2 = vsel %vm8274_vm5, %v6232_v47, %v3207_v35  ;;  %v7599_v57 = vld [vmem:[%s9947_s1 + $0xb0] sm:$0xff]   ;;  %v7717_v31 = vld [vmem:[%s7875_s14 + $0x60] sm:$0xf]  ;;  %v8489_v33 = vld [vmem:[%s7875_s14 + $0x64] sm:$0xf] }
  0xb9   : > { %6855 = vmatprep.mubr.bf16.mxu1 %v5969_v40  ;;  %6884 = vmatpush3.bf16.msra.mxu1 %v7591_v60  ;;  %v6263_v56 = vcombine.low %v8450_v1, %v8460_v27  ;;  %v3209_v60 = vrot.slane %v3207_v35, 4  ;;  %v6234_v40 = vrot.slane %v6218_v52, 9  ;;  %v3216_v5 = vrot.slane %v3214_v6, 4 }
  0xba   : > { %7074 = vmatpush3.bf16.msra.mxu0 %v7586_v53  ;;  %6885 = vmatprep.subr.bf16.mxu1 %v7595_v28  ;;  %v8478_v53 = vsel %vm8274_vm5, %v6233_v7, %v3214_v6  ;;  %v5971_v47 = vcombine.low %v7717_v31, %v8489_v33  ;;  %v3223_v7 = vrot.slane %v3221_v18, 4  ;;  %v8559_v31 = vld [vmem:[%s7875_s14 + $0x7c] sm:$0xf]  ;;  %v1484_v10 = vrot.slane %v7729_v22, 5 }
  0xbb   : > { %7075 = vmatprep.subr.bf16.mxu0 %v7590_v41  ;;  %v8494_v52 = vsel %vm8274_vm5, %v3209_v60, %v3210_v13  ;;  %v8500_v58 = vsel %vm8274_vm5, %v3216_v5, %v3217_v43  ;;  %v8504_v35 = vsel %vm8274_vm5, %v6234_v40, %v3221_v18  ;;  %v7719_v13 = vld [vmem:[%s7875_s14 + $0x7c] sm:$0xf]  ;;  %v6229_v60 = vrot.slane %v6213_v46, 9  ;;  %v7721_v5 = vld [vmem:[%s7875_s14 + $0x8c] sm:$0x1] }
  0xbc   : > { %v6264_v50 = vcombine.low %v8468_v2, %v8494_v52  ;;  %v3179_v6 = vrot.slane %v7719_v13, 5  ;;  %v6265_v43 = vcombine.low %v8478_v53, %v8500_v58  ;;  %v8537_v14 = vsel %vm8274_vm5, %v3223_v7, %v3224_v44  ;;  %v7722_v44 = vld [vmem:[%s7875_s14 + $0x6c] sm:$0xf]  ;;  %v7604_v52 = vld [vmem:[%s7875_s14 + $0x18] sm:$0xff]  }
  0xbd   : > { %7044 = vmatmul.mubr.bf16.gmra.mrb[8].mxu0 %v6256_v20  ;;  %6886 = vmatpush3.bf16.msra.mxu1 %v7595_v28  ;;  %v3166_v20 = vsel %vm8274_vm5, %v6226_v3, %v3165_v59  ;;  %v3169_v28 = vsel %vm8274_vm5, %v3167_v29, %v3168_v12  ;;  %v3176_v59 = vsel %vm8274_vm5, %v3174_v0, %v3175_v63  ;;  %v6212_v3 = vld [vmem:[%s7875_s14 + $0x78] sm:$0xe]  ;;  %v7598_v12 = vld [vmem:[%s9947_s1 + $0x1b0] sm:$0xff]   ;;  %v7720_v63 = vld [vmem:[%s7875_s14 + $0x80] sm:$0x1]  ;;  %v3188_v40 = vrot.slane %v3186_v55, 4 }
  0xbe   : > { %7047 = vmatprep.mubr.bf16.mxu0 %v6257_v24  ;;  %7076 = vmatpush3.bf16.msra.mxu0 %v7590_v41  ;;  %v6266_v16 = vcombine.low %v8504_v35, %v8537_v14  ;;  %v6258_v29 = vcombine.low %v3166_v20, %v3169_v28  ;;  %v6259_v48 = vcombine.low %v3173_v30, %v3176_v59  ;;  %v6228_v34 = vrot.slane %v6212_v3, 9  ;;  %v7602_v24 = vld [vmem:[%s9947_s1 + $0x1b8] sm:$0xff]   ;;  %v7726_v59 = vld [vmem:[%s7875_s14 + $0x84] sm:$0xf]  ;;  %v8579_v3 = vld [vmem:[%s7875_s14 + $0x88] sm:$0xf] }
  0xbf   : > { %7077 = vmatprep.subr.bf16.mxu0 %v7594_v51  ;;  %6887 = vmatprep.subr.bf16.mxu1 %v7599_v57  ;;  %v3181_v41 = vrot.slane %v3179_v6, 4  ;;  %v3182_v0 = vrot.slane %v7720_v63, 5  ;;  %v3189_v18 = vrot.slane %v7721_v5, 5  ;;  %v3187_v28 = vsel %vm8274_vm5, %v6229_v60, %v3186_v55  ;;  %v1424_v60 = vld [vmem:[%s7875_s14 + $0x24] sm:$0xe] }
  0xc0   : > { %6856 = vmatmul.mubr.bf16.gmra.mrb[12].mxu1 %v5970_v37  ;;  %v7724_v37 = vld [vmem:[%s7875_s14 + $0x78] sm:$0xf]  ;;  %v3180_v7 = vsel %vm8274_vm5, %v6228_v34, %v3179_v6  ;;  %v5974_v55 = vcombine.low %v7726_v59, %v8579_v3  ;;  %v1474_v46 = vrot.slane %v8271_v38, 5  ;;  %v5977_v34 = vcombine.low %v8202_v15, %v8208_v21  ;;  %v1422_v38 = vld [vmem:[%s7875_s14 + $0xc] sm:$0xe] }
  0xc1   : > { %6859 = vmatprep.mubr.bf16.mxu1 %v5971_v47  ;;  %6888 = vmatpush3.bf16.msra.mxu1 %v7599_v57  ;;  %v8550_v57 = vld [vmem:[%s9947_s1 + $0xc0] sm:$0xff]   ;;  %v5973_v47 = vcombine.low %v7724_v37, %v8559_v31  ;;  %v3183_v20 = vsel %vm8274_vm5, %v3181_v41, %v3182_v0  ;;  %v3190_v13 = vsel %vm8274_vm5, %v3188_v40, %v3189_v18  ;;  %v7728_v41 = vld [vmem:[%s7875_s14 + $0x8] sm:$0x1]  ;;  %v1423_v0 = vld [vmem:[%s7875_s14 + $0x18] sm:$0xe]  ;;  %v1495_v5 = vrot.slane %v8340_v8, 5 }
  0xc2   : > { %7078 = vmatpush3.bf16.msra.mxu0 %v7594_v51  ;;  %6889 = vmatprep.subr.bf16.mxu1 %v7603_v54  ;;  %v5972_v51 = vcombine.low %v7722_v44, %v8554_v49  ;;  %v6260_v6 = vcombine.low %v3180_v7, %v3183_v20  ;;  %v6261_v30 = vcombine.low %v3187_v28, %v3190_v13  ;;  %v1477_v63 = vrot.slane %v7728_v41, 5  ;;  %v1425_v18 = vld [vmem:[%s7875_s14 + $0x30] sm:$0xe]  ;;  %v1427_v37 = vld [vmem:[%s7875_s14 + $0x48] sm:$0xe] }
  0xc3   : > { %7079 = vmatprep.subr.bf16.mxu0 %v7598_v12  ;;  %v5989_v1 = vrot.slane %v1423_v0, 9  ;;  %v5978_v27 = vcombine.low %v8230_v62, %v8237_v17  ;;  %v1502_v62 = vrot.slane %v8345_v4, 5  ;;  %v5991_v58 = vrot.slane %v1425_v18, 9  ;;  %v7732_v7 = vld [vmem:[%s7875_s14 + $0x38] sm:$0x1] }
  0xc4   : > { %v1497_v4 = vrot.slane %v1495_v5, 4  ;;  %v1505_v20 = vrot.slane %v7732_v7, 5  ;;  %v1509_v28 = vrot.slane %v8374_v11, 5  ;;  %v1516_v13 = vrot.slane %v8405_v9, 5  ;;  %v8721_v7 = vld [vmem:[%s7875_s14 + $0x9c] sm:$0xe] }
  0xc5   : > { %7048 = vmatmul.mubr.bf16.gmra.mrb[12].mxu0 %v6258_v29  ;;  %6890 = vmatpush3.bf16.msra.mxu1 %v7603_v54  ;;  %v8573_v54 = vld [vmem:[%s9947_s1 + $0x1c0] sm:$0xff]   ;;  %v1530_v11 = vrot.slane %v8489_v33, 5  ;;  %v7611_v33 = vld [vmem:[%s9947_s1 + $0xc8] sm:$0xff]  }
  0xc6   : > { %7051 = vmatprep.mubr.bf16.mxu0 %v6259_v48  ;;  %7080 = vmatpush3.bf16.msra.mxu0 %v7598_v12  ;;  %v5975_v12 = vcombine.low %v8141_v39, %v8149_v45  ;;  %v1421_v29 = vld [vmem:[%s7875_s14] sm:$0xe]  ;;  %v5976_v48 = vcombine.low %v8172_v23, %v8175_v25  ;;  %v1476_v45 = vrot.slane %v1474_v46, 4  ;;  %v1481_v23 = vrot.slane %v8306_v26, 5 }
  0xc7   : > { %7081 = vmatprep.subr.bf16.mxu0 %v7602_v24  ;;  %6923 = vmatprep.subr.bf16.mxu1 %v8550_v57  ;;  %v5987_v39 = vrot.slane %v1421_v29, 9  ;;  %v1488_v25 = vrot.slane %v8311_v19, 5  ;;  %v8643_v29 = vsel %vm8274_vm5, %v5991_v58, %v1502_v62  ;;  %v1511_v14 = vrot.slane %v1509_v28, 4 }
  0xc8   : > { %6860 = vmatmul.mubr.bf16.gmra.mrb[16].mxu1 %v5972_v51  ;;  %v1478_v21 = vsel %vm8274_vm5, %v1476_v45, %v1477_v63  ;;  %v1426_v51 = vld [vmem:[%s7875_s14 + $0x3c] sm:$0xe]  ;;  %v5993_v63 = vrot.slane %v1427_v37, 9  ;;  %v7734_v45 = vld [vmem:[%s7875_s14 + $0x50] sm:$0x1]  ;;  %v1532_v22 = vrot.slane %v1530_v11, 4 }
  0xc9   : > { %6863 = vmatprep.mubr.bf16.mxu1 %v5973_v47  ;;  %v1475_v15 = vsel %vm8274_vm5, %v5987_v39, %v1474_v46  ;;  %v1490_v26 = vrot.slane %v1488_v25, 4  ;;  %v1489_v2 = vsel %vm8274_vm5, %v5989_v1, %v1488_v25  ;;  %v1504_v47 = vrot.slane %v1502_v62, 4  ;;  %v7735_v25 = vld [vmem:[%s7875_s14 + $0x5c] sm:$0x1]  ;;  %v1431_v1 = vld [vmem:[%s7875_s14 + $0x78] sm:$0xe] }
  0xca   : > { %7082 = vmatpush3.bf16.msra.mxu0 %v7602_v24  ;;  %v7730_v24 = vld [vmem:[%s7875_s14 + $0x20] sm:$0x1]  ;;  %v6019_v40 = vcombine.low %v1475_v15, %v1478_v21  ;;  %v1537_v39 = vrot.slane %v8554_v49, 5  ;;  %v1526_v49 = vrot.slane %v7735_v25, 5  ;;  %v5997_v58 = vrot.slane %v1431_v1, 9  ;;  %v8776_v25 = vld [vmem:[%s9947_s1 + $0x1d8] sm:$0xff]  }
  0xcb   : > { %7115 = vmatprep.subr.bf16.mxu0 %v8573_v54  ;;  %v1491_v19 = vrot.slane %v7730_v24, 5  ;;  %v8661_v35 = vsel %vm8274_vm5, %v1504_v47, %v1505_v20  ;;  %v1551_v47 = vrot.slane %v8579_v3, 5  ;;  %v8726_v20 = vld [vmem:[%s9947_s1 + $0x1d0] sm:$0xff]  }
  0xcc   : > { %v6023_v18 = vcombine.low %v8643_v29, %v8661_v35  ;;  %v7619_v29 = vld [vmem:[%s9947_s1 + $0xd8] sm:$0xff]   ;;  %v7612_v35 = vld [vmem:[%s7875_s14 + $0x48] sm:$0xff]  }
  0xcd   : > { %7052 = vmatmul.mubr.bf16.gmra.mrb[16].mxu0 %v6260_v6  ;;  %v1492_v53 = vsel %vm8274_vm5, %v1490_v26, %v1491_v19  ;;  %v1428_v6 = vld [vmem:[%s7875_s14 + $0x54] sm:$0xe]  ;;  %v1539_v19 = vrot.slane %v1537_v39, 4 }
  0xce   : > { %7055 = vmatprep.mubr.bf16.mxu0 %v6261_v30  ;;  %v1429_v30 = vld [vmem:[%s7875_s14 + $0x60] sm:$0xe]  ;;  %v5994_v0 = vrot.slane %v1428_v6, 9  ;;  %v7739_v6 = vld [vmem:[%s7875_s14 + $0x94] sm:$0xf] }
  0xcf   : > { %v5995_v15 = vrot.slane %v1429_v30, 9  ;;  %v1558_v30 = vrot.slane %v7739_v6, 5  ;;  %v8820_v6 = vld [vmem:[%s7875_s14 + $0xb4] sm:$0xe] }
  0xd0   : > { %6864 = vmatmul.mubr.bf16.gmra.mrb[20].mxu1 %v5974_v55  ;;  %v6021_v55 = vcombine.low %v1489_v2, %v1492_v53  ;;  %v7610_v2 = vld [vmem:[%s9947_s1 + $0x1c8] sm:$0xff]  }
  0xd1   : > { %6867 = vmatprep.mubr.bf16.mxu1 %v5975_v12  ;;  %v1523_v12 = vrot.slane %v8484_v32, 5  ;;  %v7733_v32 = vld [vmem:[%s7875_s14 + $0x44] sm:$0x1] }
  0xd2   : > { %v1512_v41 = vrot.slane %v7733_v32, 5 }
  0xd5   : > { %7056 = vmatmul.mubr.bf16.gmra.mrb[20].mxu0 %v6262_v61  ;;  %v5988_v61 = vrot.slane %v1422_v38, 9  ;;  %v1519_v38 = vrot.slane %v7734_v45, 5  ;;  %v1553_v45 = vrot.slane %v1551_v47, 4 }
  0xd6   : > { %7059 = vmatprep.mubr.bf16.mxu0 %v6263_v56  ;;  %v1483_v56 = vrot.slane %v1481_v23, 4 }
  0xd7   : > { %v1482_v17 = vsel %vm8274_vm5, %v5988_v61, %v1481_v23  ;;  %v1525_v23 = vrot.slane %v1523_v12, 4 }
  0xd8   : > { %6868 = vmatmul.mubr.bf16.gmra.mrb[24].mxu1 %v5976_v48  ;;  %v1485_v8 = vsel %vm8274_vm5, %v1483_v56, %v1484_v10  ;;  %v5992_v48 = vrot.slane %v1426_v51, 9  ;;  %v7736_v10 = vld [vmem:[%s7875_s14 + $0x68] sm:$0x1]  ;;  %v7738_v51 = vld [vmem:[%s7875_s14 + $0x80] sm:$0x1] }
  0xd9   : > { %6871 = vmatprep.mubr.bf16.mxu1 %v5977_v34  ;;  %v6020_v59 = vcombine.low %v1482_v17, %v1485_v8  ;;  %v1430_v34 = vld [vmem:[%s7875_s14 + $0x6c] sm:$0xe]  ;;  %v1533_v61 = vrot.slane %v7736_v10, 5  ;;  %v7605_v56 = vld [vmem:[%s7875_s14 + $0x24] sm:$0xff]   ;;  %v8701_v8 = vsel %vm8274_vm5, %v5994_v0, %v1523_v12  ;;  %v8705_v53 = vsel %vm8274_vm5, %v1525_v23, %v1526_v49 }
  0xda   : > { %v8674_v26 = vsel %vm8274_vm5, %v5992_v48, %v1509_v28  ;;  %v5996_v24 = vrot.slane %v1430_v34, 9  ;;  %v1432_v17 = vld [vmem:[%s7875_s14 + $0x84] sm:$0xe]  ;;  %v1547_v37 = vrot.slane %v7738_v51, 5  ;;  %v7740_v48 = vld [vmem:[%s7875_s14 + $0xa0] sm:$0xf] }
  0xdb   : > { %v5998_v3 = vrot.slane %v1432_v17, 9  ;;  %v7609_v34 = vld [vmem:[%s7875_s14 + $0x3c] sm:$0xff]   ;;  %v6351_v23 = vld [vmem:[%s7875_s14 + $0x28] sm:$0xf]  ;;  %v7743_v10 = vld [vmem:[%s7875_s14 + $0xa4] sm:$0x1] }
  0xdc   : > { %v8730_v28 = vsel %vm8274_vm5, %v5996_v24, %v1537_v39  ;;  %v7623_v49 = vld [vmem:[%s9947_s1 + $0xe0] sm:$0xff]  }
  0xdd   : > { %7060 = vmatmul.mubr.bf16.gmra.mrb[24].mxu0 %v6264_v50  ;;  %v5990_v50 = vrot.slane %v1424_v60, 9  ;;  %v7737_v60 = vld [vmem:[%s7875_s14 + $0x74] sm:$0x1] }
  0xde   : > { %7063 = vmatprep.mubr.bf16.mxu0 %v6265_v43  ;;  %v7731_v43 = vld [vmem:[%s7875_s14 + $0x2c] sm:$0x1] }
  0xdf   : > { %v1498_v44 = vrot.slane %v7731_v43, 5  ;;  %v8639_v46 = vsel %vm8274_vm5, %v5990_v50, %v1495_v5  ;;  %v7608_v5 = vld [vmem:[%s7875_s14 + $0x30] sm:$0xff]   ;;  %v8709_v50 = vsel %vm8274_vm5, %v5995_v15, %v1530_v11  ;;  %v8716_v43 = vsel %vm8274_vm5, %v1532_v22, %v1533_v61 }
  0xe0   : > { %6872 = vmatmul.mubr.bf16.gmra.mrb[28].mxu1 %v5978_v27  ;;  %v1544_v27 = vrot.slane %v8559_v31, 5  ;;  %v8682_v31 = vsel %vm8274_vm5, %v1511_v14, %v1512_v41  ;;  %v1565_v11 = vrot.slane %v7740_v48, 5  ;;  %v7741_v41 = vld [vmem:[%s7875_s14 + $0x8c] sm:$0x1]  ;;  %v8783_v15 = vsel %vm8274_vm5, %v5998_v3, %v1551_v47  ;;  %v8831_v48 = vld [vmem:[%s7875_s14 + $0x20] sm:$0x1] }
  0xe1   : > { %6891 = vmatprep.mubr.bf16.mxu1 %v6019_v40  ;;  %v8652_v9 = vsel %vm8274_vm5, %v1497_v4, %v1498_v44  ;;  %v1540_v40 = vrot.slane %v7737_v60, 5  ;;  %v8712_v4 = vld [vmem:[%s7875_s14 + $0x90] sm:$0xe]  ;;  %v6000_v22 = vrot.slane %v8721_v7, 9  ;;  %v1568_v61 = vrot.slane %v7743_v10, 5 }
  0xe2   : > { %v6022_v21 = vcombine.low %v8639_v46, %v8652_v9  ;;  %v1546_v44 = vrot.slane %v1544_v27, 4  ;;  %v6026_v46 = vcombine.low %v8701_v8, %v8705_v53  ;;  %v6027_v9 = vcombine.low %v8709_v50, %v8716_v43  ;;  %v8816_v7 = vld [vmem:[%s7875_s14 + $0xb0] sm:$0x1]  ;;  %v8867_v10 = vld [vmem:[%s7875_s14 + $0xb8] sm:$0xf] }
  0xe3   : > { %v8759_v32 = vsel %vm8274_vm5, %v5997_v58, %v1544_v27  ;;  %v5999_v39 = vrot.slane %v8712_v4, 9  ;;  %v1567_v1 = vrot.slane %v1565_v11, 4  ;;  %v1435_v27 = vld [vmem:[%s7875_s14 + $0xa8] sm:$0xe]  ;;  %v4020_v58 = vshll.u32 %v6351_v23, 16  ;;  %v7634_v50 = vld [vmem:[%s9947_s1 + $0x1f8] sm:$0xff]  }
  0xe4   : > { %v4024_v4 = vshrl.u32 %v6351_v23, 16  ;;  %v6001_v47 = vrot.slane %v1435_v27, 9  ;;  %v1575_v3 = vrot.slane %v8816_v7, 5  ;;  %v7616_v27 = vld [vmem:[%s7875_s14 + $0x60] sm:$0xff]  }
  0xe5   : > { %7064 = vmatmul.mubr.bf16.gmra.mrb[28].mxu0 %v6266_v16  ;;  %v1518_v16 = vrot.slane %v1516_v13, 4  ;;  %v8853_v23 = vrot.slane %v4020_v58, 5 }
  0xe6   : > { %7083 = vmatprep.mubr.bf16.mxu0 %v7604_v52  ;;  %v7615_v52 = vld [vmem:[%s9947_s1 + $0xd0] sm:$0xff]  }
  0xe7   : > { %v8690_v62 = vsel %vm8274_vm5, %v1518_v16, %v1519_v38  ;;  %v8769_v16 = vsel %vm8274_vm5, %v1546_v44, %v1547_v37  ;;  %v7742_v38 = vld [vmem:[%s7875_s14 + $0x98] sm:$0x1]  ;;  %v8805_v44 = vld [vmem:[%s9947_s1 + $0x1e0] sm:$0xff]   ;;  %v8813_v37 = vsel %vm8274_vm5, %v6000_v22, %v1565_v11  ;;  %v6356_v22 = vld [vmem:[%s7875_s14 + $0x3c] sm:$0xf] }
  0xe8   : > { %6892 = vmatmul.mubr.bf16.vlgmr.msra.gmra.mrb[0].mxu1 %v6020_v59  ;;  %v8738_v59 = vld [vmem:[%s7875_s14 + $0x18] sm:$0xf]  ;;  %v1561_v0 = vrot.slane %v7742_v38, 5  ;;  %v6029_v38 = vcombine.low %v8759_v32, %v8769_v16  ;;  %v6368_v32 = vld [vmem:[%s7875_s14 + $0x6c] sm:$0xf] }
  0xe9   : > { %6924 = vmatpush3.bf16.msra.mxu1 %v8550_v57  ;;  %6895 = vmatprep.mubr.bf16.mxu1 %v6021_v55  ;;  %v8686_v57 = vsel %vm8274_vm5, %v5993_v63, %v1516_v13  ;;  %v8734_v13 = vsel %vm8274_vm5, %v1539_v19, %v1540_v40  ;;  %v6024_v55 = vcombine.low %v8674_v26, %v8682_v31  ;;  %v1554_v63 = vrot.slane %v7741_v41, 5  ;;  %v7613_v41 = vld [vmem:[%s7875_s14 + $0x54] sm:$0xff]   ;;  %v8924_v26 = vld [vmem:[%s7875_s14 + $0x4c] sm:$0xf] }
  0xea   : > { %6925 = vmatprep.subr.bf16.mxu1 %v7611_v33  ;;  %v6025_v12 = vcombine.low %v8686_v57, %v8690_v62  ;;  %v6028_v14 = vcombine.low %v8730_v28, %v8734_v13  ;;  %v3987_v19 = vshrl.u32 %v8738_v59, 16  ;;  %v3990_v60 = vshll.u32 %v8738_v59, 16  ;;  %v7747_v62 = vld [vmem:[%s7875_s14 + $0xbc] sm:$0x1] }
  0xeb   : > { %v8828_v59 = vsel %vm8274_vm5, %v1567_v1, %v1568_v61  ;;  %v1579_v61 = vrot.slane %v8867_v10, 5  ;;  %v8871_v1 = vld [vmem:[%s7875_s14 + $0x40] sm:$0xf] }
  0xec   : > { %v8833_v11 = vrot.slane %v3987_v19, 4  ;;  %v7631_v19 = vld [vmem:[%s9947_s1 + $0xf0] sm:$0xff]  }
  0xed   : > { %7084 = vmatmul.mubr.bf16.vlgmr.msra.gmra.mrb[0].mxu0 %v7605_v56  ;;  %6926 = vmatpush3.bf16.msra.mxu1 %v7611_v33  ;;  %v6350_v33 = vld [vmem:[%s7875_s14 + $0x24] sm:$0xf]  ;;  %v7744_v56 = vld [vmem:[%s7875_s14 + $0xac] sm:$0xf] }
  0xee   : > { %7116 = vmatpush3.bf16.msra.mxu0 %v8573_v54  ;;  %7087 = vmatprep.mubr.bf16.mxu0 %v7608_v5  ;;  %v8752_v54 = vld [vmem:[%s7875_s14 + $0x1c] sm:$0xf]  ;;  %v1572_v24 = vrot.slane %v7744_v56, 5  ;;  %v4014_v17 = vshll.u32 %v6350_v33, 16 }
  0xef   : > { %7117 = vmatprep.subr.bf16.mxu0 %v7610_v2  ;;  %6927 = vmatprep.subr.bf16.mxu1 %v7615_v52  ;;  %v3996_v40 = vshll.u32 %v8752_v54, 16  ;;  %v4000_v5 = vshrl.u32 %v8752_v54, 16  ;;  %v3992_v54 = vrot.slane %v3990_v60, 5 }
  0xf0   : > { %6896 = vmatmul.mubr.bf16.gmra.mrb[4].mxu1 %v6022_v21  ;;  %v1560_v21 = vrot.slane %v1558_v30, 4  ;;  %v8863_v31 = vsel %vm8274_vm5, %v6001_v47, %v1572_v24  ;;  %v7630_v47 = vld [vmem:[%s9947_s1 + $0x1f0] sm:$0xff]  }
  0xf1   : > { %6899 = vmatprep.mubr.bf16.mxu1 %v6023_v18  ;;  %6928 = vmatpush3.bf16.msra.mxu1 %v7615_v52  ;;  %v4011_v18 = vshrl.u32 %v6350_v33, 16  ;;  %v8800_v52 = vsel %vm8274_vm5, %v5999_v39, %v1558_v30  ;;  %v7627_v30 = vld [vmem:[%s9947_s1 + $0xe8] sm:$0xff]  }
  0xf2   : > { %7118 = vmatpush3.bf16.msra.mxu0 %v7610_v2  ;;  %6929 = vmatprep.subr.bf16.mxu1 %v7619_v29  ;;  %v8796_v2 = vsel %vm8274_vm5, %v1553_v45, %v1554_v63  ;;  %v8809_v51 = vsel %vm8274_vm5, %v1560_v21, %v1561_v0  ;;  %v4002_v63 = vrot.slane %v4000_v5, 4  ;;  %v8841_v39 = vld [vmem:[%s7875_s14 + $0x2c] sm:$0x1]  ;;  %v8844_v45 = vld [vmem:[%s7875_s14 + $0x34] sm:$0xf]  ;;  %v4026_v21 = vrot.slane %v4024_v4, 4 }
  0xf3   : > { %7119 = vmatprep.subr.bf16.mxu0 %v8726_v20  ;;  %v4013_v33 = vrot.slane %v4011_v18, 4  ;;  %v6030_v0 = vcombine.low %v8783_v15, %v8796_v2  ;;  %v4044_v58 = vshll.u32 %v8844_v45, 16  ;;  %v4048_v4 = vshrl.u32 %v8844_v45, 16 }
  0xf4   : > { %v4027_v18 = vor.u32 %v4026_v21, %v8853_v23  ;;  %v7617_v21 = vld [vmem:[%s7875_s14 + $0x6c] sm:$0xff]  }
  0xf5   : > { %7088 = vmatmul.mubr.bf16.gmra.mrb[4].mxu0 %v7609_v34  ;;  %6930 = vmatpush3.bf16.msra.mxu1 %v7619_v29  ;;  %v1574_v29 = vrot.slane %v1572_v24, 4  ;;  %v6353_v34 = vld [vmem:[%s7875_s14 + $0x30] sm:$0xf]  ;;  %v7626_v24 = vld [vmem:[%s9947_s1 + $0x1e8] sm:$0xff]   ;;  %v4050_v57 = vrot.slane %v4048_v4, 4 }
  0xf6   : > { %7091 = vmatprep.mubr.bf16.mxu0 %v7612_v35  ;;  %7120 = vmatpush3.bf16.msra.mxu0 %v8726_v20  ;;  %v8838_v20 = vrot.slane %v3996_v40, 5  ;;  %v4016_v35 = vrot.slane %v4014_v17, 5  ;;  %v4038_v56 = vshll.u32 %v6353_v34, 16  ;;  %v4006_v40 = vshll.u32 %v8831_v48, 16 }
  0xf7   : > { %7121 = vmatprep.subr.bf16.mxu0 %v8776_v25  ;;  %6931 = vmatprep.subr.bf16.mxu1 %v7623_v49  ;;  %v4030_v17 = vshll.u32 %v8841_v39, 16  ;;  %v4062_v48 = vshll.u32 %v6356_v22, 16  ;;  %v7635_v39 = vld [vmem:[%s9947_s1 + $0xf8] sm:$0xff]  }
  0xf8   : > { %6900 = vmatmul.mubr.bf16.gmra.mrb[8].mxu1 %v6024_v55  ;;  %v6002_v55 = vrot.slane %v8820_v6, 9  ;;  %v4003_v60 = vor.u32 %v4002_v63, %v8838_v20  ;;  %v4017_v5 = vor.u32 %v4016_v35, %v4013_v33  ;;  %v4072_v63 = vshrl.u32 %v8871_v1, 16 }
  0xf9   : > { %6903 = vmatprep.mubr.bf16.mxu1 %v6025_v12  ;;  %6932 = vmatpush3.bf16.msra.mxu1 %v7623_v49  ;;  %v1582_v12 = vrot.slane %v7747_v62, 5  ;;  %v4035_v49 = vshrl.u32 %v6353_v34, 16  ;;  %v4068_v34 = vshll.u32 %v8871_v1, 16  ;;  %v4040_v35 = vrot.slane %v4038_v56, 5  ;;  %v8915_v62 = vld [vmem:[%s7875_s14 + $0x48] sm:$0xf] }
  0xfa   : > { %7122 = vmatpush3.bf16.msra.mxu0 %v8776_v25  ;;  %6933 = vmatprep.subr.bf16.mxu1 %v7627_v30  ;;  %v3993_v25 = vor.u32 %v3992_v54, %v8833_v11  ;;  %v8896_v11 = vld [vmem:[%s7875_s14 + $0x38] sm:$0x1]  ;;  %v4059_v54 = vshrl.u32 %v6356_v22, 16  ;;  %v4008_v10 = vrot.slane %v4006_v40, 5  ;;  %v4018_v7 = vrot.slane %v4017_v5, 4 }
  0xfb   : > { %7123 = vmatprep.subr.bf16.mxu0 %v8805_v44  ;;  %v4037_v33 = vrot.slane %v4035_v49, 4  ;;  %v4032_v49 = vrot.slane %v4030_v17, 5  ;;  %v8921_v56 = vrot.slane %v4044_v58, 5  ;;  %v8929_v40 = vrot.slane %v4068_v34, 5  ;;  %v8961_v5 = vld [vmem:[%s7875_s14 + $0x50] sm:$0x1] }
  0xfc   : > { %v3994_v22 = vrot.slane %v3993_v25, 4  ;;  %v4061_v25 = vrot.slane %v4059_v54, 4  ;;  %v4074_v8 = vrot.slane %v4072_v63, 4  ;;  %v4083_v17 = vshrl.u32 %v8915_v62, 16  ;;  %v6362_v58 = vld [vmem:[%s7875_s14 + $0x54] sm:$0xf] }
  0xfd   : > { %7092 = vmatmul.mubr.bf16.gmra.mrb[8].mxu0 %v7613_v41  ;;  %6934 = vmatpush3.bf16.msra.mxu1 %v7627_v30  ;;  %v8905_v30 = vsel %vm8274_vm5, %v1574_v29, %v1575_v3  ;;  %v1581_v41 = vrot.slane %v1579_v61, 4  ;;  %v7620_v3 = vld [vmem:[%s7875_s14 + $0x78] sm:$0xff]   ;;  %v4028_v29 = vrot.slane %v4027_v18, 4  ;;  %v4041_v43 = vor.u32 %v4040_v35, %v4037_v33  ;;  %v7621_v35 = vld [vmem:[%s7875_s14 + $0x84] sm:$0xff]  }
  0xfe   : > { %7095 = vmatprep.mubr.bf16.mxu0 %v7616_v27  ;;  %7124 = vmatpush3.bf16.msra.mxu0 %v8805_v44  ;;  %v4004_v44 = vrot.slane %v4003_v60, 4  ;;  %v8912_v27 = vld [vmem:[%s7875_s14 + $0x44] sm:$0x1]  ;;  %v4064_v60 = vrot.slane %v4062_v48, 5  ;;  %v3999_v6 = vsel %vm7900_vm2, %v3994_v22, %v8838_v20  ;;  %v4051_v18 = vor.u32 %v4050_v57, %v8921_v56  ;;  %v8984_v33 = vld [vmem:[%s7875_s14 + $0x58] sm:$0xf] }
  0xff   : > { %7125 = vmatprep.subr.bf16.mxu0 %v7626_v24  ;;  %6935 = vmatprep.subr.bf16.mxu1 %v7631_v19  ;;  %v4078_v20 = vshll.u32 %v8912_v27, 16  ;;  %v4075_v54 = vor.u32 %v4074_v8, %v8929_v40  ;;  %v4086_v48 = vshll.u32 %v8915_v62, 16  ;;  %v4092_v57 = vshll.u32 %v8924_v26, 16  ;;  %v7624_v62 = vld [vmem:[%s7875_s14 + $0x90] sm:$0xff]  }
 0x100   : > { %6904 = vmatmul.mubr.bf16.gmra.mrb[12].mxu1 %v6026_v46  ;;  %v8937_v46 = vsel %vm8274_vm5, %v6002_v55, %v1579_v61  ;;  %v4009_v55 = vsel %vm7900_vm2, %v4004_v44, %v4008_v10  ;;  %v4023_v61 = vsel %vm7900_vm2, %v4018_v7, %v8853_v23  ;;  %v8972_v23 = vld [vmem:[%s9947_s1 + $0x200] sm:$0xff]   ;;  %v4065_v4 = vor.u32 %v4064_v60, %v4061_v25 }
 0x101   : > { %6907 = vmatprep.mubr.bf16.mxu1 %v6027_v9  ;;  %6936 = vmatpush3.bf16.msra.mxu1 %v7631_v19  ;;  %v4054_v9 = vshll.u32 %v8896_v11, 16  ;;  %v8958_v19 = vld [vmem:[%s9951_s5] sm:$0xff]   ;;  %9977 = vst [vmem:[#allocation3_spill] sm:$0xff] %v8972_v23  ;;  %v8977_v34 = vrot.slane %v4041_v43, 4  ;;  %v8989_v22 = vcombine.low %v3999_v6, %v4009_v55  ;;  %v4110_v44 = vshll.u32 %v6362_v58, 16 }
 0x102   : > { %7126 = vmatpush3.bf16.msra.mxu0 %v7626_v24  ;;  %6937 = vmatprep.subr.bf16.mxu1 %v7635_v39  ;;  %v8945_v24 = vsel %vm8274_vm5, %v1581_v41, %v1582_v12  ;;  %9976 = vst [vmem:[#allocation2_spill] sm:$0xff] %v8958_v19  ;;  %v4033_v12 = vsel %vm7900_vm2, %v4028_v29, %v4032_v49  ;;  %v4096_v41 = vshrl.u32 %v8924_v26, 16  ;;  %v6365_v10 = vld [vmem:[%s7875_s14 + $0x60] sm:$0xf]  ;;  %v8994_v7 = vld [vmem:[%s7875_s14 + $0x64] sm:$0xf] }
 0x103   : > { %7127 = vmatprep.subr.bf16.mxu0 %v7630_v47  ;;  %v8979_v63 = vrot.slane %v4054_v9, 5  ;;  %v9002_v29 = vrot.slane %v4051_v18, 4  ;;  %v9004_v49 = vrot.slane %v4078_v20, 5  ;;  %v4085_v25 = vrot.slane %v4083_v17, 4 }
 0x104   : > { %v9009_v60 = vrot.slane %v4065_v4, 4  ;;  %v9011_v8 = vrot.slane %v4075_v54, 4  ;;  %v4088_v28 = vrot.slane %v4086_v48, 5  ;;  %v9013_v13 = vrot.slane %v4092_v57, 5  ;;  %v9040_v48 = vld [vmem:[%s7875_s14 + $0x5c] sm:$0x1] }
 0x105   : > { %7096 = vmatmul.mubr.bf16.gmra.mrb[12].mxu0 %v7617_v21  ;;  %6938 = vmatpush3.bf16.msra.mxu1 %v7635_v39  ;;  %v4102_v39 = vshll.u32 %v8961_v5, 16  ;;  %v4116_v9 = vshll.u32 %v8984_v33, 16  ;;  %v4120_v6 = vshrl.u32 %v8984_v33, 16  ;;  %v4131_v55 = vshrl.u32 %v6365_v10, 16  ;;  %v9043_v57 = vld [vmem:[%s7875_s14 + $0x68] sm:$0x1] }
 0x106   : > { %7099 = vmatprep.mubr.bf16.mxu0 %v7620_v3  ;;  %7128 = vmatpush3.bf16.msra.mxu0 %v7630_v47  ;;  %v4107_v47 = vshrl.u32 %v6362_v58, 16  ;;  %v9000_v3 = vcombine.low %v4023_v61, %v4033_v12  ;;  %v4134_v61 = vshll.u32 %v6365_v10, 16  ;;  %v9022_v12 = vld [vmem:[%s7875_s14 + $0x70] sm:$0xf]  ;;  %v4140_v20 = vshll.u32 %v8994_v7, 16 }
 0x107   : > { %7129 = vmatprep.subr.bf16.mxu0 %v7634_v50  ;;  %7211 = vmatprep.subr.bf16.mxu1 %v8958_v19  ;;  %v9015_v43 = vrot.slane %v4102_v39, 5  ;;  %v4144_v17 = vshrl.u32 %v8994_v7, 16  ;;  %v6371_v58 = vld [vmem:[%s7875_s14 + $0x78] sm:$0xf]  ;;  %v4089_v54 = vor.u32 %v4088_v28, %v4085_v25  ;;  %v4158_v39 = vshll.u32 %v6368_v32, 16 }
 0x108   : > { %6908 = vmatmul.mubr.bf16.gmra.mrb[16].mxu1 %v6028_v14  ;;  %9978 = vst [vmem:[#allocation4_spill] sm:$0xff] %v9000_v3  ;;  %v4098_v14 = vrot.slane %v4096_v41, 4  ;;  %v4109_v16 = vrot.slane %v4107_v47, 4  ;;  %v4155_v41 = vshrl.u32 %v6368_v32, 16  ;;  %v4122_v10 = vrot.slane %v4120_v6, 4 }
 0x109   : > { %6911 = vmatprep.mubr.bf16.mxu1 %v6029_v38  ;;  %v4112_v38 = vrot.slane %v4110_v44, 5  ;;  %v9050_v44 = vrot.slane %v4116_v9, 5  ;;  %v9053_v25 = vld [vmem:[%s7875_s14 + $0x7c] sm:$0xf]  ;;  %v4133_v28 = vrot.slane %v4131_v55, 4  ;;  %v4136_v21 = vrot.slane %v4134_v61, 5 }
 0x10a   : > { %7130 = vmatpush3.bf16.msra.mxu0 %v7634_v50  ;;  %9979 = vst [vmem:[#allocation5_spill] sm:$0xff] %v9053_v25  ;;  %v4164_v4 = vshll.u32 %v9022_v12, 16  ;;  %v4168_v32 = vshrl.u32 %v9022_v12, 16  ;;  %v4146_v47 = vrot.slane %v4144_v17, 4  ;;  %v4182_v9 = vshll.u32 %v6371_v58, 16  ;;  %v7625_v50 = vld [vmem:[%s7875_s14 + $0x9c] sm:$0xff]  }
 0x10b   : > { %7163 = vmatprep.subr.bf16.mxu0 %v8972_v23  ;;  %v9980_v6 = vcombine.low %v8800_v52, %v8809_v51  ;;  %v7628_v55 = vld [vmem:[%s7875_s14 + $0xa8] sm:$0xff]   ;;  %v4157_v61 = vrot.slane %v4155_v41, 4  ;;  %v4160_v18 = vrot.slane %v4158_v39, 5  ;;  %v4188_v53 = vshll.u32 %v9053_v25, 16 }
 0x10c   : > { %v4192_v15 = vshrl.u32 %v9053_v25, 16  ;;  %v4113_v2 = vor.u32 %v4112_v38, %v4109_v16  ;;  %v4150_v17 = vshll.u32 %v9043_v57, 16  ;;  %v4090_v52 = vrot.slane %v4089_v54, 4  ;;  %v9079_v16 = vld [vmem:[%s7875_s14 + $0x80] sm:$0x1] }
 0x10d   : > { %7100 = vmatmul.mubr.bf16.gmra.mrb[16].mxu0 %v7621_v35  ;;  %v4099_v35 = vor.u32 %v4098_v14, %v9013_v13  ;;  %v4179_v14 = vshrl.u32 %v6371_v58, 16  ;;  %v9073_v58 = vld [vmem:[%s7875_s14 + $0x74] sm:$0x1]  ;;  %v4137_v51 = vor.u32 %v4136_v21, %v4133_v28  ;;  %v4170_v41 = vrot.slane %v4168_v32, 4  ;;  %v6374_v21 = vld [vmem:[%s7875_s14 + $0x84] sm:$0xf] }
 0x10e   : > { %7103 = vmatprep.mubr.bf16.mxu0 %v7624_v62  ;;  %v9060_v62 = vrot.slane %v4140_v20, 5  ;;  %v4126_v20 = vshll.u32 %v9040_v48, 16  ;;  %v4161_v3 = vor.u32 %v4160_v18, %v4157_v61  ;;  %v4174_v25 = vshll.u32 %v9073_v58, 16  ;;  %v9087_v32 = vld [vmem:[%s7875_s14 + $0x88] sm:$0xf] }
 0x10f   : > { %v4100_v39 = vrot.slane %v4099_v35, 4  ;;  %v4181_v38 = vrot.slane %v4179_v14, 4  ;;  %v9082_v19 = vrot.slane %v4188_v53, 5  ;;  %v4194_v54 = vrot.slane %v4192_v15, 4  ;;  %v7629_v14 = vld [vmem:[%s7875_s14 + $0xb4] sm:$0xff]  }
 0x110   : > { %6912 = vmatmul.mubr.bf16.gmra.mrb[20].mxu1 %v6030_v0  ;;  %v4123_v0 = vor.u32 %v4122_v10, %v9050_v44  ;;  %v4147_v23 = vor.u32 %v4146_v47, %v9060_v62  ;;  %v4184_v10 = vrot.slane %v4182_v9, 5  ;;  %v4128_v47 = vrot.slane %v4126_v20, 5  ;;  %v7632_v20 = vld [vmem:[%s7875_s14 + $0xc0] sm:$0xff]  }
 0x111   : > { %6915 = vmatprep.mubr.bf16.mxu1 %v9980_v6  ;;  %v9075_v6 = vrot.slane %v4164_v4, 5  ;;  %v4114_v4 = vrot.slane %v4113_v2, 4  ;;  %v4152_v28 = vrot.slane %v4150_v17, 5  ;;  %v4138_v18 = vrot.slane %v4137_v51, 4  ;;  %v7636_v51 = vld [vmem:[%s7875_s14 + $0xc] sm:$0xff]  }
 0x112   : > { %v4124_v35 = vrot.slane %v4123_v0, 4  ;;  %v4198_v9 = vshll.u32 %v9079_v16, 16  ;;  %v4105_v61 = vsel %vm7900_vm2, %v4100_v39, %v9015_v43  ;;  %v4148_v15 = vrot.slane %v4147_v23, 4 }
 0x113   : > { %v4171_v53 = vor.u32 %v4170_v41, %v9075_v6  ;;  %v4185_v2 = vor.u32 %v4184_v10, %v4181_v38  ;;  %v4203_v0 = vshrl.u32 %v6374_v21, 16  ;;  %v9105_v17 = vrot.slane %v4161_v3, 4 }
 0x114   : > { %v4206_v43 = vshll.u32 %v6374_v21, 16  ;;  %v4212_v23 = vshll.u32 %v9087_v32, 16  ;;  %v4216_v3 = vshrl.u32 %v9087_v32, 16  ;;  %v9983_v41 = vsel %vm7900_vm2, %v9002_v29, %v8979_v63  ;;  %v9158_v21 = vld [vmem:[%s7875_s14 + $0x94] sm:$0xf] }
 0x115   : > { %7104 = vmatmul.mubr.bf16.gmra.mrb[20].mxu0 %v7625_v50  ;;  %v4095_v50 = vsel %vm7900_vm2, %v4090_v52, %v9013_v13  ;;  %v9982_v13 = vcombine.low %v8863_v31, %v8905_v30  ;;  %v9107_v52 = vrot.slane %v4174_v25, 5  ;;  %v4119_v31 = vsel %vm7900_vm2, %v4114_v4, %v9050_v44  ;;  %v9126_v25 = vld [vmem:[%s7875_s14 + $0x90] sm:$0xf] }
 0x116   : > { %7107 = vmatprep.mubr.bf16.mxu0 %v7628_v55  ;;  %v9981_v55 = vcombine.low %v8813_v37, %v8828_v59  ;;  %v4195_v37 = vor.u32 %v4194_v54, %v9082_v19  ;;  %v9111_v59 = vld [vmem:[%s7875_s14 + $0x8c] sm:$0x1]  ;;  %v4129_v30 = vsel %vm7900_vm2, %v4124_v35, %v4128_v47  ;;  %v9984_v44 = vsel %vm7900_vm2, %v8977_v34, %v8921_v56  ;;  %v6437_v47 = vld [vmem:[%s7875_s14 + $0x30] sm:$0xe] }
 0x117   : > { %v9139_v39 = vcombine.low %v9984_v44, %v9983_v41  ;;  %v9985_v38 = vsel %vm7900_vm2, %v9011_v8, %v9004_v49  ;;  %v9986_v10 = vsel %vm7900_vm2, %v9009_v60, %v8929_v40  ;;  %v9153_v63 = vrot.slane %v4171_v53, 4  ;;  %v6440_v41 = vld [vmem:[%s7875_s14 + $0x54] sm:$0xe]  ;;  %v9356_v44 = vld [vmem:[%s7875_s14 + $0xbc] sm:$0x1] }
 0x118   : > { %6916 = vmatmul.mubr.bf16.gmra.mrb[24].mxu1 %v9981_v55  ;;  %v9151_v54 = vcombine.low %v9986_v10, %v9985_v38  ;;  %v9155_v29 = vrot.slane %v4198_v9, 5  ;;  %v4143_v56 = vsel %vm7900_vm2, %v4138_v18, %v9060_v62  ;;  %v4153_v34 = vsel %vm7900_vm2, %v4148_v15, %v4152_v28  ;;  %v7633_v9 = vld [vmem:[%s7875_s14 + $0xcc] sm:$0xff]   ;;  %v6438_v15 = vld [vmem:[%s7875_s14 + $0x3c] sm:$0xe] }
 0x119   : > { %6919 = vmatprep.mubr.bf16.mxu1 %v9982_v13  ;;  %v9165_v49 = vrot.slane %v4185_v2, 4  ;;  %v9167_v8 = vrot.slane %v4203_v0, 4  ;;  %v9169_v40 = vcombine.low %v4095_v50, %v4105_v61  ;;  %v9171_v60 = vcombine.low %v4119_v31, %v4129_v30  ;;  %v6439_v31 = vld [vmem:[%s7875_s14 + $0x48] sm:$0xe]  ;;  %v7637_v30 = vld [vmem:[%s7875_s14 + $0x18] sm:$0xff]  }
 0x11a   : > { %v9173_v4 = vrot.slane %v4195_v37, 4  ;;  %v9175_v35 = vrot.slane %v4206_v43, 5  ;;  %v9178_v62 = vrot.slane %v4212_v23, 5  ;;  %v9180_v18 = vrot.slane %v4216_v3, 4  ;;  %v9353_v23 = vld [vmem:[%s7875_s14 + $0xb8] sm:$0xf] }
 0x11b   : > { %v6453_v53 = vrot.slane %v6437_v47, 9  ;;  %v4772_v61 = vrot.slane %v8844_v45, 5  ;;  %v9987_v2 = vcombine.low %v8937_v46, %v8945_v24  ;;  %v6454_v37 = vrot.slane %v6438_v15, 9  ;;  %v7643_v15 = vld [vmem:[%s9951_s5 + $0x8] sm:$0xff]   ;;  %v9389_v13 = vld [vmem:[%s7875_s14 + $0xc4] sm:$0xf] }
 0x11c   : > { %v4779_v24 = vrot.slane %v8871_v1, 5  ;;  %v4782_v3 = vrot.slane %v8912_v27, 5  ;;  %v4786_v27 = vrot.slane %v8924_v26, 5  ;;  %v4789_v47 = vrot.slane %v8961_v5, 5  ;;  %v9392_v0 = vld [vmem:[%s7875_s14 + $0xc8] sm:$0x1] }
 0x11d   : > { %7108 = vmatmul.mubr.bf16.gmra.mrb[24].mxu0 %v7629_v14  ;;  %v9184_v14 = vcombine.low %v4143_v56, %v4153_v34  ;;  %v9205_v43 = vsel %vm8274_vm5, %v6453_v53, %v4772_v61  ;;  %v4774_v46 = vrot.slane %v4772_v61, 4  ;;  %v7640_v56 = vld [vmem:[%s7875_s14 + $0x24] sm:$0xff]   ;;  %v6456_v53 = vrot.slane %v6440_v41, 9  ;;  %v6441_v61 = vld [vmem:[%s7875_s14 + $0x60] sm:$0xe] }
 0x11e   : > { %7111 = vmatprep.mubr.bf16.mxu0 %v7632_v20  ;;  %v4775_v20 = vrot.slane %v8896_v11, 5  ;;  %v9225_v38 = vsel %vm8274_vm5, %v6454_v37, %v4779_v24  ;;  %v4781_v10 = vrot.slane %v4779_v24, 4  ;;  %v4796_v37 = vrot.slane %v9040_v48, 5  ;;  %v6445_v34 = vld [vmem:[%s7875_s14 + $0x90] sm:$0xe] }
 0x11f   : > { %v4800_v24 = vrot.slane %v8994_v7, 5  ;;  %v4824_v26 = vrot.slane %v9111_v59, 5  ;;  %v4828_v11 = vrot.slane %v9158_v21, 5 }
 0x120   : > { %6920 = vmatmul.mubr.bf16.gmra.mrb[28].mxu1 %v9987_v2  ;;  %v9221_v1 = vsel %vm8274_vm5, %v4774_v46, %v4775_v20  ;;  %v9238_v2 = vsel %vm8274_vm5, %v4781_v10, %v4782_v3  ;;  %v4793_v20 = vrot.slane %v8984_v33, 5  ;;  %v6457_v46 = vrot.slane %v6441_v61, 9 }
 0x121   : > { %6939 = vmatprep.mubr.bf16.mxu1 %v7636_v51  ;;  %v6455_v51 = vrot.slane %v6439_v31, 9  ;;  %v6442_v31 = vld [vmem:[%s7875_s14 + $0x6c] sm:$0xe]  ;;  %v4803_v3 = vrot.slane %v9043_v57, 5  ;;  %v4802_v7 = vrot.slane %v4800_v24, 4  ;;  %v4807_v10 = vrot.slane %v9022_v12, 5 }
 0x122   : > { %v9253_v33 = vsel %vm8274_vm5, %v6456_v53, %v4793_v20  ;;  %v4795_v48 = vrot.slane %v4793_v20, 4  ;;  %v9989_v53 = vld [vmem:[#allocation2_spill] sm:$0xff]  ;;  %v7641_v20 = vld [vmem:[%s7875_s14 + $0x30] sm:$0xff]   ;;  %v7642_v12 = vld [vmem:[%s9947_s1 + $0x208] sm:$0xff]   ;;  %v4821_v57 = vrot.slane %v9087_v32, 5  ;;  %v4830_v45 = vrot.slane %v4828_v11, 4 }
 0x123   : > { %v9247_v5 = vsel %vm8274_vm5, %v6455_v51, %v4786_v27  ;;  %v9262_v51 = vsel %vm8274_vm5, %v6457_v46, %v4800_v24  ;;  %v9282_v46 = vsel %vm8274_vm5, %v4802_v7, %v4803_v3  ;;  %v7647_v24 = vld [vmem:[%s9951_s5 + $0x10] sm:$0xff]   ;;  %v4817_v3 = vrot.slane %v9079_v16, 5 }
 0x124   : > { %9988 = vst [vmem:[#allocation6_spill] sm:$0xff] %v9262_v51  ;;  %9990 = vst [vmem:[#allocation2_spill] sm:$0xff] %v9282_v46  ;;  %v9315_v16 = vld [vmem:[%s9947_s1 + $0x210] sm:$0xff]   ;;  %v4823_v32 = vrot.slane %v4821_v57, 4  ;;  %v4856_v46 = vrot.slane %v9389_v13, 5  ;;  %v4859_v51 = vrot.slane %v9392_v0, 5  ;;  %v10016_v42 = vcombine.low %v9225_v38, %v9238_v2 }
 0x125   : > { %7112 = vmatmul.mubr.bf16.gmra.mrb[28].mxu0 %v7633_v9  ;;  %v4788_v9 = vrot.slane %v4786_v27, 4  ;;  %v6443_v27 = vld [vmem:[%s7875_s14 + $0x78] sm:$0xe]  ;;  %v7677_v38 = vld [vmem:[%s9116_s15 + $0x48] sm:$0xff]  }
 0x126   : > { %7131 = vmatprep.mubr.bf16.mxu0 %v8989_v22  ;;  %v6458_v22 = vrot.slane %v6442_v31, 9  ;;  %v6459_v61 = vrot.slane %v6443_v27, 9  ;;  %v9293_v31 = vld [vmem:[%s7875_s14 + $0x98] sm:$0x1] }
 0x127   : > { %v9258_v41 = vsel %vm8274_vm5, %v4788_v9, %v4789_v47  ;;  %v4810_v47 = vrot.slane %v9073_v58, 5  ;;  %v6444_v9 = vld [vmem:[%s7875_s14 + $0x84] sm:$0xe]  ;;  %v9992_v27 = vld [vmem:[#allocation5_spill] sm:$0xff] }
 0x128   : > { %6940 = vmatmul.mubr.bf16.vlgmr.msra.gmra.mrb[0].mxu1 %v7637_v30  ;;  %v9271_v30 = vsel %vm8274_vm5, %v4795_v48, %v4796_v37  ;;  %v9286_v58 = vsel %vm8274_vm5, %v6458_v22, %v4807_v10  ;;  %v4809_v37 = vrot.slane %v4807_v10, 4  ;;  %v6460_v7 = vrot.slane %v6444_v9, 9  ;;  %v9301_v22 = vld [vmem:[%s7875_s14 + $0xa0] sm:$0xf]  ;;  %v9994_v48 = vld [vmem:[#allocation4_spill] sm:$0xff] }
 0x129   : > { %7212 = vmatpush3.bf16.msra.mxu1 %v9989_v53  ;;  %6943 = vmatprep.mubr.bf16.mxu1 %v7640_v56  ;;  %9991 = vst [vmem:[#allocation7_spill] sm:$0xff] %v9286_v58  ;;  %v4814_v53 = vrot.slane %v9992_v27, 5  ;;  %v7644_v56 = vld [vmem:[%s7875_s14 + $0x3c] sm:$0xff]   ;;  %v9318_v9 = vld [vmem:[%s7875_s14 + $0xa4] sm:$0x1]  ;;  %v6461_v27 = vrot.slane %v6445_v34, 9 }
 0x12a   : > { %7213 = vmatprep.subr.bf16.mxu1 %v7643_v15  ;;  %v9305_v10 = vsel %vm8274_vm5, %v4809_v37, %v4810_v47  ;;  %v9333_v50 = vsel %vm8274_vm5, %v6460_v7, %v4821_v57  ;;  %v9338_v34 = vld [vmem:[%s7875_s14 + $0xac] sm:$0xf]  ;;  %v4835_v28 = vrot.slane %v9301_v22, 5 }
 0x12b   : > { %9993 = vst [vmem:[#allocation5_spill] sm:$0xff] %v9305_v10  ;;  %v9324_v47 = vsel %vm8274_vm5, %v6459_v61, %v4814_v53  ;;  %v4816_v37 = vrot.slane %v4814_v53, 4  ;;  %v4831_v61 = vrot.slane %v9293_v31, 5  ;;  %v6446_v53 = vld [vmem:[%s7875_s14 + $0x9c] sm:$0xe]  ;;  %v9349_v7 = vsel %vm8274_vm5, %v6461_v27, %v4828_v11 }
 0x12c   : > { %9995 = vst [vmem:[#allocation4_spill] sm:$0xff] %v9324_v47  ;;  %9999 = vst [vmem:[#allocation9_spill] sm:$0xff] %v9349_v7  ;;  %v6462_v57 = vrot.slane %v6446_v53, 9  ;;  %v9373_v27 = vld [vmem:[%s9947_s1 + $0x218] sm:$0xff]   ;;  %v7645_v53 = vld [vmem:[%s7875_s14 + $0x48] sm:$0xff]   ;;  %v4842_v55 = vrot.slane %v9338_v34, 5 }
 0x12d   : > { %7132 = vmatmul.mubr.bf16.vlgmr.msra.gmra.mrb[0].mxu0 %v9994_v48  ;;  %7214 = vmatpush3.bf16.msra.mxu1 %v7643_v15  ;;  %v9996_v48 = vld [vmem:[#allocation3_spill] sm:$0xff]  ;;  %v7651_v15 = vld [vmem:[%s9951_s5 + $0x18] sm:$0xff]   ;;  %v9366_v11 = vsel %vm8274_vm5, %v4830_v45, %v4831_v61  ;;  %v6448_v61 = vld [vmem:[%s7875_s14 + $0xb4] sm:$0xe] }
 0x12e   : > { %7164 = vmatpush3.bf16.msra.mxu0 %v9996_v48  ;;  %7135 = vmatprep.mubr.bf16.mxu0 %v9139_v39  ;;  %9997 = vst [vmem:[#allocation3_spill] sm:$0xff] %v9333_v50  ;;  %v9341_v39 = vld [vmem:[%s7875_s14 + $0xb0] sm:$0x1]  ;;  %v9345_v48 = vsel %vm8274_vm5, %v4816_v37, %v4817_v3  ;;  %v9362_v3 = vsel %vm8274_vm5, %v4823_v32, %v4824_v26  ;;  %10001 = vst [vmem:[#allocation11_spill] sm:$0xff] %v9366_v11  ;;  %v6447_v37 = vld [vmem:[%s7875_s14 + $0xa8] sm:$0xe] }
 0x12f   : > { %7165 = vmatprep.subr.bf16.mxu0 %v7642_v12  ;;  %7215 = vmatprep.subr.bf16.mxu1 %v7647_v24  ;;  %9998 = vst [vmem:[#allocation8_spill] sm:$0xff] %v9345_v48  ;;  %10000 = vst [vmem:[#allocation10_spill] sm:$0xff] %v9362_v3  ;;  %v7655_v26 = vld [vmem:[%s9951_s5 + $0x20] sm:$0xff]   ;;  %v6463_v32 = vrot.slane %v6447_v37, 9  ;;  %v4845_v45 = vrot.slane %v9341_v39, 5  ;;  %v6464_v11 = vrot.slane %v6448_v61, 9 }
 0x130   : > { %6944 = vmatmul.mubr.bf16.gmra.mrb[4].mxu1 %v7641_v20  ;;  %v4838_v20 = vrot.slane %v9318_v9, 5  ;;  %v4849_v37 = vrot.slane %v9353_v23, 5  ;;  %v4852_v3 = vrot.slane %v9356_v44, 5  ;;  %v6449_v50 = vld [vmem:[%s7875_s14 + $0xc0] sm:$0xe]  ;;  %v4844_v47 = vrot.slane %v4842_v55, 4 }
 0x131   : > { %6947 = vmatprep.mubr.bf16.mxu1 %v7644_v56  ;;  %7216 = vmatpush3.bf16.msra.mxu1 %v7647_v24  ;;  %v9384_v56 = vsel %vm8274_vm5, %v6462_v57, %v4835_v28  ;;  %v4837_v24 = vrot.slane %v4835_v28, 4  ;;  %v4219_v28 = vor.u32 %v9180_v18, %v9178_v62  ;;  %v9403_v57 = vld [vmem:[%s7875_s14 + $0xd4] sm:$0x1]  ;;  %v9413_v61 = vld [vmem:[%s7875_s14 + $0x9c] sm:$0xf]  ;;  %v9419_v18 = vsel %vm8274_vm5, %v6463_v32, %v4842_v55  ;;  %v10022_v2 = vld [vmem:[#allocation7_spill] sm:$0xff] }
 0x132   : > { %10002 = vst [vmem:[#allocation12_spill] sm:$0xff] %v9384_v56  ;;  %7166 = vmatpush3.bf16.msra.mxu0 %v7642_v12  ;;  %7217 = vmatprep.subr.bf16.mxu1 %v7651_v15  ;;  %v9400_v12 = vld [vmem:[%s7875_s14 + $0xd0] sm:$0xf]  ;;  %v6465_v10 = vrot.slane %v6449_v50, 9  ;;  %v4851_v58 = vrot.slane %v4849_v37, 4  ;;  %v9437_v50 = vsel %vm8274_vm5, %v4844_v47, %v4845_v45  ;;  %v4858_v32 = vrot.slane %v4856_v46, 4 }
 0x133   : > { %7167 = vmatprep.subr.bf16.mxu0 %v9315_v16  ;;  %v9407_v7 = vsel %vm8274_vm5, %v4837_v24, %v4838_v20  ;;  %v7648_v20 = vld [vmem:[%s7875_s14 + $0x54] sm:$0xff]   ;;  %v9425_v24 = vsel %vm8274_vm5, %v6464_v11, %v4849_v37  ;;  %v6450_v48 = vld [vmem:[%s7875_s14 + $0xcc] sm:$0xe]  ;;  %v4866_v11 = vrot.slane %v9403_v57, 5  ;;  %v10004_v45 = vshrl.u32 %v9126_v25, 16 }
 0x134   : > { %10003 = vst [vmem:[#allocation13_spill] sm:$0xff] %v9407_v7  ;;  %v6466_v55 = vrot.slane %v6450_v48, 9  ;;  %v9449_v47 = vsel %vm8274_vm5, %v4851_v58, %v4852_v3  ;;  %v9453_v48 = vsel %vm8274_vm5, %v6465_v10, %v4856_v46  ;;  %v10006_v58 = vshll.u32 %v9126_v25, 16 }
 0x135   : > { %7136 = vmatmul.mubr.bf16.gmra.mrb[4].mxu0 %v9151_v54  ;;  %7218 = vmatpush3.bf16.msra.mxu1 %v7651_v15  ;;  %v7659_v54 = vld [vmem:[%s9951_s5 + $0x28] sm:$0xff]   ;;  %v4863_v15 = vrot.slane %v9400_v12, 5  ;;  %v4229_v37 = vrot.slane %v10004_v45, 4  ;;  %v10007_v10 = vshll.u32 %v9158_v21, 16  ;;  %v9473_v7 = vsel %vm8274_vm5, %v4858_v32, %v4859_v51 }
 0x136   : > { %7139 = vmatprep.mubr.bf16.mxu0 %v9169_v40  ;;  %7168 = vmatpush3.bf16.msra.mxu0 %v9315_v16  ;;  %v7654_v40 = vld [vmem:[%s9947_s1 + $0x220] sm:$0xff]   ;;  %v4232_v3 = vrot.slane %v10006_v58, 5  ;;  %v6383_v45 = vld [vmem:[%s7875_s14 + $0xa8] sm:$0xf]  ;;  %v4254_v25 = vshll.u32 %v9413_v61, 16  ;;  %v10010_v51 = vor.u32 %v9175_v35, %v9167_v8  ;;  %v4220_v58 = vrot.slane %v4219_v28, 4 }
 0x137   : > { %7169 = vmatprep.subr.bf16.mxu0 %v9373_v27  ;;  %7219 = vmatprep.subr.bf16.mxu1 %v7655_v26  ;;  %v9461_v56 = vsel %vm8274_vm5, %v6466_v55, %v4863_v15  ;;  %v4865_v16 = vrot.slane %v4863_v15, 4  ;;  %v9467_v46 = vrot.slane %v10007_v10, 5  ;;  %v7663_v10 = vld [vmem:[%s9951_s5 + $0x30] sm:$0xff]   ;;  %v4260_v8 = vshll.u32 %v9301_v22, 16 }
 0x138   : > { %6948 = vmatmul.mubr.bf16.gmra.mrb[8].mxu1 %v7645_v53  ;;  %10005 = vst [vmem:[#allocation14_spill] sm:$0xff] %v9461_v56  ;;  %v4251_v53 = vshrl.u32 %v9413_v61, 16  ;;  %v4210_v32 = vrot.slane %v10010_v51, 4  ;;  %v7658_v61 = vld [vmem:[%s9947_s1 + $0x228] sm:$0xff]   ;;  %v4264_v35 = vshrl.u32 %v9301_v22, 16  ;;  %v4275_v28 = vshrl.u32 %v6383_v45, 16 }
 0x139   : > { %6951 = vmatprep.mubr.bf16.mxu1 %v7648_v20  ;;  %7220 = vmatpush3.bf16.msra.mxu1 %v7655_v26  ;;  %v10008_v20 = vshrl.u32 %v9158_v21, 16  ;;  %v9483_v15 = vsel %vm8274_vm5, %v4865_v16, %v4866_v11  ;;  %v7649_v16 = vld [vmem:[%s7875_s14 + $0x60] sm:$0xff]   ;;  %v4201_v51 = vsel %vm7900_vm2, %v9173_v4, %v9155_v29  ;;  %v4284_v11 = vshll.u32 %v9338_v34, 16  ;;  %v7667_v56 = vld [vmem:[%s9951_s5 + $0x38] sm:$0xff]  }
 0x13a   : > { %7170 = vmatpush3.bf16.msra.mxu0 %v9373_v27  ;;  %7221 = vmatprep.subr.bf16.mxu1 %v7659_v54  ;;  %10009 = vst [vmem:[#allocation15_spill] sm:$0xff] %v9483_v15  ;;  %v10011_v27 = vshll.u32 %v9111_v59, 16  ;;  %v4278_v59 = vshll.u32 %v6383_v45, 16  ;;  %v4288_v55 = vshrl.u32 %v9338_v34, 16  ;;  %v4233_v22 = vor.u32 %v4232_v3, %v4229_v37 }
 0x13b   : > { %v4242_v26 = vrot.slane %v10008_v20, 4  ;;  %7171 = vmatprep.subr.bf16.mxu0 %v7654_v40  ;;  %v7652_v20 = vld [vmem:[%s7875_s14 + $0x6c] sm:$0xff]   ;;  %v4256_v15 = vrot.slane %v4254_v25, 5  ;;  %v10012_v29 = vsel %vm7900_vm2, %v9153_v63, %v9107_v52  ;;  %v10013_v4 = vsel %vm7900_vm2, %v9105_v17, %v9075_v6 }
 0x13c   : > { %v4224_v21 = vrot.slane %v10011_v27, 5  ;;  %v4246_v27 = vshll.u32 %v9293_v31, 16  ;;  %v4215_v31 = vsel %vm7900_vm2, %v4210_v32, %v9178_v62  ;;  %v9533_v52 = vrot.slane %v4260_v8, 5 }
 0x13d   : > { %7140 = vmatmul.mubr.bf16.gmra.mrb[8].mxu0 %v9171_v60  ;;  %7222 = vmatpush3.bf16.msra.mxu1 %v7659_v54  ;;  %v4243_v45 = vor.u32 %v4242_v26, %v9467_v46  ;;  %v4253_v60 = vrot.slane %v4251_v53, 4  ;;  %v7662_v54 = vld [vmem:[%s9947_s1 + $0x230] sm:$0xff]   ;;  %v4266_v63 = vrot.slane %v4264_v35, 4  ;;  %v4277_v6 = vrot.slane %v4275_v28, 4  ;;  %v6389_v35 = vld [vmem:[%s7875_s14 + $0xc0] sm:$0xf] }
 0x13e   : > { %7143 = vmatprep.mubr.bf16.mxu0 %v9184_v14  ;;  %7172 = vmatpush3.bf16.msra.mxu0 %v7654_v40  ;;  %v6418_v14 = vcombine.low %v10013_v4, %v10012_v29  ;;  %v4225_v34 = vsel %vm7900_vm2, %v4220_v58, %v4224_v21  ;;  %v4280_v17 = vrot.slane %v4278_v59, 5  ;;  %v10014_v62 = vsel %vm7900_vm2, %v9165_v49, %v9082_v19  ;;  %v6386_v26 = vld [vmem:[%s7875_s14 + $0xb4] sm:$0xf]  ;;  %v7666_v19 = vld [vmem:[%s9947_s1 + $0x238] sm:$0xff]  }
 0x13f   : > { %7173 = vmatprep.subr.bf16.mxu0 %v7658_v61  ;;  %7223 = vmatprep.subr.bf16.mxu1 %v7663_v10  ;;  %v6419_v40 = vcombine.low %v10014_v62, %v4201_v51  ;;  %v4248_v37 = vrot.slane %v4246_v27, 5  ;;  %v9540_v3 = vrot.slane %v4284_v11, 5  ;;  %v4290_v53 = vrot.slane %v4288_v55, 4  ;;  %v7653_v49 = vld [vmem:[%s7875_s14 + $0x78] sm:$0xff]  }
 0x140   : > { %6952 = vmatmul.mubr.bf16.gmra.mrb[12].mxu1 %v7649_v16  ;;  %v4234_v25 = vrot.slane %v4233_v22, 4  ;;  %v4244_v32 = vrot.slane %v4243_v45, 4  ;;  %v4257_v58 = vor.u32 %v4256_v15, %v4253_v60  ;;  %v4270_v21 = vshll.u32 %v9318_v9, 16  ;;  %v7656_v15 = vld [vmem:[%s7875_s14 + $0x84] sm:$0xff]  }
 0x141   : > { %6955 = vmatprep.mubr.bf16.mxu1 %v7652_v20  ;;  %7224 = vmatpush3.bf16.msra.mxu1 %v7663_v10  ;;  %v6420_v16 = vcombine.low %v4215_v31, %v4225_v34  ;;  %v4267_v55 = vor.u32 %v4266_v63, %v9533_v52  ;;  %v4281_v11 = vor.u32 %v4280_v17, %v4277_v6  ;;  %v4294_v10 = vshll.u32 %v9341_v39, 16 }
 0x142   : > { %7174 = vmatpush3.bf16.msra.mxu0 %v7658_v61  ;;  %7225 = vmatprep.subr.bf16.mxu1 %v7667_v56  ;;  %v4299_v8 = vshrl.u32 %v6386_v26, 16  ;;  %v4291_v9 = vor.u32 %v4290_v53, %v9540_v3  ;;  %v4302_v61 = vshll.u32 %v6386_v26, 16  ;;  %v4308_v28 = vshll.u32 %v9353_v23, 16 }
 0x143   : > { %7175 = vmatprep.subr.bf16.mxu0 %v7662_v54  ;;  %v4312_v59 = vshrl.u32 %v9353_v23, 16  ;;  %v4239_v20 = vsel %vm7900_vm2, %v4234_v25, %v9467_v46  ;;  %v4249_v39 = vsel %vm7900_vm2, %v4244_v32, %v4248_v37  ;;  %v4258_v51 = vrot.slane %v4257_v58, 4  ;;  %v7657_v37 = vld [vmem:[%s7875_s14 + $0x90] sm:$0xff]   ;;  %v7660_v32 = vld [vmem:[%s7875_s14 + $0x9c] sm:$0xff]  }
 0x144   : > { %v4272_v27 = vrot.slane %v4270_v21, 5  ;;  %v4323_v22 = vshrl.u32 %v6389_v35, 16  ;;  %v4326_v45 = vshll.u32 %v6389_v35, 16  ;;  %v4332_v60 = vshll.u32 %v9389_v13, 16 }
 0x145   : > { %7144 = vmatmul.mubr.bf16.gmra.mrb[12].mxu0 %v6418_v14  ;;  %7226 = vmatpush3.bf16.msra.mxu1 %v7667_v56  ;;  %v4336_v29 = vshrl.u32 %v9389_v13, 16  ;;  %v4268_v23 = vrot.slane %v4267_v55, 4  ;;  %v4282_v56 = vrot.slane %v4281_v11, 4  ;;  %v4296_v4 = vrot.slane %v4294_v10, 5 }
 0x146   : > { %7147 = vmatprep.mubr.bf16.mxu0 %v6419_v40  ;;  %7176 = vmatpush3.bf16.msra.mxu0 %v7662_v54  ;;  %v4301_v46 = vrot.slane %v4299_v8, 4  ;;  %v4292_v14 = vrot.slane %v4291_v9, 4  ;;  %v4304_v31 = vrot.slane %v4302_v61, 5  ;;  %v4310_v34 = vrot.slane %v4308_v28, 5  ;;  %v6392_v40 = vld [vmem:[%s7875_s14 + $0xcc] sm:$0xf] }
 0x147   : > { %7177 = vmatprep.subr.bf16.mxu0 %v7666_v19  ;;  %v4314_v54 = vrot.slane %v4312_v59, 4  ;;  %v6421_v63 = vcombine.low %v4239_v20, %v4249_v39  ;;  %v4325_v6 = vrot.slane %v4323_v22, 4  ;;  %v4328_v17 = vrot.slane %v4326_v45, 5  ;;  %v7661_v22 = vld [vmem:[%s7875_s14 + $0xa8] sm:$0xff]   ;;  %v7664_v45 = vld [vmem:[%s7875_s14 + $0xb4] sm:$0xff]  }
 0x148   : > { %6956 = vmatmul.mubr.bf16.gmra.mrb[16].mxu1 %v7653_v49  ;;  %v4334_v62 = vrot.slane %v4332_v60, 5  ;;  %v4338_v13 = vrot.slane %v4336_v29, 4  ;;  %v4263_v53 = vsel %vm7900_vm2, %v4258_v51, %v9533_v52  ;;  %v4273_v26 = vsel %vm7900_vm2, %v4268_v23, %v4272_v27 }
 0x149   : > { %6959 = vmatprep.mubr.bf16.mxu1 %v7656_v15  ;;  %v4287_v25 = vsel %vm7900_vm2, %v4282_v56, %v9540_v3  ;;  %v4297_v58 = vsel %vm7900_vm2, %v4292_v14, %v4296_v4  ;;  %v4305_v21 = vor.u32 %v4304_v31, %v4301_v46  ;;  %v4318_v49 = vshll.u32 %v9356_v44, 16  ;;  %v7748_v14 = vld [vmem:[%s7875_s14 + $0x1c] sm:$0xf] }
 0x14a   : > { %7178 = vmatpush3.bf16.msra.mxu0 %v7666_v19  ;;  %v4315_v19 = vor.u32 %v4314_v54, %v4310_v34  ;;  %v4347_v55 = vshrl.u32 %v6392_v40, 16  ;;  %v4350_v11 = vshll.u32 %v6392_v40, 16  ;;  %v4356_v52 = vshll.u32 %v9400_v12, 16 }
 0x14b   : > { %v4360_v10 = vshrl.u32 %v9400_v12, 16  ;;  %v4329_v8 = vor.u32 %v4328_v17, %v4325_v6  ;;  %v4339_v35 = vor.u32 %v4338_v13, %v4334_v62  ;;  %v4342_v3 = vshll.u32 %v9392_v0, 16 }
 0x14c   : > { %v6423_v15 = vcombine.low %v4287_v25, %v4297_v58  ;;  %v4306_v9 = vrot.slane %v4305_v21, 4  ;;  %v4316_v61 = vrot.slane %v4315_v19, 4  ;;  %v4320_v44 = vrot.slane %v4318_v49, 5  ;;  %v7750_v58 = vld [vmem:[%s7875_s14 + $0x28] sm:$0xf] }
 0x14d   : > { %7148 = vmatmul.mubr.bf16.gmra.mrb[16].mxu0 %v6420_v16  ;;  %v6422_v16 = vcombine.low %v4263_v53, %v4273_v26  ;;  %v4349_v28 = vrot.slane %v4347_v55, 4  ;;  %v4352_v59 = vrot.slane %v4350_v11, 5  ;;  %v4358_v20 = vrot.slane %v4356_v52, 5  ;;  %v7665_v53 = vld [vmem:[%s7875_s14 + $0xc0] sm:$0xff]  }
 0x14e   : > { %7151 = vmatprep.mubr.bf16.mxu0 %v6421_v63  ;;  %v4362_v39 = vrot.slane %v4360_v10, 4  ;;  %v4330_v51 = vrot.slane %v4329_v8, 4  ;;  %v4340_v12 = vrot.slane %v4339_v35, 4  ;;  %v4344_v27 = vrot.slane %v4342_v3, 5  ;;  %v7668_v26 = vld [vmem:[%s9116_s15] sm:$0xff]   ;;  %v7669_v3 = vld [vmem:[%s9116_s15 + $0x8] sm:$0xff]  }
 0x14f   : > { %v4311_v0 = vsel %vm7900_vm2, %v4306_v9, %v4310_v34  ;;  %v4321_v60 = vsel %vm7900_vm2, %v4316_v61, %v4320_v44  ;;  %v4353_v29 = vor.u32 %v4352_v59, %v4349_v28  ;;  %v4366_v56 = vshll.u32 %v9403_v57, 16  ;;  %v6435_v34 = vld [vmem:[%s7875_s14 + $0x18] sm:$0xe]  ;;  %v6436_v55 = vld [vmem:[%s7875_s14 + $0x24] sm:$0xe] }
 0x150   : > { %6960 = vmatmul.mubr.bf16.gmra.mrb[20].mxu1 %v7657_v37  ;;  %v4363_v23 = vor.u32 %v4362_v39, %v4358_v20  ;;  %v4335_v4 = vsel %vm7900_vm2, %v4330_v51, %v4334_v62  ;;  %v4345_v46 = vsel %vm7900_vm2, %v4340_v12, %v4344_v27  ;;  %v4758_v31 = vrot.slane %v7748_v14, 5  ;;  %v7749_v62 = vld [vmem:[%s7875_s14 + $0x20] sm:$0x1]  ;;  %v7671_v44 = vld [vmem:[%s9116_s15 + $0x18] sm:$0xff]   ;;  %v7674_v39 = vld [vmem:[%s9116_s15 + $0x30] sm:$0xff]  }
 0x151   : > { %6963 = vmatprep.mubr.bf16.mxu1 %v7660_v32  ;;  %v6424_v54 = vcombine.low %v4311_v0, %v4321_v60  ;;  %v6425_v63 = vcombine.low %v4335_v4, %v4345_v46  ;;  %v4354_v6 = vrot.slane %v4353_v29, 4  ;;  %v4368_v57 = vrot.slane %v4366_v56, 5  ;;  %v7672_v28 = vld [vmem:[%s9116_s15 + $0x20] sm:$0xff]   ;;  %v10025_v60 = vld [vmem:[#allocation4_spill] sm:$0xff]  ;;  %v10031_v14 = vld [vmem:[#allocation9_spill] sm:$0xff] }
 0x152   : > { %v4364_v17 = vrot.slane %v4363_v23, 4  ;;  %v6451_v13 = vrot.slane %v6435_v34, 9  ;;  %v4760_v40 = vrot.slane %v4758_v31, 4  ;;  %v4761_v37 = vrot.slane %v7749_v62, 5  ;;  %v7676_v12 = vld [vmem:[%s9116_s15 + $0x40] sm:$0xff]   ;;  %v10026_v29 = vld [vmem:[#allocation8_spill] sm:$0xff] }
 0x153   : > { %v4359_v25 = vsel %vm7900_vm2, %v4354_v6, %v4358_v20  ;;  %v4765_v21 = vrot.slane %v7750_v58, 5  ;;  %v6452_v10 = vrot.slane %v6436_v55, 9  ;;  %v4768_v35 = vrot.slane %v7751_v36, 5  ;;  %v7673_v20 = vld [vmem:[%s9116_s15 + $0x28] sm:$0xff]   ;;  %v10019_v27 = vld [vmem:[#allocation6_spill] sm:$0xff]  ;;  %v10035_v6 = vld [vmem:[#allocation13_spill] sm:$0xff] }
 0x154   : > { %v4369_v32 = vsel %vm7900_vm2, %v4364_v17, %v4368_v57  ;;  %v4759_v19 = vsel %vm8274_vm5, %v6451_v13, %v4758_v31  ;;  %v4762_v49 = vsel %vm8274_vm5, %v4760_v40, %v4761_v37  ;;  %v10015_v59 = vcombine.low %v9205_v43, %v9221_v1  ;;  %v7675_v43 = vld [vmem:[%s9116_s15 + $0x38] sm:$0xff]   ;;  %v10029_v56 = vld [vmem:[#allocation10_spill] sm:$0xff]  ;;  %v10032_v31 = vld [vmem:[#allocation11_spill] sm:$0xff] }
 0x155   : > { %7152 = vmatmul.mubr.bf16.gmra.mrb[20].mxu0 %v6422_v16  ;;  %v6426_v11 = vcombine.low %v4359_v25, %v4369_v32  ;;  %v6483_v52 = vcombine.low %v4759_v19, %v4762_v49  ;;  %v4767_v8 = vrot.slane %v4765_v21, 4  ;;  %v7670_v16 = vld [vmem:[%s9116_s15 + $0x10] sm:$0xff]   ;;  %v10017_v51 = vcombine.low %v9247_v5, %v9258_v41  ;;  %v10023_v5 = vld [vmem:[#allocation5_spill] sm:$0xff]  ;;  %v7680_v46 = vld [vmem:[%s9116_s15 + $0x60] sm:$0xff]  }
 0x156   : > { %7155 = vmatprep.mubr.bf16.mxu0 %v6423_v15  ;;  %v4766_v15 = vsel %vm8274_vm5, %v6452_v10, %v4765_v21  ;;  %v10018_v1 = vcombine.low %v9253_v33, %v9271_v30  ;;  %v10024_v41 = vcombine.low %v10022_v2, %v10023_v5  ;;  %v10027_v23 = vcombine.low %v10025_v60, %v10026_v29  ;;  %v7679_v33 = vld [vmem:[%s9116_s15 + $0x58] sm:$0xff]   ;;  %v10028_v30 = vld [vmem:[#allocation3_spill] sm:$0xff]  ;;  %v7682_v57 = vld [vmem:[%s9116_s15 + $0x70] sm:$0xff]  }
 0x157   : > { %v4769_v9 = vsel %vm8274_vm5, %v4767_v8, %v4768_v35  ;;  %v10030_v4 = vcombine.low %v10028_v30, %v10029_v56  ;;  %v10033_v34 = vcombine.low %v10031_v14, %v10032_v31  ;;  %v10037_v13 = vcombine.low %v9419_v18, %v9437_v50  ;;  %v7683_v40 = vld [vmem:[%s9116_s15 + $0x78] sm:$0xff]  }
 0x158   : > { %6964 = vmatmul.mubr.bf16.gmra.mrb[24].mxu1 %v7661_v22  ;;  %v6484_v61 = vcombine.low %v4766_v15, %v4769_v9  ;;  %v10020_v22 = vld [vmem:[#allocation2_spill] sm:$0xff]  ;;  %v10038_v62 = vcombine.low %v9425_v24, %v9449_v47  ;;  %v10039_v37 = vcombine.low %v9453_v48, %v9473_v7 }
 0x159   : > { %6967 = vmatprep.mubr.bf16.mxu1 %v7664_v45  ;;  %v10021_v0 = vcombine.low %v10019_v27, %v10020_v22  ;;  %v7678_v45 = vld [vmem:[%s9116_s15 + $0x50] sm:$0xff]   ;;  %v9726_v27 = vld [vmem:[%s9952_s6] ss:$0 sm:$0xff] }
 0x15d   : > { %7156 = vmatmul.mubr.bf16.gmra.mrb[24].mxu0 %v6424_v54  ;;  %v7681_v54 = vld [vmem:[%s9116_s15 + $0x68] sm:$0xff]  }
 0x15e   : > { %7159 = vmatprep.mubr.bf16.mxu0 %v6425_v63  ;;  %v10034_v63 = vld [vmem:[#allocation12_spill] sm:$0xff] }
 0x15f   : > { %v10036_v17 = vcombine.low %v10034_v63, %v10035_v6 }
 0x160   : > { %6968 = vmatmul.mubr.bf16.gmra.mrb[28].mxu1 %v7665_v53  ;;  %v10040_v53 = vld [vmem:[#allocation14_spill] sm:$0xff] }
 0x161   : > { %7227 = vmatprep.mubr.bf16.mxu1 %v7668_v26  ;;  %v10041_v26 = vld [vmem:[#allocation15_spill] sm:$0xff] }
 0x162   : > { %v10042_v25 = vcombine.low %v10040_v53, %v10041_v26 }
 0x165   : > { %7160 = vmatmul.mubr.bf16.gmra.mrb[28].mxu0 %v6426_v11 }
 0x166   : > { %7179 = vmatprep.mubr.bf16.mxu0 %v6483_v52 }
 0x168   : > { %7228 = vmatmul.mubr.bf16.vlgmr.msra.gmra.mrb[32].mxu1 %v7669_v3 }
 0x169   : > { %7231 = vmatprep.mubr.bf16.mxu1 %v7670_v16 }
 0x16d   : > { %7180 = vmatmul.mubr.bf16.vlgmr.msra.gmra.mrb[0].mxu0 %v6484_v61 }
 0x16e   : > { %7183 = vmatprep.mubr.bf16.mxu0 %v10015_v59 }
 0x170   : > { %7232 = vmatmul.mubr.bf16.gmra.mrb[36].mxu1 %v7671_v44 }
 0x171   : > { %7235 = vmatprep.mubr.bf16.mxu1 %v7672_v28 }
 0x175   : > { %7184 = vmatmul.mubr.bf16.gmra.mrb[4].mxu0 %v10016_v42 }
 0x176   : > { %7187 = vmatprep.mubr.bf16.mxu0 %v10017_v51 }
 0x178   : > { %7236 = vmatmul.mubr.bf16.gmra.mrb[40].mxu1 %v7673_v20 }
 0x179   : > { %7239 = vmatprep.mubr.bf16.mxu1 %v7674_v39 }
 0x17d   : > { %7188 = vmatmul.mubr.bf16.gmra.mrb[8].mxu0 %v10018_v1 }
 0x17e   : > { %7191 = vmatprep.mubr.bf16.mxu0 %v10021_v0 }
 0x180   : > { %7240 = vmatmul.mubr.bf16.gmra.mrb[44].mxu1 %v7675_v43 }
 0x181   : > { %7243 = vmatprep.mubr.bf16.mxu1 %v7676_v12 }
 0x185   : > { %7192 = vmatmul.mubr.bf16.gmra.mrb[12].mxu0 %v10024_v41  ;;  %v9732_v41 = vld [vmem:[%s9948_s2] ss:$0 sm:$0xff] }
 0x186   : > { %7195 = vmatprep.mubr.bf16.mxu0 %v10027_v23 }
 0x188   : > { %7244 = vmatmul.mubr.bf16.gmra.mrb[48].mxu1 %v7677_v38 }
 0x189   : > { %7247 = vmatprep.mubr.bf16.mxu1 %v7678_v45  ;;  %v9737_v45 = vld [vmem:[%s9953_s7] ss:$0 sm:$0xff] }
 0x18d   : > { %7196 = vmatmul.mubr.bf16.gmra.mrb[16].mxu0 %v10030_v4 }
 0x18e   : > { %7199 = vmatprep.mubr.bf16.mxu0 %v10033_v34 }
 0x190   : > { %7248 = vmatmul.mubr.bf16.gmra.mrb[52].mxu1 %v7679_v33  ;;  %v9743_v33 = vld [vmem:[%s9949_s3] ss:$0 sm:$0xff] }
 0x191   : > { %7251 = vmatprep.mubr.bf16.mxu1 %v7680_v46 }
 0x195   : > { %7200 = vmatmul.mubr.bf16.gmra.mrb[20].mxu0 %v10036_v17 }
 0x196   : > { %7203 = vmatprep.mubr.bf16.mxu0 %v10037_v13 }
 0x198   : > { %7252 = vmatmul.mubr.bf16.gmra.mrb[56].mxu1 %v7681_v54 }
 0x199   : > { %7255 = vmatprep.mubr.bf16.mxu1 %v7682_v57 }
 0x19d   : > { %7204 = vmatmul.mubr.bf16.gmra.mrb[24].mxu0 %v10038_v62 }
 0x19e   : > { %7207 = vmatprep.mubr.bf16.mxu0 %v10039_v37 }
 0x1a0   : > { %7256 = vmatmul.mubr.bf16.gmra.mrb[60].mxu1 %v7683_v40 }
 0x1a5   : > { %7208 = vmatmul.mubr.bf16.gmra.mrb[28].mxu0 %v10042_v25 }
 0x1fb   : > { %v6941_v32 = vpop.f32.mrb[0].mxu1 }
 0x1fc   : > { %v2137_v58 = vpop.f32.mrb[1].mxu1 }
 0x1fd   : > { %v6942_v18 = vpop.f32.mrb[2].mxu1 }
 0x1fe   : > { %v2140_v50 = vpop.f32.mrb[3].mxu1 }
 0x203   : > { %v9667_v21 = vpop.f32.mrb[4].mxu1 }
 0x204   : > { %v9669_v19 = vpop.f32.mrb[5].mxu1 }
 0x205   : > { %v9671_v49 = vpop.f32.mrb[6].mxu1 }
 0x206   : > { %v9673_v24 = vpop.f32.mrb[7].mxu1 }
 0x20b   : > { %v9675_v47 = vpop.f32.mrb[8].mxu1 }
 0x20c   : > { %v9677_v7 = vpop.f32.mrb[9].mxu1 }
 0x20d   : > { %v9679_v48 = vpop.f32.mrb[10].mxu1 }
 0x20e   : > { %v9681_v55 = vpop.f32.mrb[11].mxu1 }
 0x213   : > { %v9683_v11 = vpop.f32.mrb[12].mxu1 }
 0x214   : > { %v9685_v52 = vpop.f32.mrb[13].mxu1 }
 0x215   : > { %v9687_v10 = vpop.f32.mrb[14].mxu1 }
 0x216   : > { %v9689_v8 = vpop.f32.mrb[15].mxu1 }
 0x21b   : > { %v9691_v36 = vpop.f32.mrb[16].mxu1 }
 0x21c   : > { %v9693_v35 = vpop.f32.mrb[17].mxu1 }
 0x21d   : > { %v9695_v3 = vpop.f32.mrb[18].mxu1 }
 0x21e   : > { %v9697_v16 = vpop.f32.mrb[19].mxu1 }
 0x223   : > { %v9699_v15 = vpop.f32.mrb[20].mxu1 }
 0x224   : > { %v9701_v9 = vpop.f32.mrb[21].mxu1 }
 0x225   : > { %v9703_v61 = vpop.f32.mrb[22].mxu1 }
 0x226   : > { %v9705_v44 = vpop.f32.mrb[23].mxu1 }
 0x22b   : > { %v9707_v28 = vpop.f32.mrb[24].mxu1 }
 0x22c   : > { %v9709_v59 = vpop.f32.mrb[25].mxu1 }
 0x22d   : > { %v9711_v20 = vpop.f32.mrb[26].mxu1 }
 0x22e   : > { %v9713_v42 = vpop.f32.mrb[27].mxu1 }
 0x233   : > { %v9715_v39 = vpop.f32.mrb[28].mxu1 }
 0x234   : > { %v9717_v51 = vpop.f32.mrb[29].mxu1 }
 0x235   : > { %v9719_v43 = vpop.f32.mrb[30].mxu1 }
 0x236   : > { %v9721_v1 = vpop.f32.mrb[31].mxu1 }
 0x23b   : > { %v7229_v12 = vpop.f32.mrb[32].mxu1 }
 0x23c   : > { %v5494_v22 = vpop.f32.mrb[33].mxu1  ;;  %v5630_v2 = vmul.f32 %v7229_v12, %v9726_v27 }
 0x23d   : > { %v7230_v0 = vpop.f32.mrb[34].mxu1  ;;  %v5628_v60 = vmul.f32 %v9726_v27, %v5494_v22 }
 0x23e   : > { %v5497_v38 = vpop.f32.mrb[35].mxu1  ;;  %v5669_v46 = vadd.f32 %v9737_v45, %v5630_v2  ;;  %v5631_v31 = vmul.f32 %v7230_v0, %v9726_v27 }
 0x23f   : > { %v5667_v6 = vadd.f32 %v9737_v45, %v5628_v60  ;;  %v5629_v57 = vmul.f32 %v9726_v27, %v5497_v38 }
 0x240   : > { %v7181_v5 = vpop.f32.mrb[0].mxu0 }
 0x241   : > { %v7259_v29 = vadd.f32 %v7181_v5, %v6941_v32  ;;  %v5031_v23 = vpop.f32.mrb[1].mxu0  ;;  %v5668_v38 = vadd.f32 %v9737_v45, %v5629_v57 }
 0x242   : > { %v7260_v30 = vadd.f32 %v5031_v23, %v2137_v58  ;;  %v7182_v56 = vpop.f32.mrb[2].mxu0 }
 0x243   : > { %v5199_v4 = vmul.f32 %v7259_v29, %v9732_v41  ;;  %v7261_v14 = vadd.f32 %v7182_v56, %v6942_v18  ;;  %v5034_v34 = vpop.f32.mrb[3].mxu0  ;;  %v7233_v54 = vpop.f32.mrb[36].mxu1 }
 0x244   : > { %v5197_v63 = vmul.f32 %v7260_v30, %v9732_v41  ;;  %v7262_v17 = vadd.f32 %v5034_v34, %v2140_v50  ;;  %v5510_v13 = vpop.f32.mrb[37].mxu1  ;;  %v5634_v37 = vmul.f32 %v7233_v54, %v9726_v27  ;;  %v5670_v50 = vadd.f32 %v9737_v45, %v5631_v31 }
 0x245   : > { %v5238_v40 = vadd.f32 %v9743_v33, %v5199_v4  ;;  %v5200_v62 = vmul.f32 %v7261_v14, %v9732_v41  ;;  %v7234_v53 = vpop.f32.mrb[38].mxu1  ;;  %v5632_v12 = vmul.f32 %v9726_v27, %v5510_v13 }
 0x246   : > { %v5236_v26 = vadd.f32 %v9743_v33, %v5197_v63  ;;  %v5198_v25 = vmul.f32 %v7262_v17, %v9732_v41  ;;  %v5513_v32 = vpop.f32.mrb[39].mxu1  ;;  %v5673_v23 = vadd.f32 %v9737_v45, %v5634_v37  ;;  %v5635_v31 = vmul.f32 %v7234_v53, %v9726_v27 }
 0x247   : > { %v5701_v58 = vadd.f32 %v5669_v46, %v5238_v40  ;;  %v5239_v18 = vadd.f32 %v9743_v33, %v5200_v62  ;;  %v5671_v63 = vadd.f32 %v9737_v45, %v5632_v12  ;;  %v5633_v40 = vmul.f32 %v9726_v27, %v5513_v32 }
 0x248   : > { %v5699_v22 = vadd.f32 %v5667_v6, %v5236_v26  ;;  %v5237_v0 = vadd.f32 %v9743_v33, %v5198_v25  ;;  %v7185_v2 = vpop.f32.mrb[4].mxu0  ;;  %v5674_v32 = vadd.f32 %v9737_v45, %v5635_v31 }
 0x249   : > { %v5733_v5 = vmax.f32 %v5701_v58, 0.0  ;;  %v5702_v60 = vadd.f32 %v5670_v50, %v5239_v18  ;;  %v7263_v29 = vadd.f32 %v7185_v2, %v9667_v21  ;;  %v5047_v30 = vpop.f32.mrb[5].mxu0 }
 0x24a   : > { %v5731_v56 = vmax.f32 %v5699_v22, 0.0  ;;  %v5700_v4 = vadd.f32 %v5668_v38, %v5237_v0  ;;  %v7264_v46 = vadd.f32 %v5047_v30, %v9669_v19  ;;  %v7186_v14 = vpop.f32.mrb[6].mxu0  ;;  %v5672_v38 = vadd.f32 %v9737_v45, %v5633_v40 }
 0x24b   : > { %5765 = vst [vmem:[%s9763_s27 + $0x10] sm:$0xff] %v5733_v5  ;;  %v5734_v34 = vmax.f32 %v5702_v60, 0.0  ;;  %v5203_v54 = vmul.f32 %v7263_v29, %v9732_v41  ;;  %v7265_v21 = vadd.f32 %v7186_v14, %v9671_v49  ;;  %v5050_v6 = vpop.f32.mrb[7].mxu0  ;;  %v7237_v17 = vpop.f32.mrb[40].mxu1 }
 0x24c   : > { %5763 = vst [vmem:[%s9763_s27] sm:$0xff] %v5731_v56  ;;  %v5732_v57 = vmax.f32 %v5700_v4, 0.0  ;;  %v5201_v13 = vmul.f32 %v7264_v46, %v9732_v41  ;;  %v7266_v19 = vadd.f32 %v5050_v6, %v9673_v24  ;;  %v5526_v62 = vpop.f32.mrb[41].mxu1  ;;  %v5638_v26 = vmul.f32 %v7237_v17, %v9726_v27 }
 0x24d   : > { %5766 = vst [vmem:[%s9763_s27 + $0x18] sm:$0xff] %v5734_v34  ;;  %v5242_v37 = vadd.f32 %v9743_v33, %v5203_v54  ;;  %v5204_v53 = vmul.f32 %v7265_v21, %v9732_v41  ;;  %v7238_v25 = vpop.f32.mrb[42].mxu1  ;;  %v5636_v12 = vmul.f32 %v9726_v27, %v5526_v62 }
 0x24e   : > { %5764 = vst [vmem:[%s9763_s27 + $0x8] sm:$0xff] %v5732_v57  ;;  %v5240_v49 = vadd.f32 %v9743_v33, %v5201_v13  ;;  %v5202_v58 = vmul.f32 %v7266_v19, %v9732_v41  ;;  %v5529_v18 = vpop.f32.mrb[43].mxu1  ;;  %v5639_v31 = vmul.f32 %v7238_v25, %v9726_v27 }
 0x24f   : > { %v5705_v50 = vadd.f32 %v5673_v23, %v5242_v37  ;;  %v5243_v24 = vadd.f32 %v9743_v33, %v5204_v53  ;;  %v5677_v23 = vadd.f32 %v9737_v45, %v5638_v26  ;;  %v5637_v13 = vmul.f32 %v9726_v27, %v5529_v18 }
 0x250   : > { %v5703_v22 = vadd.f32 %v5671_v63, %v5240_v49  ;;  %v5241_v0 = vadd.f32 %v9743_v33, %v5202_v58  ;;  %v7189_v2 = vpop.f32.mrb[8].mxu0  ;;  %v5675_v63 = vadd.f32 %v9737_v45, %v5636_v12  ;;  %v5678_v58 = vadd.f32 %v9737_v45, %v5639_v31 }
 0x251   : > { %v5737_v5 = vmax.f32 %v5705_v50, 0.0  ;;  %v5706_v60 = vadd.f32 %v5674_v32, %v5243_v24  ;;  %v7267_v29 = vadd.f32 %v7189_v2, %v9675_v47  ;;  %v5063_v30 = vpop.f32.mrb[9].mxu0  ;;  %v5676_v32 = vadd.f32 %v9737_v45, %v5637_v13 }
 0x252   : > { %v5735_v56 = vmax.f32 %v5703_v22, 0.0  ;;  %v5704_v4 = vadd.f32 %v5672_v38, %v5241_v0  ;;  %v7268_v46 = vadd.f32 %v5063_v30, %v9677_v7  ;;  %v7190_v14 = vpop.f32.mrb[10].mxu0 }
 0x253   : > { %5769 = vst [vmem:[%s9763_s27 + $0x30] sm:$0xff] %v5737_v5  ;;  %v5738_v34 = vmax.f32 %v5706_v60, 0.0  ;;  %v5207_v54 = vmul.f32 %v7267_v29, %v9732_v41  ;;  %v7269_v47 = vadd.f32 %v7190_v14, %v9679_v48  ;;  %v5066_v21 = vpop.f32.mrb[11].mxu0  ;;  %v7241_v6 = vpop.f32.mrb[44].mxu1 }
 0x254   : > { %5767 = vst [vmem:[%s9763_s27 + $0x20] sm:$0xff] %v5735_v56  ;;  %v5736_v17 = vmax.f32 %v5704_v4, 0.0  ;;  %v5205_v57 = vmul.f32 %v7268_v46, %v9732_v41  ;;  %v7270_v7 = vadd.f32 %v5066_v21, %v9681_v55  ;;  %v5542_v19 = vpop.f32.mrb[45].mxu1  ;;  %v5642_v37 = vmul.f32 %v7241_v6, %v9726_v27 }
 0x255   : > { %5770 = vst [vmem:[%s9763_s27 + $0x38] sm:$0xff] %v5738_v34  ;;  %v5246_v40 = vadd.f32 %v9743_v33, %v5207_v54  ;;  %v5208_v62 = vmul.f32 %v7269_v47, %v9732_v41  ;;  %v7242_v53 = vpop.f32.mrb[46].mxu1  ;;  %v5640_v18 = vmul.f32 %v9726_v27, %v5542_v19 }
 0x256   : > { %5768 = vst [vmem:[%s9763_s27 + $0x28] sm:$0xff] %v5736_v17  ;;  %v5244_v48 = vadd.f32 %v9743_v33, %v5205_v57  ;;  %v5206_v26 = vmul.f32 %v7270_v7, %v9732_v41  ;;  %v5545_v25 = vpop.f32.mrb[47].mxu1  ;;  %v5681_v2 = vadd.f32 %v9737_v45, %v5642_v37  ;;  %v5643_v56 = vmul.f32 %v7242_v53, %v9726_v27 }
 0x257   : > { %v5709_v49 = vadd.f32 %v5677_v23, %v5246_v40  ;;  %v5247_v55 = vadd.f32 %v9743_v33, %v5208_v62  ;;  %v5679_v14 = vadd.f32 %v9737_v45, %v5640_v18  ;;  %v5641_v47 = vmul.f32 %v9726_v27, %v5545_v25 }
 0x258   : > { %v5707_v50 = vadd.f32 %v5675_v63, %v5244_v48  ;;  %v5245_v24 = vadd.f32 %v9743_v33, %v5206_v26  ;;  %v7193_v12 = vpop.f32.mrb[12].mxu0  ;;  %v5682_v62 = vadd.f32 %v9737_v45, %v5643_v56 }
 0x259   : > { %v5741_v22 = vmax.f32 %v5709_v49, 0.0  ;;  %v5710_v0 = vadd.f32 %v5678_v58, %v5247_v55  ;;  %v7271_v38 = vadd.f32 %v7193_v12, %v9683_v11  ;;  %v5079_v5 = vpop.f32.mrb[13].mxu0  ;;  %v5680_v26 = vadd.f32 %v9737_v45, %v5641_v47 }
 0x25a   : > { %v5739_v60 = vmax.f32 %v5707_v50, 0.0  ;;  %v5708_v29 = vadd.f32 %v5676_v32, %v5245_v24  ;;  %v7272_v23 = vadd.f32 %v5079_v5, %v9685_v52  ;;  %v7194_v30 = vpop.f32.mrb[14].mxu0 }
 0x25b   : > { %5773 = vst [vmem:[%s9763_s27 + $0x50] sm:$0xff] %v5741_v22  ;;  %v5742_v4 = vmax.f32 %v5710_v0, 0.0  ;;  %v5211_v46 = vmul.f32 %v7271_v38, %v9732_v41  ;;  %v7273_v11 = vadd.f32 %v7194_v30, %v9687_v10  ;;  %v5082_v31 = vpop.f32.mrb[15].mxu0  ;;  %v7245_v34 = vpop.f32.mrb[48].mxu1 }
 0x25c   : > { %5771 = vst [vmem:[%s9763_s27 + $0x40] sm:$0xff] %v5739_v60  ;;  %v5740_v54 = vmax.f32 %v5708_v29, 0.0  ;;  %v5209_v63 = vmul.f32 %v7272_v23, %v9732_v41  ;;  %v7274_v52 = vadd.f32 %v5082_v31, %v9689_v8  ;;  %v5558_v21 = vpop.f32.mrb[49].mxu1  ;;  %v5646_v57 = vmul.f32 %v7245_v34, %v9726_v27 }
 0x25d   : > { %5774 = vst [vmem:[%s9763_s27 + $0x58] sm:$0xff] %v5742_v4  ;;  %v5250_v6 = vadd.f32 %v9743_v33, %v5211_v46  ;;  %v5212_v17 = vmul.f32 %v7273_v11, %v9732_v41  ;;  %v7246_v7 = vpop.f32.mrb[50].mxu1  ;;  %v5644_v37 = vmul.f32 %v9726_v27, %v5558_v21 }
 0x25e   : > { %5772 = vst [vmem:[%s9763_s27 + $0x48] sm:$0xff] %v5740_v54  ;;  %v5248_v10 = vadd.f32 %v9743_v33, %v5209_v63  ;;  %v5210_v13 = vmul.f32 %v7274_v52, %v9732_v41  ;;  %v5561_v19 = vpop.f32.mrb[51].mxu1  ;;  %v5685_v18 = vadd.f32 %v9737_v45, %v5646_v57  ;;  %v5647_v0 = vmul.f32 %v7246_v7, %v9726_v27 }
 0x25f   : > { %v5713_v40 = vadd.f32 %v5681_v2, %v5250_v6  ;;  %v5251_v8 = vadd.f32 %v9743_v33, %v5212_v17  ;;  %v5683_v5 = vadd.f32 %v9737_v45, %v5644_v37  ;;  %v5645_v56 = vmul.f32 %v9726_v27, %v5561_v19 }
 0x260   : > { %v5711_v53 = vadd.f32 %v5679_v14, %v5248_v10  ;;  %v5249_v48 = vadd.f32 %v9743_v33, %v5210_v13  ;;  %v7197_v25 = vpop.f32.mrb[16].mxu0  ;;  %v5686_v52 = vadd.f32 %v9737_v45, %v5647_v0 }
 0x261   : > { %v5745_v49 = vmax.f32 %v5713_v40, 0.0  ;;  %v5714_v55 = vadd.f32 %v5682_v62, %v5251_v8  ;;  %v7275_v58 = vadd.f32 %v7197_v25, %v9691_v36  ;;  %v5095_v50 = vpop.f32.mrb[17].mxu0  ;;  %v5684_v17 = vadd.f32 %v9737_v45, %v5645_v56 }
 0x262   : > { %v5743_v24 = vmax.f32 %v5711_v53, 0.0  ;;  %v5712_v32 = vadd.f32 %v5680_v26, %v5249_v48  ;;  %v7276_v12 = vadd.f32 %v5095_v50, %v9693_v35  ;;  %v7198_v22 = vpop.f32.mrb[18].mxu0 }
 0x263   : > { %5777 = vst [vmem:[%s9763_s27 + $0x70] sm:$0xff] %v5745_v49  ;;  %v5746_v38 = vmax.f32 %v5714_v55, 0.0  ;;  %v5215_v2 = vmul.f32 %v7275_v58, %v9732_v41  ;;  %v7277_v36 = vadd.f32 %v7198_v22, %v9695_v3  ;;  %v5098_v60 = vpop.f32.mrb[19].mxu0  ;;  %v7249_v29 = vpop.f32.mrb[52].mxu1 }
 0x264   : > { %5775 = vst [vmem:[%s9763_s27 + $0x60] sm:$0xff] %v5743_v24  ;;  %v5744_v23 = vmax.f32 %v5712_v32, 0.0  ;;  %v5213_v30 = vmul.f32 %v7276_v12, %v9732_v41  ;;  %v7278_v35 = vadd.f32 %v5098_v60, %v9697_v16  ;;  %v5574_v4 = vpop.f32.mrb[53].mxu1  ;;  %v5650_v11 = vmul.f32 %v7249_v29, %v9726_v27 }
 0x265   : > { %5778 = vst [vmem:[%s9763_s27 + $0x78] sm:$0xff] %v5746_v38  ;;  %v5254_v46 = vadd.f32 %v9743_v33, %v5215_v2  ;;  %v5216_v14 = vmul.f32 %v7277_v36, %v9732_v41  ;;  %v7250_v31 = vpop.f32.mrb[54].mxu1  ;;  %v5648_v47 = vmul.f32 %v9726_v27, %v5574_v4 }
 0x266   : > { %5776 = vst [vmem:[%s9763_s27 + $0x68] sm:$0xff] %v5744_v23  ;;  %v5252_v3 = vadd.f32 %v9743_v33, %v5213_v30  ;;  %v5214_v34 = vmul.f32 %v7278_v35, %v9732_v41  ;;  %v5577_v54 = vpop.f32.mrb[55].mxu1  ;;  %v5689_v19 = vadd.f32 %v9737_v45, %v5650_v11  ;;  %v5651_v48 = vmul.f32 %v7250_v31, %v9726_v27 }
 0x267   : > { %v5717_v63 = vadd.f32 %v5685_v18, %v5254_v46  ;;  %v5255_v16 = vadd.f32 %v9743_v33, %v5216_v14  ;;  %v5687_v49 = vadd.f32 %v9737_v45, %v5648_v47  ;;  %v5649_v24 = vmul.f32 %v9726_v27, %v5577_v54 }
 0x268   : > { %v5715_v21 = vadd.f32 %v5683_v5, %v5252_v3  ;;  %v5253_v6 = vadd.f32 %v9743_v33, %v5214_v34  ;;  %v7201_v57 = vpop.f32.mrb[20].mxu0  ;;  %v5690_v60 = vadd.f32 %v9737_v45, %v5651_v48 }
 0x269   : > { %v5749_v7 = vmax.f32 %v5717_v63, 0.0  ;;  %v5718_v10 = vadd.f32 %v5686_v52, %v5255_v16  ;;  %v7279_v13 = vadd.f32 %v7201_v57, %v9699_v15  ;;  %v5111_v40 = vpop.f32.mrb[21].mxu0  ;;  %v5688_v35 = vadd.f32 %v9737_v45, %v5649_v24 }
 0x26a   : > { %v5747_v8 = vmax.f32 %v5715_v21, 0.0  ;;  %v5716_v62 = vadd.f32 %v5684_v17, %v5253_v6  ;;  %v7280_v37 = vadd.f32 %v5111_v40, %v9701_v9  ;;  %v7202_v53 = vpop.f32.mrb[22].mxu0 }
 0x26b   : > { %5781 = vst [vmem:[%s9763_s27 + $0x90] sm:$0xff] %v5749_v7  ;;  %v5750_v26 = vmax.f32 %v5718_v10, 0.0  ;;  %v5219_v25 = vmul.f32 %v7279_v13, %v9732_v41  ;;  %v7281_v15 = vadd.f32 %v7202_v53, %v9703_v61  ;;  %v5114_v55 = vpop.f32.mrb[23].mxu0  ;;  %v7253_v58 = vpop.f32.mrb[56].mxu1 }
 0x26c   : > { %5779 = vst [vmem:[%s9763_s27 + $0x80] sm:$0xff] %v5747_v8  ;;  %v5748_v18 = vmax.f32 %v5716_v62, 0.0  ;;  %v5217_v50 = vmul.f32 %v7280_v37, %v9732_v41  ;;  %v7282_v9 = vadd.f32 %v5114_v55, %v9705_v44  ;;  %v5590_v32 = vpop.f32.mrb[57].mxu1  ;;  %v5654_v0 = vmul.f32 %v7253_v58, %v9726_v27 }
 0x26d   : > { %5782 = vst [vmem:[%s9763_s27 + $0x98] sm:$0xff] %v5750_v26  ;;  %v5258_v12 = vadd.f32 %v9743_v33, %v5219_v25  ;;  %v5220_v22 = vmul.f32 %v7281_v15, %v9732_v41  ;;  %v7254_v38 = vpop.f32.mrb[58].mxu1  ;;  %v5652_v29 = vmul.f32 %v9726_v27, %v5590_v32 }
 0x26e   : > { %5780 = vst [vmem:[%s9763_s27 + $0x88] sm:$0xff] %v5748_v18  ;;  %v5256_v61 = vadd.f32 %v9743_v33, %v5217_v50  ;;  %v5218_v2 = vmul.f32 %v7282_v9, %v9732_v41  ;;  %v5593_v5 = vpop.f32.mrb[59].mxu1  ;;  %v5693_v11 = vadd.f32 %v9737_v45, %v5654_v0  ;;  %v5655_v16 = vmul.f32 %v7254_v38, %v9726_v27 }
 0x26f   : > { %v5721_v36 = vadd.f32 %v5689_v19, %v5258_v12  ;;  %v5259_v44 = vadd.f32 %v9743_v33, %v5220_v22  ;;  %v5691_v21 = vadd.f32 %v9737_v45, %v5652_v29  ;;  %v5653_v10 = vmul.f32 %v9726_v27, %v5593_v5 }
 0x270   : > { %v5719_v23 = vadd.f32 %v5687_v49, %v5256_v61  ;;  %v5257_v30 = vadd.f32 %v9743_v33, %v5218_v2  ;;  %v7205_v56 = vpop.f32.mrb[24].mxu0  ;;  %v5694_v26 = vadd.f32 %v9737_v45, %v5655_v16 }
 0x271   : > { %v5753_v4 = vmax.f32 %v5721_v36, 0.0  ;;  %v5722_v46 = vadd.f32 %v5690_v60, %v5259_v44  ;;  %v7283_v14 = vadd.f32 %v7205_v56, %v9707_v28  ;;  %v5127_v31 = vpop.f32.mrb[25].mxu0  ;;  %v5692_v55 = vadd.f32 %v9737_v45, %v5653_v10 }
 0x272   : > { %v5751_v3 = vmax.f32 %v5719_v23, 0.0  ;;  %v5720_v34 = vadd.f32 %v5688_v35, %v5257_v30  ;;  %v7284_v54 = vadd.f32 %v5127_v31, %v9709_v59  ;;  %v7206_v63 = vpop.f32.mrb[26].mxu0 }
 0x273   : > { %5785 = vst [vmem:[%s9763_s27 + $0xb0] sm:$0xff] %v5753_v4  ;;  %v5754_v52 = vmax.f32 %v5722_v46, 0.0  ;;  %v5223_v47 = vmul.f32 %v7283_v14, %v9732_v41  ;;  %v7285_v28 = vadd.f32 %v7206_v63, %v9711_v20  ;;  %v5130_v6 = vpop.f32.mrb[27].mxu0  ;;  %v7257_v17 = vpop.f32.mrb[60].mxu1 }
 0x274   : > { %5783 = vst [vmem:[%s9763_s27 + $0xa0] sm:$0xff] %v5751_v3  ;;  %v5752_v57 = vmax.f32 %v5720_v34, 0.0  ;;  %v5221_v7 = vmul.f32 %v7284_v54, %v9732_v41  ;;  %v7286_v59 = vadd.f32 %v5130_v6, %v9713_v42  ;;  %v5606_v13 = vpop.f32.mrb[61].mxu1  ;;  %v5658_v8 = vmul.f32 %v7257_v17, %v9726_v27 }
 0x275   : > { %5786 = vst [vmem:[%s9763_s27 + $0xb8] sm:$0xff] %v5754_v52  ;;  %v5262_v19 = vadd.f32 %v9743_v33, %v5223_v47  ;;  %v5224_v40 = vmul.f32 %v7285_v28, %v9732_v41  ;;  %v7258_v62 = vpop.f32.mrb[62].mxu1  ;;  %v5656_v25 = vmul.f32 %v9726_v27, %v5606_v13 }
 0x276   : > { %5784 = vst [vmem:[%s9763_s27 + $0xa8] sm:$0xff] %v5752_v57  ;;  %v5260_v20 = vadd.f32 %v9743_v33, %v5221_v7  ;;  %v5222_v37 = vmul.f32 %v7286_v59, %v9732_v41  ;;  %v5609_v53 = vpop.f32.mrb[63].mxu1  ;;  %v5697_v24 = vadd.f32 %v9737_v45, %v5658_v8  ;;  %v5659_v61 = vmul.f32 %v7258_v62, %v9726_v27 }
 0x277   : > { %v5725_v48 = vadd.f32 %v5693_v11, %v5262_v19  ;;  %v5263_v42 = vadd.f32 %v9743_v33, %v5224_v40  ;;  %v5695_v36 = vadd.f32 %v9737_v45, %v5656_v25 }
 0x278   : > { %v5723_v49 = vadd.f32 %v5691_v21, %v5260_v20  ;;  %v5261_v15 = vadd.f32 %v9743_v33, %v5222_v37  ;;  %v7209_v58 = vpop.f32.mrb[28].mxu0 }
 0x279   : > { %v5757_v18 = vmax.f32 %v5725_v48, 0.0  ;;  %v5726_v50 = vadd.f32 %v5694_v26, %v5263_v42  ;;  %v7287_v9 = vadd.f32 %v7209_v58, %v9715_v39  ;;  %v5143_v32 = vpop.f32.mrb[29].mxu0 }
 0x27a   : > { %v5755_v12 = vmax.f32 %v5723_v49, 0.0  ;;  %v5724_v22 = vadd.f32 %v5692_v55, %v5261_v15  ;;  %v7288_v0 = vadd.f32 %v5143_v32, %v9717_v51  ;;  %v7210_v38 = vpop.f32.mrb[30].mxu0  ;;  %v5657_v51 = vmul.f32 %v9726_v27, %v5609_v53 }
 0x27b   : > { %5789 = vst [vmem:[%s9763_s27 + $0xd0] sm:$0xff] %v5757_v18  ;;  %v5758_v2 = vmax.f32 %v5726_v50, 0.0  ;;  %v5227_v5 = vmul.f32 %v7287_v9, %v9732_v41  ;;  %v7289_v39 = vadd.f32 %v7210_v38, %v9719_v43  ;;  %v5146_v44 = vpop.f32.mrb[31].mxu0 }
 0x27c   : > { %5787 = vst [vmem:[%s9763_s27 + $0xc0] sm:$0xff] %v5755_v12  ;;  %v5756_v60 = vmax.f32 %v5724_v22, 0.0  ;;  %v5225_v29 = vmul.f32 %v7288_v0, %v9732_v41  ;;  %v7290_v23 = vadd.f32 %v5146_v44, %v9721_v1  ;;  %v5698_v1 = vadd.f32 %v9737_v45, %v5659_v61 }
 0x27d   : > { %5790 = vst [vmem:[%s9763_s27 + $0xd8] sm:$0xff] %v5758_v2  ;;  %v5266_v30 = vadd.f32 %v9743_v33, %v5227_v5  ;;  %v5228_v35 = vmul.f32 %v7289_v39, %v9732_v41  ;;  %v5696_v11 = vadd.f32 %v9737_v45, %v5657_v51 }
 0x27e   : > { %5788 = vst [vmem:[%s9763_s27 + $0xc8] sm:$0xff] %v5756_v60  ;;  %v5264_v56 = vadd.f32 %v9743_v33, %v5225_v29  ;;  %v5226_v43 = vmul.f32 %v7290_v23, %v9732_v41 }
 0x27f   : > { %v5729_v4 = vadd.f32 %v5697_v24, %v5266_v30  ;;  %v5267_v46 = vadd.f32 %v9743_v33, %v5228_v35 }
 0x280   : > { %v5727_v27 = vadd.f32 %v5695_v36, %v5264_v56  ;;  %v5265_v14 = vadd.f32 %v9743_v33, %v5226_v43 }
 0x281   : > { %v5761_v31 = vmax.f32 %v5729_v4, 0.0  ;;  %v5730_v3 = vadd.f32 %v5698_v1, %v5267_v46 }
 0x282   : > { %v5759_v34 = vmax.f32 %v5727_v27, 0.0  ;;  %v5728_v54 = vadd.f32 %v5696_v11, %v5265_v14 }
 0x283   : > { %5793 = vst [vmem:[%s9763_s27 + $0xf0] sm:$0xff] %v5761_v31  ;;  %v5762_v63 = vmax.f32 %v5730_v3, 0.0 }
 0x284   : > { %5791 = vst [vmem:[%s9763_s27 + $0xe0] sm:$0xff] %v5759_v34  ;;  %v5760_v16 = vmax.f32 %v5728_v54, 0.0 }
 0x285   : > { %5794 = vst [vmem:[%s9763_s27 + $0xf8] sm:$0xff] %v5762_v63 }
 0x286   : > { %5792 = vst [vmem:[%s9763_s27 + $0xe8] sm:$0xff] %v5760_v16 }
 0x287 PF: > { %s18_s29 = sadd.s32 1, %s7774_s29   ;;  %s10043_s27 = smov %s7770_s28 }
 0x288   : > { %p15_p5 = scmp.ge.s32.totalorder %s18_s29, 4   ;;  %s10044_s28 = smov %s10046_s30 }
 0x28a   :  { %17 = sbr.rel (!%p15_p5) target bundleno = 2 (0x2), region = 96 }

</bundles_post_ra>
